<compile_context>
chip_gen: v6e
topology: v6e:2x2x1
jax: 0.10.0
libtpu: 0.0.40
codegen_flags: <defaults>
</compile_context>

<pallas_src>
import functools

import jax
import jax.numpy as jnp
from jax.experimental import pallas as pl
from jax.experimental.pallas import tpu as pltpu

NEG_SLOPE = 0.01   # nn.LeakyReLU default
BN_EPS = 1e-5      # nn.BatchNorm1d default
KSIZE = 15


# ----------------------------- Pallas kernels ------------------------------ #
def _conv_bn_kernel(x_ref, w_ref, s_ref, o_ref, *, ntaps, act):
    # x_ref: (1, CKs, Min)  w_ref: (K', Cout, CKs)  s_ref: (Cout, 1)
    # o_ref: (1, Cout, L)
    L = o_ref.shape[2]
    acc = jnp.zeros((o_ref.shape[1], L), jnp.float32)
    for q in range(ntaps):                       # in-kernel im2col: K' shifted matmuls
        acc = acc + jnp.dot(w_ref[q], x_ref[0, :, pl.ds(q, L)],
                            preferred_element_type=jnp.float32)
    acc = acc + s_ref[...]                       # folded conv-bias + BatchNorm
    if act:
        acc = jnp.where(acc >= 0, acc, NEG_SLOPE * acc)
    o_ref[0] = acc.astype(o_ref.dtype)


def _conv_bn_res_kernel(x_ref, w_ref, s_ref, r_ref, o_ref, *, ntaps, act):
    # Same as above plus residual add before the activation.
    L = o_ref.shape[2]
    acc = jnp.zeros((o_ref.shape[1], L), jnp.float32)
    for q in range(ntaps):
        acc = acc + jnp.dot(w_ref[q], x_ref[0, :, pl.ds(q, L)],
                            preferred_element_type=jnp.float32)
    acc = acc + s_ref[...]
    acc = acc + r_ref[0].astype(jnp.float32)
    if act:
        acc = jnp.where(acc >= 0, acc, NEG_SLOPE * acc)
    o_ref[0] = acc.astype(o_ref.dtype)


def _dual_conv_bn_kernel(x_ref, w_ref, s_ref, h_ref, d_ref, *, ntaps, split):
    # Fused conv1(+BN+LeakyReLU) and downsample-conv(+BN); both read the same
    # input block.  Rows [:split] -> conv1, rows [split:] -> downsample.
    L = h_ref.shape[2]
    ctot = w_ref.shape[1]
    acc = jnp.zeros((ctot, L), jnp.float32)
    for q in range(ntaps):
        acc = acc + jnp.dot(w_ref[q], x_ref[0, :, pl.ds(q, L)],
                            preferred_element_type=jnp.float32)
    acc = acc + s_ref[...]
    h = acc[:split]
    h_ref[0] = jnp.where(h >= 0, h, NEG_SLOPE * h).astype(h_ref.dtype)
    d_ref[0] = acc[split:].astype(d_ref.dtype)


# ----------------------- wrapper-side glue (no expansion) ------------------- #
def _prep_input(x, stride, pad, ntaps):
    """Zero-pad the time axis and 'destride': (B, Cin, T) -> (B, Cin*stride, L+K'-1).

    Pure pad + contiguous reshape (+ a tiny transpose of the last two axes for
    strided convs); element count is unchanged — no im2col blow-up in HBM."""
    B, Cin, T = x.shape
    L = (T + 2 * pad - KSIZE) // stride + 1
    t_resh = (L + ntaps - 1) * stride            # multiple of stride, covers all taps
    right = t_resh - pad - T
    xp = x
    if pad > 0 or right > 0:
        xp = jnp.pad(x, ((0, 0), (0, 0), (pad, max(right, 0))))
    xp = xp[:, :, :t_resh]                       # crop if the conv ignores a tail
    if stride > 1:
        xp = xp.reshape(B, Cin, t_resh // stride, stride)
        xp = jnp.transpose(xp, (0, 1, 3, 2)).reshape(
            B, Cin * stride, t_resh // stride)
    return xp.astype(jnp.bfloat16), L


def conv_bn_act(x, wr, shift, *, stride, pad, act, residual=None):
    """x: (B, Cin, T) NCW bf16.  Returns (B, Cout, L) NCW bf16."""
    B = x.shape[0]
    ntaps, cout, cks = wr.shape
    xr, L = _prep_input(x, stride, pad, ntaps)
    m_in = xr.shape[2]

    in_specs = [
        pl.BlockSpec((1, cks, m_in), lambda b: (b, 0, 0)),
        pl.BlockSpec((ntaps, cout, cks), lambda b: (0, 0, 0)),
        pl.BlockSpec((cout, 1), lambda b: (0, 0)),
    ]
    args = [xr, wr, shift]
    if residual is None:
        kern = functools.partial(_conv_bn_kernel, ntaps=ntaps, act=act)
    else:
        args.append(residual.astype(jnp.bfloat16))
        in_specs.append(pl.BlockSpec((1, cout, L), lambda b: (b, 0, 0)))
        kern = functools.partial(_conv_bn_res_kernel, ntaps=ntaps, act=act)

    return pl.pallas_call(
        kern,
        out_shape=jax.ShapeDtypeStruct((B, cout, L), jnp.bfloat16),
        grid=(B,),
        in_specs=in_specs,
        out_specs=pl.BlockSpec((1, cout, L), lambda b: (b, 0, 0)),
        compiler_params=pltpu.CompilerParams(
            dimension_semantics=("parallel",)),
    )(*args)


def conv_bn_dual(x, wr, shift, cout_main, *, stride, pad):
    """Fused conv1(+BN+LeakyReLU) and downsample conv(+BN) in one kernel call."""
    B = x.shape[0]
    ntaps, ctot, cks = wr.shape
    cds = ctot - cout_main
    xr, L = _prep_input(x, stride, pad, ntaps)
    m_in = xr.shape[2]

    kern = functools.partial(_dual_conv_bn_kernel, ntaps=ntaps, split=cout_main)
    h, ds = pl.pallas_call(
        kern,
        out_shape=(jax.ShapeDtypeStruct((B, cout_main, L), jnp.bfloat16),
                   jax.ShapeDtypeStruct((B, cds, L), jnp.bfloat16)),
        grid=(B,),
        in_specs=[
            pl.BlockSpec((1, cks, m_in), lambda b: (b, 0, 0)),
            pl.BlockSpec((ntaps, ctot, cks), lambda b: (0, 0, 0)),
            pl.BlockSpec((ctot, 1), lambda b: (0, 0)),
        ],
        out_specs=(pl.BlockSpec((1, cout_main, L), lambda b: (b, 0, 0)),
                   pl.BlockSpec((1, cds, L), lambda b: (b, 0, 0))),
        compiler_params=pltpu.CompilerParams(
            dimension_semantics=("parallel",)),
    )(xr, wr, shift)
    return h, ds


# -------------------- BN folding / weight re-layout (once) ------------------ #
def fold_conv_bn(w, b, gamma, beta, mean, var, stride):
    """Fold BN into conv weights and rearrange for the destrided tap matmuls.

    Returns wr: (K', Cout, Cin*stride) bf16 with wr[q, co, ci*s+r] = w'[co, ci, q*s+r],
    and shift: (Cout, 1) f32 with shift = scale*(b - mean) + beta."""
    cout, cin, k = w.shape
    scale = gamma / jnp.sqrt(var + BN_EPS)
    wf = w * scale[:, None, None]
    shift = (scale * (b - mean) + beta)[:, None].astype(jnp.float32)
    s = stride
    ntaps = -(-k // s)                                  # ceil(K / stride)
    wk = jnp.pad(wf, ((0, 0), (0, 0), (0, ntaps * s - k)))
    wk = wk.reshape(cout, cin, ntaps, s)
    wr = jnp.transpose(wk, (2, 0, 1, 3)).reshape(ntaps, cout, cin * s)
    return wr.astype(jnp.bfloat16), shift


def prepare_block_params(p, *, stride, downsample):
    bp = {}
    w1, s1 = fold_conv_bn(p["w1"], p["b1"], p["g1"], p["be1"], p["m1"], p["v1"],
                          stride)
    bp["w2"], bp["s2"] = fold_conv_bn(p["w2"], p["b2"], p["g2"], p["be2"],
                                      p["m2"], p["v2"], 1)
    if downsample:
        wd, sd = fold_conv_bn(p["dw"], p["db"], p["dg"], p["dbe"], p["dm"],
                              p["dv"], stride)
        bp["w1d"] = jnp.concatenate([w1, wd], axis=1)   # (K', 2*Cout, Cin*s)
        bp["s1d"] = jnp.concatenate([s1, sd], axis=0)   # (2*Cout, 1)
        bp["c1out"] = w1.shape[1]
    else:
        bp["w1"], bp["s1"] = w1, s1
    return bp


# ------------------------------- BasicBlock -------------------------------- #
def basic_block(x, bp, *, stride, pad, downsample):
    if downsample:
        h, shortcut = conv_bn_dual(x, bp["w1d"], bp["s1d"], bp["c1out"],
                                   stride=stride, pad=pad)
    else:
        shortcut = x
        h = conv_bn_act(x, bp["w1"], bp["s1"], stride=stride, pad=pad, act=True)
    return conv_bn_act(h, bp["w2"], bp["s2"], stride=1, pad=KSIZE // 2,
                       act=True, residual=shortcut)


# ------------------------- parameter construction -------------------------- #
def _conv_params(key, cin, cout, k):
    kw, kb = jax.random.split(key)
    w = 0.05 * jax.random.normal(kw, (cout, cin, k), jnp.float32)
    b = 0.01 * jax.random.normal(kb, (cout,), jnp.float32)
    return w, b


def _bn_params(key, c):
    k1, k2, k3, k4 = jax.random.split(key, 4)
    gamma = 1.0 + 0.1 * jax.random.normal(k1, (c,), jnp.float32)
    beta = 0.1 * jax.random.normal(k2, (c,), jnp.float32)
    mean = 0.1 * jax.random.normal(k3, (c,), jnp.float32)
    var = 1.0 + 0.1 * jax.random.uniform(k4, (c,), jnp.float32)
    return gamma, beta, mean, var


def make_block_params(key, cin, cout, downsample):
    keys = jax.random.split(key, 6)
    p = {}
    p["w1"], p["b1"] = _conv_params(keys[0], cin, cout, KSIZE)
    p["g1"], p["be1"], p["m1"], p["v1"] = _bn_params(keys[1], cout)
    p["w2"], p["b2"] = _conv_params(keys[2], cout, cout, KSIZE)
    p["g2"], p["be2"], p["m2"], p["v2"] = _bn_params(keys[3], cout)
    if downsample:
        p["dw"], p["db"] = _conv_params(keys[4], cin, cout, KSIZE)
        p["dg"], p["dbe"], p["dm"], p["dv"] = _bn_params(keys[5], cout)
    return p


def make_wav_encoder_params(key, out_dim, audio_in=1):
    d4, d2 = out_dim // 4, out_dim // 2
    cfgs = [
        dict(cin=audio_in, cout=d4, stride=5, pad=1600, downsample=True),
        dict(cin=d4, cout=d4, stride=6, pad=0, downsample=True),
        dict(cin=d4, cout=d4, stride=1, pad=7, downsample=False),
        dict(cin=d4, cout=d2, stride=6, pad=0, downsample=True),
        dict(cin=d2, cout=d2, stride=1, pad=7, downsample=False),
        dict(cin=d2, cout=out_dim, stride=3, pad=0, downsample=True),
    ]
    keys = jax.random.split(key, len(cfgs))
    params = [make_block_params(k, c["cin"], c["cout"], c["downsample"])
              for k, c in zip(keys, cfgs)]
    return params, cfgs


# ------------------------------- WavEncoder -------------------------------- #
def wav_encoder_forward(wav_data, block_params, cfgs):
    # matches: if dim==2 -> unsqueeze(1); else -> transpose(1,2)
    if wav_data.ndim == 2:
        x = wav_data[:, None, :]                     # (B, 1, T)
    else:
        x = jnp.transpose(wav_data, (0, 2, 1))       # (B, C, T)
    x = x.astype(jnp.bfloat16)
    for bp, c in zip(block_params, cfgs):
        x = basic_block(x, bp, stride=c["stride"], pad=c["pad"],
                        downsample=c["downsample"])
    # single layout change at the encoder boundary: (B, C, T) -> (B, T, C)
    return jnp.transpose(x, (0, 2, 1)).astype(jnp.float32)


if __name__ == "__main__":
    out_dim = 32
    B, T = 2, 1600   # small raw-audio snippet; seq shrinks 1600 -> 4 frames

    key = jax.random.PRNGKey(0)
    kx, kp = jax.random.split(key)
    wav = jax.random.normal(kx, (B, T), jnp.float32)

    raw_params, cfgs = make_wav_encoder_params(kp, out_dim, audio_in=1)
    prep_params = [prepare_block_params(p, stride=c["stride"],
                                        downsample=c["downsample"])
                   for p, c in zip(raw_params, cfgs)]

    @jax.jit
    def run(w):
        return wav_encoder_forward(w, prep_params, cfgs)

    out = jax.block_until_ready(run(wav))

    assert out.shape == (B, 4, out_dim), out.shape
    assert jnp.all(jnp.isfinite(out))
    print("KERNEL_OK")
</pallas_src>

<mosaic_0001>
module attributes {stable_mosaic.version = 11 : i64} {
  func.func @_dual_conv_bn_kernel(%arg0: i32, %arg1: memref<1x5x960xbf16, #tpu.memory_space<vmem>>, %arg2: memref<3x16x5xbf16, #tpu.memory_space<vmem>>, %arg3: memref<16x1xf32, #tpu.memory_space<vmem>>, %arg4: memref<1x8x958xbf16, #tpu.memory_space<vmem>>, %arg5: memref<1x8x958xbf16, #tpu.memory_space<vmem>>) attributes {dimension_semantics = [#tpu.dimension_semantics<parallel>], iteration_bounds = array<i64: 2>, scalar_prefetch = 0 : i64, scratch_operands = 0 : i64, tpu.core_type = #tpu.core_type<tc>, window_params = [{transform_indices = @transform_0, window_bounds = array<i64: 1, 5, 960>}, {pipeline_mode = #tpu.pipeline_mode<synchronous>, transform_indices = @transform_1, window_bounds = array<i64: 3, 16, 5>}, {pipeline_mode = #tpu.pipeline_mode<synchronous>, transform_indices = @transform_2, window_bounds = array<i64: 16, 1>}, {transform_indices = @transform_3, window_bounds = array<i64: 1, 8, 958>}, {transform_indices = @transform_4, window_bounds = array<i64: 1, 8, 958>}]} {
    %cst = arith.constant 0.000000e+00 : f32
    %0 = vector.broadcast %cst : f32 to vector<16x958xf32>
    %c0 = arith.constant 0 : index
    %c0_0 = arith.constant 0 : index
    %c0_1 = arith.constant 0 : index
    %1 = vector.load %arg2[%c0, %c0_0, %c0_1] : memref<3x16x5xbf16, #tpu.memory_space<vmem>>, vector<1x16x5xbf16>
    %2 = vector.shape_cast %1 : vector<1x16x5xbf16> to vector<16x5xbf16>
    %c0_2 = arith.constant 0 : index
    %c0_3 = arith.constant 0 : index
    %c0_4 = arith.constant 0 : index
    %3 = vector.load %arg1[%c0_2, %c0_3, %c0_4] : memref<1x5x960xbf16, #tpu.memory_space<vmem>>, vector<1x5x958xbf16>
    %4 = vector.shape_cast %3 : vector<1x5x958xbf16> to vector<5x958xbf16>
    %cst_5 = arith.constant dense<0.000000e+00> : vector<16x958xf32>
    %5 = tpu.matmul %2, %4, %cst_5 {dimension_numbers = #tpu.dot_dimension_numbers<[1], [0], [0], [1], [0, 0, 1, 1], [], []>} : vector<16x5xbf16>, vector<5x958xbf16>, vector<16x958xf32> -> vector<16x958xf32>
    %6 = arith.addf %0, %5 : vector<16x958xf32>
    %c1 = arith.constant 1 : index
    %c0_6 = arith.constant 0 : index
    %c0_7 = arith.constant 0 : index
    %7 = vector.load %arg2[%c1, %c0_6, %c0_7] : memref<3x16x5xbf16, #tpu.memory_space<vmem>>, vector<1x16x5xbf16>
    %8 = vector.shape_cast %7 : vector<1x16x5xbf16> to vector<16x5xbf16>
    %c0_8 = arith.constant 0 : index
    %c0_9 = arith.constant 0 : index
    %c1_10 = arith.constant 1 : index
    %9 = vector.load %arg1[%c0_8, %c0_9, %c1_10] : memref<1x5x960xbf16, #tpu.memory_space<vmem>>, vector<1x5x958xbf16>
    %10 = vector.shape_cast %9 : vector<1x5x958xbf16> to vector<5x958xbf16>
    %cst_11 = arith.constant dense<0.000000e+00> : vector<16x958xf32>
    %11 = tpu.matmul %8, %10, %cst_11 {dimension_numbers = #tpu.dot_dimension_numbers<[1], [0], [0], [1], [0, 0, 1, 1], [], []>} : vector<16x5xbf16>, vector<5x958xbf16>, vector<16x958xf32> -> vector<16x958xf32>
    %12 = arith.addf %6, %11 : vector<16x958xf32>
    %c2 = arith.constant 2 : index
    %c0_12 = arith.constant 0 : index
    %c0_13 = arith.constant 0 : index
    %13 = vector.load %arg2[%c2, %c0_12, %c0_13] : memref<3x16x5xbf16, #tpu.memory_space<vmem>>, vector<1x16x5xbf16>
    %14 = vector.shape_cast %13 : vector<1x16x5xbf16> to vector<16x5xbf16>
    %c0_14 = arith.constant 0 : index
    %c0_15 = arith.constant 0 : index
    %c2_16 = arith.constant 2 : index
    %15 = vector.load %arg1[%c0_14, %c0_15, %c2_16] : memref<1x5x960xbf16, #tpu.memory_space<vmem>>, vector<1x5x958xbf16>
    %16 = vector.shape_cast %15 : vector<1x5x958xbf16> to vector<5x958xbf16>
    %cst_17 = arith.constant dense<0.000000e+00> : vector<16x958xf32>
    %17 = tpu.matmul %14, %16, %cst_17 {dimension_numbers = #tpu.dot_dimension_numbers<[1], [0], [0], [1], [0, 0, 1, 1], [], []>} : vector<16x5xbf16>, vector<5x958xbf16>, vector<16x958xf32> -> vector<16x958xf32>
    %18 = arith.addf %12, %17 : vector<16x958xf32>
    %c0_18 = arith.constant 0 : index
    %c0_19 = arith.constant 0 : index
    %19 = vector.load %arg3[%c0_18, %c0_19] : memref<16x1xf32, #tpu.memory_space<vmem>>, vector<16x1xf32>
    %20 = vector.broadcast %19 : vector<16x1xf32> to vector<16x958xf32>
    %21 = arith.addf %18, %20 : vector<16x958xf32>
    %22 = vector.extract_strided_slice %21 {offsets = [0, 0], sizes = [8, 958], strides = [1, 1]} : vector<16x958xf32> to vector<8x958xf32>
    %cst_20 = arith.constant 0.000000e+00 : f32
    %23 = vector.broadcast %cst_20 : f32 to vector<8x958xf32>
    %24 = arith.cmpf oge, %22, %23 : vector<8x958xf32>
    %cst_21 = arith.constant 0.00999999977 : f32
    %25 = vector.broadcast %cst_21 : f32 to vector<8x958xf32>
    %26 = arith.mulf %25, %22 : vector<8x958xf32>
    %27 = arith.select %24, %22, %26 : vector<8x958xi1>, vector<8x958xf32>
    %28 = arith.truncf %27 : vector<8x958xf32> to vector<8x958xbf16>
    %c0_22 = arith.constant 0 : index
    %c0_23 = arith.constant 0 : index
    %c0_24 = arith.constant 0 : index
    %29 = vector.load %arg4[%c0_22, %c0_23, %c0_24] : memref<1x8x958xbf16, #tpu.memory_space<vmem>>, vector<1x8x958xbf16>
    %30 = vector.shape_cast %29 : vector<1x8x958xbf16> to vector<8x958xbf16>
    %31 = vector.shape_cast %28 : vector<8x958xbf16> to vector<1x8x958xbf16>
    tpu.vector_store %arg4[%c0_22, %c0_23, %c0_24], %31 {strides = array<i32>} : memref<1x8x958xbf16, #tpu.memory_space<vmem>>, vector<1x8x958xbf16>,
    %32 = vector.extract_strided_slice %21 {offsets = [8, 0], sizes = [8, 958], strides = [1, 1]} : vector<16x958xf32> to vector<8x958xf32>
    %33 = arith.truncf %32 : vector<8x958xf32> to vector<8x958xbf16>
    %c0_25 = arith.constant 0 : index
    %c0_26 = arith.constant 0 : index
    %c0_27 = arith.constant 0 : index
    %34 = vector.load %arg5[%c0_25, %c0_26, %c0_27] : memref<1x8x958xbf16, #tpu.memory_space<vmem>>, vector<1x8x958xbf16>
    %35 = vector.shape_cast %34 : vector<1x8x958xbf16> to vector<8x958xbf16>
    %36 = vector.shape_cast %33 : vector<8x958xbf16> to vector<1x8x958xbf16>
    tpu.vector_store %arg5[%c0_25, %c0_26, %c0_27], %36 {strides = array<i32>} : memref<1x8x958xbf16, #tpu.memory_space<vmem>>, vector<1x8x958xbf16>,
    return
  }
  func.func @transform_0(%arg0: i32) -> (i32, i32, i32) {
    %c0_i32 = arith.constant 0 : i32
    %c0_i32_0 = arith.constant 0 : i32
    %c0_i32_1 = arith.constant 0 : i32
    return %arg0, %c0_i32, %c0_i32_0 : i32, i32, i32
  }
  func.func @transform_1(%arg0: i32) -> (i32, i32, i32) {
    %c0_i32 = arith.constant 0 : i32
    %c0_i32_0 = arith.constant 0 : i32
    %c0_i32_1 = arith.constant 0 : i32
    %c0_i32_2 = arith.constant 0 : i32
    return %c0_i32, %c0_i32_0, %c0_i32_1 : i32, i32, i32
  }
  func.func @transform_2(%arg0: i32) -> (i32, i32) {
    %c0_i32 = arith.constant 0 : i32
    %c0_i32_0 = arith.constant 0 : i32
    %c0_i32_1 = arith.constant 0 : i32
    return %c0_i32, %c0_i32_0 : i32, i32
  }
  func.func @transform_3(%arg0: i32) -> (i32, i32, i32) {
    %c0_i32 = arith.constant 0 : i32
    %c0_i32_0 = arith.constant 0 : i32
    %c0_i32_1 = arith.constant 0 : i32
    return %arg0, %c0_i32, %c0_i32_0 : i32, i32, i32
  }
  func.func @transform_4(%arg0: i32) -> (i32, i32, i32) {
    %c0_i32 = arith.constant 0 : i32
    %c0_i32_0 = arith.constant 0 : i32
    %c0_i32_1 = arith.constant 0 : i32
    return %arg0, %c0_i32, %c0_i32_0 : i32, i32, i32
  }
}

module attributes {stable_mosaic.version = 11 : i64} {
  func.func @_conv_bn_res_kernel(%arg0: i32, %arg1: memref<1x8x972xbf16, #tpu.memory_space<vmem>>, %arg2: memref<15x8x8xbf16, #tpu.memory_space<vmem>>, %arg3: memref<8x1xf32, #tpu.memory_space<vmem>>, %arg4: memref<1x8x958xbf16, #tpu.memory_space<vmem>>, %arg5: memref<1x8x958xbf16, #tpu.memory_space<vmem>>) attributes {dimension_semantics = [#tpu.dimension_semantics<parallel>], iteration_bounds = array<i64: 2>, scalar_prefetch = 0 : i64, scratch_operands = 0 : i64, tpu.core_type = #tpu.core_type<tc>, window_params = [{transform_indices = @transform_0, window_bounds = array<i64: 1, 8, 972>}, {pipeline_mode = #tpu.pipeline_mode<synchronous>, transform_indices = @transform_1, window_bounds = array<i64: 15, 8, 8>}, {pipeline_mode = #tpu.pipeline_mode<synchronous>, transform_indices = @transform_2, window_bounds = array<i64: 8, 1>}, {transform_indices = @transform_3, window_bounds = array<i64: 1, 8, 958>}, {transform_indices = @transform_4, window_bounds = array<i64: 1, 8, 958>}]} {
    %cst = arith.constant 0.000000e+00 : f32
    %0 = vector.broadcast %cst : f32 to vector<8x958xf32>
    %c0 = arith.constant 0 : index
    %c0_0 = arith.constant 0 : index
    %c0_1 = arith.constant 0 : index
    %1 = vector.load %arg2[%c0, %c0_0, %c0_1] : memref<15x8x8xbf16, #tpu.memory_space<vmem>>, vector<1x8x8xbf16>
    %2 = vector.shape_cast %1 : vector<1x8x8xbf16> to vector<8x8xbf16>
    %c0_2 = arith.constant 0 : index
    %c0_3 = arith.constant 0 : index
    %c0_4 = arith.constant 0 : index
    %3 = vector.load %arg1[%c0_2, %c0_3, %c0_4] : memref<1x8x972xbf16, #tpu.memory_space<vmem>>, vector<1x8x958xbf16>
    %4 = vector.shape_cast %3 : vector<1x8x958xbf16> to vector<8x958xbf16>
    %cst_5 = arith.constant dense<0.000000e+00> : vector<8x958xf32>
    %5 = tpu.matmul %2, %4, %cst_5 {dimension_numbers = #tpu.dot_dimension_numbers<[1], [0], [0], [1], [0, 0, 1, 1], [], []>} : vector<8x8xbf16>, vector<8x958xbf16>, vector<8x958xf32> -> vector<8x958xf32>
    %6 = arith.addf %0, %5 : vector<8x958xf32>
    %c1 = arith.constant 1 : index
    %c0_6 = arith.constant 0 : index
    %c0_7 = arith.constant 0 : index
    %7 = vector.load %arg2[%c1, %c0_6, %c0_7] : memref<15x8x8xbf16, #tpu.memory_space<vmem>>, vector<1x8x8xbf16>
    %8 = vector.shape_cast %7 : vector<1x8x8xbf16> to vector<8x8xbf16>
    %c0_8 = arith.constant 0 : index
    %c0_9 = arith.constant 0 : index
    %c1_10 = arith.constant 1 : index
    %9 = vector.load %arg1[%c0_8, %c0_9, %c1_10] : memref<1x8x972xbf16, #tpu.memory_space<vmem>>, vector<1x8x958xbf16>
    %10 = vector.shape_cast %9 : vector<1x8x958xbf16> to vector<8x958xbf16>
    %cst_11 = arith.constant dense<0.000000e+00> : vector<8x958xf32>
    %11 = tpu.matmul %8, %10, %cst_11 {dimension_numbers = #tpu.dot_dimension_numbers<[1], [0], [0], [1], [0, 0, 1, 1], [], []>} : vector<8x8xbf16>, vector<8x958xbf16>, vector<8x958xf32> -> vector<8x958xf32>
    %12 = arith.addf %6, %11 : vector<8x958xf32>
    %c2 = arith.constant 2 : index
    %c0_12 = arith.constant 0 : index
    %c0_13 = arith.constant 0 : index
    %13 = vector.load %arg2[%c2, %c0_12, %c0_13] : memref<15x8x8xbf16, #tpu.memory_space<vmem>>, vector<1x8x8xbf16>
    %14 = vector.shape_cast %13 : vector<1x8x8xbf16> to vector<8x8xbf16>
    %c0_14 = arith.constant 0 : index
    %c0_15 = arith.constant 0 : index
    %c2_16 = arith.constant 2 : index
    %15 = vector.load %arg1[%c0_14, %c0_15, %c2_16] : memref<1x8x972xbf16, #tpu.memory_space<vmem>>, vector<1x8x958xbf16>
    %16 = vector.shape_cast %15 : vector<1x8x958xbf16> to vector<8x958xbf16>
    %cst_17 = arith.constant dense<0.000000e+00> : vector<8x958xf32>
    %17 = tpu.matmul %14, %16, %cst_17 {dimension_numbers = #tpu.dot_dimension_numbers<[1], [0], [0], [1], [0, 0, 1, 1], [], []>} : vector<8x8xbf16>, vector<8x958xbf16>, vector<8x958xf32> -> vector<8x958xf32>
    %18 = arith.addf %12, %17 : vector<8x958xf32>
    %c3 = arith.constant 3 : index
    %c0_18 = arith.constant 0 : index
    %c0_19 = arith.constant 0 : index
    %19 = vector.load %arg2[%c3, %c0_18, %c0_19] : memref<15x8x8xbf16, #tpu.memory_space<vmem>>, vector<1x8x8xbf16>
    %20 = vector.shape_cast %19 : vector<1x8x8xbf16> to vector<8x8xbf16>
    %c0_20 = arith.constant 0 : index
    %c0_21 = arith.constant 0 : index
    %c3_22 = arith.constant 3 : index
    %21 = vector.load %arg1[%c0_20, %c0_21, %c3_22] : memref<1x8x972xbf16, #tpu.memory_space<vmem>>, vector<1x8x958xbf16>
    %22 = vector.shape_cast %21 : vector<1x8x958xbf16> to vector<8x958xbf16>
    %cst_23 = arith.constant dense<0.000000e+00> : vector<8x958xf32>
    %23 = tpu.matmul %20, %22, %cst_23 {dimension_numbers = #tpu.dot_dimension_numbers<[1], [0], [0], [1], [0, 0, 1, 1], [], []>} : vector<8x8xbf16>, vector<8x958xbf16>, vector<8x958xf32> -> vector<8x958xf32>
    %24 = arith.addf %18, %23 : vector<8x958xf32>
    %c4 = arith.constant 4 : index
    %c0_24 = arith.constant 0 : index
    %c0_25 = arith.constant 0 : index
    %25 = vector.load %arg2[%c4, %c0_24, %c0_25] : memref<15x8x8xbf16, #tpu.memory_space<vmem>>, vector<1x8x8xbf16>
    %26 = vector.shape_cast %25 : vector<1x8x8xbf16> to vector<8x8xbf16>
    %c0_26 = arith.constant 0 : index
    %c0_27 = arith.constant 0 : index
    %c4_28 = arith.constant 4 : index
    %27 = vector.load %arg1[%c0_26, %c0_27, %c4_28] : memref<1x8x972xbf16, #tpu.memory_space<vmem>>, vector<1x8x958xbf16>
    %28 = vector.shape_cast %27 : vector<1x8x958xbf16> to vector<8x958xbf16>
    %cst_29 = arith.constant dense<0.000000e+00> : vector<8x958xf32>
    %29 = tpu.matmul %26, %28, %cst_29 {dimension_numbers = #tpu.dot_dimension_numbers<[1], [0], [0], [1], [0, 0, 1, 1], [], []>} : vector<8x8xbf16>, vector<8x958xbf16>, vector<8x958xf32> -> vector<8x958xf32>
    %30 = arith.addf %24, %29 : vector<8x958xf32>
    %c5 = arith.constant 5 : index
    %c0_30 = arith.constant 0 : index
    %c0_31 = arith.constant 0 : index
    %31 = vector.load %arg2[%c5, %c0_30, %c0_31] : memref<15x8x8xbf16, #tpu.memory_space<vmem>>, vector<1x8x8xbf16>
    %32 = vector.shape_cast %31 : vector<1x8x8xbf16> to vector<8x8xbf16>
    %c0_32 = arith.constant 0 : index
    %c0_33 = arith.constant 0 : index
    %c5_34 = arith.constant 5 : index
    %33 = vector.load %arg1[%c0_32, %c0_33, %c5_34] : memref<1x8x972xbf16, #tpu.memory_space<vmem>>, vector<1x8x958xbf16>
    %34 = vector.shape_cast %33 : vector<1x8x958xbf16> to vector<8x958xbf16>
    %cst_35 = arith.constant dense<0.000000e+00> : vector<8x958xf32>
    %35 = tpu.matmul %32, %34, %cst_35 {dimension_numbers = #tpu.dot_dimension_numbers<[1], [0], [0], [1], [0, 0, 1, 1], [], []>} : vector<8x8xbf16>, vector<8x958xbf16>, vector<8x958xf32> -> vector<8x958xf32>
    %36 = arith.addf %30, %35 : vector<8x958xf32>
    %c6 = arith.constant 6 : index
    %c0_36 = arith.constant 0 : index
    %c0_37 = arith.constant 0 : index
    %37 = vector.load %arg2[%c6, %c0_36, %c0_37] : memref<15x8x8xbf16, #tpu.memory_space<vmem>>, vector<1x8x8xbf16>
    %38 = vector.shape_cast %37 : vector<1x8x8xbf16> to vector<8x8xbf16>
    %c0_38 = arith.constant 0 : index
    %c0_39 = arith.constant 0 : index
    %c6_40 = arith.constant 6 : index
    %39 = vector.load %arg1[%c0_38, %c0_39, %c6_40] : memref<1x8x972xbf16, #tpu.memory_space<vmem>>, vector<1x8x958xbf16>
    %40 = vector.shape_cast %39 : vector<1x8x958xbf16> to vector<8x958xbf16>
    %cst_41 = arith.constant dense<0.000000e+00> : vector<8x958xf32>
    %41 = tpu.matmul %38, %40, %cst_41 {dimension_numbers = #tpu.dot_dimension_numbers<[1], [0], [0], [1], [0, 0, 1, 1], [], []>} : vector<8x8xbf16>, vector<8x958xbf16>, vector<8x958xf32> -> vector<8x958xf32>
    %42 = arith.addf %36, %41 : vector<8x958xf32>
    %c7 = arith.constant 7 : index
    %c0_42 = arith.constant 0 : index
    %c0_43 = arith.constant 0 : index
    %43 = vector.load %arg2[%c7, %c0_42, %c0_43] : memref<15x8x8xbf16, #tpu.memory_space<vmem>>, vector<1x8x8xbf16>
    %44 = vector.shape_cast %43 : vector<1x8x8xbf16> to vector<8x8xbf16>
    %c0_44 = arith.constant 0 : index
    %c0_45 = arith.constant 0 : index
    %c7_46 = arith.constant 7 : index
    %45 = vector.load %arg1[%c0_44, %c0_45, %c7_46] : memref<1x8x972xbf16, #tpu.memory_space<vmem>>, vector<1x8x958xbf16>
    %46 = vector.shape_cast %45 : vector<1x8x958xbf16> to vector<8x958xbf16>
    %cst_47 = arith.constant dense<0.000000e+00> : vector<8x958xf32>
    %47 = tpu.matmul %44, %46, %cst_47 {dimension_numbers = #tpu.dot_dimension_numbers<[1], [0], [0], [1], [0, 0, 1, 1], [], []>} : vector<8x8xbf16>, vector<8x958xbf16>, vector<8x958xf32> -> vector<8x958xf32>
    %48 = arith.addf %42, %47 : vector<8x958xf32>
    %c8 = arith.constant 8 : index
    %c0_48 = arith.constant 0 : index
    %c0_49 = arith.constant 0 : index
    %49 = vector.load %arg2[%c8, %c0_48, %c0_49] : memref<15x8x8xbf16, #tpu.memory_space<vmem>>, vector<1x8x8xbf16>
    %50 = vector.shape_cast %49 : vector<1x8x8xbf16> to vector<8x8xbf16>
    %c0_50 = arith.constant 0 : index
    %c0_51 = arith.constant 0 : index
    %c8_52 = arith.constant 8 : index
    %51 = vector.load %arg1[%c0_50, %c0_51, %c8_52] : memref<1x8x972xbf16, #tpu.memory_space<vmem>>, vector<1x8x958xbf16>
    %52 = vector.shape_cast %51 : vector<1x8x958xbf16> to vector<8x958xbf16>
    %cst_53 = arith.constant dense<0.000000e+00> : vector<8x958xf32>
    %53 = tpu.matmul %50, %52, %cst_53 {dimension_numbers = #tpu.dot_dimension_numbers<[1], [0], [0], [1], [0, 0, 1, 1], [], []>} : vector<8x8xbf16>, vector<8x958xbf16>, vector<8x958xf32> -> vector<8x958xf32>
    %54 = arith.addf %48, %53 : vector<8x958xf32>
    %c9 = arith.constant 9 : index
    %c0_54 = arith.constant 0 : index
    %c0_55 = arith.constant 0 : index
    %55 = vector.load %arg2[%c9, %c0_54, %c0_55] : memref<15x8x8xbf16, #tpu.memory_space<vmem>>, vector<1x8x8xbf16>
    %56 = vector.shape_cast %55 : vector<1x8x8xbf16> to vector<8x8xbf16>
    %c0_56 = arith.constant 0 : index
    %c0_57 = arith.constant 0 : index
    %c9_58 = arith.constant 9 : index
    %57 = vector.load %arg1[%c0_56, %c0_57, %c9_58] : memref<1x8x972xbf16, #tpu.memory_space<vmem>>, vector<1x8x958xbf16>
    %58 = vector.shape_cast %57 : vector<1x8x958xbf16> to vector<8x958xbf16>
    %cst_59 = arith.constant dense<0.000000e+00> : vector<8x958xf32>
    %59 = tpu.matmul %56, %58, %cst_59 {dimension_numbers = #tpu.dot_dimension_numbers<[1], [0], [0], [1], [0, 0, 1, 1], [], []>} : vector<8x8xbf16>, vector<8x958xbf16>, vector<8x958xf32> -> vector<8x958xf32>
    %60 = arith.addf %54, %59 : vector<8x958xf32>
    %c10 = arith.constant 10 : index
    %c0_60 = arith.constant 0 : index
    %c0_61 = arith.constant 0 : index
    %61 = vector.load %arg2[%c10, %c0_60, %c0_61] : memref<15x8x8xbf16, #tpu.memory_space<vmem>>, vector<1x8x8xbf16>
    %62 = vector.shape_cast %61 : vector<1x8x8xbf16> to vector<8x8xbf16>
    %c0_62 = arith.constant 0 : index
    %c0_63 = arith.constant 0 : index
    %c10_64 = arith.constant 10 : index
    %63 = vector.load %arg1[%c0_62, %c0_63, %c10_64] : memref<1x8x972xbf16, #tpu.memory_space<vmem>>, vector<1x8x958xbf16>
    %64 = vector.shape_cast %63 : vector<1x8x958xbf16> to vector<8x958xbf16>
    %cst_65 = arith.constant dense<0.000000e+00> : vector<8x958xf32>
    %65 = tpu.matmul %62, %64, %cst_65 {dimension_numbers = #tpu.dot_dimension_numbers<[1], [0], [0], [1], [0, 0, 1, 1], [], []>} : vector<8x8xbf16>, vector<8x958xbf16>, vector<8x958xf32> -> vector<8x958xf32>
    %66 = arith.addf %60, %65 : vector<8x958xf32>
    %c11 = arith.constant 11 : index
    %c0_66 = arith.constant 0 : index
    %c0_67 = arith.constant 0 : index
    %67 = vector.load %arg2[%c11, %c0_66, %c0_67] : memref<15x8x8xbf16, #tpu.memory_space<vmem>>, vector<1x8x8xbf16>
    %68 = vector.shape_cast %67 : vector<1x8x8xbf16> to vector<8x8xbf16>
    %c0_68 = arith.constant 0 : index
    %c0_69 = arith.constant 0 : index
    %c11_70 = arith.constant 11 : index
    %69 = vector.load %arg1[%c0_68, %c0_69, %c11_70] : memref<1x8x972xbf16, #tpu.memory_space<vmem>>, vector<1x8x958xbf16>
    %70 = vector.shape_cast %69 : vector<1x8x958xbf16> to vector<8x958xbf16>
    %cst_71 = arith.constant dense<0.000000e+00> : vector<8x958xf32>
    %71 = tpu.matmul %68, %70, %cst_71 {dimension_numbers = #tpu.dot_dimension_numbers<[1], [0], [0], [1], [0, 0, 1, 1], [], []>} : vector<8x8xbf16>, vector<8x958xbf16>, vector<8x958xf32> -> vector<8x958xf32>
    %72 = arith.addf %66, %71 : vector<8x958xf32>
    %c12 = arith.constant 12 : index
    %c0_72 = arith.constant 0 : index
    %c0_73 = arith.constant 0 : index
    %73 = vector.load %arg2[%c12, %c0_72, %c0_73] : memref<15x8x8xbf16, #tpu.memory_space<vmem>>, vector<1x8x8xbf16>
    %74 = vector.shape_cast %73 : vector<1x8x8xbf16> to vector<8x8xbf16>
    %c0_74 = arith.constant 0 : index
    %c0_75 = arith.constant 0 : index
    %c12_76 = arith.constant 12 : index
    %75 = vector.load %arg1[%c0_74, %c0_75, %c12_76] : memref<1x8x972xbf16, #tpu.memory_space<vmem>>, vector<1x8x958xbf16>
    %76 = vector.shape_cast %75 : vector<1x8x958xbf16> to vector<8x958xbf16>
    %cst_77 = arith.constant dense<0.000000e+00> : vector<8x958xf32>
    %77 = tpu.matmul %74, %76, %cst_77 {dimension_numbers = #tpu.dot_dimension_numbers<[1], [0], [0], [1], [0, 0, 1, 1], [], []>} : vector<8x8xbf16>, vector<8x958xbf16>, vector<8x958xf32> -> vector<8x958xf32>
    %78 = arith.addf %72, %77 : vector<8x958xf32>
    %c13 = arith.constant 13 : index
    %c0_78 = arith.constant 0 : index
    %c0_79 = arith.constant 0 : index
    %79 = vector.load %arg2[%c13, %c0_78, %c0_79] : memref<15x8x8xbf16, #tpu.memory_space<vmem>>, vector<1x8x8xbf16>
    %80 = vector.shape_cast %79 : vector<1x8x8xbf16> to vector<8x8xbf16>
    %c0_80 = arith.constant 0 : index
    %c0_81 = arith.constant 0 : index
    %c13_82 = arith.constant 13 : index
    %81 = vector.load %arg1[%c0_80, %c0_81, %c13_82] : memref<1x8x972xbf16, #tpu.memory_space<vmem>>, vector<1x8x958xbf16>
    %82 = vector.shape_cast %81 : vector<1x8x958xbf16> to vector<8x958xbf16>
    %cst_83 = arith.constant dense<0.000000e+00> : vector<8x958xf32>
    %83 = tpu.matmul %80, %82, %cst_83 {dimension_numbers = #tpu.dot_dimension_numbers<[1], [0], [0], [1], [0, 0, 1, 1], [], []>} : vector<8x8xbf16>, vector<8x958xbf16>, vector<8x958xf32> -> vector<8x958xf32>
    %84 = arith.addf %78, %83 : vector<8x958xf32>
    %c14 = arith.constant 14 : index
    %c0_84 = arith.constant 0 : index
    %c0_85 = arith.constant 0 : index
    %85 = vector.load %arg2[%c14, %c0_84, %c0_85] : memref<15x8x8xbf16, #tpu.memory_space<vmem>>, vector<1x8x8xbf16>
    %86 = vector.shape_cast %85 : vector<1x8x8xbf16> to vector<8x8xbf16>
    %c0_86 = arith.constant 0 : index
    %c0_87 = arith.constant 0 : index
    %c14_88 = arith.constant 14 : index
    %87 = vector.load %arg1[%c0_86, %c0_87, %c14_88] : memref<1x8x972xbf16, #tpu.memory_space<vmem>>, vector<1x8x958xbf16>
    %88 = vector.shape_cast %87 : vector<1x8x958xbf16> to vector<8x958xbf16>
    %cst_89 = arith.constant dense<0.000000e+00> : vector<8x958xf32>
    %89 = tpu.matmul %86, %88, %cst_89 {dimension_numbers = #tpu.dot_dimension_numbers<[1], [0], [0], [1], [0, 0, 1, 1], [], []>} : vector<8x8xbf16>, vector<8x958xbf16>, vector<8x958xf32> -> vector<8x958xf32>
    %90 = arith.addf %84, %89 : vector<8x958xf32>
    %c0_90 = arith.constant 0 : index
    %c0_91 = arith.constant 0 : index
    %91 = vector.load %arg3[%c0_90, %c0_91] : memref<8x1xf32, #tpu.memory_space<vmem>>, vector<8x1xf32>
    %92 = vector.broadcast %91 : vector<8x1xf32> to vector<8x958xf32>
    %93 = arith.addf %90, %92 : vector<8x958xf32>
    %c0_92 = arith.constant 0 : index
    %c0_93 = arith.constant 0 : index
    %c0_94 = arith.constant 0 : index
    %94 = vector.load %arg4[%c0_92, %c0_93, %c0_94] : memref<1x8x958xbf16, #tpu.memory_space<vmem>>, vector<1x8x958xbf16>
    %95 = vector.shape_cast %94 : vector<1x8x958xbf16> to vector<8x958xbf16>
    %96 = arith.extf %95 : vector<8x958xbf16> to vector<8x958xf32>
    %97 = arith.addf %93, %96 : vector<8x958xf32>
    %cst_95 = arith.constant 0.000000e+00 : f32
    %98 = vector.broadcast %cst_95 : f32 to vector<8x958xf32>
    %99 = arith.cmpf oge, %97, %98 : vector<8x958xf32>
    %cst_96 = arith.constant 0.00999999977 : f32
    %100 = vector.broadcast %cst_96 : f32 to vector<8x958xf32>
    %101 = arith.mulf %100, %97 : vector<8x958xf32>
    %102 = arith.select %99, %97, %101 : vector<8x958xi1>, vector<8x958xf32>
    %103 = arith.truncf %102 : vector<8x958xf32> to vector<8x958xbf16>
    %c0_97 = arith.constant 0 : index
    %c0_98 = arith.constant 0 : index
    %c0_99 = arith.constant 0 : index
    %104 = vector.load %arg5[%c0_97, %c0_98, %c0_99] : memref<1x8x958xbf16, #tpu.memory_space<vmem>>, vector<1x8x958xbf16>
    %105 = vector.shape_cast %104 : vector<1x8x958xbf16> to vector<8x958xbf16>
    %106 = vector.shape_cast %103 : vector<8x958xbf16> to vector<1x8x958xbf16>
    tpu.vector_store %arg5[%c0_97, %c0_98, %c0_99], %106 {strides = array<i32>} : memref<1x8x958xbf16, #tpu.memory_space<vmem>>, vector<1x8x958xbf16>,
    return
  }
  func.func @transform_0(%arg0: i32) -> (i32, i32, i32) {
    %c0_i32 = arith.constant 0 : i32
    %c0_i32_0 = arith.constant 0 : i32
    %c0_i32_1 = arith.constant 0 : i32
    return %arg0, %c0_i32, %c0_i32_0 : i32, i32, i32
  }
  func.func @transform_1(%arg0: i32) -> (i32, i32, i32) {
    %c0_i32 = arith.constant 0 : i32
    %c0_i32_0 = arith.constant 0 : i32
    %c0_i32_1 = arith.constant 0 : i32
    %c0_i32_2 = arith.constant 0 : i32
    return %c0_i32, %c0_i32_0, %c0_i32_1 : i32, i32, i32
  }
  func.func @transform_2(%arg0: i32) -> (i32, i32) {
    %c0_i32 = arith.constant 0 : i32
    %c0_i32_0 = arith.constant 0 : i32
    %c0_i32_1 = arith.constant 0 : i32
    return %c0_i32, %c0_i32_0 : i32, i32
  }
  func.func @transform_3(%arg0: i32) -> (i32, i32, i32) {
    %c0_i32 = arith.constant 0 : i32
    %c0_i32_0 = arith.constant 0 : i32
    %c0_i32_1 = arith.constant 0 : i32
    return %arg0, %c0_i32, %c0_i32_0 : i32, i32, i32
  }
  func.func @transform_4(%arg0: i32) -> (i32, i32, i32) {
    %c0_i32 = arith.constant 0 : i32
    %c0_i32_0 = arith.constant 0 : i32
    %c0_i32_1 = arith.constant 0 : i32
    return %arg0, %c0_i32, %c0_i32_0 : i32, i32, i32
  }
}

module attributes {stable_mosaic.version = 11 : i64} {
  func.func @_dual_conv_bn_kernel(%arg0: i32, %arg1: memref<1x48x160xbf16, #tpu.memory_space<vmem>>, %arg2: memref<3x16x48xbf16, #tpu.memory_space<vmem>>, %arg3: memref<16x1xf32, #tpu.memory_space<vmem>>, %arg4: memref<1x8x158xbf16, #tpu.memory_space<vmem>>, %arg5: memref<1x8x158xbf16, #tpu.memory_space<vmem>>) attributes {dimension_semantics = [#tpu.dimension_semantics<parallel>], iteration_bounds = array<i64: 2>, scalar_prefetch = 0 : i64, scratch_operands = 0 : i64, tpu.core_type = #tpu.core_type<tc>, window_params = [{transform_indices = @transform_0, window_bounds = array<i64: 1, 48, 160>}, {pipeline_mode = #tpu.pipeline_mode<synchronous>, transform_indices = @transform_1, window_bounds = array<i64: 3, 16, 48>}, {pipeline_mode = #tpu.pipeline_mode<synchronous>, transform_indices = @transform_2, window_bounds = array<i64: 16, 1>}, {transform_indices = @transform_3, window_bounds = array<i64: 1, 8, 158>}, {transform_indices = @transform_4, window_bounds = array<i64: 1, 8, 158>}]} {
    %cst = arith.constant 0.000000e+00 : f32
    %0 = vector.broadcast %cst : f32 to vector<16x158xf32>
    %c0 = arith.constant 0 : index
    %c0_0 = arith.constant 0 : index
    %c0_1 = arith.constant 0 : index
    %1 = vector.load %arg2[%c0, %c0_0, %c0_1] : memref<3x16x48xbf16, #tpu.memory_space<vmem>>, vector<1x16x48xbf16>
    %2 = vector.shape_cast %1 : vector<1x16x48xbf16> to vector<16x48xbf16>
    %c0_2 = arith.constant 0 : index
    %c0_3 = arith.constant 0 : index
    %c0_4 = arith.constant 0 : index
    %3 = vector.load %arg1[%c0_2, %c0_3, %c0_4] : memref<1x48x160xbf16, #tpu.memory_space<vmem>>, vector<1x48x158xbf16>
    %4 = vector.shape_cast %3 : vector<1x48x158xbf16> to vector<48x158xbf16>
    %cst_5 = arith.constant dense<0.000000e+00> : vector<16x158xf32>
    %5 = tpu.matmul %2, %4, %cst_5 {dimension_numbers = #tpu.dot_dimension_numbers<[1], [0], [0], [1], [0, 0, 1, 1], [], []>} : vector<16x48xbf16>, vector<48x158xbf16>, vector<16x158xf32> -> vector<16x158xf32>
    %6 = arith.addf %0, %5 : vector<16x158xf32>
    %c1 = arith.constant 1 : index
    %c0_6 = arith.constant 0 : index
    %c0_7 = arith.constant 0 : index
    %7 = vector.load %arg2[%c1, %c0_6, %c0_7] : memref<3x16x48xbf16, #tpu.memory_space<vmem>>, vector<1x16x48xbf16>
    %8 = vector.shape_cast %7 : vector<1x16x48xbf16> to vector<16x48xbf16>
    %c0_8 = arith.constant 0 : index
    %c0_9 = arith.constant 0 : index
    %c1_10 = arith.constant 1 : index
    %9 = vector.load %arg1[%c0_8, %c0_9, %c1_10] : memref<1x48x160xbf16, #tpu.memory_space<vmem>>, vector<1x48x158xbf16>
    %10 = vector.shape_cast %9 : vector<1x48x158xbf16> to vector<48x158xbf16>
    %cst_11 = arith.constant dense<0.000000e+00> : vector<16x158xf32>
    %11 = tpu.matmul %8, %10, %cst_11 {dimension_numbers = #tpu.dot_dimension_numbers<[1], [0], [0], [1], [0, 0, 1, 1], [], []>} : vector<16x48xbf16>, vector<48x158xbf16>, vector<16x158xf32> -> vector<16x158xf32>
    %12 = arith.addf %6, %11 : vector<16x158xf32>
    %c2 = arith.constant 2 : index
    %c0_12 = arith.constant 0 : index
    %c0_13 = arith.constant 0 : index
    %13 = vector.load %arg2[%c2, %c0_12, %c0_13] : memref<3x16x48xbf16, #tpu.memory_space<vmem>>, vector<1x16x48xbf16>
    %14 = vector.shape_cast %13 : vector<1x16x48xbf16> to vector<16x48xbf16>
    %c0_14 = arith.constant 0 : index
    %c0_15 = arith.constant 0 : index
    %c2_16 = arith.constant 2 : index
    %15 = vector.load %arg1[%c0_14, %c0_15, %c2_16] : memref<1x48x160xbf16, #tpu.memory_space<vmem>>, vector<1x48x158xbf16>
    %16 = vector.shape_cast %15 : vector<1x48x158xbf16> to vector<48x158xbf16>
    %cst_17 = arith.constant dense<0.000000e+00> : vector<16x158xf32>
    %17 = tpu.matmul %14, %16, %cst_17 {dimension_numbers = #tpu.dot_dimension_numbers<[1], [0], [0], [1], [0, 0, 1, 1], [], []>} : vector<16x48xbf16>, vector<48x158xbf16>, vector<16x158xf32> -> vector<16x158xf32>
    %18 = arith.addf %12, %17 : vector<16x158xf32>
    %c0_18 = arith.constant 0 : index
    %c0_19 = arith.constant 0 : index
    %19 = vector.load %arg3[%c0_18, %c0_19] : memref<16x1xf32, #tpu.memory_space<vmem>>, vector<16x1xf32>
    %20 = vector.broadcast %19 : vector<16x1xf32> to vector<16x158xf32>
    %21 = arith.addf %18, %20 : vector<16x158xf32>
    %22 = vector.extract_strided_slice %21 {offsets = [0, 0], sizes = [8, 158], strides = [1, 1]} : vector<16x158xf32> to vector<8x158xf32>
    %cst_20 = arith.constant 0.000000e+00 : f32
    %23 = vector.broadcast %cst_20 : f32 to vector<8x158xf32>
    %24 = arith.cmpf oge, %22, %23 : vector<8x158xf32>
    %cst_21 = arith.constant 0.00999999977 : f32
    %25 = vector.broadcast %cst_21 : f32 to vector<8x158xf32>
    %26 = arith.mulf %25, %22 : vector<8x158xf32>
    %27 = arith.select %24, %22, %26 : vector<8x158xi1>, vector<8x158xf32>
    %28 = arith.truncf %27 : vector<8x158xf32> to vector<8x158xbf16>
    %c0_22 = arith.constant 0 : index
    %c0_23 = arith.constant 0 : index
    %c0_24 = arith.constant 0 : index
    %29 = vector.load %arg4[%c0_22, %c0_23, %c0_24] : memref<1x8x158xbf16, #tpu.memory_space<vmem>>, vector<1x8x158xbf16>
    %30 = vector.shape_cast %29 : vector<1x8x158xbf16> to vector<8x158xbf16>
    %31 = vector.shape_cast %28 : vector<8x158xbf16> to vector<1x8x158xbf16>
    tpu.vector_store %arg4[%c0_22, %c0_23, %c0_24], %31 {strides = array<i32>} : memref<1x8x158xbf16, #tpu.memory_space<vmem>>, vector<1x8x158xbf16>,
    %32 = vector.extract_strided_slice %21 {offsets = [8, 0], sizes = [8, 158], strides = [1, 1]} : vector<16x158xf32> to vector<8x158xf32>
    %33 = arith.truncf %32 : vector<8x158xf32> to vector<8x158xbf16>
    %c0_25 = arith.constant 0 : index
    %c0_26 = arith.constant 0 : index
    %c0_27 = arith.constant 0 : index
    %34 = vector.load %arg5[%c0_25, %c0_26, %c0_27] : memref<1x8x158xbf16, #tpu.memory_space<vmem>>, vector<1x8x158xbf16>
    %35 = vector.shape_cast %34 : vector<1x8x158xbf16> to vector<8x158xbf16>
    %36 = vector.shape_cast %33 : vector<8x158xbf16> to vector<1x8x158xbf16>
    tpu.vector_store %arg5[%c0_25, %c0_26, %c0_27], %36 {strides = array<i32>} : memref<1x8x158xbf16, #tpu.memory_space<vmem>>, vector<1x8x158xbf16>,
    return
  }
  func.func @transform_0(%arg0: i32) -> (i32, i32, i32) {
    %c0_i32 = arith.constant 0 : i32
    %c0_i32_0 = arith.constant 0 : i32
    %c0_i32_1 = arith.constant 0 : i32
    return %arg0, %c0_i32, %c0_i32_0 : i32, i32, i32
  }
  func.func @transform_1(%arg0: i32) -> (i32, i32, i32) {
    %c0_i32 = arith.constant 0 : i32
    %c0_i32_0 = arith.constant 0 : i32
    %c0_i32_1 = arith.constant 0 : i32
    %c0_i32_2 = arith.constant 0 : i32
    return %c0_i32, %c0_i32_0, %c0_i32_1 : i32, i32, i32
  }
  func.func @transform_2(%arg0: i32) -> (i32, i32) {
    %c0_i32 = arith.constant 0 : i32
    %c0_i32_0 = arith.constant 0 : i32
    %c0_i32_1 = arith.constant 0 : i32
    return %c0_i32, %c0_i32_0 : i32, i32
  }
  func.func @transform_3(%arg0: i32) -> (i32, i32, i32) {
    %c0_i32 = arith.constant 0 : i32
    %c0_i32_0 = arith.constant 0 : i32
    %c0_i32_1 = arith.constant 0 : i32
    return %arg0, %c0_i32, %c0_i32_0 : i32, i32, i32
  }
  func.func @transform_4(%arg0: i32) -> (i32, i32, i32) {
    %c0_i32 = arith.constant 0 : i32
    %c0_i32_0 = arith.constant 0 : i32
    %c0_i32_1 = arith.constant 0 : i32
    return %arg0, %c0_i32, %c0_i32_0 : i32, i32, i32
  }
}

module attributes {stable_mosaic.version = 11 : i64} {
  func.func @_conv_bn_res_kernel(%arg0: i32, %arg1: memref<1x8x172xbf16, #tpu.memory_space<vmem>>, %arg2: memref<15x8x8xbf16, #tpu.memory_space<vmem>>, %arg3: memref<8x1xf32, #tpu.memory_space<vmem>>, %arg4: memref<1x8x158xbf16, #tpu.memory_space<vmem>>, %arg5: memref<1x8x158xbf16, #tpu.memory_space<vmem>>) attributes {dimension_semantics = [#tpu.dimension_semantics<parallel>], iteration_bounds = array<i64: 2>, scalar_prefetch = 0 : i64, scratch_operands = 0 : i64, tpu.core_type = #tpu.core_type<tc>, window_params = [{transform_indices = @transform_0, window_bounds = array<i64: 1, 8, 172>}, {pipeline_mode = #tpu.pipeline_mode<synchronous>, transform_indices = @transform_1, window_bounds = array<i64: 15, 8, 8>}, {pipeline_mode = #tpu.pipeline_mode<synchronous>, transform_indices = @transform_2, window_bounds = array<i64: 8, 1>}, {transform_indices = @transform_3, window_bounds = array<i64: 1, 8, 158>}, {transform_indices = @transform_4, window_bounds = array<i64: 1, 8, 158>}]} {
    %cst = arith.constant 0.000000e+00 : f32
    %0 = vector.broadcast %cst : f32 to vector<8x158xf32>
    %c0 = arith.constant 0 : index
    %c0_0 = arith.constant 0 : index
    %c0_1 = arith.constant 0 : index
    %1 = vector.load %arg2[%c0, %c0_0, %c0_1] : memref<15x8x8xbf16, #tpu.memory_space<vmem>>, vector<1x8x8xbf16>
    %2 = vector.shape_cast %1 : vector<1x8x8xbf16> to vector<8x8xbf16>
    %c0_2 = arith.constant 0 : index
    %c0_3 = arith.constant 0 : index
    %c0_4 = arith.constant 0 : index
    %3 = vector.load %arg1[%c0_2, %c0_3, %c0_4] : memref<1x8x172xbf16, #tpu.memory_space<vmem>>, vector<1x8x158xbf16>
    %4 = vector.shape_cast %3 : vector<1x8x158xbf16> to vector<8x158xbf16>
    %cst_5 = arith.constant dense<0.000000e+00> : vector<8x158xf32>
    %5 = tpu.matmul %2, %4, %cst_5 {dimension_numbers = #tpu.dot_dimension_numbers<[1], [0], [0], [1], [0, 0, 1, 1], [], []>} : vector<8x8xbf16>, vector<8x158xbf16>, vector<8x158xf32> -> vector<8x158xf32>
    %6 = arith.addf %0, %5 : vector<8x158xf32>
    %c1 = arith.constant 1 : index
    %c0_6 = arith.constant 0 : index
    %c0_7 = arith.constant 0 : index
    %7 = vector.load %arg2[%c1, %c0_6, %c0_7] : memref<15x8x8xbf16, #tpu.memory_space<vmem>>, vector<1x8x8xbf16>
    %8 = vector.shape_cast %7 : vector<1x8x8xbf16> to vector<8x8xbf16>
    %c0_8 = arith.constant 0 : index
    %c0_9 = arith.constant 0 : index
    %c1_10 = arith.constant 1 : index
    %9 = vector.load %arg1[%c0_8, %c0_9, %c1_10] : memref<1x8x172xbf16, #tpu.memory_space<vmem>>, vector<1x8x158xbf16>
    %10 = vector.shape_cast %9 : vector<1x8x158xbf16> to vector<8x158xbf16>
    %cst_11 = arith.constant dense<0.000000e+00> : vector<8x158xf32>
    %11 = tpu.matmul %8, %10, %cst_11 {dimension_numbers = #tpu.dot_dimension_numbers<[1], [0], [0], [1], [0, 0, 1, 1], [], []>} : vector<8x8xbf16>, vector<8x158xbf16>, vector<8x158xf32> -> vector<8x158xf32>
    %12 = arith.addf %6, %11 : vector<8x158xf32>
    %c2 = arith.constant 2 : index
    %c0_12 = arith.constant 0 : index
    %c0_13 = arith.constant 0 : index
    %13 = vector.load %arg2[%c2, %c0_12, %c0_13] : memref<15x8x8xbf16, #tpu.memory_space<vmem>>, vector<1x8x8xbf16>
    %14 = vector.shape_cast %13 : vector<1x8x8xbf16> to vector<8x8xbf16>
    %c0_14 = arith.constant 0 : index
    %c0_15 = arith.constant 0 : index
    %c2_16 = arith.constant 2 : index
    %15 = vector.load %arg1[%c0_14, %c0_15, %c2_16] : memref<1x8x172xbf16, #tpu.memory_space<vmem>>, vector<1x8x158xbf16>
    %16 = vector.shape_cast %15 : vector<1x8x158xbf16> to vector<8x158xbf16>
    %cst_17 = arith.constant dense<0.000000e+00> : vector<8x158xf32>
    %17 = tpu.matmul %14, %16, %cst_17 {dimension_numbers = #tpu.dot_dimension_numbers<[1], [0], [0], [1], [0, 0, 1, 1], [], []>} : vector<8x8xbf16>, vector<8x158xbf16>, vector<8x158xf32> -> vector<8x158xf32>
    %18 = arith.addf %12, %17 : vector<8x158xf32>
    %c3 = arith.constant 3 : index
    %c0_18 = arith.constant 0 : index
    %c0_19 = arith.constant 0 : index
    %19 = vector.load %arg2[%c3, %c0_18, %c0_19] : memref<15x8x8xbf16, #tpu.memory_space<vmem>>, vector<1x8x8xbf16>
    %20 = vector.shape_cast %19 : vector<1x8x8xbf16> to vector<8x8xbf16>
    %c0_20 = arith.constant 0 : index
    %c0_21 = arith.constant 0 : index
    %c3_22 = arith.constant 3 : index
    %21 = vector.load %arg1[%c0_20, %c0_21, %c3_22] : memref<1x8x172xbf16, #tpu.memory_space<vmem>>, vector<1x8x158xbf16>
    %22 = vector.shape_cast %21 : vector<1x8x158xbf16> to vector<8x158xbf16>
    %cst_23 = arith.constant dense<0.000000e+00> : vector<8x158xf32>
    %23 = tpu.matmul %20, %22, %cst_23 {dimension_numbers = #tpu.dot_dimension_numbers<[1], [0], [0], [1], [0, 0, 1, 1], [], []>} : vector<8x8xbf16>, vector<8x158xbf16>, vector<8x158xf32> -> vector<8x158xf32>
    %24 = arith.addf %18, %23 : vector<8x158xf32>
    %c4 = arith.constant 4 : index
    %c0_24 = arith.constant 0 : index
    %c0_25 = arith.constant 0 : index
    %25 = vector.load %arg2[%c4, %c0_24, %c0_25] : memref<15x8x8xbf16, #tpu.memory_space<vmem>>, vector<1x8x8xbf16>
    %26 = vector.shape_cast %25 : vector<1x8x8xbf16> to vector<8x8xbf16>
    %c0_26 = arith.constant 0 : index
    %c0_27 = arith.constant 0 : index
    %c4_28 = arith.constant 4 : index
    %27 = vector.load %arg1[%c0_26, %c0_27, %c4_28] : memref<1x8x172xbf16, #tpu.memory_space<vmem>>, vector<1x8x158xbf16>
    %28 = vector.shape_cast %27 : vector<1x8x158xbf16> to vector<8x158xbf16>
    %cst_29 = arith.constant dense<0.000000e+00> : vector<8x158xf32>
    %29 = tpu.matmul %26, %28, %cst_29 {dimension_numbers = #tpu.dot_dimension_numbers<[1], [0], [0], [1], [0, 0, 1, 1], [], []>} : vector<8x8xbf16>, vector<8x158xbf16>, vector<8x158xf32> -> vector<8x158xf32>
    %30 = arith.addf %24, %29 : vector<8x158xf32>
    %c5 = arith.constant 5 : index
    %c0_30 = arith.constant 0 : index
    %c0_31 = arith.constant 0 : index
    %31 = vector.load %arg2[%c5, %c0_30, %c0_31] : memref<15x8x8xbf16, #tpu.memory_space<vmem>>, vector<1x8x8xbf16>
    %32 = vector.shape_cast %31 : vector<1x8x8xbf16> to vector<8x8xbf16>
    %c0_32 = arith.constant 0 : index
    %c0_33 = arith.constant 0 : index
    %c5_34 = arith.constant 5 : index
    %33 = vector.load %arg1[%c0_32, %c0_33, %c5_34] : memref<1x8x172xbf16, #tpu.memory_space<vmem>>, vector<1x8x158xbf16>
    %34 = vector.shape_cast %33 : vector<1x8x158xbf16> to vector<8x158xbf16>
    %cst_35 = arith.constant dense<0.000000e+00> : vector<8x158xf32>
    %35 = tpu.matmul %32, %34, %cst_35 {dimension_numbers = #tpu.dot_dimension_numbers<[1], [0], [0], [1], [0, 0, 1, 1], [], []>} : vector<8x8xbf16>, vector<8x158xbf16>, vector<8x158xf32> -> vector<8x158xf32>
    %36 = arith.addf %30, %35 : vector<8x158xf32>
    %c6 = arith.constant 6 : index
    %c0_36 = arith.constant 0 : index
    %c0_37 = arith.constant 0 : index
    %37 = vector.load %arg2[%c6, %c0_36, %c0_37] : memref<15x8x8xbf16, #tpu.memory_space<vmem>>, vector<1x8x8xbf16>
    %38 = vector.shape_cast %37 : vector<1x8x8xbf16> to vector<8x8xbf16>
    %c0_38 = arith.constant 0 : index
    %c0_39 = arith.constant 0 : index
    %c6_40 = arith.constant 6 : index
    %39 = vector.load %arg1[%c0_38, %c0_39, %c6_40] : memref<1x8x172xbf16, #tpu.memory_space<vmem>>, vector<1x8x158xbf16>
    %40 = vector.shape_cast %39 : vector<1x8x158xbf16> to vector<8x158xbf16>
    %cst_41 = arith.constant dense<0.000000e+00> : vector<8x158xf32>
    %41 = tpu.matmul %38, %40, %cst_41 {dimension_numbers = #tpu.dot_dimension_numbers<[1], [0], [0], [1], [0, 0, 1, 1], [], []>} : vector<8x8xbf16>, vector<8x158xbf16>, vector<8x158xf32> -> vector<8x158xf32>
    %42 = arith.addf %36, %41 : vector<8x158xf32>
    %c7 = arith.constant 7 : index
    %c0_42 = arith.constant 0 : index
    %c0_43 = arith.constant 0 : index
    %43 = vector.load %arg2[%c7, %c0_42, %c0_43] : memref<15x8x8xbf16, #tpu.memory_space<vmem>>, vector<1x8x8xbf16>
    %44 = vector.shape_cast %43 : vector<1x8x8xbf16> to vector<8x8xbf16>
    %c0_44 = arith.constant 0 : index
    %c0_45 = arith.constant 0 : index
    %c7_46 = arith.constant 7 : index
    %45 = vector.load %arg1[%c0_44, %c0_45, %c7_46] : memref<1x8x172xbf16, #tpu.memory_space<vmem>>, vector<1x8x158xbf16>
    %46 = vector.shape_cast %45 : vector<1x8x158xbf16> to vector<8x158xbf16>
    %cst_47 = arith.constant dense<0.000000e+00> : vector<8x158xf32>
    %47 = tpu.matmul %44, %46, %cst_47 {dimension_numbers = #tpu.dot_dimension_numbers<[1], [0], [0], [1], [0, 0, 1, 1], [], []>} : vector<8x8xbf16>, vector<8x158xbf16>, vector<8x158xf32> -> vector<8x158xf32>
    %48 = arith.addf %42, %47 : vector<8x158xf32>
    %c8 = arith.constant 8 : index
    %c0_48 = arith.constant 0 : index
    %c0_49 = arith.constant 0 : index
    %49 = vector.load %arg2[%c8, %c0_48, %c0_49] : memref<15x8x8xbf16, #tpu.memory_space<vmem>>, vector<1x8x8xbf16>
    %50 = vector.shape_cast %49 : vector<1x8x8xbf16> to vector<8x8xbf16>
    %c0_50 = arith.constant 0 : index
    %c0_51 = arith.constant 0 : index
    %c8_52 = arith.constant 8 : index
    %51 = vector.load %arg1[%c0_50, %c0_51, %c8_52] : memref<1x8x172xbf16, #tpu.memory_space<vmem>>, vector<1x8x158xbf16>
    %52 = vector.shape_cast %51 : vector<1x8x158xbf16> to vector<8x158xbf16>
    %cst_53 = arith.constant dense<0.000000e+00> : vector<8x158xf32>
    %53 = tpu.matmul %50, %52, %cst_53 {dimension_numbers = #tpu.dot_dimension_numbers<[1], [0], [0], [1], [0, 0, 1, 1], [], []>} : vector<8x8xbf16>, vector<8x158xbf16>, vector<8x158xf32> -> vector<8x158xf32>
    %54 = arith.addf %48, %53 : vector<8x158xf32>
    %c9 = arith.constant 9 : index
    %c0_54 = arith.constant 0 : index
    %c0_55 = arith.constant 0 : index
    %55 = vector.load %arg2[%c9, %c0_54, %c0_55] : memref<15x8x8xbf16, #tpu.memory_space<vmem>>, vector<1x8x8xbf16>
    %56 = vector.shape_cast %55 : vector<1x8x8xbf16> to vector<8x8xbf16>
    %c0_56 = arith.constant 0 : index
    %c0_57 = arith.constant 0 : index
    %c9_58 = arith.constant 9 : index
    %57 = vector.load %arg1[%c0_56, %c0_57, %c9_58] : memref<1x8x172xbf16, #tpu.memory_space<vmem>>, vector<1x8x158xbf16>
    %58 = vector.shape_cast %57 : vector<1x8x158xbf16> to vector<8x158xbf16>
    %cst_59 = arith.constant dense<0.000000e+00> : vector<8x158xf32>
    %59 = tpu.matmul %56, %58, %cst_59 {dimension_numbers = #tpu.dot_dimension_numbers<[1], [0], [0], [1], [0, 0, 1, 1], [], []>} : vector<8x8xbf16>, vector<8x158xbf16>, vector<8x158xf32> -> vector<8x158xf32>
    %60 = arith.addf %54, %59 : vector<8x158xf32>
    %c10 = arith.constant 10 : index
    %c0_60 = arith.constant 0 : index
    %c0_61 = arith.constant 0 : index
    %61 = vector.load %arg2[%c10, %c0_60, %c0_61] : memref<15x8x8xbf16, #tpu.memory_space<vmem>>, vector<1x8x8xbf16>
    %62 = vector.shape_cast %61 : vector<1x8x8xbf16> to vector<8x8xbf16>
    %c0_62 = arith.constant 0 : index
    %c0_63 = arith.constant 0 : index
    %c10_64 = arith.constant 10 : index
    %63 = vector.load %arg1[%c0_62, %c0_63, %c10_64] : memref<1x8x172xbf16, #tpu.memory_space<vmem>>, vector<1x8x158xbf16>
    %64 = vector.shape_cast %63 : vector<1x8x158xbf16> to vector<8x158xbf16>
    %cst_65 = arith.constant dense<0.000000e+00> : vector<8x158xf32>
    %65 = tpu.matmul %62, %64, %cst_65 {dimension_numbers = #tpu.dot_dimension_numbers<[1], [0], [0], [1], [0, 0, 1, 1], [], []>} : vector<8x8xbf16>, vector<8x158xbf16>, vector<8x158xf32> -> vector<8x158xf32>
    %66 = arith.addf %60, %65 : vector<8x158xf32>
    %c11 = arith.constant 11 : index
    %c0_66 = arith.constant 0 : index
    %c0_67 = arith.constant 0 : index
    %67 = vector.load %arg2[%c11, %c0_66, %c0_67] : memref<15x8x8xbf16, #tpu.memory_space<vmem>>, vector<1x8x8xbf16>
    %68 = vector.shape_cast %67 : vector<1x8x8xbf16> to vector<8x8xbf16>
    %c0_68 = arith.constant 0 : index
    %c0_69 = arith.constant 0 : index
    %c11_70 = arith.constant 11 : index
    %69 = vector.load %arg1[%c0_68, %c0_69, %c11_70] : memref<1x8x172xbf16, #tpu.memory_space<vmem>>, vector<1x8x158xbf16>
    %70 = vector.shape_cast %69 : vector<1x8x158xbf16> to vector<8x158xbf16>
    %cst_71 = arith.constant dense<0.000000e+00> : vector<8x158xf32>
    %71 = tpu.matmul %68, %70, %cst_71 {dimension_numbers = #tpu.dot_dimension_numbers<[1], [0], [0], [1], [0, 0, 1, 1], [], []>} : vector<8x8xbf16>, vector<8x158xbf16>, vector<8x158xf32> -> vector<8x158xf32>
    %72 = arith.addf %66, %71 : vector<8x158xf32>
    %c12 = arith.constant 12 : index
    %c0_72 = arith.constant 0 : index
    %c0_73 = arith.constant 0 : index
    %73 = vector.load %arg2[%c12, %c0_72, %c0_73] : memref<15x8x8xbf16, #tpu.memory_space<vmem>>, vector<1x8x8xbf16>
    %74 = vector.shape_cast %73 : vector<1x8x8xbf16> to vector<8x8xbf16>
    %c0_74 = arith.constant 0 : index
    %c0_75 = arith.constant 0 : index
    %c12_76 = arith.constant 12 : index
    %75 = vector.load %arg1[%c0_74, %c0_75, %c12_76] : memref<1x8x172xbf16, #tpu.memory_space<vmem>>, vector<1x8x158xbf16>
    %76 = vector.shape_cast %75 : vector<1x8x158xbf16> to vector<8x158xbf16>
    %cst_77 = arith.constant dense<0.000000e+00> : vector<8x158xf32>
    %77 = tpu.matmul %74, %76, %cst_77 {dimension_numbers = #tpu.dot_dimension_numbers<[1], [0], [0], [1], [0, 0, 1, 1], [], []>} : vector<8x8xbf16>, vector<8x158xbf16>, vector<8x158xf32> -> vector<8x158xf32>
    %78 = arith.addf %72, %77 : vector<8x158xf32>
    %c13 = arith.constant 13 : index
    %c0_78 = arith.constant 0 : index
    %c0_79 = arith.constant 0 : index
    %79 = vector.load %arg2[%c13, %c0_78, %c0_79] : memref<15x8x8xbf16, #tpu.memory_space<vmem>>, vector<1x8x8xbf16>
    %80 = vector.shape_cast %79 : vector<1x8x8xbf16> to vector<8x8xbf16>
    %c0_80 = arith.constant 0 : index
    %c0_81 = arith.constant 0 : index
    %c13_82 = arith.constant 13 : index
    %81 = vector.load %arg1[%c0_80, %c0_81, %c13_82] : memref<1x8x172xbf16, #tpu.memory_space<vmem>>, vector<1x8x158xbf16>
    %82 = vector.shape_cast %81 : vector<1x8x158xbf16> to vector<8x158xbf16>
    %cst_83 = arith.constant dense<0.000000e+00> : vector<8x158xf32>
    %83 = tpu.matmul %80, %82, %cst_83 {dimension_numbers = #tpu.dot_dimension_numbers<[1], [0], [0], [1], [0, 0, 1, 1], [], []>} : vector<8x8xbf16>, vector<8x158xbf16>, vector<8x158xf32> -> vector<8x158xf32>
    %84 = arith.addf %78, %83 : vector<8x158xf32>
    %c14 = arith.constant 14 : index
    %c0_84 = arith.constant 0 : index
    %c0_85 = arith.constant 0 : index
    %85 = vector.load %arg2[%c14, %c0_84, %c0_85] : memref<15x8x8xbf16, #tpu.memory_space<vmem>>, vector<1x8x8xbf16>
    %86 = vector.shape_cast %85 : vector<1x8x8xbf16> to vector<8x8xbf16>
    %c0_86 = arith.constant 0 : index
    %c0_87 = arith.constant 0 : index
    %c14_88 = arith.constant 14 : index
    %87 = vector.load %arg1[%c0_86, %c0_87, %c14_88] : memref<1x8x172xbf16, #tpu.memory_space<vmem>>, vector<1x8x158xbf16>
    %88 = vector.shape_cast %87 : vector<1x8x158xbf16> to vector<8x158xbf16>
    %cst_89 = arith.constant dense<0.000000e+00> : vector<8x158xf32>
    %89 = tpu.matmul %86, %88, %cst_89 {dimension_numbers = #tpu.dot_dimension_numbers<[1], [0], [0], [1], [0, 0, 1, 1], [], []>} : vector<8x8xbf16>, vector<8x158xbf16>, vector<8x158xf32> -> vector<8x158xf32>
    %90 = arith.addf %84, %89 : vector<8x158xf32>
    %c0_90 = arith.constant 0 : index
    %c0_91 = arith.constant 0 : index
    %91 = vector.load %arg3[%c0_90, %c0_91] : memref<8x1xf32, #tpu.memory_space<vmem>>, vector<8x1xf32>
    %92 = vector.broadcast %91 : vector<8x1xf32> to vector<8x158xf32>
    %93 = arith.addf %90, %92 : vector<8x158xf32>
    %c0_92 = arith.constant 0 : index
    %c0_93 = arith.constant 0 : index
    %c0_94 = arith.constant 0 : index
    %94 = vector.load %arg4[%c0_92, %c0_93, %c0_94] : memref<1x8x158xbf16, #tpu.memory_space<vmem>>, vector<1x8x158xbf16>
    %95 = vector.shape_cast %94 : vector<1x8x158xbf16> to vector<8x158xbf16>
    %96 = arith.extf %95 : vector<8x158xbf16> to vector<8x158xf32>
    %97 = arith.addf %93, %96 : vector<8x158xf32>
    %cst_95 = arith.constant 0.000000e+00 : f32
    %98 = vector.broadcast %cst_95 : f32 to vector<8x158xf32>
    %99 = arith.cmpf oge, %97, %98 : vector<8x158xf32>
    %cst_96 = arith.constant 0.00999999977 : f32
    %100 = vector.broadcast %cst_96 : f32 to vector<8x158xf32>
    %101 = arith.mulf %100, %97 : vector<8x158xf32>
    %102 = arith.select %99, %97, %101 : vector<8x158xi1>, vector<8x158xf32>
    %103 = arith.truncf %102 : vector<8x158xf32> to vector<8x158xbf16>
    %c0_97 = arith.constant 0 : index
    %c0_98 = arith.constant 0 : index
    %c0_99 = arith.constant 0 : index
    %104 = vector.load %arg5[%c0_97, %c0_98, %c0_99] : memref<1x8x158xbf16, #tpu.memory_space<vmem>>, vector<1x8x158xbf16>
    %105 = vector.shape_cast %104 : vector<1x8x158xbf16> to vector<8x158xbf16>
    %106 = vector.shape_cast %103 : vector<8x158xbf16> to vector<1x8x158xbf16>
    tpu.vector_store %arg5[%c0_97, %c0_98, %c0_99], %106 {strides = array<i32>} : memref<1x8x158xbf16, #tpu.memory_space<vmem>>, vector<1x8x158xbf16>,
    return
  }
  func.func @transform_0(%arg0: i32) -> (i32, i32, i32) {
    %c0_i32 = arith.constant 0 : i32
    %c0_i32_0 = arith.constant 0 : i32
    %c0_i32_1 = arith.constant 0 : i32
    return %arg0, %c0_i32, %c0_i32_0 : i32, i32, i32
  }
  func.func @transform_1(%arg0: i32) -> (i32, i32, i32) {
    %c0_i32 = arith.constant 0 : i32
    %c0_i32_0 = arith.constant 0 : i32
    %c0_i32_1 = arith.constant 0 : i32
    %c0_i32_2 = arith.constant 0 : i32
    return %c0_i32, %c0_i32_0, %c0_i32_1 : i32, i32, i32
  }
  func.func @transform_2(%arg0: i32) -> (i32, i32) {
    %c0_i32 = arith.constant 0 : i32
    %c0_i32_0 = arith.constant 0 : i32
    %c0_i32_1 = arith.constant 0 : i32
    return %c0_i32, %c0_i32_0 : i32, i32
  }
  func.func @transform_3(%arg0: i32) -> (i32, i32, i32) {
    %c0_i32 = arith.constant 0 : i32
    %c0_i32_0 = arith.constant 0 : i32
    %c0_i32_1 = arith.constant 0 : i32
    return %arg0, %c0_i32, %c0_i32_0 : i32, i32, i32
  }
  func.func @transform_4(%arg0: i32) -> (i32, i32, i32) {
    %c0_i32 = arith.constant 0 : i32
    %c0_i32_0 = arith.constant 0 : i32
    %c0_i32_1 = arith.constant 0 : i32
    return %arg0, %c0_i32, %c0_i32_0 : i32, i32, i32
  }
}

module attributes {stable_mosaic.version = 11 : i64} {
  func.func @_conv_bn_kernel(%arg0: i32, %arg1: memref<1x8x172xbf16, #tpu.memory_space<vmem>>, %arg2: memref<15x8x8xbf16, #tpu.memory_space<vmem>>, %arg3: memref<8x1xf32, #tpu.memory_space<vmem>>, %arg4: memref<1x8x158xbf16, #tpu.memory_space<vmem>>) attributes {dimension_semantics = [#tpu.dimension_semantics<parallel>], iteration_bounds = array<i64: 2>, scalar_prefetch = 0 : i64, scratch_operands = 0 : i64, tpu.core_type = #tpu.core_type<tc>, window_params = [{transform_indices = @transform_0, window_bounds = array<i64: 1, 8, 172>}, {pipeline_mode = #tpu.pipeline_mode<synchronous>, transform_indices = @transform_1, window_bounds = array<i64: 15, 8, 8>}, {pipeline_mode = #tpu.pipeline_mode<synchronous>, transform_indices = @transform_2, window_bounds = array<i64: 8, 1>}, {transform_indices = @transform_3, window_bounds = array<i64: 1, 8, 158>}]} {
    %cst = arith.constant 0.000000e+00 : f32
    %0 = vector.broadcast %cst : f32 to vector<8x158xf32>
    %c0 = arith.constant 0 : index
    %c0_0 = arith.constant 0 : index
    %c0_1 = arith.constant 0 : index
    %1 = vector.load %arg2[%c0, %c0_0, %c0_1] : memref<15x8x8xbf16, #tpu.memory_space<vmem>>, vector<1x8x8xbf16>
    %2 = vector.shape_cast %1 : vector<1x8x8xbf16> to vector<8x8xbf16>
    %c0_2 = arith.constant 0 : index
    %c0_3 = arith.constant 0 : index
    %c0_4 = arith.constant 0 : index
    %3 = vector.load %arg1[%c0_2, %c0_3, %c0_4] : memref<1x8x172xbf16, #tpu.memory_space<vmem>>, vector<1x8x158xbf16>
    %4 = vector.shape_cast %3 : vector<1x8x158xbf16> to vector<8x158xbf16>
    %cst_5 = arith.constant dense<0.000000e+00> : vector<8x158xf32>
    %5 = tpu.matmul %2, %4, %cst_5 {dimension_numbers = #tpu.dot_dimension_numbers<[1], [0], [0], [1], [0, 0, 1, 1], [], []>} : vector<8x8xbf16>, vector<8x158xbf16>, vector<8x158xf32> -> vector<8x158xf32>
    %6 = arith.addf %0, %5 : vector<8x158xf32>
    %c1 = arith.constant 1 : index
    %c0_6 = arith.constant 0 : index
    %c0_7 = arith.constant 0 : index
    %7 = vector.load %arg2[%c1, %c0_6, %c0_7] : memref<15x8x8xbf16, #tpu.memory_space<vmem>>, vector<1x8x8xbf16>
    %8 = vector.shape_cast %7 : vector<1x8x8xbf16> to vector<8x8xbf16>
    %c0_8 = arith.constant 0 : index
    %c0_9 = arith.constant 0 : index
    %c1_10 = arith.constant 1 : index
    %9 = vector.load %arg1[%c0_8, %c0_9, %c1_10] : memref<1x8x172xbf16, #tpu.memory_space<vmem>>, vector<1x8x158xbf16>
    %10 = vector.shape_cast %9 : vector<1x8x158xbf16> to vector<8x158xbf16>
    %cst_11 = arith.constant dense<0.000000e+00> : vector<8x158xf32>
    %11 = tpu.matmul %8, %10, %cst_11 {dimension_numbers = #tpu.dot_dimension_numbers<[1], [0], [0], [1], [0, 0, 1, 1], [], []>} : vector<8x8xbf16>, vector<8x158xbf16>, vector<8x158xf32> -> vector<8x158xf32>
    %12 = arith.addf %6, %11 : vector<8x158xf32>
    %c2 = arith.constant 2 : index
    %c0_12 = arith.constant 0 : index
    %c0_13 = arith.constant 0 : index
    %13 = vector.load %arg2[%c2, %c0_12, %c0_13] : memref<15x8x8xbf16, #tpu.memory_space<vmem>>, vector<1x8x8xbf16>
    %14 = vector.shape_cast %13 : vector<1x8x8xbf16> to vector<8x8xbf16>
    %c0_14 = arith.constant 0 : index
    %c0_15 = arith.constant 0 : index
    %c2_16 = arith.constant 2 : index
    %15 = vector.load %arg1[%c0_14, %c0_15, %c2_16] : memref<1x8x172xbf16, #tpu.memory_space<vmem>>, vector<1x8x158xbf16>
    %16 = vector.shape_cast %15 : vector<1x8x158xbf16> to vector<8x158xbf16>
    %cst_17 = arith.constant dense<0.000000e+00> : vector<8x158xf32>
    %17 = tpu.matmul %14, %16, %cst_17 {dimension_numbers = #tpu.dot_dimension_numbers<[1], [0], [0], [1], [0, 0, 1, 1], [], []>} : vector<8x8xbf16>, vector<8x158xbf16>, vector<8x158xf32> -> vector<8x158xf32>
    %18 = arith.addf %12, %17 : vector<8x158xf32>
    %c3 = arith.constant 3 : index
    %c0_18 = arith.constant 0 : index
    %c0_19 = arith.constant 0 : index
    %19 = vector.load %arg2[%c3, %c0_18, %c0_19] : memref<15x8x8xbf16, #tpu.memory_space<vmem>>, vector<1x8x8xbf16>
    %20 = vector.shape_cast %19 : vector<1x8x8xbf16> to vector<8x8xbf16>
    %c0_20 = arith.constant 0 : index
    %c0_21 = arith.constant 0 : index
    %c3_22 = arith.constant 3 : index
    %21 = vector.load %arg1[%c0_20, %c0_21, %c3_22] : memref<1x8x172xbf16, #tpu.memory_space<vmem>>, vector<1x8x158xbf16>
    %22 = vector.shape_cast %21 : vector<1x8x158xbf16> to vector<8x158xbf16>
    %cst_23 = arith.constant dense<0.000000e+00> : vector<8x158xf32>
    %23 = tpu.matmul %20, %22, %cst_23 {dimension_numbers = #tpu.dot_dimension_numbers<[1], [0], [0], [1], [0, 0, 1, 1], [], []>} : vector<8x8xbf16>, vector<8x158xbf16>, vector<8x158xf32> -> vector<8x158xf32>
    %24 = arith.addf %18, %23 : vector<8x158xf32>
    %c4 = arith.constant 4 : index
    %c0_24 = arith.constant 0 : index
    %c0_25 = arith.constant 0 : index
    %25 = vector.load %arg2[%c4, %c0_24, %c0_25] : memref<15x8x8xbf16, #tpu.memory_space<vmem>>, vector<1x8x8xbf16>
    %26 = vector.shape_cast %25 : vector<1x8x8xbf16> to vector<8x8xbf16>
    %c0_26 = arith.constant 0 : index
    %c0_27 = arith.constant 0 : index
    %c4_28 = arith.constant 4 : index
    %27 = vector.load %arg1[%c0_26, %c0_27, %c4_28] : memref<1x8x172xbf16, #tpu.memory_space<vmem>>, vector<1x8x158xbf16>
    %28 = vector.shape_cast %27 : vector<1x8x158xbf16> to vector<8x158xbf16>
    %cst_29 = arith.constant dense<0.000000e+00> : vector<8x158xf32>
    %29 = tpu.matmul %26, %28, %cst_29 {dimension_numbers = #tpu.dot_dimension_numbers<[1], [0], [0], [1], [0, 0, 1, 1], [], []>} : vector<8x8xbf16>, vector<8x158xbf16>, vector<8x158xf32> -> vector<8x158xf32>
    %30 = arith.addf %24, %29 : vector<8x158xf32>
    %c5 = arith.constant 5 : index
    %c0_30 = arith.constant 0 : index
    %c0_31 = arith.constant 0 : index
    %31 = vector.load %arg2[%c5, %c0_30, %c0_31] : memref<15x8x8xbf16, #tpu.memory_space<vmem>>, vector<1x8x8xbf16>
    %32 = vector.shape_cast %31 : vector<1x8x8xbf16> to vector<8x8xbf16>
    %c0_32 = arith.constant 0 : index
    %c0_33 = arith.constant 0 : index
    %c5_34 = arith.constant 5 : index
    %33 = vector.load %arg1[%c0_32, %c0_33, %c5_34] : memref<1x8x172xbf16, #tpu.memory_space<vmem>>, vector<1x8x158xbf16>
    %34 = vector.shape_cast %33 : vector<1x8x158xbf16> to vector<8x158xbf16>
    %cst_35 = arith.constant dense<0.000000e+00> : vector<8x158xf32>
    %35 = tpu.matmul %32, %34, %cst_35 {dimension_numbers = #tpu.dot_dimension_numbers<[1], [0], [0], [1], [0, 0, 1, 1], [], []>} : vector<8x8xbf16>, vector<8x158xbf16>, vector<8x158xf32> -> vector<8x158xf32>
    %36 = arith.addf %30, %35 : vector<8x158xf32>
    %c6 = arith.constant 6 : index
    %c0_36 = arith.constant 0 : index
    %c0_37 = arith.constant 0 : index
    %37 = vector.load %arg2[%c6, %c0_36, %c0_37] : memref<15x8x8xbf16, #tpu.memory_space<vmem>>, vector<1x8x8xbf16>
    %38 = vector.shape_cast %37 : vector<1x8x8xbf16> to vector<8x8xbf16>
    %c0_38 = arith.constant 0 : index
    %c0_39 = arith.constant 0 : index
    %c6_40 = arith.constant 6 : index
    %39 = vector.load %arg1[%c0_38, %c0_39, %c6_40] : memref<1x8x172xbf16, #tpu.memory_space<vmem>>, vector<1x8x158xbf16>
    %40 = vector.shape_cast %39 : vector<1x8x158xbf16> to vector<8x158xbf16>
    %cst_41 = arith.constant dense<0.000000e+00> : vector<8x158xf32>
    %41 = tpu.matmul %38, %40, %cst_41 {dimension_numbers = #tpu.dot_dimension_numbers<[1], [0], [0], [1], [0, 0, 1, 1], [], []>} : vector<8x8xbf16>, vector<8x158xbf16>, vector<8x158xf32> -> vector<8x158xf32>
    %42 = arith.addf %36, %41 : vector<8x158xf32>
    %c7 = arith.constant 7 : index
    %c0_42 = arith.constant 0 : index
    %c0_43 = arith.constant 0 : index
    %43 = vector.load %arg2[%c7, %c0_42, %c0_43] : memref<15x8x8xbf16, #tpu.memory_space<vmem>>, vector<1x8x8xbf16>
    %44 = vector.shape_cast %43 : vector<1x8x8xbf16> to vector<8x8xbf16>
    %c0_44 = arith.constant 0 : index
    %c0_45 = arith.constant 0 : index
    %c7_46 = arith.constant 7 : index
    %45 = vector.load %arg1[%c0_44, %c0_45, %c7_46] : memref<1x8x172xbf16, #tpu.memory_space<vmem>>, vector<1x8x158xbf16>
    %46 = vector.shape_cast %45 : vector<1x8x158xbf16> to vector<8x158xbf16>
    %cst_47 = arith.constant dense<0.000000e+00> : vector<8x158xf32>
    %47 = tpu.matmul %44, %46, %cst_47 {dimension_numbers = #tpu.dot_dimension_numbers<[1], [0], [0], [1], [0, 0, 1, 1], [], []>} : vector<8x8xbf16>, vector<8x158xbf16>, vector<8x158xf32> -> vector<8x158xf32>
    %48 = arith.addf %42, %47 : vector<8x158xf32>
    %c8 = arith.constant 8 : index
    %c0_48 = arith.constant 0 : index
    %c0_49 = arith.constant 0 : index
    %49 = vector.load %arg2[%c8, %c0_48, %c0_49] : memref<15x8x8xbf16, #tpu.memory_space<vmem>>, vector<1x8x8xbf16>
    %50 = vector.shape_cast %49 : vector<1x8x8xbf16> to vector<8x8xbf16>
    %c0_50 = arith.constant 0 : index
    %c0_51 = arith.constant 0 : index
    %c8_52 = arith.constant 8 : index
    %51 = vector.load %arg1[%c0_50, %c0_51, %c8_52] : memref<1x8x172xbf16, #tpu.memory_space<vmem>>, vector<1x8x158xbf16>
    %52 = vector.shape_cast %51 : vector<1x8x158xbf16> to vector<8x158xbf16>
    %cst_53 = arith.constant dense<0.000000e+00> : vector<8x158xf32>
    %53 = tpu.matmul %50, %52, %cst_53 {dimension_numbers = #tpu.dot_dimension_numbers<[1], [0], [0], [1], [0, 0, 1, 1], [], []>} : vector<8x8xbf16>, vector<8x158xbf16>, vector<8x158xf32> -> vector<8x158xf32>
    %54 = arith.addf %48, %53 : vector<8x158xf32>
    %c9 = arith.constant 9 : index
    %c0_54 = arith.constant 0 : index
    %c0_55 = arith.constant 0 : index
    %55 = vector.load %arg2[%c9, %c0_54, %c0_55] : memref<15x8x8xbf16, #tpu.memory_space<vmem>>, vector<1x8x8xbf16>
    %56 = vector.shape_cast %55 : vector<1x8x8xbf16> to vector<8x8xbf16>
    %c0_56 = arith.constant 0 : index
    %c0_57 = arith.constant 0 : index
    %c9_58 = arith.constant 9 : index
    %57 = vector.load %arg1[%c0_56, %c0_57, %c9_58] : memref<1x8x172xbf16, #tpu.memory_space<vmem>>, vector<1x8x158xbf16>
    %58 = vector.shape_cast %57 : vector<1x8x158xbf16> to vector<8x158xbf16>
    %cst_59 = arith.constant dense<0.000000e+00> : vector<8x158xf32>
    %59 = tpu.matmul %56, %58, %cst_59 {dimension_numbers = #tpu.dot_dimension_numbers<[1], [0], [0], [1], [0, 0, 1, 1], [], []>} : vector<8x8xbf16>, vector<8x158xbf16>, vector<8x158xf32> -> vector<8x158xf32>
    %60 = arith.addf %54, %59 : vector<8x158xf32>
    %c10 = arith.constant 10 : index
    %c0_60 = arith.constant 0 : index
    %c0_61 = arith.constant 0 : index
    %61 = vector.load %arg2[%c10, %c0_60, %c0_61] : memref<15x8x8xbf16, #tpu.memory_space<vmem>>, vector<1x8x8xbf16>
    %62 = vector.shape_cast %61 : vector<1x8x8xbf16> to vector<8x8xbf16>
    %c0_62 = arith.constant 0 : index
    %c0_63 = arith.constant 0 : index
    %c10_64 = arith.constant 10 : index
    %63 = vector.load %arg1[%c0_62, %c0_63, %c10_64] : memref<1x8x172xbf16, #tpu.memory_space<vmem>>, vector<1x8x158xbf16>
    %64 = vector.shape_cast %63 : vector<1x8x158xbf16> to vector<8x158xbf16>
    %cst_65 = arith.constant dense<0.000000e+00> : vector<8x158xf32>
    %65 = tpu.matmul %62, %64, %cst_65 {dimension_numbers = #tpu.dot_dimension_numbers<[1], [0], [0], [1], [0, 0, 1, 1], [], []>} : vector<8x8xbf16>, vector<8x158xbf16>, vector<8x158xf32> -> vector<8x158xf32>
    %66 = arith.addf %60, %65 : vector<8x158xf32>
    %c11 = arith.constant 11 : index
    %c0_66 = arith.constant 0 : index
    %c0_67 = arith.constant 0 : index
    %67 = vector.load %arg2[%c11, %c0_66, %c0_67] : memref<15x8x8xbf16, #tpu.memory_space<vmem>>, vector<1x8x8xbf16>
    %68 = vector.shape_cast %67 : vector<1x8x8xbf16> to vector<8x8xbf16>
    %c0_68 = arith.constant 0 : index
    %c0_69 = arith.constant 0 : index
    %c11_70 = arith.constant 11 : index
    %69 = vector.load %arg1[%c0_68, %c0_69, %c11_70] : memref<1x8x172xbf16, #tpu.memory_space<vmem>>, vector<1x8x158xbf16>
    %70 = vector.shape_cast %69 : vector<1x8x158xbf16> to vector<8x158xbf16>
    %cst_71 = arith.constant dense<0.000000e+00> : vector<8x158xf32>
    %71 = tpu.matmul %68, %70, %cst_71 {dimension_numbers = #tpu.dot_dimension_numbers<[1], [0], [0], [1], [0, 0, 1, 1], [], []>} : vector<8x8xbf16>, vector<8x158xbf16>, vector<8x158xf32> -> vector<8x158xf32>
    %72 = arith.addf %66, %71 : vector<8x158xf32>
    %c12 = arith.constant 12 : index
    %c0_72 = arith.constant 0 : index
    %c0_73 = arith.constant 0 : index
    %73 = vector.load %arg2[%c12, %c0_72, %c0_73] : memref<15x8x8xbf16, #tpu.memory_space<vmem>>, vector<1x8x8xbf16>
    %74 = vector.shape_cast %73 : vector<1x8x8xbf16> to vector<8x8xbf16>
    %c0_74 = arith.constant 0 : index
    %c0_75 = arith.constant 0 : index
    %c12_76 = arith.constant 12 : index
    %75 = vector.load %arg1[%c0_74, %c0_75, %c12_76] : memref<1x8x172xbf16, #tpu.memory_space<vmem>>, vector<1x8x158xbf16>
    %76 = vector.shape_cast %75 : vector<1x8x158xbf16> to vector<8x158xbf16>
    %cst_77 = arith.constant dense<0.000000e+00> : vector<8x158xf32>
    %77 = tpu.matmul %74, %76, %cst_77 {dimension_numbers = #tpu.dot_dimension_numbers<[1], [0], [0], [1], [0, 0, 1, 1], [], []>} : vector<8x8xbf16>, vector<8x158xbf16>, vector<8x158xf32> -> vector<8x158xf32>
    %78 = arith.addf %72, %77 : vector<8x158xf32>
    %c13 = arith.constant 13 : index
    %c0_78 = arith.constant 0 : index
    %c0_79 = arith.constant 0 : index
    %79 = vector.load %arg2[%c13, %c0_78, %c0_79] : memref<15x8x8xbf16, #tpu.memory_space<vmem>>, vector<1x8x8xbf16>
    %80 = vector.shape_cast %79 : vector<1x8x8xbf16> to vector<8x8xbf16>
    %c0_80 = arith.constant 0 : index
    %c0_81 = arith.constant 0 : index
    %c13_82 = arith.constant 13 : index
    %81 = vector.load %arg1[%c0_80, %c0_81, %c13_82] : memref<1x8x172xbf16, #tpu.memory_space<vmem>>, vector<1x8x158xbf16>
    %82 = vector.shape_cast %81 : vector<1x8x158xbf16> to vector<8x158xbf16>
    %cst_83 = arith.constant dense<0.000000e+00> : vector<8x158xf32>
    %83 = tpu.matmul %80, %82, %cst_83 {dimension_numbers = #tpu.dot_dimension_numbers<[1], [0], [0], [1], [0, 0, 1, 1], [], []>} : vector<8x8xbf16>, vector<8x158xbf16>, vector<8x158xf32> -> vector<8x158xf32>
    %84 = arith.addf %78, %83 : vector<8x158xf32>
    %c14 = arith.constant 14 : index
    %c0_84 = arith.constant 0 : index
    %c0_85 = arith.constant 0 : index
    %85 = vector.load %arg2[%c14, %c0_84, %c0_85] : memref<15x8x8xbf16, #tpu.memory_space<vmem>>, vector<1x8x8xbf16>
    %86 = vector.shape_cast %85 : vector<1x8x8xbf16> to vector<8x8xbf16>
    %c0_86 = arith.constant 0 : index
    %c0_87 = arith.constant 0 : index
    %c14_88 = arith.constant 14 : index
    %87 = vector.load %arg1[%c0_86, %c0_87, %c14_88] : memref<1x8x172xbf16, #tpu.memory_space<vmem>>, vector<1x8x158xbf16>
    %88 = vector.shape_cast %87 : vector<1x8x158xbf16> to vector<8x158xbf16>
    %cst_89 = arith.constant dense<0.000000e+00> : vector<8x158xf32>
    %89 = tpu.matmul %86, %88, %cst_89 {dimension_numbers = #tpu.dot_dimension_numbers<[1], [0], [0], [1], [0, 0, 1, 1], [], []>} : vector<8x8xbf16>, vector<8x158xbf16>, vector<8x158xf32> -> vector<8x158xf32>
    %90 = arith.addf %84, %89 : vector<8x158xf32>
    %c0_90 = arith.constant 0 : index
    %c0_91 = arith.constant 0 : index
    %91 = vector.load %arg3[%c0_90, %c0_91] : memref<8x1xf32, #tpu.memory_space<vmem>>, vector<8x1xf32>
    %92 = vector.broadcast %91 : vector<8x1xf32> to vector<8x158xf32>
    %93 = arith.addf %90, %92 : vector<8x158xf32>
    %cst_92 = arith.constant 0.000000e+00 : f32
    %94 = vector.broadcast %cst_92 : f32 to vector<8x158xf32>
    %95 = arith.cmpf oge, %93, %94 : vector<8x158xf32>
    %cst_93 = arith.constant 0.00999999977 : f32
    %96 = vector.broadcast %cst_93 : f32 to vector<8x158xf32>
    %97 = arith.mulf %96, %93 : vector<8x158xf32>
    %98 = arith.select %95, %93, %97 : vector<8x158xi1>, vector<8x158xf32>
    %99 = arith.truncf %98 : vector<8x158xf32> to vector<8x158xbf16>
    %c0_94 = arith.constant 0 : index
    %c0_95 = arith.constant 0 : index
    %c0_96 = arith.constant 0 : index
    %100 = vector.load %arg4[%c0_94, %c0_95, %c0_96] : memref<1x8x158xbf16, #tpu.memory_space<vmem>>, vector<1x8x158xbf16>
    %101 = vector.shape_cast %100 : vector<1x8x158xbf16> to vector<8x158xbf16>
    %102 = vector.shape_cast %99 : vector<8x158xbf16> to vector<1x8x158xbf16>
    tpu.vector_store %arg4[%c0_94, %c0_95, %c0_96], %102 {strides = array<i32>} : memref<1x8x158xbf16, #tpu.memory_space<vmem>>, vector<1x8x158xbf16>,
    return
  }
  func.func @transform_0(%arg0: i32) -> (i32, i32, i32) {
    %c0_i32 = arith.constant 0 : i32
    %c0_i32_0 = arith.constant 0 : i32
    %c0_i32_1 = arith.constant 0 : i32
    return %arg0, %c0_i32, %c0_i32_0 : i32, i32, i32
  }
  func.func @transform_1(%arg0: i32) -> (i32, i32, i32) {
    %c0_i32 = arith.constant 0 : i32
    %c0_i32_0 = arith.constant 0 : i32
    %c0_i32_1 = arith.constant 0 : i32
    %c0_i32_2 = arith.constant 0 : i32
    return %c0_i32, %c0_i32_0, %c0_i32_1 : i32, i32, i32
  }
  func.func @transform_2(%arg0: i32) -> (i32, i32) {
    %c0_i32 = arith.constant 0 : i32
    %c0_i32_0 = arith.constant 0 : i32
    %c0_i32_1 = arith.constant 0 : i32
    return %c0_i32, %c0_i32_0 : i32, i32
  }
  func.func @transform_3(%arg0: i32) -> (i32, i32, i32) {
    %c0_i32 = arith.constant 0 : i32
    %c0_i32_0 = arith.constant 0 : i32
    %c0_i32_1 = arith.constant 0 : i32
    return %arg0, %c0_i32, %c0_i32_0 : i32, i32, i32
  }
}

module attributes {stable_mosaic.version = 11 : i64} {
  func.func @_dual_conv_bn_kernel(%arg0: i32, %arg1: memref<1x48x26xbf16, #tpu.memory_space<vmem>>, %arg2: memref<3x32x48xbf16, #tpu.memory_space<vmem>>, %arg3: memref<32x1xf32, #tpu.memory_space<vmem>>, %arg4: memref<1x16x24xbf16, #tpu.memory_space<vmem>>, %arg5: memref<1x16x24xbf16, #tpu.memory_space<vmem>>) attributes {dimension_semantics = [#tpu.dimension_semantics<parallel>], iteration_bounds = array<i64: 2>, scalar_prefetch = 0 : i64, scratch_operands = 0 : i64, tpu.core_type = #tpu.core_type<tc>, window_params = [{transform_indices = @transform_0, window_bounds = array<i64: 1, 48, 26>}, {pipeline_mode = #tpu.pipeline_mode<synchronous>, transform_indices = @transform_1, window_bounds = array<i64: 3, 32, 48>}, {pipeline_mode = #tpu.pipeline_mode<synchronous>, transform_indices = @transform_2, window_bounds = array<i64: 32, 1>}, {transform_indices = @transform_3, window_bounds = array<i64: 1, 16, 24>}, {transform_indices = @transform_4, window_bounds = array<i64: 1, 16, 24>}]} {
    %cst = arith.constant 0.000000e+00 : f32
    %0 = vector.broadcast %cst : f32 to vector<32x24xf32>
    %c0 = arith.constant 0 : index
    %c0_0 = arith.constant 0 : index
    %c0_1 = arith.constant 0 : index
    %1 = vector.load %arg2[%c0, %c0_0, %c0_1] : memref<3x32x48xbf16, #tpu.memory_space<vmem>>, vector<1x32x48xbf16>
    %2 = vector.shape_cast %1 : vector<1x32x48xbf16> to vector<32x48xbf16>
    %c0_2 = arith.constant 0 : index
    %c0_3 = arith.constant 0 : index
    %c0_4 = arith.constant 0 : index
    %3 = vector.load %arg1[%c0_2, %c0_3, %c0_4] : memref<1x48x26xbf16, #tpu.memory_space<vmem>>, vector<1x48x24xbf16>
    %4 = vector.shape_cast %3 : vector<1x48x24xbf16> to vector<48x24xbf16>
    %cst_5 = arith.constant dense<0.000000e+00> : vector<32x24xf32>
    %5 = tpu.matmul %2, %4, %cst_5 {dimension_numbers = #tpu.dot_dimension_numbers<[1], [0], [0], [1], [0, 0, 1, 1], [], []>} : vector<32x48xbf16>, vector<48x24xbf16>, vector<32x24xf32> -> vector<32x24xf32>
    %6 = arith.addf %0, %5 : vector<32x24xf32>
    %c1 = arith.constant 1 : index
    %c0_6 = arith.constant 0 : index
    %c0_7 = arith.constant 0 : index
    %7 = vector.load %arg2[%c1, %c0_6, %c0_7] : memref<3x32x48xbf16, #tpu.memory_space<vmem>>, vector<1x32x48xbf16>
    %8 = vector.shape_cast %7 : vector<1x32x48xbf16> to vector<32x48xbf16>
    %c0_8 = arith.constant 0 : index
    %c0_9 = arith.constant 0 : index
    %c1_10 = arith.constant 1 : index
    %9 = vector.load %arg1[%c0_8, %c0_9, %c1_10] : memref<1x48x26xbf16, #tpu.memory_space<vmem>>, vector<1x48x24xbf16>
    %10 = vector.shape_cast %9 : vector<1x48x24xbf16> to vector<48x24xbf16>
    %cst_11 = arith.constant dense<0.000000e+00> : vector<32x24xf32>
    %11 = tpu.matmul %8, %10, %cst_11 {dimension_numbers = #tpu.dot_dimension_numbers<[1], [0], [0], [1], [0, 0, 1, 1], [], []>} : vector<32x48xbf16>, vector<48x24xbf16>, vector<32x24xf32> -> vector<32x24xf32>
    %12 = arith.addf %6, %11 : vector<32x24xf32>
    %c2 = arith.constant 2 : index
    %c0_12 = arith.constant 0 : index
    %c0_13 = arith.constant 0 : index
    %13 = vector.load %arg2[%c2, %c0_12, %c0_13] : memref<3x32x48xbf16, #tpu.memory_space<vmem>>, vector<1x32x48xbf16>
    %14 = vector.shape_cast %13 : vector<1x32x48xbf16> to vector<32x48xbf16>
    %c0_14 = arith.constant 0 : index
    %c0_15 = arith.constant 0 : index
    %c2_16 = arith.constant 2 : index
    %15 = vector.load %arg1[%c0_14, %c0_15, %c2_16] : memref<1x48x26xbf16, #tpu.memory_space<vmem>>, vector<1x48x24xbf16>
    %16 = vector.shape_cast %15 : vector<1x48x24xbf16> to vector<48x24xbf16>
    %cst_17 = arith.constant dense<0.000000e+00> : vector<32x24xf32>
    %17 = tpu.matmul %14, %16, %cst_17 {dimension_numbers = #tpu.dot_dimension_numbers<[1], [0], [0], [1], [0, 0, 1, 1], [], []>} : vector<32x48xbf16>, vector<48x24xbf16>, vector<32x24xf32> -> vector<32x24xf32>
    %18 = arith.addf %12, %17 : vector<32x24xf32>
    %c0_18 = arith.constant 0 : index
    %c0_19 = arith.constant 0 : index
    %19 = vector.load %arg3[%c0_18, %c0_19] : memref<32x1xf32, #tpu.memory_space<vmem>>, vector<32x1xf32>
    %20 = vector.broadcast %19 : vector<32x1xf32> to vector<32x24xf32>
    %21 = arith.addf %18, %20 : vector<32x24xf32>
    %22 = vector.extract_strided_slice %21 {offsets = [0, 0], sizes = [16, 24], strides = [1, 1]} : vector<32x24xf32> to vector<16x24xf32>
    %cst_20 = arith.constant 0.000000e+00 : f32
    %23 = vector.broadcast %cst_20 : f32 to vector<16x24xf32>
    %24 = arith.cmpf oge, %22, %23 : vector<16x24xf32>
    %cst_21 = arith.constant 0.00999999977 : f32
    %25 = vector.broadcast %cst_21 : f32 to vector<16x24xf32>
    %26 = arith.mulf %25, %22 : vector<16x24xf32>
    %27 = arith.select %24, %22, %26 : vector<16x24xi1>, vector<16x24xf32>
    %28 = arith.truncf %27 : vector<16x24xf32> to vector<16x24xbf16>
    %c0_22 = arith.constant 0 : index
    %c0_23 = arith.constant 0 : index
    %c0_24 = arith.constant 0 : index
    %29 = vector.load %arg4[%c0_22, %c0_23, %c0_24] : memref<1x16x24xbf16, #tpu.memory_space<vmem>>, vector<1x16x24xbf16>
    %30 = vector.shape_cast %29 : vector<1x16x24xbf16> to vector<16x24xbf16>
    %31 = vector.shape_cast %28 : vector<16x24xbf16> to vector<1x16x24xbf16>
    tpu.vector_store %arg4[%c0_22, %c0_23, %c0_24], %31 {strides = array<i32>} : memref<1x16x24xbf16, #tpu.memory_space<vmem>>, vector<1x16x24xbf16>,
    %32 = vector.extract_strided_slice %21 {offsets = [16, 0], sizes = [16, 24], strides = [1, 1]} : vector<32x24xf32> to vector<16x24xf32>
    %33 = arith.truncf %32 : vector<16x24xf32> to vector<16x24xbf16>
    %c0_25 = arith.constant 0 : index
    %c0_26 = arith.constant 0 : index
    %c0_27 = arith.constant 0 : index
    %34 = vector.load %arg5[%c0_25, %c0_26, %c0_27] : memref<1x16x24xbf16, #tpu.memory_space<vmem>>, vector<1x16x24xbf16>
    %35 = vector.shape_cast %34 : vector<1x16x24xbf16> to vector<16x24xbf16>
    %36 = vector.shape_cast %33 : vector<16x24xbf16> to vector<1x16x24xbf16>
    tpu.vector_store %arg5[%c0_25, %c0_26, %c0_27], %36 {strides = array<i32>} : memref<1x16x24xbf16, #tpu.memory_space<vmem>>, vector<1x16x24xbf16>,
    return
  }
  func.func @transform_0(%arg0: i32) -> (i32, i32, i32) {
    %c0_i32 = arith.constant 0 : i32
    %c0_i32_0 = arith.constant 0 : i32
    %c0_i32_1 = arith.constant 0 : i32
    return %arg0, %c0_i32, %c0_i32_0 : i32, i32, i32
  }
  func.func @transform_1(%arg0: i32) -> (i32, i32, i32) {
    %c0_i32 = arith.constant 0 : i32
    %c0_i32_0 = arith.constant 0 : i32
    %c0_i32_1 = arith.constant 0 : i32
    %c0_i32_2 = arith.constant 0 : i32
    return %c0_i32, %c0_i32_0, %c0_i32_1 : i32, i32, i32
  }
  func.func @transform_2(%arg0: i32) -> (i32, i32) {
    %c0_i32 = arith.constant 0 : i32
    %c0_i32_0 = arith.constant 0 : i32
    %c0_i32_1 = arith.constant 0 : i32
    return %c0_i32, %c0_i32_0 : i32, i32
  }
  func.func @transform_3(%arg0: i32) -> (i32, i32, i32) {
    %c0_i32 = arith.constant 0 : i32
    %c0_i32_0 = arith.constant 0 : i32
    %c0_i32_1 = arith.constant 0 : i32
    return %arg0, %c0_i32, %c0_i32_0 : i32, i32, i32
  }
  func.func @transform_4(%arg0: i32) -> (i32, i32, i32) {
    %c0_i32 = arith.constant 0 : i32
    %c0_i32_0 = arith.constant 0 : i32
    %c0_i32_1 = arith.constant 0 : i32
    return %arg0, %c0_i32, %c0_i32_0 : i32, i32, i32
  }
}

module attributes {stable_mosaic.version = 11 : i64} {
  func.func @_conv_bn_res_kernel(%arg0: i32, %arg1: memref<1x16x38xbf16, #tpu.memory_space<vmem>>, %arg2: memref<15x16x16xbf16, #tpu.memory_space<vmem>>, %arg3: memref<16x1xf32, #tpu.memory_space<vmem>>, %arg4: memref<1x16x24xbf16, #tpu.memory_space<vmem>>, %arg5: memref<1x16x24xbf16, #tpu.memory_space<vmem>>) attributes {dimension_semantics = [#tpu.dimension_semantics<parallel>], iteration_bounds = array<i64: 2>, scalar_prefetch = 0 : i64, scratch_operands = 0 : i64, tpu.core_type = #tpu.core_type<tc>, window_params = [{transform_indices = @transform_0, window_bounds = array<i64: 1, 16, 38>}, {pipeline_mode = #tpu.pipeline_mode<synchronous>, transform_indices = @transform_1, window_bounds = array<i64: 15, 16, 16>}, {pipeline_mode = #tpu.pipeline_mode<synchronous>, transform_indices = @transform_2, window_bounds = array<i64: 16, 1>}, {transform_indices = @transform_3, window_bounds = array<i64: 1, 16, 24>}, {transform_indices = @transform_4, window_bounds = array<i64: 1, 16, 24>}]} {
    %cst = arith.constant 0.000000e+00 : f32
    %0 = vector.broadcast %cst : f32 to vector<16x24xf32>
    %c0 = arith.constant 0 : index
    %c0_0 = arith.constant 0 : index
    %c0_1 = arith.constant 0 : index
    %1 = vector.load %arg2[%c0, %c0_0, %c0_1] : memref<15x16x16xbf16, #tpu.memory_space<vmem>>, vector<1x16x16xbf16>
    %2 = vector.shape_cast %1 : vector<1x16x16xbf16> to vector<16x16xbf16>
    %c0_2 = arith.constant 0 : index
    %c0_3 = arith.constant 0 : index
    %c0_4 = arith.constant 0 : index
    %3 = vector.load %arg1[%c0_2, %c0_3, %c0_4] : memref<1x16x38xbf16, #tpu.memory_space<vmem>>, vector<1x16x24xbf16>
    %4 = vector.shape_cast %3 : vector<1x16x24xbf16> to vector<16x24xbf16>
    %cst_5 = arith.constant dense<0.000000e+00> : vector<16x24xf32>
    %5 = tpu.matmul %2, %4, %cst_5 {dimension_numbers = #tpu.dot_dimension_numbers<[1], [0], [0], [1], [0, 0, 1, 1], [], []>} : vector<16x16xbf16>, vector<16x24xbf16>, vector<16x24xf32> -> vector<16x24xf32>
    %6 = arith.addf %0, %5 : vector<16x24xf32>
    %c1 = arith.constant 1 : index
    %c0_6 = arith.constant 0 : index
    %c0_7 = arith.constant 0 : index
    %7 = vector.load %arg2[%c1, %c0_6, %c0_7] : memref<15x16x16xbf16, #tpu.memory_space<vmem>>, vector<1x16x16xbf16>
    %8 = vector.shape_cast %7 : vector<1x16x16xbf16> to vector<16x16xbf16>
    %c0_8 = arith.constant 0 : index
    %c0_9 = arith.constant 0 : index
    %c1_10 = arith.constant 1 : index
    %9 = vector.load %arg1[%c0_8, %c0_9, %c1_10] : memref<1x16x38xbf16, #tpu.memory_space<vmem>>, vector<1x16x24xbf16>
    %10 = vector.shape_cast %9 : vector<1x16x24xbf16> to vector<16x24xbf16>
    %cst_11 = arith.constant dense<0.000000e+00> : vector<16x24xf32>
    %11 = tpu.matmul %8, %10, %cst_11 {dimension_numbers = #tpu.dot_dimension_numbers<[1], [0], [0], [1], [0, 0, 1, 1], [], []>} : vector<16x16xbf16>, vector<16x24xbf16>, vector<16x24xf32> -> vector<16x24xf32>
    %12 = arith.addf %6, %11 : vector<16x24xf32>
    %c2 = arith.constant 2 : index
    %c0_12 = arith.constant 0 : index
    %c0_13 = arith.constant 0 : index
    %13 = vector.load %arg2[%c2, %c0_12, %c0_13] : memref<15x16x16xbf16, #tpu.memory_space<vmem>>, vector<1x16x16xbf16>
    %14 = vector.shape_cast %13 : vector<1x16x16xbf16> to vector<16x16xbf16>
    %c0_14 = arith.constant 0 : index
    %c0_15 = arith.constant 0 : index
    %c2_16 = arith.constant 2 : index
    %15 = vector.load %arg1[%c0_14, %c0_15, %c2_16] : memref<1x16x38xbf16, #tpu.memory_space<vmem>>, vector<1x16x24xbf16>
    %16 = vector.shape_cast %15 : vector<1x16x24xbf16> to vector<16x24xbf16>
    %cst_17 = arith.constant dense<0.000000e+00> : vector<16x24xf32>
    %17 = tpu.matmul %14, %16, %cst_17 {dimension_numbers = #tpu.dot_dimension_numbers<[1], [0], [0], [1], [0, 0, 1, 1], [], []>} : vector<16x16xbf16>, vector<16x24xbf16>, vector<16x24xf32> -> vector<16x24xf32>
    %18 = arith.addf %12, %17 : vector<16x24xf32>
    %c3 = arith.constant 3 : index
    %c0_18 = arith.constant 0 : index
    %c0_19 = arith.constant 0 : index
    %19 = vector.load %arg2[%c3, %c0_18, %c0_19] : memref<15x16x16xbf16, #tpu.memory_space<vmem>>, vector<1x16x16xbf16>
    %20 = vector.shape_cast %19 : vector<1x16x16xbf16> to vector<16x16xbf16>
    %c0_20 = arith.constant 0 : index
    %c0_21 = arith.constant 0 : index
    %c3_22 = arith.constant 3 : index
    %21 = vector.load %arg1[%c0_20, %c0_21, %c3_22] : memref<1x16x38xbf16, #tpu.memory_space<vmem>>, vector<1x16x24xbf16>
    %22 = vector.shape_cast %21 : vector<1x16x24xbf16> to vector<16x24xbf16>
    %cst_23 = arith.constant dense<0.000000e+00> : vector<16x24xf32>
    %23 = tpu.matmul %20, %22, %cst_23 {dimension_numbers = #tpu.dot_dimension_numbers<[1], [0], [0], [1], [0, 0, 1, 1], [], []>} : vector<16x16xbf16>, vector<16x24xbf16>, vector<16x24xf32> -> vector<16x24xf32>
    %24 = arith.addf %18, %23 : vector<16x24xf32>
    %c4 = arith.constant 4 : index
    %c0_24 = arith.constant 0 : index
    %c0_25 = arith.constant 0 : index
    %25 = vector.load %arg2[%c4, %c0_24, %c0_25] : memref<15x16x16xbf16, #tpu.memory_space<vmem>>, vector<1x16x16xbf16>
    %26 = vector.shape_cast %25 : vector<1x16x16xbf16> to vector<16x16xbf16>
    %c0_26 = arith.constant 0 : index
    %c0_27 = arith.constant 0 : index
    %c4_28 = arith.constant 4 : index
    %27 = vector.load %arg1[%c0_26, %c0_27, %c4_28] : memref<1x16x38xbf16, #tpu.memory_space<vmem>>, vector<1x16x24xbf16>
    %28 = vector.shape_cast %27 : vector<1x16x24xbf16> to vector<16x24xbf16>
    %cst_29 = arith.constant dense<0.000000e+00> : vector<16x24xf32>
    %29 = tpu.matmul %26, %28, %cst_29 {dimension_numbers = #tpu.dot_dimension_numbers<[1], [0], [0], [1], [0, 0, 1, 1], [], []>} : vector<16x16xbf16>, vector<16x24xbf16>, vector<16x24xf32> -> vector<16x24xf32>
    %30 = arith.addf %24, %29 : vector<16x24xf32>
    %c5 = arith.constant 5 : index
    %c0_30 = arith.constant 0 : index
    %c0_31 = arith.constant 0 : index
    %31 = vector.load %arg2[%c5, %c0_30, %c0_31] : memref<15x16x16xbf16, #tpu.memory_space<vmem>>, vector<1x16x16xbf16>
    %32 = vector.shape_cast %31 : vector<1x16x16xbf16> to vector<16x16xbf16>
    %c0_32 = arith.constant 0 : index
    %c0_33 = arith.constant 0 : index
    %c5_34 = arith.constant 5 : index
    %33 = vector.load %arg1[%c0_32, %c0_33, %c5_34] : memref<1x16x38xbf16, #tpu.memory_space<vmem>>, vector<1x16x24xbf16>
    %34 = vector.shape_cast %33 : vector<1x16x24xbf16> to vector<16x24xbf16>
    %cst_35 = arith.constant dense<0.000000e+00> : vector<16x24xf32>
    %35 = tpu.matmul %32, %34, %cst_35 {dimension_numbers = #tpu.dot_dimension_numbers<[1], [0], [0], [1], [0, 0, 1, 1], [], []>} : vector<16x16xbf16>, vector<16x24xbf16>, vector<16x24xf32> -> vector<16x24xf32>
    %36 = arith.addf %30, %35 : vector<16x24xf32>
    %c6 = arith.constant 6 : index
    %c0_36 = arith.constant 0 : index
    %c0_37 = arith.constant 0 : index
    %37 = vector.load %arg2[%c6, %c0_36, %c0_37] : memref<15x16x16xbf16, #tpu.memory_space<vmem>>, vector<1x16x16xbf16>
    %38 = vector.shape_cast %37 : vector<1x16x16xbf16> to vector<16x16xbf16>
    %c0_38 = arith.constant 0 : index
    %c0_39 = arith.constant 0 : index
    %c6_40 = arith.constant 6 : index
    %39 = vector.load %arg1[%c0_38, %c0_39, %c6_40] : memref<1x16x38xbf16, #tpu.memory_space<vmem>>, vector<1x16x24xbf16>
    %40 = vector.shape_cast %39 : vector<1x16x24xbf16> to vector<16x24xbf16>
    %cst_41 = arith.constant dense<0.000000e+00> : vector<16x24xf32>
    %41 = tpu.matmul %38, %40, %cst_41 {dimension_numbers = #tpu.dot_dimension_numbers<[1], [0], [0], [1], [0, 0, 1, 1], [], []>} : vector<16x16xbf16>, vector<16x24xbf16>, vector<16x24xf32> -> vector<16x24xf32>
    %42 = arith.addf %36, %41 : vector<16x24xf32>
    %c7 = arith.constant 7 : index
    %c0_42 = arith.constant 0 : index
    %c0_43 = arith.constant 0 : index
    %43 = vector.load %arg2[%c7, %c0_42, %c0_43] : memref<15x16x16xbf16, #tpu.memory_space<vmem>>, vector<1x16x16xbf16>
    %44 = vector.shape_cast %43 : vector<1x16x16xbf16> to vector<16x16xbf16>
    %c0_44 = arith.constant 0 : index
    %c0_45 = arith.constant 0 : index
    %c7_46 = arith.constant 7 : index
    %45 = vector.load %arg1[%c0_44, %c0_45, %c7_46] : memref<1x16x38xbf16, #tpu.memory_space<vmem>>, vector<1x16x24xbf16>
    %46 = vector.shape_cast %45 : vector<1x16x24xbf16> to vector<16x24xbf16>
    %cst_47 = arith.constant dense<0.000000e+00> : vector<16x24xf32>
    %47 = tpu.matmul %44, %46, %cst_47 {dimension_numbers = #tpu.dot_dimension_numbers<[1], [0], [0], [1], [0, 0, 1, 1], [], []>} : vector<16x16xbf16>, vector<16x24xbf16>, vector<16x24xf32> -> vector<16x24xf32>
    %48 = arith.addf %42, %47 : vector<16x24xf32>
    %c8 = arith.constant 8 : index
    %c0_48 = arith.constant 0 : index
    %c0_49 = arith.constant 0 : index
    %49 = vector.load %arg2[%c8, %c0_48, %c0_49] : memref<15x16x16xbf16, #tpu.memory_space<vmem>>, vector<1x16x16xbf16>
    %50 = vector.shape_cast %49 : vector<1x16x16xbf16> to vector<16x16xbf16>
    %c0_50 = arith.constant 0 : index
    %c0_51 = arith.constant 0 : index
    %c8_52 = arith.constant 8 : index
    %51 = vector.load %arg1[%c0_50, %c0_51, %c8_52] : memref<1x16x38xbf16, #tpu.memory_space<vmem>>, vector<1x16x24xbf16>
    %52 = vector.shape_cast %51 : vector<1x16x24xbf16> to vector<16x24xbf16>
    %cst_53 = arith.constant dense<0.000000e+00> : vector<16x24xf32>
    %53 = tpu.matmul %50, %52, %cst_53 {dimension_numbers = #tpu.dot_dimension_numbers<[1], [0], [0], [1], [0, 0, 1, 1], [], []>} : vector<16x16xbf16>, vector<16x24xbf16>, vector<16x24xf32> -> vector<16x24xf32>
    %54 = arith.addf %48, %53 : vector<16x24xf32>
    %c9 = arith.constant 9 : index
    %c0_54 = arith.constant 0 : index
    %c0_55 = arith.constant 0 : index
    %55 = vector.load %arg2[%c9, %c0_54, %c0_55] : memref<15x16x16xbf16, #tpu.memory_space<vmem>>, vector<1x16x16xbf16>
    %56 = vector.shape_cast %55 : vector<1x16x16xbf16> to vector<16x16xbf16>
    %c0_56 = arith.constant 0 : index
    %c0_57 = arith.constant 0 : index
    %c9_58 = arith.constant 9 : index
    %57 = vector.load %arg1[%c0_56, %c0_57, %c9_58] : memref<1x16x38xbf16, #tpu.memory_space<vmem>>, vector<1x16x24xbf16>
    %58 = vector.shape_cast %57 : vector<1x16x24xbf16> to vector<16x24xbf16>
    %cst_59 = arith.constant dense<0.000000e+00> : vector<16x24xf32>
    %59 = tpu.matmul %56, %58, %cst_59 {dimension_numbers = #tpu.dot_dimension_numbers<[1], [0], [0], [1], [0, 0, 1, 1], [], []>} : vector<16x16xbf16>, vector<16x24xbf16>, vector<16x24xf32> -> vector<16x24xf32>
    %60 = arith.addf %54, %59 : vector<16x24xf32>
    %c10 = arith.constant 10 : index
    %c0_60 = arith.constant 0 : index
    %c0_61 = arith.constant 0 : index
    %61 = vector.load %arg2[%c10, %c0_60, %c0_61] : memref<15x16x16xbf16, #tpu.memory_space<vmem>>, vector<1x16x16xbf16>
    %62 = vector.shape_cast %61 : vector<1x16x16xbf16> to vector<16x16xbf16>
    %c0_62 = arith.constant 0 : index
    %c0_63 = arith.constant 0 : index
    %c10_64 = arith.constant 10 : index
    %63 = vector.load %arg1[%c0_62, %c0_63, %c10_64] : memref<1x16x38xbf16, #tpu.memory_space<vmem>>, vector<1x16x24xbf16>
    %64 = vector.shape_cast %63 : vector<1x16x24xbf16> to vector<16x24xbf16>
    %cst_65 = arith.constant dense<0.000000e+00> : vector<16x24xf32>
    %65 = tpu.matmul %62, %64, %cst_65 {dimension_numbers = #tpu.dot_dimension_numbers<[1], [0], [0], [1], [0, 0, 1, 1], [], []>} : vector<16x16xbf16>, vector<16x24xbf16>, vector<16x24xf32> -> vector<16x24xf32>
    %66 = arith.addf %60, %65 : vector<16x24xf32>
    %c11 = arith.constant 11 : index
    %c0_66 = arith.constant 0 : index
    %c0_67 = arith.constant 0 : index
    %67 = vector.load %arg2[%c11, %c0_66, %c0_67] : memref<15x16x16xbf16, #tpu.memory_space<vmem>>, vector<1x16x16xbf16>
    %68 = vector.shape_cast %67 : vector<1x16x16xbf16> to vector<16x16xbf16>
    %c0_68 = arith.constant 0 : index
    %c0_69 = arith.constant 0 : index
    %c11_70 = arith.constant 11 : index
    %69 = vector.load %arg1[%c0_68, %c0_69, %c11_70] : memref<1x16x38xbf16, #tpu.memory_space<vmem>>, vector<1x16x24xbf16>
    %70 = vector.shape_cast %69 : vector<1x16x24xbf16> to vector<16x24xbf16>
    %cst_71 = arith.constant dense<0.000000e+00> : vector<16x24xf32>
    %71 = tpu.matmul %68, %70, %cst_71 {dimension_numbers = #tpu.dot_dimension_numbers<[1], [0], [0], [1], [0, 0, 1, 1], [], []>} : vector<16x16xbf16>, vector<16x24xbf16>, vector<16x24xf32> -> vector<16x24xf32>
    %72 = arith.addf %66, %71 : vector<16x24xf32>
    %c12 = arith.constant 12 : index
    %c0_72 = arith.constant 0 : index
    %c0_73 = arith.constant 0 : index
    %73 = vector.load %arg2[%c12, %c0_72, %c0_73] : memref<15x16x16xbf16, #tpu.memory_space<vmem>>, vector<1x16x16xbf16>
    %74 = vector.shape_cast %73 : vector<1x16x16xbf16> to vector<16x16xbf16>
    %c0_74 = arith.constant 0 : index
    %c0_75 = arith.constant 0 : index
    %c12_76 = arith.constant 12 : index
    %75 = vector.load %arg1[%c0_74, %c0_75, %c12_76] : memref<1x16x38xbf16, #tpu.memory_space<vmem>>, vector<1x16x24xbf16>
    %76 = vector.shape_cast %75 : vector<1x16x24xbf16> to vector<16x24xbf16>
    %cst_77 = arith.constant dense<0.000000e+00> : vector<16x24xf32>
    %77 = tpu.matmul %74, %76, %cst_77 {dimension_numbers = #tpu.dot_dimension_numbers<[1], [0], [0], [1], [0, 0, 1, 1], [], []>} : vector<16x16xbf16>, vector<16x24xbf16>, vector<16x24xf32> -> vector<16x24xf32>
    %78 = arith.addf %72, %77 : vector<16x24xf32>
    %c13 = arith.constant 13 : index
    %c0_78 = arith.constant 0 : index
    %c0_79 = arith.constant 0 : index
    %79 = vector.load %arg2[%c13, %c0_78, %c0_79] : memref<15x16x16xbf16, #tpu.memory_space<vmem>>, vector<1x16x16xbf16>
    %80 = vector.shape_cast %79 : vector<1x16x16xbf16> to vector<16x16xbf16>
    %c0_80 = arith.constant 0 : index
    %c0_81 = arith.constant 0 : index
    %c13_82 = arith.constant 13 : index
    %81 = vector.load %arg1[%c0_80, %c0_81, %c13_82] : memref<1x16x38xbf16, #tpu.memory_space<vmem>>, vector<1x16x24xbf16>
    %82 = vector.shape_cast %81 : vector<1x16x24xbf16> to vector<16x24xbf16>
    %cst_83 = arith.constant dense<0.000000e+00> : vector<16x24xf32>
    %83 = tpu.matmul %80, %82, %cst_83 {dimension_numbers = #tpu.dot_dimension_numbers<[1], [0], [0], [1], [0, 0, 1, 1], [], []>} : vector<16x16xbf16>, vector<16x24xbf16>, vector<16x24xf32> -> vector<16x24xf32>
    %84 = arith.addf %78, %83 : vector<16x24xf32>
    %c14 = arith.constant 14 : index
    %c0_84 = arith.constant 0 : index
    %c0_85 = arith.constant 0 : index
    %85 = vector.load %arg2[%c14, %c0_84, %c0_85] : memref<15x16x16xbf16, #tpu.memory_space<vmem>>, vector<1x16x16xbf16>
    %86 = vector.shape_cast %85 : vector<1x16x16xbf16> to vector<16x16xbf16>
    %c0_86 = arith.constant 0 : index
    %c0_87 = arith.constant 0 : index
    %c14_88 = arith.constant 14 : index
    %87 = vector.load %arg1[%c0_86, %c0_87, %c14_88] : memref<1x16x38xbf16, #tpu.memory_space<vmem>>, vector<1x16x24xbf16>
    %88 = vector.shape_cast %87 : vector<1x16x24xbf16> to vector<16x24xbf16>
    %cst_89 = arith.constant dense<0.000000e+00> : vector<16x24xf32>
    %89 = tpu.matmul %86, %88, %cst_89 {dimension_numbers = #tpu.dot_dimension_numbers<[1], [0], [0], [1], [0, 0, 1, 1], [], []>} : vector<16x16xbf16>, vector<16x24xbf16>, vector<16x24xf32> -> vector<16x24xf32>
    %90 = arith.addf %84, %89 : vector<16x24xf32>
    %c0_90 = arith.constant 0 : index
    %c0_91 = arith.constant 0 : index
    %91 = vector.load %arg3[%c0_90, %c0_91] : memref<16x1xf32, #tpu.memory_space<vmem>>, vector<16x1xf32>
    %92 = vector.broadcast %91 : vector<16x1xf32> to vector<16x24xf32>
    %93 = arith.addf %90, %92 : vector<16x24xf32>
    %c0_92 = arith.constant 0 : index
    %c0_93 = arith.constant 0 : index
    %c0_94 = arith.constant 0 : index
    %94 = vector.load %arg4[%c0_92, %c0_93, %c0_94] : memref<1x16x24xbf16, #tpu.memory_space<vmem>>, vector<1x16x24xbf16>
    %95 = vector.shape_cast %94 : vector<1x16x24xbf16> to vector<16x24xbf16>
    %96 = arith.extf %95 : vector<16x24xbf16> to vector<16x24xf32>
    %97 = arith.addf %93, %96 : vector<16x24xf32>
    %cst_95 = arith.constant 0.000000e+00 : f32
    %98 = vector.broadcast %cst_95 : f32 to vector<16x24xf32>
    %99 = arith.cmpf oge, %97, %98 : vector<16x24xf32>
    %cst_96 = arith.constant 0.00999999977 : f32
    %100 = vector.broadcast %cst_96 : f32 to vector<16x24xf32>
    %101 = arith.mulf %100, %97 : vector<16x24xf32>
    %102 = arith.select %99, %97, %101 : vector<16x24xi1>, vector<16x24xf32>
    %103 = arith.truncf %102 : vector<16x24xf32> to vector<16x24xbf16>
    %c0_97 = arith.constant 0 : index
    %c0_98 = arith.constant 0 : index
    %c0_99 = arith.constant 0 : index
    %104 = vector.load %arg5[%c0_97, %c0_98, %c0_99] : memref<1x16x24xbf16, #tpu.memory_space<vmem>>, vector<1x16x24xbf16>
    %105 = vector.shape_cast %104 : vector<1x16x24xbf16> to vector<16x24xbf16>
    %106 = vector.shape_cast %103 : vector<16x24xbf16> to vector<1x16x24xbf16>
    tpu.vector_store %arg5[%c0_97, %c0_98, %c0_99], %106 {strides = array<i32>} : memref<1x16x24xbf16, #tpu.memory_space<vmem>>, vector<1x16x24xbf16>,
    return
  }
  func.func @transform_0(%arg0: i32) -> (i32, i32, i32) {
    %c0_i32 = arith.constant 0 : i32
    %c0_i32_0 = arith.constant 0 : i32
    %c0_i32_1 = arith.constant 0 : i32
    return %arg0, %c0_i32, %c0_i32_0 : i32, i32, i32
  }
  func.func @transform_1(%arg0: i32) -> (i32, i32, i32) {
    %c0_i32 = arith.constant 0 : i32
    %c0_i32_0 = arith.constant 0 : i32
    %c0_i32_1 = arith.constant 0 : i32
    %c0_i32_2 = arith.constant 0 : i32
    return %c0_i32, %c0_i32_0, %c0_i32_1 : i32, i32, i32
  }
  func.func @transform_2(%arg0: i32) -> (i32, i32) {
    %c0_i32 = arith.constant 0 : i32
    %c0_i32_0 = arith.constant 0 : i32
    %c0_i32_1 = arith.constant 0 : i32
    return %c0_i32, %c0_i32_0 : i32, i32
  }
  func.func @transform_3(%arg0: i32) -> (i32, i32, i32) {
    %c0_i32 = arith.constant 0 : i32
    %c0_i32_0 = arith.constant 0 : i32
    %c0_i32_1 = arith.constant 0 : i32
    return %arg0, %c0_i32, %c0_i32_0 : i32, i32, i32
  }
  func.func @transform_4(%arg0: i32) -> (i32, i32, i32) {
    %c0_i32 = arith.constant 0 : i32
    %c0_i32_0 = arith.constant 0 : i32
    %c0_i32_1 = arith.constant 0 : i32
    return %arg0, %c0_i32, %c0_i32_0 : i32, i32, i32
  }
}

module attributes {stable_mosaic.version = 11 : i64} {
  func.func @_conv_bn_kernel(%arg0: i32, %arg1: memref<1x16x38xbf16, #tpu.memory_space<vmem>>, %arg2: memref<15x16x16xbf16, #tpu.memory_space<vmem>>, %arg3: memref<16x1xf32, #tpu.memory_space<vmem>>, %arg4: memref<1x16x24xbf16, #tpu.memory_space<vmem>>) attributes {dimension_semantics = [#tpu.dimension_semantics<parallel>], iteration_bounds = array<i64: 2>, scalar_prefetch = 0 : i64, scratch_operands = 0 : i64, tpu.core_type = #tpu.core_type<tc>, window_params = [{transform_indices = @transform_0, window_bounds = array<i64: 1, 16, 38>}, {pipeline_mode = #tpu.pipeline_mode<synchronous>, transform_indices = @transform_1, window_bounds = array<i64: 15, 16, 16>}, {pipeline_mode = #tpu.pipeline_mode<synchronous>, transform_indices = @transform_2, window_bounds = array<i64: 16, 1>}, {transform_indices = @transform_3, window_bounds = array<i64: 1, 16, 24>}]} {
    %cst = arith.constant 0.000000e+00 : f32
    %0 = vector.broadcast %cst : f32 to vector<16x24xf32>
    %c0 = arith.constant 0 : index
    %c0_0 = arith.constant 0 : index
    %c0_1 = arith.constant 0 : index
    %1 = vector.load %arg2[%c0, %c0_0, %c0_1] : memref<15x16x16xbf16, #tpu.memory_space<vmem>>, vector<1x16x16xbf16>
    %2 = vector.shape_cast %1 : vector<1x16x16xbf16> to vector<16x16xbf16>
    %c0_2 = arith.constant 0 : index
    %c0_3 = arith.constant 0 : index
    %c0_4 = arith.constant 0 : index
    %3 = vector.load %arg1[%c0_2, %c0_3, %c0_4] : memref<1x16x38xbf16, #tpu.memory_space<vmem>>, vector<1x16x24xbf16>
    %4 = vector.shape_cast %3 : vector<1x16x24xbf16> to vector<16x24xbf16>
    %cst_5 = arith.constant dense<0.000000e+00> : vector<16x24xf32>
    %5 = tpu.matmul %2, %4, %cst_5 {dimension_numbers = #tpu.dot_dimension_numbers<[1], [0], [0], [1], [0, 0, 1, 1], [], []>} : vector<16x16xbf16>, vector<16x24xbf16>, vector<16x24xf32> -> vector<16x24xf32>
    %6 = arith.addf %0, %5 : vector<16x24xf32>
    %c1 = arith.constant 1 : index
    %c0_6 = arith.constant 0 : index
    %c0_7 = arith.constant 0 : index
    %7 = vector.load %arg2[%c1, %c0_6, %c0_7] : memref<15x16x16xbf16, #tpu.memory_space<vmem>>, vector<1x16x16xbf16>
    %8 = vector.shape_cast %7 : vector<1x16x16xbf16> to vector<16x16xbf16>
    %c0_8 = arith.constant 0 : index
    %c0_9 = arith.constant 0 : index
    %c1_10 = arith.constant 1 : index
    %9 = vector.load %arg1[%c0_8, %c0_9, %c1_10] : memref<1x16x38xbf16, #tpu.memory_space<vmem>>, vector<1x16x24xbf16>
    %10 = vector.shape_cast %9 : vector<1x16x24xbf16> to vector<16x24xbf16>
    %cst_11 = arith.constant dense<0.000000e+00> : vector<16x24xf32>
    %11 = tpu.matmul %8, %10, %cst_11 {dimension_numbers = #tpu.dot_dimension_numbers<[1], [0], [0], [1], [0, 0, 1, 1], [], []>} : vector<16x16xbf16>, vector<16x24xbf16>, vector<16x24xf32> -> vector<16x24xf32>
    %12 = arith.addf %6, %11 : vector<16x24xf32>
    %c2 = arith.constant 2 : index
    %c0_12 = arith.constant 0 : index
    %c0_13 = arith.constant 0 : index
    %13 = vector.load %arg2[%c2, %c0_12, %c0_13] : memref<15x16x16xbf16, #tpu.memory_space<vmem>>, vector<1x16x16xbf16>
    %14 = vector.shape_cast %13 : vector<1x16x16xbf16> to vector<16x16xbf16>
    %c0_14 = arith.constant 0 : index
    %c0_15 = arith.constant 0 : index
    %c2_16 = arith.constant 2 : index
    %15 = vector.load %arg1[%c0_14, %c0_15, %c2_16] : memref<1x16x38xbf16, #tpu.memory_space<vmem>>, vector<1x16x24xbf16>
    %16 = vector.shape_cast %15 : vector<1x16x24xbf16> to vector<16x24xbf16>
    %cst_17 = arith.constant dense<0.000000e+00> : vector<16x24xf32>
    %17 = tpu.matmul %14, %16, %cst_17 {dimension_numbers = #tpu.dot_dimension_numbers<[1], [0], [0], [1], [0, 0, 1, 1], [], []>} : vector<16x16xbf16>, vector<16x24xbf16>, vector<16x24xf32> -> vector<16x24xf32>
    %18 = arith.addf %12, %17 : vector<16x24xf32>
    %c3 = arith.constant 3 : index
    %c0_18 = arith.constant 0 : index
    %c0_19 = arith.constant 0 : index
    %19 = vector.load %arg2[%c3, %c0_18, %c0_19] : memref<15x16x16xbf16, #tpu.memory_space<vmem>>, vector<1x16x16xbf16>
    %20 = vector.shape_cast %19 : vector<1x16x16xbf16> to vector<16x16xbf16>
    %c0_20 = arith.constant 0 : index
    %c0_21 = arith.constant 0 : index
    %c3_22 = arith.constant 3 : index
    %21 = vector.load %arg1[%c0_20, %c0_21, %c3_22] : memref<1x16x38xbf16, #tpu.memory_space<vmem>>, vector<1x16x24xbf16>
    %22 = vector.shape_cast %21 : vector<1x16x24xbf16> to vector<16x24xbf16>
    %cst_23 = arith.constant dense<0.000000e+00> : vector<16x24xf32>
    %23 = tpu.matmul %20, %22, %cst_23 {dimension_numbers = #tpu.dot_dimension_numbers<[1], [0], [0], [1], [0, 0, 1, 1], [], []>} : vector<16x16xbf16>, vector<16x24xbf16>, vector<16x24xf32> -> vector<16x24xf32>
    %24 = arith.addf %18, %23 : vector<16x24xf32>
    %c4 = arith.constant 4 : index
    %c0_24 = arith.constant 0 : index
    %c0_25 = arith.constant 0 : index
    %25 = vector.load %arg2[%c4, %c0_24, %c0_25] : memref<15x16x16xbf16, #tpu.memory_space<vmem>>, vector<1x16x16xbf16>
    %26 = vector.shape_cast %25 : vector<1x16x16xbf16> to vector<16x16xbf16>
    %c0_26 = arith.constant 0 : index
    %c0_27 = arith.constant 0 : index
    %c4_28 = arith.constant 4 : index
    %27 = vector.load %arg1[%c0_26, %c0_27, %c4_28] : memref<1x16x38xbf16, #tpu.memory_space<vmem>>, vector<1x16x24xbf16>
    %28 = vector.shape_cast %27 : vector<1x16x24xbf16> to vector<16x24xbf16>
    %cst_29 = arith.constant dense<0.000000e+00> : vector<16x24xf32>
    %29 = tpu.matmul %26, %28, %cst_29 {dimension_numbers = #tpu.dot_dimension_numbers<[1], [0], [0], [1], [0, 0, 1, 1], [], []>} : vector<16x16xbf16>, vector<16x24xbf16>, vector<16x24xf32> -> vector<16x24xf32>
    %30 = arith.addf %24, %29 : vector<16x24xf32>
    %c5 = arith.constant 5 : index
    %c0_30 = arith.constant 0 : index
    %c0_31 = arith.constant 0 : index
    %31 = vector.load %arg2[%c5, %c0_30, %c0_31] : memref<15x16x16xbf16, #tpu.memory_space<vmem>>, vector<1x16x16xbf16>
    %32 = vector.shape_cast %31 : vector<1x16x16xbf16> to vector<16x16xbf16>
    %c0_32 = arith.constant 0 : index
    %c0_33 = arith.constant 0 : index
    %c5_34 = arith.constant 5 : index
    %33 = vector.load %arg1[%c0_32, %c0_33, %c5_34] : memref<1x16x38xbf16, #tpu.memory_space<vmem>>, vector<1x16x24xbf16>
    %34 = vector.shape_cast %33 : vector<1x16x24xbf16> to vector<16x24xbf16>
    %cst_35 = arith.constant dense<0.000000e+00> : vector<16x24xf32>
    %35 = tpu.matmul %32, %34, %cst_35 {dimension_numbers = #tpu.dot_dimension_numbers<[1], [0], [0], [1], [0, 0, 1, 1], [], []>} : vector<16x16xbf16>, vector<16x24xbf16>, vector<16x24xf32> -> vector<16x24xf32>
    %36 = arith.addf %30, %35 : vector<16x24xf32>
    %c6 = arith.constant 6 : index
    %c0_36 = arith.constant 0 : index
    %c0_37 = arith.constant 0 : index
    %37 = vector.load %arg2[%c6, %c0_36, %c0_37] : memref<15x16x16xbf16, #tpu.memory_space<vmem>>, vector<1x16x16xbf16>
    %38 = vector.shape_cast %37 : vector<1x16x16xbf16> to vector<16x16xbf16>
    %c0_38 = arith.constant 0 : index
    %c0_39 = arith.constant 0 : index
    %c6_40 = arith.constant 6 : index
    %39 = vector.load %arg1[%c0_38, %c0_39, %c6_40] : memref<1x16x38xbf16, #tpu.memory_space<vmem>>, vector<1x16x24xbf16>
    %40 = vector.shape_cast %39 : vector<1x16x24xbf16> to vector<16x24xbf16>
    %cst_41 = arith.constant dense<0.000000e+00> : vector<16x24xf32>
    %41 = tpu.matmul %38, %40, %cst_41 {dimension_numbers = #tpu.dot_dimension_numbers<[1], [0], [0], [1], [0, 0, 1, 1], [], []>} : vector<16x16xbf16>, vector<16x24xbf16>, vector<16x24xf32> -> vector<16x24xf32>
    %42 = arith.addf %36, %41 : vector<16x24xf32>
    %c7 = arith.constant 7 : index
    %c0_42 = arith.constant 0 : index
    %c0_43 = arith.constant 0 : index
    %43 = vector.load %arg2[%c7, %c0_42, %c0_43] : memref<15x16x16xbf16, #tpu.memory_space<vmem>>, vector<1x16x16xbf16>
    %44 = vector.shape_cast %43 : vector<1x16x16xbf16> to vector<16x16xbf16>
    %c0_44 = arith.constant 0 : index
    %c0_45 = arith.constant 0 : index
    %c7_46 = arith.constant 7 : index
    %45 = vector.load %arg1[%c0_44, %c0_45, %c7_46] : memref<1x16x38xbf16, #tpu.memory_space<vmem>>, vector<1x16x24xbf16>
    %46 = vector.shape_cast %45 : vector<1x16x24xbf16> to vector<16x24xbf16>
    %cst_47 = arith.constant dense<0.000000e+00> : vector<16x24xf32>
    %47 = tpu.matmul %44, %46, %cst_47 {dimension_numbers = #tpu.dot_dimension_numbers<[1], [0], [0], [1], [0, 0, 1, 1], [], []>} : vector<16x16xbf16>, vector<16x24xbf16>, vector<16x24xf32> -> vector<16x24xf32>
    %48 = arith.addf %42, %47 : vector<16x24xf32>
    %c8 = arith.constant 8 : index
    %c0_48 = arith.constant 0 : index
    %c0_49 = arith.constant 0 : index
    %49 = vector.load %arg2[%c8, %c0_48, %c0_49] : memref<15x16x16xbf16, #tpu.memory_space<vmem>>, vector<1x16x16xbf16>
    %50 = vector.shape_cast %49 : vector<1x16x16xbf16> to vector<16x16xbf16>
    %c0_50 = arith.constant 0 : index
    %c0_51 = arith.constant 0 : index
    %c8_52 = arith.constant 8 : index
    %51 = vector.load %arg1[%c0_50, %c0_51, %c8_52] : memref<1x16x38xbf16, #tpu.memory_space<vmem>>, vector<1x16x24xbf16>
    %52 = vector.shape_cast %51 : vector<1x16x24xbf16> to vector<16x24xbf16>
    %cst_53 = arith.constant dense<0.000000e+00> : vector<16x24xf32>
    %53 = tpu.matmul %50, %52, %cst_53 {dimension_numbers = #tpu.dot_dimension_numbers<[1], [0], [0], [1], [0, 0, 1, 1], [], []>} : vector<16x16xbf16>, vector<16x24xbf16>, vector<16x24xf32> -> vector<16x24xf32>
    %54 = arith.addf %48, %53 : vector<16x24xf32>
    %c9 = arith.constant 9 : index
    %c0_54 = arith.constant 0 : index
    %c0_55 = arith.constant 0 : index
    %55 = vector.load %arg2[%c9, %c0_54, %c0_55] : memref<15x16x16xbf16, #tpu.memory_space<vmem>>, vector<1x16x16xbf16>
    %56 = vector.shape_cast %55 : vector<1x16x16xbf16> to vector<16x16xbf16>
    %c0_56 = arith.constant 0 : index
    %c0_57 = arith.constant 0 : index
    %c9_58 = arith.constant 9 : index
    %57 = vector.load %arg1[%c0_56, %c0_57, %c9_58] : memref<1x16x38xbf16, #tpu.memory_space<vmem>>, vector<1x16x24xbf16>
    %58 = vector.shape_cast %57 : vector<1x16x24xbf16> to vector<16x24xbf16>
    %cst_59 = arith.constant dense<0.000000e+00> : vector<16x24xf32>
    %59 = tpu.matmul %56, %58, %cst_59 {dimension_numbers = #tpu.dot_dimension_numbers<[1], [0], [0], [1], [0, 0, 1, 1], [], []>} : vector<16x16xbf16>, vector<16x24xbf16>, vector<16x24xf32> -> vector<16x24xf32>
    %60 = arith.addf %54, %59 : vector<16x24xf32>
    %c10 = arith.constant 10 : index
    %c0_60 = arith.constant 0 : index
    %c0_61 = arith.constant 0 : index
    %61 = vector.load %arg2[%c10, %c0_60, %c0_61] : memref<15x16x16xbf16, #tpu.memory_space<vmem>>, vector<1x16x16xbf16>
    %62 = vector.shape_cast %61 : vector<1x16x16xbf16> to vector<16x16xbf16>
    %c0_62 = arith.constant 0 : index
    %c0_63 = arith.constant 0 : index
    %c10_64 = arith.constant 10 : index
    %63 = vector.load %arg1[%c0_62, %c0_63, %c10_64] : memref<1x16x38xbf16, #tpu.memory_space<vmem>>, vector<1x16x24xbf16>
    %64 = vector.shape_cast %63 : vector<1x16x24xbf16> to vector<16x24xbf16>
    %cst_65 = arith.constant dense<0.000000e+00> : vector<16x24xf32>
    %65 = tpu.matmul %62, %64, %cst_65 {dimension_numbers = #tpu.dot_dimension_numbers<[1], [0], [0], [1], [0, 0, 1, 1], [], []>} : vector<16x16xbf16>, vector<16x24xbf16>, vector<16x24xf32> -> vector<16x24xf32>
    %66 = arith.addf %60, %65 : vector<16x24xf32>
    %c11 = arith.constant 11 : index
    %c0_66 = arith.constant 0 : index
    %c0_67 = arith.constant 0 : index
    %67 = vector.load %arg2[%c11, %c0_66, %c0_67] : memref<15x16x16xbf16, #tpu.memory_space<vmem>>, vector<1x16x16xbf16>
    %68 = vector.shape_cast %67 : vector<1x16x16xbf16> to vector<16x16xbf16>
    %c0_68 = arith.constant 0 : index
    %c0_69 = arith.constant 0 : index
    %c11_70 = arith.constant 11 : index
    %69 = vector.load %arg1[%c0_68, %c0_69, %c11_70] : memref<1x16x38xbf16, #tpu.memory_space<vmem>>, vector<1x16x24xbf16>
    %70 = vector.shape_cast %69 : vector<1x16x24xbf16> to vector<16x24xbf16>
    %cst_71 = arith.constant dense<0.000000e+00> : vector<16x24xf32>
    %71 = tpu.matmul %68, %70, %cst_71 {dimension_numbers = #tpu.dot_dimension_numbers<[1], [0], [0], [1], [0, 0, 1, 1], [], []>} : vector<16x16xbf16>, vector<16x24xbf16>, vector<16x24xf32> -> vector<16x24xf32>
    %72 = arith.addf %66, %71 : vector<16x24xf32>
    %c12 = arith.constant 12 : index
    %c0_72 = arith.constant 0 : index
    %c0_73 = arith.constant 0 : index
    %73 = vector.load %arg2[%c12, %c0_72, %c0_73] : memref<15x16x16xbf16, #tpu.memory_space<vmem>>, vector<1x16x16xbf16>
    %74 = vector.shape_cast %73 : vector<1x16x16xbf16> to vector<16x16xbf16>
    %c0_74 = arith.constant 0 : index
    %c0_75 = arith.constant 0 : index
    %c12_76 = arith.constant 12 : index
    %75 = vector.load %arg1[%c0_74, %c0_75, %c12_76] : memref<1x16x38xbf16, #tpu.memory_space<vmem>>, vector<1x16x24xbf16>
    %76 = vector.shape_cast %75 : vector<1x16x24xbf16> to vector<16x24xbf16>
    %cst_77 = arith.constant dense<0.000000e+00> : vector<16x24xf32>
    %77 = tpu.matmul %74, %76, %cst_77 {dimension_numbers = #tpu.dot_dimension_numbers<[1], [0], [0], [1], [0, 0, 1, 1], [], []>} : vector<16x16xbf16>, vector<16x24xbf16>, vector<16x24xf32> -> vector<16x24xf32>
    %78 = arith.addf %72, %77 : vector<16x24xf32>
    %c13 = arith.constant 13 : index
    %c0_78 = arith.constant 0 : index
    %c0_79 = arith.constant 0 : index
    %79 = vector.load %arg2[%c13, %c0_78, %c0_79] : memref<15x16x16xbf16, #tpu.memory_space<vmem>>, vector<1x16x16xbf16>
    %80 = vector.shape_cast %79 : vector<1x16x16xbf16> to vector<16x16xbf16>
    %c0_80 = arith.constant 0 : index
    %c0_81 = arith.constant 0 : index
    %c13_82 = arith.constant 13 : index
    %81 = vector.load %arg1[%c0_80, %c0_81, %c13_82] : memref<1x16x38xbf16, #tpu.memory_space<vmem>>, vector<1x16x24xbf16>
    %82 = vector.shape_cast %81 : vector<1x16x24xbf16> to vector<16x24xbf16>
    %cst_83 = arith.constant dense<0.000000e+00> : vector<16x24xf32>
    %83 = tpu.matmul %80, %82, %cst_83 {dimension_numbers = #tpu.dot_dimension_numbers<[1], [0], [0], [1], [0, 0, 1, 1], [], []>} : vector<16x16xbf16>, vector<16x24xbf16>, vector<16x24xf32> -> vector<16x24xf32>
    %84 = arith.addf %78, %83 : vector<16x24xf32>
    %c14 = arith.constant 14 : index
    %c0_84 = arith.constant 0 : index
    %c0_85 = arith.constant 0 : index
    %85 = vector.load %arg2[%c14, %c0_84, %c0_85] : memref<15x16x16xbf16, #tpu.memory_space<vmem>>, vector<1x16x16xbf16>
    %86 = vector.shape_cast %85 : vector<1x16x16xbf16> to vector<16x16xbf16>
    %c0_86 = arith.constant 0 : index
    %c0_87 = arith.constant 0 : index
    %c14_88 = arith.constant 14 : index
    %87 = vector.load %arg1[%c0_86, %c0_87, %c14_88] : memref<1x16x38xbf16, #tpu.memory_space<vmem>>, vector<1x16x24xbf16>
    %88 = vector.shape_cast %87 : vector<1x16x24xbf16> to vector<16x24xbf16>
    %cst_89 = arith.constant dense<0.000000e+00> : vector<16x24xf32>
    %89 = tpu.matmul %86, %88, %cst_89 {dimension_numbers = #tpu.dot_dimension_numbers<[1], [0], [0], [1], [0, 0, 1, 1], [], []>} : vector<16x16xbf16>, vector<16x24xbf16>, vector<16x24xf32> -> vector<16x24xf32>
    %90 = arith.addf %84, %89 : vector<16x24xf32>
    %c0_90 = arith.constant 0 : index
    %c0_91 = arith.constant 0 : index
    %91 = vector.load %arg3[%c0_90, %c0_91] : memref<16x1xf32, #tpu.memory_space<vmem>>, vector<16x1xf32>
    %92 = vector.broadcast %91 : vector<16x1xf32> to vector<16x24xf32>
    %93 = arith.addf %90, %92 : vector<16x24xf32>
    %cst_92 = arith.constant 0.000000e+00 : f32
    %94 = vector.broadcast %cst_92 : f32 to vector<16x24xf32>
    %95 = arith.cmpf oge, %93, %94 : vector<16x24xf32>
    %cst_93 = arith.constant 0.00999999977 : f32
    %96 = vector.broadcast %cst_93 : f32 to vector<16x24xf32>
    %97 = arith.mulf %96, %93 : vector<16x24xf32>
    %98 = arith.select %95, %93, %97 : vector<16x24xi1>, vector<16x24xf32>
    %99 = arith.truncf %98 : vector<16x24xf32> to vector<16x24xbf16>
    %c0_94 = arith.constant 0 : index
    %c0_95 = arith.constant 0 : index
    %c0_96 = arith.constant 0 : index
    %100 = vector.load %arg4[%c0_94, %c0_95, %c0_96] : memref<1x16x24xbf16, #tpu.memory_space<vmem>>, vector<1x16x24xbf16>
    %101 = vector.shape_cast %100 : vector<1x16x24xbf16> to vector<16x24xbf16>
    %102 = vector.shape_cast %99 : vector<16x24xbf16> to vector<1x16x24xbf16>
    tpu.vector_store %arg4[%c0_94, %c0_95, %c0_96], %102 {strides = array<i32>} : memref<1x16x24xbf16, #tpu.memory_space<vmem>>, vector<1x16x24xbf16>,
    return
  }
  func.func @transform_0(%arg0: i32) -> (i32, i32, i32) {
    %c0_i32 = arith.constant 0 : i32
    %c0_i32_0 = arith.constant 0 : i32
    %c0_i32_1 = arith.constant 0 : i32
    return %arg0, %c0_i32, %c0_i32_0 : i32, i32, i32
  }
  func.func @transform_1(%arg0: i32) -> (i32, i32, i32) {
    %c0_i32 = arith.constant 0 : i32
    %c0_i32_0 = arith.constant 0 : i32
    %c0_i32_1 = arith.constant 0 : i32
    %c0_i32_2 = arith.constant 0 : i32
    return %c0_i32, %c0_i32_0, %c0_i32_1 : i32, i32, i32
  }
  func.func @transform_2(%arg0: i32) -> (i32, i32) {
    %c0_i32 = arith.constant 0 : i32
    %c0_i32_0 = arith.constant 0 : i32
    %c0_i32_1 = arith.constant 0 : i32
    return %c0_i32, %c0_i32_0 : i32, i32
  }
  func.func @transform_3(%arg0: i32) -> (i32, i32, i32) {
    %c0_i32 = arith.constant 0 : i32
    %c0_i32_0 = arith.constant 0 : i32
    %c0_i32_1 = arith.constant 0 : i32
    return %arg0, %c0_i32, %c0_i32_0 : i32, i32, i32
  }
}

module attributes {stable_mosaic.version = 11 : i64} {
  func.func @_conv_bn_res_kernel(%arg0: i32, %arg1: memref<1x32x18xbf16, #tpu.memory_space<vmem>>, %arg2: memref<15x32x32xbf16, #tpu.memory_space<vmem>>, %arg3: memref<32x1xf32, #tpu.memory_space<vmem>>, %arg4: memref<1x32x4xbf16, #tpu.memory_space<vmem>>, %arg5: memref<1x32x4xbf16, #tpu.memory_space<vmem>>) attributes {dimension_semantics = [#tpu.dimension_semantics<parallel>], iteration_bounds = array<i64: 2>, scalar_prefetch = 0 : i64, scratch_operands = 0 : i64, tpu.core_type = #tpu.core_type<tc>, window_params = [{transform_indices = @transform_0, window_bounds = array<i64: 1, 32, 18>}, {pipeline_mode = #tpu.pipeline_mode<synchronous>, transform_indices = @transform_1, window_bounds = array<i64: 15, 32, 32>}, {pipeline_mode = #tpu.pipeline_mode<synchronous>, transform_indices = @transform_2, window_bounds = array<i64: 32, 1>}, {transform_indices = @transform_3, window_bounds = array<i64: 1, 32, 4>}, {transform_indices = @transform_4, window_bounds = array<i64: 1, 32, 4>}]} {
    %cst = arith.constant 0.000000e+00 : f32
    %0 = vector.broadcast %cst : f32 to vector<32x4xf32>
    %c0 = arith.constant 0 : index
    %c0_0 = arith.constant 0 : index
    %c0_1 = arith.constant 0 : index
    %1 = vector.load %arg2[%c0, %c0_0, %c0_1] : memref<15x32x32xbf16, #tpu.memory_space<vmem>>, vector<1x32x32xbf16>
    %2 = vector.shape_cast %1 : vector<1x32x32xbf16> to vector<32x32xbf16>
    %c0_2 = arith.constant 0 : index
    %c0_3 = arith.constant 0 : index
    %c0_4 = arith.constant 0 : index
    %3 = vector.load %arg1[%c0_2, %c0_3, %c0_4] : memref<1x32x18xbf16, #tpu.memory_space<vmem>>, vector<1x32x4xbf16>
    %4 = vector.shape_cast %3 : vector<1x32x4xbf16> to vector<32x4xbf16>
    %cst_5 = arith.constant dense<0.000000e+00> : vector<32x4xf32>
    %5 = tpu.matmul %2, %4, %cst_5 {dimension_numbers = #tpu.dot_dimension_numbers<[1], [0], [0], [1], [0, 0, 1, 1], [], []>} : vector<32x32xbf16>, vector<32x4xbf16>, vector<32x4xf32> -> vector<32x4xf32>
    %6 = arith.addf %0, %5 : vector<32x4xf32>
    %c1 = arith.constant 1 : index
    %c0_6 = arith.constant 0 : index
    %c0_7 = arith.constant 0 : index
    %7 = vector.load %arg2[%c1, %c0_6, %c0_7] : memref<15x32x32xbf16, #tpu.memory_space<vmem>>, vector<1x32x32xbf16>
    %8 = vector.shape_cast %7 : vector<1x32x32xbf16> to vector<32x32xbf16>
    %c0_8 = arith.constant 0 : index
    %c0_9 = arith.constant 0 : index
    %c1_10 = arith.constant 1 : index
    %9 = vector.load %arg1[%c0_8, %c0_9, %c1_10] : memref<1x32x18xbf16, #tpu.memory_space<vmem>>, vector<1x32x4xbf16>
    %10 = vector.shape_cast %9 : vector<1x32x4xbf16> to vector<32x4xbf16>
    %cst_11 = arith.constant dense<0.000000e+00> : vector<32x4xf32>
    %11 = tpu.matmul %8, %10, %cst_11 {dimension_numbers = #tpu.dot_dimension_numbers<[1], [0], [0], [1], [0, 0, 1, 1], [], []>} : vector<32x32xbf16>, vector<32x4xbf16>, vector<32x4xf32> -> vector<32x4xf32>
    %12 = arith.addf %6, %11 : vector<32x4xf32>
    %c2 = arith.constant 2 : index
    %c0_12 = arith.constant 0 : index
    %c0_13 = arith.constant 0 : index
    %13 = vector.load %arg2[%c2, %c0_12, %c0_13] : memref<15x32x32xbf16, #tpu.memory_space<vmem>>, vector<1x32x32xbf16>
    %14 = vector.shape_cast %13 : vector<1x32x32xbf16> to vector<32x32xbf16>
    %c0_14 = arith.constant 0 : index
    %c0_15 = arith.constant 0 : index
    %c2_16 = arith.constant 2 : index
    %15 = vector.load %arg1[%c0_14, %c0_15, %c2_16] : memref<1x32x18xbf16, #tpu.memory_space<vmem>>, vector<1x32x4xbf16>
    %16 = vector.shape_cast %15 : vector<1x32x4xbf16> to vector<32x4xbf16>
    %cst_17 = arith.constant dense<0.000000e+00> : vector<32x4xf32>
    %17 = tpu.matmul %14, %16, %cst_17 {dimension_numbers = #tpu.dot_dimension_numbers<[1], [0], [0], [1], [0, 0, 1, 1], [], []>} : vector<32x32xbf16>, vector<32x4xbf16>, vector<32x4xf32> -> vector<32x4xf32>
    %18 = arith.addf %12, %17 : vector<32x4xf32>
    %c3 = arith.constant 3 : index
    %c0_18 = arith.constant 0 : index
    %c0_19 = arith.constant 0 : index
    %19 = vector.load %arg2[%c3, %c0_18, %c0_19] : memref<15x32x32xbf16, #tpu.memory_space<vmem>>, vector<1x32x32xbf16>
    %20 = vector.shape_cast %19 : vector<1x32x32xbf16> to vector<32x32xbf16>
    %c0_20 = arith.constant 0 : index
    %c0_21 = arith.constant 0 : index
    %c3_22 = arith.constant 3 : index
    %21 = vector.load %arg1[%c0_20, %c0_21, %c3_22] : memref<1x32x18xbf16, #tpu.memory_space<vmem>>, vector<1x32x4xbf16>
    %22 = vector.shape_cast %21 : vector<1x32x4xbf16> to vector<32x4xbf16>
    %cst_23 = arith.constant dense<0.000000e+00> : vector<32x4xf32>
    %23 = tpu.matmul %20, %22, %cst_23 {dimension_numbers = #tpu.dot_dimension_numbers<[1], [0], [0], [1], [0, 0, 1, 1], [], []>} : vector<32x32xbf16>, vector<32x4xbf16>, vector<32x4xf32> -> vector<32x4xf32>
    %24 = arith.addf %18, %23 : vector<32x4xf32>
    %c4 = arith.constant 4 : index
    %c0_24 = arith.constant 0 : index
    %c0_25 = arith.constant 0 : index
    %25 = vector.load %arg2[%c4, %c0_24, %c0_25] : memref<15x32x32xbf16, #tpu.memory_space<vmem>>, vector<1x32x32xbf16>
    %26 = vector.shape_cast %25 : vector<1x32x32xbf16> to vector<32x32xbf16>
    %c0_26 = arith.constant 0 : index
    %c0_27 = arith.constant 0 : index
    %c4_28 = arith.constant 4 : index
    %27 = vector.load %arg1[%c0_26, %c0_27, %c4_28] : memref<1x32x18xbf16, #tpu.memory_space<vmem>>, vector<1x32x4xbf16>
    %28 = vector.shape_cast %27 : vector<1x32x4xbf16> to vector<32x4xbf16>
    %cst_29 = arith.constant dense<0.000000e+00> : vector<32x4xf32>
    %29 = tpu.matmul %26, %28, %cst_29 {dimension_numbers = #tpu.dot_dimension_numbers<[1], [0], [0], [1], [0, 0, 1, 1], [], []>} : vector<32x32xbf16>, vector<32x4xbf16>, vector<32x4xf32> -> vector<32x4xf32>
    %30 = arith.addf %24, %29 : vector<32x4xf32>
    %c5 = arith.constant 5 : index
    %c0_30 = arith.constant 0 : index
    %c0_31 = arith.constant 0 : index
    %31 = vector.load %arg2[%c5, %c0_30, %c0_31] : memref<15x32x32xbf16, #tpu.memory_space<vmem>>, vector<1x32x32xbf16>
    %32 = vector.shape_cast %31 : vector<1x32x32xbf16> to vector<32x32xbf16>
    %c0_32 = arith.constant 0 : index
    %c0_33 = arith.constant 0 : index
    %c5_34 = arith.constant 5 : index
    %33 = vector.load %arg1[%c0_32, %c0_33, %c5_34] : memref<1x32x18xbf16, #tpu.memory_space<vmem>>, vector<1x32x4xbf16>
    %34 = vector.shape_cast %33 : vector<1x32x4xbf16> to vector<32x4xbf16>
    %cst_35 = arith.constant dense<0.000000e+00> : vector<32x4xf32>
    %35 = tpu.matmul %32, %34, %cst_35 {dimension_numbers = #tpu.dot_dimension_numbers<[1], [0], [0], [1], [0, 0, 1, 1], [], []>} : vector<32x32xbf16>, vector<32x4xbf16>, vector<32x4xf32> -> vector<32x4xf32>
    %36 = arith.addf %30, %35 : vector<32x4xf32>
    %c6 = arith.constant 6 : index
    %c0_36 = arith.constant 0 : index
    %c0_37 = arith.constant 0 : index
    %37 = vector.load %arg2[%c6, %c0_36, %c0_37] : memref<15x32x32xbf16, #tpu.memory_space<vmem>>, vector<1x32x32xbf16>
    %38 = vector.shape_cast %37 : vector<1x32x32xbf16> to vector<32x32xbf16>
    %c0_38 = arith.constant 0 : index
    %c0_39 = arith.constant 0 : index
    %c6_40 = arith.constant 6 : index
    %39 = vector.load %arg1[%c0_38, %c0_39, %c6_40] : memref<1x32x18xbf16, #tpu.memory_space<vmem>>, vector<1x32x4xbf16>
    %40 = vector.shape_cast %39 : vector<1x32x4xbf16> to vector<32x4xbf16>
    %cst_41 = arith.constant dense<0.000000e+00> : vector<32x4xf32>
    %41 = tpu.matmul %38, %40, %cst_41 {dimension_numbers = #tpu.dot_dimension_numbers<[1], [0], [0], [1], [0, 0, 1, 1], [], []>} : vector<32x32xbf16>, vector<32x4xbf16>, vector<32x4xf32> -> vector<32x4xf32>
    %42 = arith.addf %36, %41 : vector<32x4xf32>
    %c7 = arith.constant 7 : index
    %c0_42 = arith.constant 0 : index
    %c0_43 = arith.constant 0 : index
    %43 = vector.load %arg2[%c7, %c0_42, %c0_43] : memref<15x32x32xbf16, #tpu.memory_space<vmem>>, vector<1x32x32xbf16>
    %44 = vector.shape_cast %43 : vector<1x32x32xbf16> to vector<32x32xbf16>
    %c0_44 = arith.constant 0 : index
    %c0_45 = arith.constant 0 : index
    %c7_46 = arith.constant 7 : index
    %45 = vector.load %arg1[%c0_44, %c0_45, %c7_46] : memref<1x32x18xbf16, #tpu.memory_space<vmem>>, vector<1x32x4xbf16>
    %46 = vector.shape_cast %45 : vector<1x32x4xbf16> to vector<32x4xbf16>
    %cst_47 = arith.constant dense<0.000000e+00> : vector<32x4xf32>
    %47 = tpu.matmul %44, %46, %cst_47 {dimension_numbers = #tpu.dot_dimension_numbers<[1], [0], [0], [1], [0, 0, 1, 1], [], []>} : vector<32x32xbf16>, vector<32x4xbf16>, vector<32x4xf32> -> vector<32x4xf32>
    %48 = arith.addf %42, %47 : vector<32x4xf32>
    %c8 = arith.constant 8 : index
    %c0_48 = arith.constant 0 : index
    %c0_49 = arith.constant 0 : index
    %49 = vector.load %arg2[%c8, %c0_48, %c0_49] : memref<15x32x32xbf16, #tpu.memory_space<vmem>>, vector<1x32x32xbf16>
    %50 = vector.shape_cast %49 : vector<1x32x32xbf16> to vector<32x32xbf16>
    %c0_50 = arith.constant 0 : index
    %c0_51 = arith.constant 0 : index
    %c8_52 = arith.constant 8 : index
    %51 = vector.load %arg1[%c0_50, %c0_51, %c8_52] : memref<1x32x18xbf16, #tpu.memory_space<vmem>>, vector<1x32x4xbf16>
    %52 = vector.shape_cast %51 : vector<1x32x4xbf16> to vector<32x4xbf16>
    %cst_53 = arith.constant dense<0.000000e+00> : vector<32x4xf32>
    %53 = tpu.matmul %50, %52, %cst_53 {dimension_numbers = #tpu.dot_dimension_numbers<[1], [0], [0], [1], [0, 0, 1, 1], [], []>} : vector<32x32xbf16>, vector<32x4xbf16>, vector<32x4xf32> -> vector<32x4xf32>
    %54 = arith.addf %48, %53 : vector<32x4xf32>
    %c9 = arith.constant 9 : index
    %c0_54 = arith.constant 0 : index
    %c0_55 = arith.constant 0 : index
    %55 = vector.load %arg2[%c9, %c0_54, %c0_55] : memref<15x32x32xbf16, #tpu.memory_space<vmem>>, vector<1x32x32xbf16>
    %56 = vector.shape_cast %55 : vector<1x32x32xbf16> to vector<32x32xbf16>
    %c0_56 = arith.constant 0 : index
    %c0_57 = arith.constant 0 : index
    %c9_58 = arith.constant 9 : index
    %57 = vector.load %arg1[%c0_56, %c0_57, %c9_58] : memref<1x32x18xbf16, #tpu.memory_space<vmem>>, vector<1x32x4xbf16>
    %58 = vector.shape_cast %57 : vector<1x32x4xbf16> to vector<32x4xbf16>
    %cst_59 = arith.constant dense<0.000000e+00> : vector<32x4xf32>
    %59 = tpu.matmul %56, %58, %cst_59 {dimension_numbers = #tpu.dot_dimension_numbers<[1], [0], [0], [1], [0, 0, 1, 1], [], []>} : vector<32x32xbf16>, vector<32x4xbf16>, vector<32x4xf32> -> vector<32x4xf32>
    %60 = arith.addf %54, %59 : vector<32x4xf32>
    %c10 = arith.constant 10 : index
    %c0_60 = arith.constant 0 : index
    %c0_61 = arith.constant 0 : index
    %61 = vector.load %arg2[%c10, %c0_60, %c0_61] : memref<15x32x32xbf16, #tpu.memory_space<vmem>>, vector<1x32x32xbf16>
    %62 = vector.shape_cast %61 : vector<1x32x32xbf16> to vector<32x32xbf16>
    %c0_62 = arith.constant 0 : index
    %c0_63 = arith.constant 0 : index
    %c10_64 = arith.constant 10 : index
    %63 = vector.load %arg1[%c0_62, %c0_63, %c10_64] : memref<1x32x18xbf16, #tpu.memory_space<vmem>>, vector<1x32x4xbf16>
    %64 = vector.shape_cast %63 : vector<1x32x4xbf16> to vector<32x4xbf16>
    %cst_65 = arith.constant dense<0.000000e+00> : vector<32x4xf32>
    %65 = tpu.matmul %62, %64, %cst_65 {dimension_numbers = #tpu.dot_dimension_numbers<[1], [0], [0], [1], [0, 0, 1, 1], [], []>} : vector<32x32xbf16>, vector<32x4xbf16>, vector<32x4xf32> -> vector<32x4xf32>
    %66 = arith.addf %60, %65 : vector<32x4xf32>
    %c11 = arith.constant 11 : index
    %c0_66 = arith.constant 0 : index
    %c0_67 = arith.constant 0 : index
    %67 = vector.load %arg2[%c11, %c0_66, %c0_67] : memref<15x32x32xbf16, #tpu.memory_space<vmem>>, vector<1x32x32xbf16>
    %68 = vector.shape_cast %67 : vector<1x32x32xbf16> to vector<32x32xbf16>
    %c0_68 = arith.constant 0 : index
    %c0_69 = arith.constant 0 : index
    %c11_70 = arith.constant 11 : index
    %69 = vector.load %arg1[%c0_68, %c0_69, %c11_70] : memref<1x32x18xbf16, #tpu.memory_space<vmem>>, vector<1x32x4xbf16>
    %70 = vector.shape_cast %69 : vector<1x32x4xbf16> to vector<32x4xbf16>
    %cst_71 = arith.constant dense<0.000000e+00> : vector<32x4xf32>
    %71 = tpu.matmul %68, %70, %cst_71 {dimension_numbers = #tpu.dot_dimension_numbers<[1], [0], [0], [1], [0, 0, 1, 1], [], []>} : vector<32x32xbf16>, vector<32x4xbf16>, vector<32x4xf32> -> vector<32x4xf32>
    %72 = arith.addf %66, %71 : vector<32x4xf32>
    %c12 = arith.constant 12 : index
    %c0_72 = arith.constant 0 : index
    %c0_73 = arith.constant 0 : index
    %73 = vector.load %arg2[%c12, %c0_72, %c0_73] : memref<15x32x32xbf16, #tpu.memory_space<vmem>>, vector<1x32x32xbf16>
    %74 = vector.shape_cast %73 : vector<1x32x32xbf16> to vector<32x32xbf16>
    %c0_74 = arith.constant 0 : index
    %c0_75 = arith.constant 0 : index
    %c12_76 = arith.constant 12 : index
    %75 = vector.load %arg1[%c0_74, %c0_75, %c12_76] : memref<1x32x18xbf16, #tpu.memory_space<vmem>>, vector<1x32x4xbf16>
    %76 = vector.shape_cast %75 : vector<1x32x4xbf16> to vector<32x4xbf16>
    %cst_77 = arith.constant dense<0.000000e+00> : vector<32x4xf32>
    %77 = tpu.matmul %74, %76, %cst_77 {dimension_numbers = #tpu.dot_dimension_numbers<[1], [0], [0], [1], [0, 0, 1, 1], [], []>} : vector<32x32xbf16>, vector<32x4xbf16>, vector<32x4xf32> -> vector<32x4xf32>
    %78 = arith.addf %72, %77 : vector<32x4xf32>
    %c13 = arith.constant 13 : index
    %c0_78 = arith.constant 0 : index
    %c0_79 = arith.constant 0 : index
    %79 = vector.load %arg2[%c13, %c0_78, %c0_79] : memref<15x32x32xbf16, #tpu.memory_space<vmem>>, vector<1x32x32xbf16>
    %80 = vector.shape_cast %79 : vector<1x32x32xbf16> to vector<32x32xbf16>
    %c0_80 = arith.constant 0 : index
    %c0_81 = arith.constant 0 : index
    %c13_82 = arith.constant 13 : index
    %81 = vector.load %arg1[%c0_80, %c0_81, %c13_82] : memref<1x32x18xbf16, #tpu.memory_space<vmem>>, vector<1x32x4xbf16>
    %82 = vector.shape_cast %81 : vector<1x32x4xbf16> to vector<32x4xbf16>
    %cst_83 = arith.constant dense<0.000000e+00> : vector<32x4xf32>
    %83 = tpu.matmul %80, %82, %cst_83 {dimension_numbers = #tpu.dot_dimension_numbers<[1], [0], [0], [1], [0, 0, 1, 1], [], []>} : vector<32x32xbf16>, vector<32x4xbf16>, vector<32x4xf32> -> vector<32x4xf32>
    %84 = arith.addf %78, %83 : vector<32x4xf32>
    %c14 = arith.constant 14 : index
    %c0_84 = arith.constant 0 : index
    %c0_85 = arith.constant 0 : index
    %85 = vector.load %arg2[%c14, %c0_84, %c0_85] : memref<15x32x32xbf16, #tpu.memory_space<vmem>>, vector<1x32x32xbf16>
    %86 = vector.shape_cast %85 : vector<1x32x32xbf16> to vector<32x32xbf16>
    %c0_86 = arith.constant 0 : index
    %c0_87 = arith.constant 0 : index
    %c14_88 = arith.constant 14 : index
    %87 = vector.load %arg1[%c0_86, %c0_87, %c14_88] : memref<1x32x18xbf16, #tpu.memory_space<vmem>>, vector<1x32x4xbf16>
    %88 = vector.shape_cast %87 : vector<1x32x4xbf16> to vector<32x4xbf16>
    %cst_89 = arith.constant dense<0.000000e+00> : vector<32x4xf32>
    %89 = tpu.matmul %86, %88, %cst_89 {dimension_numbers = #tpu.dot_dimension_numbers<[1], [0], [0], [1], [0, 0, 1, 1], [], []>} : vector<32x32xbf16>, vector<32x4xbf16>, vector<32x4xf32> -> vector<32x4xf32>
    %90 = arith.addf %84, %89 : vector<32x4xf32>
    %c0_90 = arith.constant 0 : index
    %c0_91 = arith.constant 0 : index
    %91 = vector.load %arg3[%c0_90, %c0_91] : memref<32x1xf32, #tpu.memory_space<vmem>>, vector<32x1xf32>
    %92 = vector.broadcast %91 : vector<32x1xf32> to vector<32x4xf32>
    %93 = arith.addf %90, %92 : vector<32x4xf32>
    %c0_92 = arith.constant 0 : index
    %c0_93 = arith.constant 0 : index
    %c0_94 = arith.constant 0 : index
    %94 = vector.load %arg4[%c0_92, %c0_93, %c0_94] : memref<1x32x4xbf16, #tpu.memory_space<vmem>>, vector<1x32x4xbf16>
    %95 = vector.shape_cast %94 : vector<1x32x4xbf16> to vector<32x4xbf16>
    %96 = arith.extf %95 : vector<32x4xbf16> to vector<32x4xf32>
    %97 = arith.addf %93, %96 : vector<32x4xf32>
    %cst_95 = arith.constant 0.000000e+00 : f32
    %98 = vector.broadcast %cst_95 : f32 to vector<32x4xf32>
    %99 = arith.cmpf oge, %97, %98 : vector<32x4xf32>
    %cst_96 = arith.constant 0.00999999977 : f32
    %100 = vector.broadcast %cst_96 : f32 to vector<32x4xf32>
    %101 = arith.mulf %100, %97 : vector<32x4xf32>
    %102 = arith.select %99, %97, %101 : vector<32x4xi1>, vector<32x4xf32>
    %103 = arith.truncf %102 : vector<32x4xf32> to vector<32x4xbf16>
    %c0_97 = arith.constant 0 : index
    %c0_98 = arith.constant 0 : index
    %c0_99 = arith.constant 0 : index
    %104 = vector.load %arg5[%c0_97, %c0_98, %c0_99] : memref<1x32x4xbf16, #tpu.memory_space<vmem>>, vector<1x32x4xbf16>
    %105 = vector.shape_cast %104 : vector<1x32x4xbf16> to vector<32x4xbf16>
    %106 = vector.shape_cast %103 : vector<32x4xbf16> to vector<1x32x4xbf16>
    tpu.vector_store %arg5[%c0_97, %c0_98, %c0_99], %106 {strides = array<i32>} : memref<1x32x4xbf16, #tpu.memory_space<vmem>>, vector<1x32x4xbf16>,
    return
  }
  func.func @transform_0(%arg0: i32) -> (i32, i32, i32) {
    %c0_i32 = arith.constant 0 : i32
    %c0_i32_0 = arith.constant 0 : i32
    %c0_i32_1 = arith.constant 0 : i32
    return %arg0, %c0_i32, %c0_i32_0 : i32, i32, i32
  }
  func.func @transform_1(%arg0: i32) -> (i32, i32, i32) {
    %c0_i32 = arith.constant 0 : i32
    %c0_i32_0 = arith.constant 0 : i32
    %c0_i32_1 = arith.constant 0 : i32
    %c0_i32_2 = arith.constant 0 : i32
    return %c0_i32, %c0_i32_0, %c0_i32_1 : i32, i32, i32
  }
  func.func @transform_2(%arg0: i32) -> (i32, i32) {
    %c0_i32 = arith.constant 0 : i32
    %c0_i32_0 = arith.constant 0 : i32
    %c0_i32_1 = arith.constant 0 : i32
    return %c0_i32, %c0_i32_0 : i32, i32
  }
  func.func @transform_3(%arg0: i32) -> (i32, i32, i32) {
    %c0_i32 = arith.constant 0 : i32
    %c0_i32_0 = arith.constant 0 : i32
    %c0_i32_1 = arith.constant 0 : i32
    return %arg0, %c0_i32, %c0_i32_0 : i32, i32, i32
  }
  func.func @transform_4(%arg0: i32) -> (i32, i32, i32) {
    %c0_i32 = arith.constant 0 : i32
    %c0_i32_0 = arith.constant 0 : i32
    %c0_i32_1 = arith.constant 0 : i32
    return %arg0, %c0_i32, %c0_i32_0 : i32, i32, i32
  }
}

module attributes {stable_mosaic.version = 11 : i64} {
  func.func @_dual_conv_bn_kernel(%arg0: i32, %arg1: memref<1x48x8xbf16, #tpu.memory_space<vmem>>, %arg2: memref<5x64x48xbf16, #tpu.memory_space<vmem>>, %arg3: memref<64x1xf32, #tpu.memory_space<vmem>>, %arg4: memref<1x32x4xbf16, #tpu.memory_space<vmem>>, %arg5: memref<1x32x4xbf16, #tpu.memory_space<vmem>>) attributes {dimension_semantics = [#tpu.dimension_semantics<parallel>], iteration_bounds = array<i64: 2>, scalar_prefetch = 0 : i64, scratch_operands = 0 : i64, tpu.core_type = #tpu.core_type<tc>, window_params = [{transform_indices = @transform_0, window_bounds = array<i64: 1, 48, 8>}, {pipeline_mode = #tpu.pipeline_mode<synchronous>, transform_indices = @transform_1, window_bounds = array<i64: 5, 64, 48>}, {pipeline_mode = #tpu.pipeline_mode<synchronous>, transform_indices = @transform_2, window_bounds = array<i64: 64, 1>}, {transform_indices = @transform_3, window_bounds = array<i64: 1, 32, 4>}, {transform_indices = @transform_4, window_bounds = array<i64: 1, 32, 4>}]} {
    %cst = arith.constant 0.000000e+00 : f32
    %0 = vector.broadcast %cst : f32 to vector<64x4xf32>
    %c0 = arith.constant 0 : index
    %c0_0 = arith.constant 0 : index
    %c0_1 = arith.constant 0 : index
    %1 = vector.load %arg2[%c0, %c0_0, %c0_1] : memref<5x64x48xbf16, #tpu.memory_space<vmem>>, vector<1x64x48xbf16>
    %2 = vector.shape_cast %1 : vector<1x64x48xbf16> to vector<64x48xbf16>
    %c0_2 = arith.constant 0 : index
    %c0_3 = arith.constant 0 : index
    %c0_4 = arith.constant 0 : index
    %3 = vector.load %arg1[%c0_2, %c0_3, %c0_4] : memref<1x48x8xbf16, #tpu.memory_space<vmem>>, vector<1x48x4xbf16>
    %4 = vector.shape_cast %3 : vector<1x48x4xbf16> to vector<48x4xbf16>
    %cst_5 = arith.constant dense<0.000000e+00> : vector<64x4xf32>
    %5 = tpu.matmul %2, %4, %cst_5 {dimension_numbers = #tpu.dot_dimension_numbers<[1], [0], [0], [1], [0, 0, 1, 1], [], []>} : vector<64x48xbf16>, vector<48x4xbf16>, vector<64x4xf32> -> vector<64x4xf32>
    %6 = arith.addf %0, %5 : vector<64x4xf32>
    %c1 = arith.constant 1 : index
    %c0_6 = arith.constant 0 : index
    %c0_7 = arith.constant 0 : index
    %7 = vector.load %arg2[%c1, %c0_6, %c0_7] : memref<5x64x48xbf16, #tpu.memory_space<vmem>>, vector<1x64x48xbf16>
    %8 = vector.shape_cast %7 : vector<1x64x48xbf16> to vector<64x48xbf16>
    %c0_8 = arith.constant 0 : index
    %c0_9 = arith.constant 0 : index
    %c1_10 = arith.constant 1 : index
    %9 = vector.load %arg1[%c0_8, %c0_9, %c1_10] : memref<1x48x8xbf16, #tpu.memory_space<vmem>>, vector<1x48x4xbf16>
    %10 = vector.shape_cast %9 : vector<1x48x4xbf16> to vector<48x4xbf16>
    %cst_11 = arith.constant dense<0.000000e+00> : vector<64x4xf32>
    %11 = tpu.matmul %8, %10, %cst_11 {dimension_numbers = #tpu.dot_dimension_numbers<[1], [0], [0], [1], [0, 0, 1, 1], [], []>} : vector<64x48xbf16>, vector<48x4xbf16>, vector<64x4xf32> -> vector<64x4xf32>
    %12 = arith.addf %6, %11 : vector<64x4xf32>
    %c2 = arith.constant 2 : index
    %c0_12 = arith.constant 0 : index
    %c0_13 = arith.constant 0 : index
    %13 = vector.load %arg2[%c2, %c0_12, %c0_13] : memref<5x64x48xbf16, #tpu.memory_space<vmem>>, vector<1x64x48xbf16>
    %14 = vector.shape_cast %13 : vector<1x64x48xbf16> to vector<64x48xbf16>
    %c0_14 = arith.constant 0 : index
    %c0_15 = arith.constant 0 : index
    %c2_16 = arith.constant 2 : index
    %15 = vector.load %arg1[%c0_14, %c0_15, %c2_16] : memref<1x48x8xbf16, #tpu.memory_space<vmem>>, vector<1x48x4xbf16>
    %16 = vector.shape_cast %15 : vector<1x48x4xbf16> to vector<48x4xbf16>
    %cst_17 = arith.constant dense<0.000000e+00> : vector<64x4xf32>
    %17 = tpu.matmul %14, %16, %cst_17 {dimension_numbers = #tpu.dot_dimension_numbers<[1], [0], [0], [1], [0, 0, 1, 1], [], []>} : vector<64x48xbf16>, vector<48x4xbf16>, vector<64x4xf32> -> vector<64x4xf32>
    %18 = arith.addf %12, %17 : vector<64x4xf32>
    %c3 = arith.constant 3 : index
    %c0_18 = arith.constant 0 : index
    %c0_19 = arith.constant 0 : index
    %19 = vector.load %arg2[%c3, %c0_18, %c0_19] : memref<5x64x48xbf16, #tpu.memory_space<vmem>>, vector<1x64x48xbf16>
    %20 = vector.shape_cast %19 : vector<1x64x48xbf16> to vector<64x48xbf16>
    %c0_20 = arith.constant 0 : index
    %c0_21 = arith.constant 0 : index
    %c3_22 = arith.constant 3 : index
    %21 = vector.load %arg1[%c0_20, %c0_21, %c3_22] : memref<1x48x8xbf16, #tpu.memory_space<vmem>>, vector<1x48x4xbf16>
    %22 = vector.shape_cast %21 : vector<1x48x4xbf16> to vector<48x4xbf16>
    %cst_23 = arith.constant dense<0.000000e+00> : vector<64x4xf32>
    %23 = tpu.matmul %20, %22, %cst_23 {dimension_numbers = #tpu.dot_dimension_numbers<[1], [0], [0], [1], [0, 0, 1, 1], [], []>} : vector<64x48xbf16>, vector<48x4xbf16>, vector<64x4xf32> -> vector<64x4xf32>
    %24 = arith.addf %18, %23 : vector<64x4xf32>
    %c4 = arith.constant 4 : index
    %c0_24 = arith.constant 0 : index
    %c0_25 = arith.constant 0 : index
    %25 = vector.load %arg2[%c4, %c0_24, %c0_25] : memref<5x64x48xbf16, #tpu.memory_space<vmem>>, vector<1x64x48xbf16>
    %26 = vector.shape_cast %25 : vector<1x64x48xbf16> to vector<64x48xbf16>
    %c0_26 = arith.constant 0 : index
    %c0_27 = arith.constant 0 : index
    %c4_28 = arith.constant 4 : index
    %27 = vector.load %arg1[%c0_26, %c0_27, %c4_28] : memref<1x48x8xbf16, #tpu.memory_space<vmem>>, vector<1x48x4xbf16>
    %28 = vector.shape_cast %27 : vector<1x48x4xbf16> to vector<48x4xbf16>
    %cst_29 = arith.constant dense<0.000000e+00> : vector<64x4xf32>
    %29 = tpu.matmul %26, %28, %cst_29 {dimension_numbers = #tpu.dot_dimension_numbers<[1], [0], [0], [1], [0, 0, 1, 1], [], []>} : vector<64x48xbf16>, vector<48x4xbf16>, vector<64x4xf32> -> vector<64x4xf32>
    %30 = arith.addf %24, %29 : vector<64x4xf32>
    %c0_30 = arith.constant 0 : index
    %c0_31 = arith.constant 0 : index
    %31 = vector.load %arg3[%c0_30, %c0_31] : memref<64x1xf32, #tpu.memory_space<vmem>>, vector<64x1xf32>
    %32 = vector.broadcast %31 : vector<64x1xf32> to vector<64x4xf32>
    %33 = arith.addf %30, %32 : vector<64x4xf32>
    %34 = vector.extract_strided_slice %33 {offsets = [0, 0], sizes = [32, 4], strides = [1, 1]} : vector<64x4xf32> to vector<32x4xf32>
    %cst_32 = arith.constant 0.000000e+00 : f32
    %35 = vector.broadcast %cst_32 : f32 to vector<32x4xf32>
    %36 = arith.cmpf oge, %34, %35 : vector<32x4xf32>
    %cst_33 = arith.constant 0.00999999977 : f32
    %37 = vector.broadcast %cst_33 : f32 to vector<32x4xf32>
    %38 = arith.mulf %37, %34 : vector<32x4xf32>
    %39 = arith.select %36, %34, %38 : vector<32x4xi1>, vector<32x4xf32>
    %40 = arith.truncf %39 : vector<32x4xf32> to vector<32x4xbf16>
    %c0_34 = arith.constant 0 : index
    %c0_35 = arith.constant 0 : index
    %c0_36 = arith.constant 0 : index
    %41 = vector.load %arg4[%c0_34, %c0_35, %c0_36] : memref<1x32x4xbf16, #tpu.memory_space<vmem>>, vector<1x32x4xbf16>
    %42 = vector.shape_cast %41 : vector<1x32x4xbf16> to vector<32x4xbf16>
    %43 = vector.shape_cast %40 : vector<32x4xbf16> to vector<1x32x4xbf16>
    tpu.vector_store %arg4[%c0_34, %c0_35, %c0_36], %43 {strides = array<i32>} : memref<1x32x4xbf16, #tpu.memory_space<vmem>>, vector<1x32x4xbf16>,
    %44 = vector.extract_strided_slice %33 {offsets = [32, 0], sizes = [32, 4], strides = [1, 1]} : vector<64x4xf32> to vector<32x4xf32>
    %45 = arith.truncf %44 : vector<32x4xf32> to vector<32x4xbf16>
    %c0_37 = arith.constant 0 : index
    %c0_38 = arith.constant 0 : index
    %c0_39 = arith.constant 0 : index
    %46 = vector.load %arg5[%c0_37, %c0_38, %c0_39] : memref<1x32x4xbf16, #tpu.memory_space<vmem>>, vector<1x32x4xbf16>
    %47 = vector.shape_cast %46 : vector<1x32x4xbf16> to vector<32x4xbf16>
    %48 = vector.shape_cast %45 : vector<32x4xbf16> to vector<1x32x4xbf16>
    tpu.vector_store %arg5[%c0_37, %c0_38, %c0_39], %48 {strides = array<i32>} : memref<1x32x4xbf16, #tpu.memory_space<vmem>>, vector<1x32x4xbf16>,
    return
  }
  func.func @transform_0(%arg0: i32) -> (i32, i32, i32) {
    %c0_i32 = arith.constant 0 : i32
    %c0_i32_0 = arith.constant 0 : i32
    %c0_i32_1 = arith.constant 0 : i32
    return %arg0, %c0_i32, %c0_i32_0 : i32, i32, i32
  }
  func.func @transform_1(%arg0: i32) -> (i32, i32, i32) {
    %c0_i32 = arith.constant 0 : i32
    %c0_i32_0 = arith.constant 0 : i32
    %c0_i32_1 = arith.constant 0 : i32
    %c0_i32_2 = arith.constant 0 : i32
    return %c0_i32, %c0_i32_0, %c0_i32_1 : i32, i32, i32
  }
  func.func @transform_2(%arg0: i32) -> (i32, i32) {
    %c0_i32 = arith.constant 0 : i32
    %c0_i32_0 = arith.constant 0 : i32
    %c0_i32_1 = arith.constant 0 : i32
    return %c0_i32, %c0_i32_0 : i32, i32
  }
  func.func @transform_3(%arg0: i32) -> (i32, i32, i32) {
    %c0_i32 = arith.constant 0 : i32
    %c0_i32_0 = arith.constant 0 : i32
    %c0_i32_1 = arith.constant 0 : i32
    return %arg0, %c0_i32, %c0_i32_0 : i32, i32, i32
  }
  func.func @transform_4(%arg0: i32) -> (i32, i32, i32) {
    %c0_i32 = arith.constant 0 : i32
    %c0_i32_0 = arith.constant 0 : i32
    %c0_i32_1 = arith.constant 0 : i32
    return %arg0, %c0_i32, %c0_i32_0 : i32, i32, i32
  }
}

</mosaic_0001>

<bundles_post_ra>
// kernel: run.12
= control target key start
LH: loop header
LB: loop body
LE: loop exit
PB: predicated region body
PF: predicated region fallthrough
CT: control target
= control target key end

     0   :  { %s1261_s15 = smov 0   ;;  %s1460_s0 = inlined_call_operand.vmem [shape: bf16[2,5,960], index: 0, kind: input, shape index: {}]   ;;  %s1461_s1 = inlined_call_operand.vmem [shape: bf16[3,16,5], index: 1, kind: input, shape index: {}]   ;;  %s1462_s2 = inlined_call_operand.vmem [shape: f32[16,1], index: 2, kind: input, shape index: {}]   ;;  %s1463_s3 = inlined_call_operand.vmem [shape: bf16[2,8,958], index: 3, kind: output, shape index: {0}]   ;;  %s1464_s4 = inlined_call_operand.vmem [shape: bf16[2,8,958], index: 4, kind: output, shape index: {1}]  }
   0x1 LB: > { %s1140_s16 = sadd.s32 4294967295, %s1230_s15   ;;  %p1144_p0 = scmp.ge.s32.totalorder %s1230_s15, 1  ;;  %s1230_s15 = sphi %s1261_s15, %s15_s15  }
   0x2   : > { %p165_p1 = scmp.lt.s32.totalorder %s1230_s15, 3 }
   0x4   : > { %p166_p2 = pnand %p1144_p0, %p165_p1 }
   0x5   : > { %p196_p3 = scmp.lt.s32.totalorder (!%p166_p2), %s1140_s16, 1  ;;  %s1233_s21 = smov (!%p166_p2), 127  }
   0x6   : > { %169 = sbr.rel (%p166_p2) target bundleno = 392 (0x188), region = 32  ;;  %s1234_s22 = smov (!%p166_p2), 126  }
   0xb   : > { %s1466_s16 = smov (!%p196_p3, %s1140_s16), 1  ;;  %v1232_v3 = vmov 0   ;;  %v925_v13 = vld [vmem:[%s1462_s2] sm:$0xff]  ;;  %v926_v14 = vld [vmem:[%s1462_s2 + $0x8] sm:$0xff]  ;;  %vm274_vm0 = vcmask 1041408   ;;  %vm275_vm1 = vcmask 1042432  }
   0xc   : > { %s1269_s17 = sshll.u32 %s1466_s16, 5  ;;  %377 = vmatprep.mubr.bf16.mxu1 %v1232_v3  ;;  %334 = vmatprep.mubr.bf16.mxu0 %v1232_v3  ;;  %v1235_v17 = vmov 65535   ;;  %vm262_vm2 = vcmask 1039360   ;;  %v1221_v30 = vld [vmem:[%s1461_s1 + $0x8] sm:$0xff]   ;;  %vm270_vm3 = vcmask 39936   ;;  %vm702_vm4 = vcmask 1031168  }
   0xd   : > { %s200_s20 = scalar_lea.vmem %s1460_s0, %s1269_s17  ;;  %1211 = vset.pattern.permute.xlu0 %v1232_v3  ;;  %1212 = vset.pattern.permute.xlu1 %v1232_v3  ;;  %v276_v18 = vsel %vm274_vm0, 4294967295, %v1235_v17  ;;  %v1222_v53 = vld [vmem:[%s1461_s1] sm:$0xff]   ;;  %vm1012_vm7 = vcmask 1043456   ;;  %vm1013_vm8 = vcmask 506884   ;;  %s1421_s9 = scalar_lea.vmem %s1463_s3, %s1269_s17 }
   0xe   : > { %v215_v0 = vld [vmem:[%s200_s20 + $0x8] sm:$0x77]  ;;  %v214_v1 = vld [vmem:[%s200_s20] sm:$0x77]  ;;  %v216_v2 = vld [vmem:[%s200_s20 + $0x10] sm:$0x77]  ;;  %s1429_s12 = scalar_lea.vmem %s1464_s4, %s1269_s17 }
   0xf   : > { %v1277_v4 = vcombine.high %v215_v0, %v215_v0  ;;  %v1279_v5 = vcombine.high %v214_v1, %v214_v1  ;;  %v1285_v6 = vcombine.low %v216_v2, %v216_v2  ;;  %v1287_v7 = vcombine.low %v215_v0, %v215_v0  ;;  %v217_v10 = vld [vmem:[%s200_s20 + $0x18] sm:$0x77]  ;;  %vm1014_vm14 = vmor %vm1013_vm8, %vm1012_vm7 }
  0x10   : > { %v1291_v8 = vcombine.high %v216_v2, %v216_v2  ;;  %v1293_v9 = vcombine.low %v214_v1, %v214_v1  ;;  %v1297_v11 = vcombine.high %v217_v10, %v217_v10  ;;  %v1299_v12 = vcombine.low %v217_v10, %v217_v10 }
  0x11   : > { %252 = vrot.lane.b32.xlu1 %v1277_v4, %s1233_s21  ;;  %248 = vrot.lane.b32.xlu0 %v1279_v5, %s1233_s21  ;;  %v1317_v19 = vsel %vm275_vm1, %v276_v18, 0 }
  0x12   : > { %v486_v41 = vand.u32 %v1279_v5, %v1317_v19  ;;  %v492_v42 = vand.u32 %v1277_v4, %v1317_v19  ;;  %v489_v46 = vand.u32 %v1287_v7, %v1317_v19  ;;  %v504_v47 = vand.u32 %v1297_v11, %v1317_v19 }
  0x13   : > { %v483_v48 = vand.u32 %v1293_v9, %v1317_v19  ;;  %v498_v51 = vand.u32 %v1291_v8, %v1317_v19  ;;  %v501_v54 = vand.u32 %v1299_v12, %v1317_v19  ;;  %v495_v59 = vand.u32 %v1285_v6, %v1317_v19 }
  0x15   : > { %254 = vrot.lane.b32.xlu1 %v1285_v6, %s1233_s21  ;;  %250 = vrot.lane.b32.xlu0 %v1287_v7, %s1233_s21 }
  0x19   : > { %256 = vrot.lane.b32.xlu1 %v1291_v8, %s1233_s21  ;;  %246 = vrot.lane.b32.xlu0 %v1293_v9, %s1233_s21 }
  0x1d   : > { %260 = vrot.lane.b32.xlu1 %v1297_v11, %s1233_s21  ;;  %258 = vrot.lane.b32.xlu0 %v1299_v12, %s1233_s21 }
  0x21   : > { %688 = vrot.lane.b32.xlu0 %v1279_v5, %s1234_s22  ;;  %690 = vrot.lane.b32.xlu1 %v1287_v7, %s1234_s22 }
  0x25   : > { %692 = vrot.lane.b32.xlu0 %v1277_v4, %s1234_s22  ;;  %694 = vrot.lane.b32.xlu1 %v1285_v6, %s1234_s22 }
  0x29   : > { %686 = vrot.lane.b32.xlu0 %v1293_v9, %s1234_s22  ;;  %696 = vrot.lane.b32.xlu1 %v1291_v8, %s1234_s22  ;;  %v1223_v8 = vld [vmem:[%s1461_s1 + $0x10] sm:$0xff]  }
  0x2d   : > { %698 = vrot.lane.b32.xlu0 %v1299_v12, %s1234_s22  ;;  %700 = vrot.lane.b32.xlu1 %v1297_v11, %s1234_s22 }
  0x31   : > { %929 = vperm.xlu0 %1211, %v925_v13   ;;  %934 = vperm.xlu1 %1212, %v926_v14  }
  0x83   : > { %v253_v15 = vpop.permute.xlu1 %252  ;;  %v249_v16 = vpop.permute.xlu0 %248 }
  0x87   : > { %v255_v20 = vpop.permute.xlu1 %254  ;;  %v251_v21 = vpop.permute.xlu0 %250 }
  0x88   : > { %v265_v22 = vsel %vm262_vm2, %v251_v21, %v253_v15  ;;  %v266_v23 = vsel %vm262_vm2, %v253_v15, %v255_v20  ;;  %v264_v24 = vsel %vm262_vm2, %v249_v16, %v251_v21 }
  0x89   : > { %v288_v25 = vand.u32 %v1317_v19, %v266_v23  ;;  %v282_v26 = vand.u32 %v1317_v19, %v264_v24  ;;  %v285_v27 = vand.u32 %v1317_v19, %v265_v22 }
  0x8b   : > { %359 = vmatprep.subr.bf16.mxu1 %v288_v25  ;;  %v257_v28 = vpop.permute.xlu1 %256  ;;  %316 = vmatprep.subr.bf16.mxu0 %v282_v26  ;;  %v247_v29 = vpop.permute.xlu0 %246 }
  0x8c   : > { %v263_v31 = vsel %vm262_vm2, %v247_v29, %v249_v16  ;;  %360 = vmatpush1.bf16.msra.mxu1 %v285_v27  ;;  %v267_v33 = vsel %vm262_vm2, %v255_v20, %v257_v28 }
  0x8d   : > { %v279_v32 = vand.u32 %v1317_v19, %v263_v31  ;;  %v291_v43 = vand.u32 %v1317_v19, %v267_v33 }
  0x8f   : > { %v261_v34 = vpop.permute.xlu1 %260  ;;  %317 = vmatpush1.bf16.msra.mxu0 %v279_v32  ;;  %1163 = vmatmul.mubr.msk.bf16.vlgmr.msra.gmra.mxu1 %vm270_vm3, %v1221_v30  ;;  %v259_v35 = vpop.permute.xlu0 %258 }
  0x90   : > { %v300_v36 = vand.u32 %v1317_v19, %v261_v34  ;;  %v268_v37 = vsel %vm262_vm2, %v257_v28, %v259_v35  ;;  %v269_v38 = vsel %vm262_vm2, %v259_v35, %v261_v34  ;;  %463 = vmatprep.mubr.bf16.mxu1 %v1232_v3 }
  0x91   : > { %v294_v39 = vand.u32 %v1317_v19, %v268_v37  ;;  %v297_v40 = vand.u32 %v1317_v19, %v269_v38 }
  0x92   : > { %1162 = vmatmul.mubr.msk.bf16.vlgmr.msra.gmra.mxu0 %vm270_vm3, %v1221_v30  ;;  %445 = vmatprep.subr.bf16.mxu1 %v300_v36 }
  0x93   : > { %402 = vmatprep.subr.bf16.mxu0 %v294_v39  ;;  %446 = vmatpush1.bf16.msra.mxu1 %v297_v40  ;;  %v689_v44 = vpop.permute.xlu0 %688  ;;  %v691_v45 = vpop.permute.xlu1 %690 }
  0x94   : > { %403 = vmatpush1.bf16.msra.mxu0 %v291_v43  ;;  %420 = vmatprep.mubr.bf16.mxu0 %v1232_v3  ;;  %v704_v55 = vsel %vm702_vm4, %v689_v44, %v691_v45 }
  0x95   : > { %520 = vmatprep.subr.bf16.mxu0 %v486_v41  ;;  %563 = vmatprep.subr.bf16.mxu1 %v492_v42  ;;  %v717_v60 = vand.u32 %v704_v55, %v1317_v19 }
  0x97   : > { %1165 = vmatmul.mubr.msk.bf16.vlgmr.msra.gmra.mxu1 %vm270_vm3, %v1221_v30  ;;  %v695_v49 = vpop.permute.xlu1 %694  ;;  %v693_v50 = vpop.permute.xlu0 %692 }
  0x98   : > { %564 = vmatpush1.bf16.msra.mxu1 %v489_v46  ;;  %581 = vmatprep.mubr.bf16.mxu1 %v1232_v3  ;;  %v706_v52 = vsel %vm702_vm4, %v693_v50, %v695_v49  ;;  %v705_v61 = vsel %vm702_vm4, %v691_v45, %v693_v50 }
  0x99   : > { %649 = vmatprep.subr.bf16.mxu1 %v504_v47  ;;  %v723_v56 = vand.u32 %v706_v52, %v1317_v19  ;;  %v720_v0 = vand.u32 %v705_v61, %v1317_v19 }
  0x9a   : > { %1164 = vmatmul.mubr.msk.bf16.vlgmr.msra.gmra.mxu0 %vm270_vm3, %v1221_v30 }
  0x9b   : > { %521 = vmatpush1.bf16.msra.mxu0 %v483_v48  ;;  %538 = vmatprep.mubr.bf16.mxu0 %v1232_v3  ;;  %v687_v57 = vpop.permute.xlu0 %686  ;;  %v697_v58 = vpop.permute.xlu1 %696 }
  0x9c   : > { %606 = vmatprep.subr.bf16.mxu0 %v498_v51  ;;  %v703_v4 = vsel %vm702_vm4, %v687_v57, %v689_v44  ;;  %v707_v10 = vsel %vm702_vm4, %v695_v49, %v697_v58 }
  0x9d   : > { %v714_v6 = vand.u32 %v703_v4, %v1317_v19  ;;  %v726_v11 = vand.u32 %v707_v10, %v1317_v19 }
  0x9f   : > { %1168 = vmatmul.mubr.msk.bf16.vlgmr.msra.gmra.mxu1 %vm270_vm3, %v1222_v53  ;;  %v699_v62 = vpop.permute.xlu0 %698  ;;  %v701_v63 = vpop.permute.xlu1 %700 }
  0xa0   : > { %650 = vmatpush1.bf16.msra.mxu1 %v501_v54  ;;  %667 = vmatprep.mubr.bf16.mxu1 %v1232_v3  ;;  %v708_v1 = vsel %vm702_vm4, %v697_v58, %v699_v62  ;;  %v735_v2 = vand.u32 %v701_v63, %v1317_v19  ;;  %v709_v7 = vsel %vm702_vm4, %v699_v62, %v701_v63 }
  0xa1   : > { %794 = vmatprep.subr.bf16.mxu1 %v723_v56  ;;  %v729_v5 = vand.u32 %v708_v1, %v1317_v19  ;;  %v732_v9 = vand.u32 %v709_v7, %v1317_v19 }
  0xa2   : > { %1167 = vmatmul.mubr.msk.bf16.vlgmr.msra.gmra.mxu0 %vm270_vm3, %v1222_v53 }
  0xa3   : > { %607 = vmatpush1.bf16.msra.mxu0 %v495_v59  ;;  %624 = vmatprep.mubr.bf16.mxu0 %v1232_v3 }
  0xa4   : > { %751 = vmatprep.subr.bf16.mxu0 %v717_v60 }
  0xa7   : > { %1170 = vmatmul.mubr.msk.bf16.vlgmr.msra.gmra.mxu1 %vm270_vm3, %v1222_v53 }
  0xa8   : > { %795 = vmatpush1.bf16.msra.mxu1 %v720_v0  ;;  %812 = vmatprep.mubr.bf16.mxu1 %v1232_v3 }
  0xa9   : > { %880 = vmatprep.subr.bf16.mxu1 %v735_v2 }
  0xaa   : > { %1169 = vmatmul.mubr.msk.bf16.vlgmr.msra.gmra.mxu0 %vm270_vm3, %v1222_v53 }
  0xab   : > { %752 = vmatpush1.bf16.msra.mxu0 %v714_v6  ;;  %769 = vmatprep.mubr.bf16.mxu0 %v1232_v3 }
  0xac   : > { %837 = vmatprep.subr.bf16.mxu0 %v729_v5  ;;  %v1406_v44 = vpop.permute.xlu0 %929  ;;  %v1412_v2 = vpop.permute.xlu1 %934 }
  0xaf   : > { %1175 = vmatmul.mubr.msk.bf16.vlgmr.msra.gmra.mxu1 %vm270_vm3, %v1223_v8 }
  0xb0   : > { %881 = vmatpush1.bf16.msra.mxu1 %v732_v9  ;;  %898 = vmatprep.mubr.bf16.mxu1 %v1232_v3 }
  0xb2   : > { %1174 = vmatmul.mubr.msk.bf16.vlgmr.msra.gmra.mxu0 %vm270_vm3, %v1223_v8 }
  0xb3   : > { %838 = vmatpush1.bf16.msra.mxu0 %v726_v11  ;;  %855 = vmatprep.mubr.bf16.mxu0 %v1232_v3 }
  0xb7   : > { %1177 = vmatmul.mubr.msk.bf16.vlgmr.msra.gmra.mxu1 %vm270_vm3, %v1223_v8 }
  0xba   : > { %1176 = vmatmul.mubr.msk.bf16.vlgmr.msra.gmra.mxu0 %vm270_vm3, %v1223_v8 }
 0x14f   : > { %v379_v12 = vpop.f32.mrf.mxu1 }
 0x151   : > { %v381_v13 = vpop.f32.mrf.mxu1 }
 0x152   : > { %v336_v14 = vpop.f32.mrf.mxu0 }
 0x153   : > { %v383_v15 = vpop.f32.mrf.mxu1 }
 0x154   : > { %v338_v16 = vpop.f32.mrf.mxu0 }
 0x155   : > { %v385_v17 = vpop.f32.mrf.mxu1 }
 0x156   : > { %v340_v18 = vpop.f32.mrf.mxu0 }
 0x157   : > { %v465_v20 = vpop.f32.mrf.mxu1 }
 0x158   : > { %v342_v21 = vpop.f32.mrf.mxu0 }
 0x159   : > { %v467_v22 = vpop.f32.mrf.mxu1 }
 0x15a   : > { %v422_v19 = vpop.f32.mrf.mxu0 }
 0x15b   : > { %v469_v23 = vpop.f32.mrf.mxu1 }
 0x15c   : > { %v1396_v24 = vpop.f32.mrf.mxu0 }
 0x15d   : > { %v1398_v25 = vpop.f32.mrf.mxu1 }
 0x15e   : > { %v1400_v3 = vpop.f32.mrf.mxu0 }
 0x15f   : > { %v583_v26 = vpop.f32.mrf.mxu1 }
 0x160   : > { %v1402_v27 = vpop.f32.mrf.mxu0  ;;  %v584_v41 = vadd.f32 %v583_v26, %v379_v12 }
 0x161   : > { %v585_v28 = vpop.f32.mrf.mxu1 }
 0x162   : > { %v540_v29 = vpop.f32.mrf.mxu0  ;;  %v586_v45 = vadd.f32 %v585_v28, %v381_v13 }
 0x163   : > { %v587_v30 = vpop.f32.mrf.mxu1  ;;  %v541_v48 = vadd.f32 %v540_v29, %v336_v14 }
 0x164   : > { %v542_v31 = vpop.f32.mrf.mxu0  ;;  %v588_v49 = vadd.f32 %v587_v30, %v383_v15 }
 0x165   : > { %v589_v32 = vpop.f32.mrf.mxu1  ;;  %v543_v50 = vadd.f32 %v542_v31, %v338_v16 }
 0x166   : > { %v544_v33 = vpop.f32.mrf.mxu0  ;;  %v590_v52 = vadd.f32 %v589_v32, %v385_v17 }
 0x167   : > { %v669_v34 = vpop.f32.mrf.mxu1  ;;  %v545_v53 = vadd.f32 %v544_v33, %v340_v18 }
 0x168   : > { %v546_v35 = vpop.f32.mrf.mxu0  ;;  %v670_v57 = vadd.f32 %v669_v34, %v465_v20 }
 0x169   : > { %v671_v36 = vpop.f32.mrf.mxu1  ;;  %v547_v58 = vadd.f32 %v546_v35, %v342_v21 }
 0x16a   : > { %v626_v37 = vpop.f32.mrf.mxu0  ;;  %v672_v59 = vadd.f32 %v671_v36, %v467_v22 }
 0x16b   : > { %v673_v38 = vpop.f32.mrf.mxu1  ;;  %v627_v4 = vadd.f32 %v626_v37, %v422_v19 }
 0x16c   : > { %v628_v39 = vpop.f32.mrf.mxu0  ;;  %v674_v5 = vadd.f32 %v673_v38, %v469_v23 }
 0x16d   : > { %v675_v40 = vpop.f32.mrf.mxu1  ;;  %v629_v19 = vadd.f32 %v628_v39, %v1396_v24 }
 0x16e   : > { %v1404_v42 = vpop.f32.mrf.mxu0  ;;  %v676_v29 = vadd.f32 %v675_v40, %v1398_v25 }
 0x16f   : > { %v814_v43 = vpop.f32.mrf.mxu1 }
 0x170   : > { %v911_v46 = vadd.f32 %v814_v43, %v584_v41  ;;  %v1408_v47 = vpop.f32.mrf.mxu0 }
 0x171   : > { %v816_v51 = vpop.f32.mrf.mxu1 }
 0x172   : > { %v912_v54 = vadd.f32 %v816_v51, %v586_v45  ;;  %v939_v55 = vadd.f32 %v1406_v44, %v911_v46  ;;  %v771_v56 = vpop.f32.mrf.mxu0 }
 0x173   : > { %v909_v60 = vadd.f32 %v771_v56, %v541_v48  ;;  %v818_v61 = vpop.f32.mrf.mxu1 }
 0x174   : > { %v940_v62 = vadd.f32 %v1406_v44, %v912_v54  ;;  %vm955_vm5 = vcmp.ge.f32.partialorder %v939_v55, 0.0  ;;  %v963_v63 = vmul.f32 0.01, %v939_v55  ;;  %v919_v0 = vadd.f32 %v818_v61, %v588_v49  ;;  %v773_v1 = vpop.f32.mrf.mxu0 }
 0x175   : > { %v937_v6 = vadd.f32 %v1406_v44, %v909_v60  ;;  %v910_v7 = vadd.f32 %v773_v1, %v543_v50  ;;  %v820_v8 = vpop.f32.mrf.mxu1  ;;  %v631_v50 = vadd.f32 %v1404_v42, %v1400_v3  ;;  %v633_v54 = vadd.f32 %v1408_v47, %v1402_v27 }
 0x176   : > { %vm956_vm6 = vcmp.ge.f32.partialorder %v940_v62, 0.0  ;;  %v964_v9 = vmul.f32 0.01, %v940_v62  ;;  %v971_v10 = vsel %vm955_vm5, %v939_v55, %v963_v63  ;;  %v920_v11 = vadd.f32 %v820_v8, %v590_v52  ;;  %v775_v12 = vpop.f32.mrf.mxu0 }
 0x177   : > { %vm953_vm9 = vcmp.ge.f32.partialorder %v937_v6, 0.0  ;;  %v961_v13 = vmul.f32 0.01, %v937_v6  ;;  %v938_v14 = vadd.f32 %v1406_v44, %v910_v7  ;;  %v947_v15 = vadd.f32 %v1412_v2, %v919_v0  ;;  %v900_v16 = vpop.f32.mrf.mxu1 }
 0x178   : > { %v972_v17 = vsel %vm956_vm6, %v940_v62, %v964_v9  ;;  %v948_v18 = vadd.f32 %v1412_v2, %v920_v11  ;;  %v917_v20 = vadd.f32 %v775_v12, %v545_v53  ;;  %v915_v21 = vadd.f32 %v900_v16, %v670_v57  ;;  %v777_v22 = vpop.f32.mrf.mxu0 }
 0x179   : > { %v1192_v23 = vpack.c.bf16 %v972_v17, %v971_v10  ;;  %vm954_vm10 = vcmp.ge.f32.partialorder %v938_v14, 0.0  ;;  %v962_v26 = vmul.f32 0.01, %v938_v14  ;;  %v902_v28 = vpop.f32.mrf.mxu1  ;;  %v918_v32 = vadd.f32 %v777_v22, %v547_v58 }
 0x17a   : > { %v1196_v30 = vpack.c.bf16 %v948_v18, %v947_v15  ;;  %v943_v31 = vadd.f32 %v1406_v44, %v915_v21  ;;  %v857_v33 = vpop.f32.mrf.mxu0  ;;  %v969_v24 = vsel %vm953_vm9, %v937_v6, %v961_v13  ;;  %v916_v35 = vadd.f32 %v902_v28, %v672_v59 }
 0x17b   : > { %1010 = vst [vmem:[%s1421_s9 + $0x8] sm:$0xff] %v1192_v23  ;;  %v970_v34 = vsel %vm954_vm10, %v938_v14, %v962_v26  ;;  %v913_v36 = vadd.f32 %v857_v33, %v627_v4  ;;  %v904_v37 = vpop.f32.mrf.mxu1  ;;  %v945_v39 = vadd.f32 %v1412_v2, %v917_v20  ;;  %v946_v25 = vadd.f32 %v1412_v2, %v918_v32 }
 0x17c   : > { %v1191_v38 = vpack.c.bf16 %v970_v34, %v969_v24  ;;  %1049 = vst [vmem:[%s1429_s12 + $0x8] sm:$0xff] %v1196_v30  ;;  %v967_v41 = vmul.f32 0.01, %v943_v31  ;;  %v859_v40 = vpop.f32.mrf.mxu0  ;;  %v944_v43 = vadd.f32 %v1406_v44, %v916_v35  ;;  %v923_v46 = vadd.f32 %v904_v37, %v674_v5 }
 0x17d   : > { %v941_v45 = vadd.f32 %v1406_v44, %v913_v36  ;;  %v914_v48 = vadd.f32 %v859_v40, %v629_v19  ;;  %v906_v49 = vpop.f32.mrf.mxu1  ;;  %vm959_vm11 = vcmp.ge.f32.partialorder %v943_v31, 0.0  ;;  %v1195_v51 = vpack.c.bf16 %v946_v25, %v945_v39 }
 0x17e   : > { %1009 = vst [vmem:[%s1421_s9] sm:$0xff] %v1191_v38  ;;  %v924_v52 = vadd.f32 %v906_v49, %v676_v29  ;;  %v861_v53 = vpop.f32.mrf.mxu0  ;;  %vm960_vm12 = vcmp.ge.f32.partialorder %v944_v43, 0.0  ;;  %v968_v55 = vmul.f32 0.01, %v944_v43  ;;  %v951_v57 = vadd.f32 %v1412_v2, %v923_v46 }
 0x17f   : > { %v965_v56 = vmul.f32 0.01, %v941_v45  ;;  %1048 = vst [vmem:[%s1429_s12] sm:$0xff] %v1195_v51  ;;  %v942_v58 = vadd.f32 %v1406_v44, %v914_v48  ;;  %v921_v3 = vadd.f32 %v861_v53, %v631_v50  ;;  %v975_v60 = vsel %vm959_vm11, %v943_v31, %v967_v41 }
 0x180   : > { %v952_v59 = vadd.f32 %v1412_v2, %v924_v52  ;;  %v863_v42 = vpop.f32.mrf.mxu0  ;;  %v976_v61 = vsel %vm960_vm12, %v944_v43, %v968_v55  ;;  %vm957_vm13 = vcmp.ge.f32.partialorder %v941_v45, 0.0 }
 0x181   : > { %v922_v27 = vadd.f32 %v863_v42, %v633_v54  ;;  %v1194_v47 = vpack.c.bf16 %v976_v61, %v975_v60  ;;  %vm958_vm15 = vcmp.ge.f32.partialorder %v942_v58, 0.0  ;;  %v966_v62 = vmul.f32 0.01, %v942_v58 }
 0x182   : > { %v1198_v63 = vpack.c.bf16 %v952_v59, %v951_v57  ;;  %v949_v44 = vadd.f32 %v1412_v2, %v921_v3  ;;  %v973_v1 = vsel %vm957_vm13, %v941_v45, %v965_v56 }
 0x183   : > { %v950_v0 = vadd.f32 %v1412_v2, %v922_v27  ;;  %v974_v4 = vsel %vm958_vm15, %v942_v58, %v966_v62  ;;  %1015 = vst.msk [vmem:[%s1421_s9 + $0x18] sm:$0xff] %vm1014_vm14, %v1194_v47 }
 0x184   : > { %1051 = vst.msk [vmem:[%s1429_s12 + $0x18] sm:$0xff] %vm1014_vm14, %v1198_v63  ;;  %v1193_v5 = vpack.c.bf16 %v974_v4, %v973_v1 }
 0x185   : > { %v1197_v6 = vpack.c.bf16 %v950_v0, %v949_v44 }
 0x186   : > { %1011 = vst [vmem:[%s1421_s9 + $0x10] sm:$0xff] %v1193_v5 }
 0x187   : > { %1050 = vst [vmem:[%s1429_s12 + $0x10] sm:$0xff] %v1197_v6 }
 0x188 PF: > { %s15_s15 = sadd.s32 1, %s1230_s15  }
 0x189   : > { %p12_p4 = scmp.ge.s32.totalorder %s15_s15, 4  }
 0x18b   :  { %14 = sbr.rel (!%p12_p4) target bundleno = 1 (0x1), region = 76 }

// kernel: run.13
= control target key start
LH: loop header
LB: loop body
LE: loop exit
PB: predicated region body
PF: predicated region fallthrough
CT: control target
= control target key end

     0   :  { %s3988_s15 = smov 0   ;;  %s4704_s0 = inlined_call_operand.vmem [shape: bf16[2,8,972], index: 0, kind: input, shape index: {}]   ;;  %s4705_s1 = inlined_call_operand.vmem [shape: bf16[15,8,8], index: 1, kind: input, shape index: {}]   ;;  %s4706_s2 = inlined_call_operand.vmem [shape: f32[8,1], index: 2, kind: input, shape index: {}]   ;;  %s4707_s3 = inlined_call_operand.vmem [shape: bf16[2,8,958], index: 3, kind: input, shape index: {}]   ;;  %s4708_s4 = inlined_call_operand.vmem [shape: bf16[2,8,958], index: 4, kind: output, shape index: {}]  }
   0x1 LB: > { %s3742_s16 = sadd.s32 4294967295, %s3946_s15   ;;  %p3746_p0 = scmp.ge.s32.totalorder %s3946_s15, 1  ;;  %s3946_s15 = sphi %s3988_s15, %s14_s15  }
   0x2   : > { %p172_p1 = scmp.lt.s32.totalorder %s3946_s15, 3 }
   0x4   : > { %p173_p2 = pnand %p3746_p0, %p172_p1 }
   0x5   : > { %p203_p3 = scmp.lt.s32.totalorder (!%p173_p2), %s3742_s16, 1  ;;  %s3949_s21 = smov (!%p173_p2), 127  }
   0x6   : > { %176 = sbr.rel (%p173_p2) target bundleno = 585 (0x249), region = 36  ;;  %s3950_s22 = smov (!%p173_p2), 126  }
   0x7   : > { %s3951_s23 = smov (!%p173_p2), 125   ;;  %s3952_s24 = smov (!%p173_p2), 124  }
   0x8   : > { %s3953_s25 = smov (!%p173_p2), 123   ;;  %s3954_s26 = smov (!%p173_p2), 122  }
   0x9   : > { %s3955_s27 = smov (!%p173_p2), 121   ;;  %s3956_s28 = smov (!%p173_p2), 120  }
   0xa   : > { %s3957_s5 = smov (!%p173_p2), 119   ;;  %s3958_s8 = smov (!%p173_p2), 118  }
   0xb   : > { %s4710_s16 = smov (!%p203_p3, %s3742_s16), 1  ;;  %v3948_v0 = vmov 0   ;;  %vm262_vm0 = vcmask 1039360   ;;  %vm274_vm1 = vcmask 1043456   ;;  %v3753_v20 = vld [vmem:[%s4705_s1 + $0x4] sm:$0xf] }
   0xc   : > { %s3996_s17 = sshll.u32 %s4710_s16, 5  ;;  %331 = vmatprep.mubr.bf16.mxu0 %v3948_v0  ;;  %372 = vmatprep.mubr.bf16.mxu1 %v3948_v0  ;;  %vm270_vm2 = vcmask 64512   ;;  %vm672_vm3 = vcmask 1031168   ;;  %v219_v39 = vld [vmem:[%s4705_s1] sm:$0xf]  ;;  %vm897_vm4 = vcmask 1022976  }
   0xd   : > { %s207_s20 = scalar_lea.vmem %s4704_s0, %s3996_s17  ;;  %3931 = vset.pattern.permute.xlu0 %v3948_v0  ;;  %v3778_v58 = vld [vmem:[%s4705_s1 + $0x8] sm:$0xf]  ;;  %s3959_s11 = smov 117   ;;  %vm1122_vm5 = vcmask 1014784   ;;  %vm1347_vm6 = vcmask 1006592   ;;  %vm1572_vm7 = vcmask 998400  }
   0xe   : > { %v221_v1 = vld [vmem:[%s207_s20 + $0x8] sm:$0xff]  ;;  %v220_v2 = vld [vmem:[%s207_s20] sm:$0xff]  ;;  %v222_v7 = vld [vmem:[%s207_s20 + $0x10] sm:$0xff]  ;;  %s3960_s14 = smov 116   ;;  %s3961_s19 = smov 115   ;;  %vm1797_vm8 = vcmask 990208  }
   0xf   : > { %v4005_v3 = vcombine.low %v221_v1, %v221_v1  ;;  %v4007_v4 = vcombine.low %v220_v2, %v220_v2  ;;  %v4011_v5 = vcombine.high %v221_v1, %v221_v1  ;;  %v4013_v6 = vcombine.high %v220_v2, %v220_v2  ;;  %v223_v10 = vld [vmem:[%s207_s20 + $0x18] sm:$0xff] }
  0x10   : > { %v4017_v8 = vcombine.high %v222_v7, %v222_v7  ;;  %v4019_v9 = vcombine.low %v222_v7, %v222_v7  ;;  %v4023_v11 = vcombine.high %v223_v10, %v223_v10  ;;  %v4025_v12 = vcombine.low %v223_v10, %v223_v10 }
  0x11   : > { %250 = vrot.lane.b32.xlu1 %v4005_v3, %s3949_s21  ;;  %246 = vrot.lane.b32.xlu0 %v4007_v4, %s3949_s21  ;;  %v467_v33 = vsel %vm274_vm1, %v4007_v4, 0  ;;  %v473_v36 = vsel %vm274_vm1, %v4005_v3, 0  ;;  %vm2022_vm9 = vcmask 982016   ;;  %vm2247_vm10 = vcmask 973824  }
  0x12   : > { %v479_v40 = vsel %vm274_vm1, %v4019_v9, 0  ;;  %v485_v44 = vsel %vm274_vm1, %v4025_v12, 0  ;;  %vm2472_vm11 = vcmask 965632   ;;  %vm2697_vm12 = vcmask 957440  }
  0x13   : > { %vm2922_vm13 = vcmask 949248   ;;  %vm3147_vm14 = vcmask 941056   ;;  %vm3372_vm15 = vcmask 932864  }
  0x15   : > { %252 = vrot.lane.b32.xlu1 %v4011_v5, %s3949_s21  ;;  %248 = vrot.lane.b32.xlu0 %v4013_v6, %s3949_s21 }
  0x19   : > { %256 = vrot.lane.b32.xlu1 %v4017_v8, %s3949_s21  ;;  %254 = vrot.lane.b32.xlu0 %v4019_v9, %s3949_s21 }
  0x1d   : > { %260 = vrot.lane.b32.xlu1 %v4023_v11, %s3949_s21  ;;  %258 = vrot.lane.b32.xlu0 %v4025_v12, %s3949_s21  ;;  %s4634_s21 = scalar_lea.vmem %s4707_s3, %s3996_s17 }
  0x21   : > { %656 = vrot.lane.b32.xlu0 %v4007_v4, %s3950_s22  ;;  %658 = vrot.lane.b32.xlu1 %v4013_v6, %s3950_s22 }
  0x25   : > { %660 = vrot.lane.b32.xlu0 %v4005_v3, %s3950_s22  ;;  %662 = vrot.lane.b32.xlu1 %v4011_v5, %s3950_s22 }
  0x29   : > { %664 = vrot.lane.b32.xlu0 %v4019_v9, %s3950_s22  ;;  %666 = vrot.lane.b32.xlu1 %v4017_v8, %s3950_s22 }
  0x2d   : > { %668 = vrot.lane.b32.xlu0 %v4025_v12, %s3950_s22  ;;  %670 = vrot.lane.b32.xlu1 %v4023_v11, %s3950_s22  ;;  %s3962_s22 = smov 114  }
  0x31   : > { %881 = vrot.lane.b32.xlu0 %v4007_v4, %s3951_s23  ;;  %883 = vrot.lane.b32.xlu1 %v4013_v6, %s3951_s23 }
  0x35   : > { %885 = vrot.lane.b32.xlu0 %v4005_v3, %s3951_s23  ;;  %887 = vrot.lane.b32.xlu1 %v4011_v5, %s3951_s23 }
  0x39   : > { %889 = vrot.lane.b32.xlu0 %v4019_v9, %s3951_s23  ;;  %891 = vrot.lane.b32.xlu1 %v4017_v8, %s3951_s23 }
  0x3d   : > { %893 = vrot.lane.b32.xlu0 %v4025_v12, %s3951_s23  ;;  %895 = vrot.lane.b32.xlu1 %v4023_v11, %s3951_s23 }
  0x41   : > { %1106 = vrot.lane.b32.xlu0 %v4007_v4, %s3952_s24  ;;  %1108 = vrot.lane.b32.xlu1 %v4013_v6, %s3952_s24 }
  0x45   : > { %1110 = vrot.lane.b32.xlu0 %v4005_v3, %s3952_s24  ;;  %1112 = vrot.lane.b32.xlu1 %v4011_v5, %s3952_s24 }
  0x49   : > { %1114 = vrot.lane.b32.xlu0 %v4019_v9, %s3952_s24  ;;  %1116 = vrot.lane.b32.xlu1 %v4017_v8, %s3952_s24 }
  0x4d   : > { %1118 = vrot.lane.b32.xlu0 %v4025_v12, %s3952_s24  ;;  %1120 = vrot.lane.b32.xlu1 %v4023_v11, %s3952_s24  ;;  %s4686_s24 = scalar_lea.vmem %s4708_s4, %s3996_s17 }
  0x51   : > { %1331 = vrot.lane.b32.xlu0 %v4007_v4, %s3953_s25  ;;  %1333 = vrot.lane.b32.xlu1 %v4013_v6, %s3953_s25 }
  0x55   : > { %1335 = vrot.lane.b32.xlu0 %v4005_v3, %s3953_s25  ;;  %1337 = vrot.lane.b32.xlu1 %v4011_v5, %s3953_s25 }
  0x59   : > { %1339 = vrot.lane.b32.xlu0 %v4019_v9, %s3953_s25  ;;  %1341 = vrot.lane.b32.xlu1 %v4017_v8, %s3953_s25 }
  0x5d   : > { %1343 = vrot.lane.b32.xlu0 %v4025_v12, %s3953_s25  ;;  %1345 = vrot.lane.b32.xlu1 %v4023_v11, %s3953_s25 }
  0x61   : > { %1556 = vrot.lane.b32.xlu0 %v4007_v4, %s3954_s26  ;;  %1558 = vrot.lane.b32.xlu1 %v4013_v6, %s3954_s26 }
  0x65   : > { %1560 = vrot.lane.b32.xlu0 %v4005_v3, %s3954_s26  ;;  %1562 = vrot.lane.b32.xlu1 %v4011_v5, %s3954_s26 }
  0x69   : > { %1564 = vrot.lane.b32.xlu0 %v4019_v9, %s3954_s26  ;;  %1566 = vrot.lane.b32.xlu1 %v4017_v8, %s3954_s26 }
  0x6d   : > { %1568 = vrot.lane.b32.xlu0 %v4025_v12, %s3954_s26  ;;  %1570 = vrot.lane.b32.xlu1 %v4023_v11, %s3954_s26 }
  0x71   : > { %1781 = vrot.lane.b32.xlu0 %v4007_v4, %s3955_s27  ;;  %1783 = vrot.lane.b32.xlu1 %v4013_v6, %s3955_s27 }
  0x75   : > { %1785 = vrot.lane.b32.xlu0 %v4005_v3, %s3955_s27  ;;  %1787 = vrot.lane.b32.xlu1 %v4011_v5, %s3955_s27 }
  0x79   : > { %1789 = vrot.lane.b32.xlu0 %v4019_v9, %s3955_s27  ;;  %1791 = vrot.lane.b32.xlu1 %v4017_v8, %s3955_s27 }
  0x7d   : > { %1793 = vrot.lane.b32.xlu0 %v4025_v12, %s3955_s27  ;;  %1795 = vrot.lane.b32.xlu1 %v4023_v11, %s3955_s27 }
  0x81   : > { %2006 = vrot.lane.b32.xlu0 %v4007_v4, %s3956_s28  ;;  %2008 = vrot.lane.b32.xlu1 %v4013_v6, %s3956_s28 }
  0x83   : > { %v251_v13 = vpop.permute.xlu1 %250  ;;  %v247_v14 = vpop.permute.xlu0 %246 }
  0x85   : > { %2010 = vrot.lane.b32.xlu0 %v4005_v3, %s3956_s28  ;;  %2012 = vrot.lane.b32.xlu1 %v4011_v5, %s3956_s28 }
  0x87   : > { %v253_v15 = vpop.permute.xlu1 %252  ;;  %v249_v16 = vpop.permute.xlu0 %248 }
  0x88   : > { %v264_v17 = vsel %vm262_vm0, %v249_v16, %v251_v13  ;;  %v263_v18 = vsel %vm262_vm0, %v247_v14, %v249_v16  ;;  %v265_v21 = vsel %vm262_vm0, %v251_v13, %v253_v15 }
  0x89   : > { %3762 = vmatprep.subr.msk.bf16.mxu0 %vm274_vm1, %v264_v17  ;;  %v276_v19 = vsel %vm274_vm1, %v263_v18, 0  ;;  %2014 = vrot.lane.b32.xlu0 %v4019_v9, %s3956_s28  ;;  %v282_v25 = vsel %vm274_vm1, %v265_v21, 0 }
  0x8a   : > { %314 = vmatpush1.bf16.msra.mxu0 %v276_v19  ;;  %2016 = vrot.lane.b32.xlu1 %v4017_v8, %s3956_s28 }
  0x8b   : > { %v257_v22 = vpop.permute.xlu1 %256  ;;  %v255_v23 = vpop.permute.xlu0 %254 }
  0x8c   : > { %v266_v24 = vsel %vm262_vm0, %v253_v15, %v255_v23  ;;  %v267_v26 = vsel %vm262_vm0, %v255_v23, %v257_v22  ;;  %v3787_v23 = vld [vmem:[%s4705_s1 + $0xc] sm:$0xf] }
  0x8d   : > { %3763 = vmatmul.mubr.msk.bf16.vlgmr.msra.gmra.mxu0 %vm270_vm2, %v3753_v20  ;;  %3764 = vmatprep.subr.msk.bf16.mxu1 %vm274_vm1, %v266_v24  ;;  %v288_v31 = vsel %vm274_vm1, %v267_v26, 0 }
  0x8e   : > { %355 = vmatpush1.bf16.msra.mxu1 %v282_v25  ;;  %413 = vmatprep.mubr.bf16.mxu0 %v3948_v0 }
  0x8f   : > { %v261_v27 = vpop.permute.xlu1 %260  ;;  %v259_v28 = vpop.permute.xlu0 %258  ;;  %2018 = vrot.lane.b32.xlu0 %v4025_v12, %s3956_s28  ;;  %2020 = vrot.lane.b32.xlu1 %v4023_v11, %s3956_s28 }
  0x90   : > { %v269_v29 = vsel %vm262_vm0, %v259_v28, %v261_v27  ;;  %3768 = vmatprep.subr.msk.bf16.mxu1 %vm274_vm1, %v261_v27  ;;  %v268_v30 = vsel %vm262_vm0, %v257_v22, %v259_v28 }
  0x91   : > { %3765 = vmatmul.mubr.msk.bf16.vlgmr.msra.gmra.mxu1 %vm270_vm2, %v3753_v20  ;;  %3766 = vmatprep.subr.msk.bf16.mxu0 %vm274_vm1, %v268_v30  ;;  %v294_v32 = vsel %vm274_vm1, %v269_v29, 0 }
  0x92   : > { %396 = vmatpush1.bf16.msra.mxu0 %v288_v31  ;;  %437 = vmatpush1.bf16.msra.mxu1 %v294_v32 }
  0x93   : > { %454 = vmatprep.mubr.bf16.mxu1 %v3948_v0  ;;  %3770 = vmatprep.subr.msk.bf16.mxu0 %vm274_vm1, %v4013_v6  ;;  %v657_v34 = vpop.permute.xlu0 %656  ;;  %v659_v35 = vpop.permute.xlu1 %658 }
  0x94   : > { %3772 = vmatprep.subr.msk.bf16.mxu1 %vm274_vm1, %v4011_v5  ;;  %2231 = vrot.lane.b32.xlu0 %v4007_v4, %s3957_s5  ;;  %v673_v47 = vsel %vm672_vm3, %v657_v34, %v659_v35 }
  0x95   : > { %3767 = vmatmul.mubr.msk.bf16.vlgmr.msra.gmra.mxu0 %vm270_vm2, %v3753_v20  ;;  %2233 = vrot.lane.b32.xlu1 %v4013_v6, %s3957_s5  ;;  %v684_v49 = vsel %vm274_vm1, %v673_v47, 0 }
  0x96   : > { %505 = vmatpush1.bf16.msra.mxu0 %v467_v33  ;;  %522 = vmatprep.mubr.bf16.mxu0 %v3948_v0 }
  0x97   : > { %3774 = vmatprep.subr.msk.bf16.mxu0 %vm274_vm1, %v4017_v8  ;;  %v661_v37 = vpop.permute.xlu0 %660  ;;  %v663_v38 = vpop.permute.xlu1 %662 }
  0x98   : > { %2235 = vrot.lane.b32.xlu0 %v4005_v3, %s3957_s5  ;;  %v674_v43 = vsel %vm672_vm3, %v659_v35, %v661_v37  ;;  %v675_v52 = vsel %vm672_vm3, %v661_v37, %v663_v38 }
  0x99   : > { %3769 = vmatmul.mubr.msk.bf16.vlgmr.msra.gmra.mxu1 %vm270_vm2, %v3753_v20  ;;  %2237 = vrot.lane.b32.xlu1 %v4011_v5, %s3957_s5  ;;  %v690_v54 = vsel %vm274_vm1, %v675_v52, 0 }
  0x9a   : > { %546 = vmatpush1.bf16.msra.mxu1 %v473_v36  ;;  %563 = vmatprep.mubr.bf16.mxu1 %v3948_v0 }
  0x9b   : > { %3776 = vmatprep.subr.msk.bf16.mxu1 %vm274_vm1, %v4023_v11  ;;  %v665_v41 = vpop.permute.xlu0 %664  ;;  %v667_v42 = vpop.permute.xlu1 %666 }
  0x9c   : > { %2239 = vrot.lane.b32.xlu0 %v4019_v9, %s3957_s5  ;;  %v676_v48 = vsel %vm672_vm3, %v663_v38, %v665_v41  ;;  %v677_v57 = vsel %vm672_vm3, %v665_v41, %v667_v42 }
  0x9d   : > { %3771 = vmatmul.mubr.msk.bf16.vlgmr.msra.gmra.mxu0 %vm270_vm2, %v219_v39  ;;  %2241 = vrot.lane.b32.xlu1 %v4017_v8, %s3957_s5  ;;  %v696_v59 = vsel %vm274_vm1, %v677_v57, 0 }
  0x9e   : > { %587 = vmatpush1.bf16.msra.mxu0 %v479_v40  ;;  %604 = vmatprep.mubr.bf16.mxu0 %v3948_v0 }
  0x9f   : > { %3779 = vmatprep.subr.msk.bf16.mxu0 %vm274_vm1, %v674_v43  ;;  %v669_v45 = vpop.permute.xlu0 %668  ;;  %v671_v46 = vpop.permute.xlu1 %670  ;;  %v3796_v43 = vld [vmem:[%s4705_s1 + $0x10] sm:$0xf] }
  0xa0   : > { %2243 = vrot.lane.b32.xlu0 %v4025_v12, %s3957_s5  ;;  %v678_v53 = vsel %vm672_vm3, %v667_v42, %v669_v45  ;;  %v679_v62 = vsel %vm672_vm3, %v669_v45, %v671_v46 }
  0xa1   : > { %3773 = vmatmul.mubr.msk.bf16.vlgmr.msra.gmra.mxu1 %vm270_vm2, %v219_v39  ;;  %2245 = vrot.lane.b32.xlu1 %v4023_v11, %s3957_s5  ;;  %v702_v1 = vsel %vm274_vm1, %v679_v62, 0 }
  0xa2   : > { %628 = vmatpush1.bf16.msra.mxu1 %v485_v44  ;;  %645 = vmatprep.mubr.bf16.mxu1 %v3948_v0 }
  0xa3   : > { %3781 = vmatprep.subr.msk.bf16.mxu1 %vm274_vm1, %v676_v48  ;;  %v882_v50 = vpop.permute.xlu0 %881  ;;  %v884_v51 = vpop.permute.xlu1 %883 }
  0xa4   : > { %2456 = vrot.lane.b32.xlu0 %v4007_v4, %s3958_s8  ;;  %v898_v10 = vsel %vm897_vm4, %v882_v50, %v884_v51 }
  0xa5   : > { %3775 = vmatmul.mubr.msk.bf16.vlgmr.msra.gmra.mxu0 %vm270_vm2, %v219_v39  ;;  %2458 = vrot.lane.b32.xlu1 %v4013_v6, %s3958_s8  ;;  %v909_v14 = vsel %vm274_vm1, %v898_v10, 0 }
  0xa6   : > { %722 = vmatpush1.bf16.msra.mxu0 %v684_v49  ;;  %739 = vmatprep.mubr.bf16.mxu0 %v3948_v0 }
  0xa7   : > { %3783 = vmatprep.subr.msk.bf16.mxu0 %vm274_vm1, %v678_v53  ;;  %v886_v55 = vpop.permute.xlu0 %885  ;;  %v888_v56 = vpop.permute.xlu1 %887 }
  0xa8   : > { %2460 = vrot.lane.b32.xlu0 %v4005_v3, %s3958_s8  ;;  %v899_v63 = vsel %vm897_vm4, %v884_v51, %v886_v55  ;;  %v900_v17 = vsel %vm897_vm4, %v886_v55, %v888_v56 }
  0xa9   : > { %3777 = vmatmul.mubr.msk.bf16.vlgmr.msra.gmra.mxu1 %vm270_vm2, %v219_v39  ;;  %2462 = vrot.lane.b32.xlu1 %v4011_v5, %s3958_s8  ;;  %v915_v19 = vsel %vm274_vm1, %v900_v17, 0 }
  0xaa   : > { %763 = vmatpush1.bf16.msra.mxu1 %v690_v54  ;;  %780 = vmatprep.mubr.bf16.mxu1 %v3948_v0 }
  0xab   : > { %3785 = vmatprep.subr.msk.bf16.mxu1 %vm274_vm1, %v671_v46  ;;  %v890_v60 = vpop.permute.xlu0 %889  ;;  %v892_v61 = vpop.permute.xlu1 %891 }
  0xac   : > { %2464 = vrot.lane.b32.xlu0 %v4019_v9, %s3958_s8  ;;  %v901_v13 = vsel %vm897_vm4, %v888_v56, %v890_v60  ;;  %v902_v22 = vsel %vm897_vm4, %v890_v60, %v892_v61 }
  0xad   : > { %3780 = vmatmul.mubr.msk.bf16.vlgmr.msra.gmra.mxu0 %vm270_vm2, %v3778_v58  ;;  %2466 = vrot.lane.b32.xlu1 %v4017_v8, %s3958_s8  ;;  %v921_v24 = vsel %vm274_vm1, %v902_v22, 0 }
  0xae   : > { %804 = vmatpush1.bf16.msra.mxu0 %v696_v59  ;;  %821 = vmatprep.mubr.bf16.mxu0 %v3948_v0 }
  0xaf   : > { %3788 = vmatprep.subr.msk.bf16.mxu0 %vm274_vm1, %v899_v63  ;;  %v894_v2 = vpop.permute.xlu0 %893  ;;  %v896_v7 = vpop.permute.xlu1 %895  ;;  %v3805_v63 = vld [vmem:[%s4705_s1 + $0x14] sm:$0xf] }
  0xb0   : > { %2468 = vrot.lane.b32.xlu0 %v4025_v12, %s3958_s8  ;;  %v903_v18 = vsel %vm897_vm4, %v892_v61, %v894_v2  ;;  %v904_v27 = vsel %vm897_vm4, %v894_v2, %v896_v7 }
  0xb1   : > { %3782 = vmatmul.mubr.msk.bf16.vlgmr.msra.gmra.mxu1 %vm270_vm2, %v3778_v58  ;;  %2470 = vrot.lane.b32.xlu1 %v4023_v11, %s3958_s8  ;;  %v927_v29 = vsel %vm274_vm1, %v904_v27, 0 }
  0xb2   : > { %845 = vmatpush1.bf16.msra.mxu1 %v702_v1  ;;  %862 = vmatprep.mubr.bf16.mxu1 %v3948_v0 }
  0xb3   : > { %3790 = vmatprep.subr.msk.bf16.mxu1 %vm274_vm1, %v901_v13  ;;  %v1107_v15 = vpop.permute.xlu0 %1106  ;;  %v1109_v16 = vpop.permute.xlu1 %1108 }
  0xb4   : > { %2681 = vrot.lane.b32.xlu0 %v4007_v4, %s3959_s11  ;;  %v1123_v32 = vsel %vm1122_vm5, %v1107_v15, %v1109_v16 }
  0xb5   : > { %3784 = vmatmul.mubr.msk.bf16.vlgmr.msra.gmra.mxu0 %vm270_vm2, %v3778_v58  ;;  %2683 = vrot.lane.b32.xlu1 %v4013_v6, %s3959_s11  ;;  %v1134_v34 = vsel %vm274_vm1, %v1123_v32, 0 }
  0xb6   : > { %947 = vmatpush1.bf16.msra.mxu0 %v909_v14  ;;  %964 = vmatprep.mubr.bf16.mxu0 %v3948_v0 }
  0xb7   : > { %3792 = vmatprep.subr.msk.bf16.mxu0 %vm274_vm1, %v903_v18  ;;  %v1111_v20 = vpop.permute.xlu0 %1110  ;;  %v1113_v21 = vpop.permute.xlu1 %1112 }
  0xb8   : > { %2685 = vrot.lane.b32.xlu0 %v4005_v3, %s3959_s11  ;;  %v1124_v28 = vsel %vm1122_vm5, %v1109_v16, %v1111_v20  ;;  %v1125_v37 = vsel %vm1122_vm5, %v1111_v20, %v1113_v21 }
  0xb9   : > { %3786 = vmatmul.mubr.msk.bf16.vlgmr.msra.gmra.mxu1 %vm270_vm2, %v3778_v58  ;;  %2687 = vrot.lane.b32.xlu1 %v4011_v5, %s3959_s11  ;;  %v1140_v39 = vsel %vm274_vm1, %v1125_v37, 0 }
  0xba   : > { %988 = vmatpush1.bf16.msra.mxu1 %v915_v19  ;;  %1005 = vmatprep.mubr.bf16.mxu1 %v3948_v0 }
  0xbb   : > { %3794 = vmatprep.subr.msk.bf16.mxu1 %vm274_vm1, %v896_v7  ;;  %v1115_v25 = vpop.permute.xlu0 %1114  ;;  %v1117_v26 = vpop.permute.xlu1 %1116 }
  0xbc   : > { %2689 = vrot.lane.b32.xlu0 %v4019_v9, %s3959_s11  ;;  %v1126_v33 = vsel %vm1122_vm5, %v1113_v21, %v1115_v25  ;;  %v1127_v42 = vsel %vm1122_vm5, %v1115_v25, %v1117_v26 }
  0xbd   : > { %3789 = vmatmul.mubr.msk.bf16.vlgmr.msra.gmra.mxu0 %vm270_vm2, %v3787_v23  ;;  %2691 = vrot.lane.b32.xlu1 %v4017_v8, %s3959_s11  ;;  %v1146_v44 = vsel %vm274_vm1, %v1127_v42, 0 }
  0xbe   : > { %1029 = vmatpush1.bf16.msra.mxu0 %v921_v24  ;;  %1046 = vmatprep.mubr.bf16.mxu0 %v3948_v0 }
  0xbf   : > { %3797 = vmatprep.subr.msk.bf16.mxu0 %vm274_vm1, %v1124_v28  ;;  %v1119_v30 = vpop.permute.xlu0 %1118  ;;  %v1121_v31 = vpop.permute.xlu1 %1120 }
  0xc0   : > { %2693 = vrot.lane.b32.xlu0 %v4025_v12, %s3959_s11  ;;  %v1128_v38 = vsel %vm1122_vm5, %v1117_v26, %v1119_v30  ;;  %v1129_v47 = vsel %vm1122_vm5, %v1119_v30, %v1121_v31 }
  0xc1   : > { %3791 = vmatmul.mubr.msk.bf16.vlgmr.msra.gmra.mxu1 %vm270_vm2, %v3787_v23  ;;  %2695 = vrot.lane.b32.xlu1 %v4023_v11, %s3959_s11  ;;  %v1152_v49 = vsel %vm274_vm1, %v1129_v47, 0 }
  0xc2   : > { %1070 = vmatpush1.bf16.msra.mxu1 %v927_v29  ;;  %1087 = vmatprep.mubr.bf16.mxu1 %v3948_v0 }
  0xc3   : > { %3799 = vmatprep.subr.msk.bf16.mxu1 %vm274_vm1, %v1126_v33  ;;  %v1332_v35 = vpop.permute.xlu0 %1331  ;;  %v1334_v36 = vpop.permute.xlu1 %1333 }
  0xc4   : > { %2906 = vrot.lane.b32.xlu0 %v4007_v4, %s3960_s14  ;;  %v1348_v52 = vsel %vm1347_vm6, %v1332_v35, %v1334_v36 }
  0xc5   : > { %3793 = vmatmul.mubr.msk.bf16.vlgmr.msra.gmra.mxu0 %vm270_vm2, %v3787_v23  ;;  %2908 = vrot.lane.b32.xlu1 %v4013_v6, %s3960_s14  ;;  %v1359_v54 = vsel %vm274_vm1, %v1348_v52, 0 }
  0xc6   : > { %1172 = vmatpush1.bf16.msra.mxu0 %v1134_v34  ;;  %1189 = vmatprep.mubr.bf16.mxu0 %v3948_v0 }
  0xc7   : > { %3801 = vmatprep.subr.msk.bf16.mxu0 %vm274_vm1, %v1128_v38  ;;  %v1336_v40 = vpop.permute.xlu0 %1335  ;;  %v1338_v41 = vpop.permute.xlu1 %1337 }
  0xc8   : > { %2910 = vrot.lane.b32.xlu0 %v4005_v3, %s3960_s14  ;;  %v1349_v48 = vsel %vm1347_vm6, %v1334_v36, %v1336_v40  ;;  %v1350_v57 = vsel %vm1347_vm6, %v1336_v40, %v1338_v41  ;;  %v3823_v40 = vld [vmem:[%s4705_s1 + $0x1c] sm:$0xf] }
  0xc9   : > { %3795 = vmatmul.mubr.msk.bf16.vlgmr.msra.gmra.mxu1 %vm270_vm2, %v3787_v23  ;;  %2912 = vrot.lane.b32.xlu1 %v4011_v5, %s3960_s14  ;;  %v1365_v59 = vsel %vm274_vm1, %v1350_v57, 0 }
  0xca   : > { %1213 = vmatpush1.bf16.msra.mxu1 %v1140_v39  ;;  %1230 = vmatprep.mubr.bf16.mxu1 %v3948_v0 }
  0xcb   : > { %3803 = vmatprep.subr.msk.bf16.mxu1 %vm274_vm1, %v1121_v31  ;;  %v1340_v45 = vpop.permute.xlu0 %1339  ;;  %v1342_v46 = vpop.permute.xlu1 %1341 }
  0xcc   : > { %2914 = vrot.lane.b32.xlu0 %v4019_v9, %s3960_s14  ;;  %v1351_v53 = vsel %vm1347_vm6, %v1338_v41, %v1340_v45  ;;  %v1352_v62 = vsel %vm1347_vm6, %v1340_v45, %v1342_v46 }
  0xcd   : > { %3798 = vmatmul.mubr.msk.bf16.vlgmr.msra.gmra.mxu0 %vm270_vm2, %v3796_v43  ;;  %2916 = vrot.lane.b32.xlu1 %v4017_v8, %s3960_s14  ;;  %v1371_v1 = vsel %vm274_vm1, %v1352_v62, 0 }
  0xce   : > { %1254 = vmatpush1.bf16.msra.mxu0 %v1146_v44  ;;  %1271 = vmatprep.mubr.bf16.mxu0 %v3948_v0 }
  0xcf   : > { %3806 = vmatprep.subr.msk.bf16.mxu0 %vm274_vm1, %v1349_v48  ;;  %v1344_v50 = vpop.permute.xlu0 %1343  ;;  %v1346_v51 = vpop.permute.xlu1 %1345 }
  0xd0   : > { %2918 = vrot.lane.b32.xlu0 %v4025_v12, %s3960_s14  ;;  %v1353_v58 = vsel %vm1347_vm6, %v1342_v46, %v1344_v50  ;;  %v1354_v10 = vsel %vm1347_vm6, %v1344_v50, %v1346_v51 }
  0xd1   : > { %3800 = vmatmul.mubr.msk.bf16.vlgmr.msra.gmra.mxu1 %vm270_vm2, %v3796_v43  ;;  %2920 = vrot.lane.b32.xlu1 %v4023_v11, %s3960_s14  ;;  %v1377_v14 = vsel %vm274_vm1, %v1354_v10, 0 }
  0xd2   : > { %1295 = vmatpush1.bf16.msra.mxu1 %v1152_v49  ;;  %1312 = vmatprep.mubr.bf16.mxu1 %v3948_v0 }
  0xd3   : > { %3808 = vmatprep.subr.msk.bf16.mxu1 %vm274_vm1, %v1351_v53  ;;  %v1557_v55 = vpop.permute.xlu0 %1556  ;;  %v1559_v56 = vpop.permute.xlu1 %1558 }
  0xd4   : > { %3131 = vrot.lane.b32.xlu0 %v4007_v4, %s3961_s19  ;;  %v1573_v17 = vsel %vm1572_vm7, %v1557_v55, %v1559_v56 }
  0xd5   : > { %3802 = vmatmul.mubr.msk.bf16.vlgmr.msra.gmra.mxu0 %vm270_vm2, %v3796_v43  ;;  %3133 = vrot.lane.b32.xlu1 %v4013_v6, %s3961_s19  ;;  %v1584_v19 = vsel %vm274_vm1, %v1573_v17, 0 }
  0xd6   : > { %1397 = vmatpush1.bf16.msra.mxu0 %v1359_v54  ;;  %1414 = vmatprep.mubr.bf16.mxu0 %v3948_v0 }
  0xd7   : > { %3810 = vmatprep.subr.msk.bf16.mxu0 %vm274_vm1, %v1353_v58  ;;  %v1561_v60 = vpop.permute.xlu0 %1560  ;;  %v1563_v61 = vpop.permute.xlu1 %1562  ;;  %v3832_v58 = vld [vmem:[%s4705_s1 + $0x20] sm:$0xf] }
  0xd8   : > { %3135 = vrot.lane.b32.xlu0 %v4005_v3, %s3961_s19  ;;  %v1574_v13 = vsel %vm1572_vm7, %v1559_v56, %v1561_v60  ;;  %v1575_v22 = vsel %vm1572_vm7, %v1561_v60, %v1563_v61 }
  0xd9   : > { %3804 = vmatmul.mubr.msk.bf16.vlgmr.msra.gmra.mxu1 %vm270_vm2, %v3796_v43  ;;  %3137 = vrot.lane.b32.xlu1 %v4011_v5, %s3961_s19  ;;  %v1590_v24 = vsel %vm274_vm1, %v1575_v22, 0 }
  0xda   : > { %1438 = vmatpush1.bf16.msra.mxu1 %v1365_v59  ;;  %1455 = vmatprep.mubr.bf16.mxu1 %v3948_v0 }
  0xdb   : > { %3812 = vmatprep.subr.msk.bf16.mxu1 %vm274_vm1, %v1346_v51  ;;  %v1565_v2 = vpop.permute.xlu0 %1564  ;;  %v1567_v7 = vpop.permute.xlu1 %1566 }
  0xdc   : > { %3139 = vrot.lane.b32.xlu0 %v4019_v9, %s3961_s19  ;;  %v1576_v18 = vsel %vm1572_vm7, %v1563_v61, %v1565_v2  ;;  %v1577_v27 = vsel %vm1572_vm7, %v1565_v2, %v1567_v7 }
  0xdd   : > { %3807 = vmatmul.mubr.msk.bf16.vlgmr.msra.gmra.mxu0 %vm270_vm2, %v3805_v63  ;;  %3141 = vrot.lane.b32.xlu1 %v4017_v8, %s3961_s19 }
  0xde   : > { %1479 = vmatpush1.bf16.msra.mxu0 %v1371_v1  ;;  %1496 = vmatprep.mubr.bf16.mxu0 %v3948_v0 }
  0xdf   : > { %3815 = vmatprep.subr.msk.bf16.mxu0 %vm274_vm1, %v1574_v13  ;;  %v1569_v15 = vpop.permute.xlu0 %1568  ;;  %v1571_v16 = vpop.permute.xlu1 %1570 }
  0xe0   : > { %3143 = vrot.lane.b32.xlu0 %v4025_v12, %s3961_s19  ;;  %v1578_v23 = vsel %vm1572_vm7, %v1567_v7, %v1569_v15 }
  0xe1   : > { %3809 = vmatmul.mubr.msk.bf16.vlgmr.msra.gmra.mxu1 %vm270_vm2, %v3805_v63  ;;  %3145 = vrot.lane.b32.xlu1 %v4023_v11, %s3961_s19 }
  0xe2   : > { %1520 = vmatpush1.bf16.msra.mxu1 %v1377_v14  ;;  %1537 = vmatprep.mubr.bf16.mxu1 %v3948_v0 }
  0xe3   : > { %3817 = vmatprep.subr.msk.bf16.mxu1 %vm274_vm1, %v1576_v18  ;;  %v1782_v20 = vpop.permute.xlu0 %1781  ;;  %v1784_v21 = vpop.permute.xlu1 %1783 }
  0xe4   : > { %3356 = vrot.lane.b32.xlu0 %v4007_v4, %s3962_s22  ;;  %v3814_v4 = vld [vmem:[%s4705_s1 + $0x18] sm:$0xf]  ;;  %v1798_v33 = vsel %vm1797_vm8, %v1782_v20, %v1784_v21 }
  0xe5   : > { %3811 = vmatmul.mubr.msk.bf16.vlgmr.msra.gmra.mxu0 %vm270_vm2, %v3805_v63  ;;  %3358 = vrot.lane.b32.xlu1 %v4013_v6, %s3962_s22  ;;  %v1596_v6 = vsel %vm274_vm1, %v1577_v27, 0 }
  0xe6   : > { %1622 = vmatpush1.bf16.msra.mxu0 %v1584_v19  ;;  %1639 = vmatprep.mubr.bf16.mxu0 %v3948_v0 }
  0xe7   : > { %3819 = vmatprep.subr.msk.bf16.mxu0 %vm274_vm1, %v1578_v23  ;;  %v1786_v25 = vpop.permute.xlu0 %1785  ;;  %v1788_v26 = vpop.permute.xlu1 %1787  ;;  %v3841_v23 = vld [vmem:[%s4705_s1 + $0x24] sm:$0xf] }
  0xe8   : > { %3360 = vrot.lane.b32.xlu0 %v4005_v3, %s3962_s22  ;;  %v1579_v3 = vsel %vm1572_vm7, %v1569_v15, %v1571_v16  ;;  %v1799_v30 = vsel %vm1797_vm8, %v1784_v21, %v1786_v25  ;;  %v1800_v36 = vsel %vm1797_vm8, %v1786_v25, %v1788_v26 }
  0xe9   : > { %3813 = vmatmul.mubr.msk.bf16.vlgmr.msra.gmra.mxu1 %vm270_vm2, %v3805_v63  ;;  %3362 = vrot.lane.b32.xlu1 %v4011_v5, %s3962_s22  ;;  %v1602_v5 = vsel %vm274_vm1, %v1579_v3, 0 }
  0xea   : > { %1663 = vmatpush1.bf16.msra.mxu1 %v1590_v24  ;;  %1680 = vmatprep.mubr.bf16.mxu1 %v3948_v0 }
  0xeb   : > { %3821 = vmatprep.subr.msk.bf16.mxu1 %vm274_vm1, %v1571_v16  ;;  %v1790_v28 = vpop.permute.xlu0 %1789  ;;  %v1792_v29 = vpop.permute.xlu1 %1791 }
  0xec   : > { %3364 = vrot.lane.b32.xlu0 %v4019_v9, %s3962_s22  ;;  %v1801_v34 = vsel %vm1797_vm8, %v1788_v26, %v1790_v28  ;;  %v1802_v39 = vsel %vm1797_vm8, %v1790_v28, %v1792_v29 }
  0xed   : > { %3816 = vmatmul.mubr.msk.bf16.vlgmr.msra.gmra.mxu0 %vm270_vm2, %v3814_v4  ;;  %3366 = vrot.lane.b32.xlu1 %v4017_v8, %s3962_s22  ;;  %v1809_v8 = vsel %vm274_vm1, %v1798_v33, 0  ;;  %v1821_v41 = vsel %vm274_vm1, %v1802_v39, 0 }
  0xee   : > { %1704 = vmatpush1.bf16.msra.mxu0 %v1596_v6  ;;  %1721 = vmatprep.mubr.bf16.mxu0 %v3948_v0 }
  0xef   : > { %3824 = vmatprep.subr.msk.bf16.mxu0 %vm274_vm1, %v1799_v30  ;;  %v1794_v31 = vpop.permute.xlu0 %1793  ;;  %v1796_v32 = vpop.permute.xlu1 %1795 }
  0xf0   : > { %3368 = vrot.lane.b32.xlu0 %v4025_v12, %s3962_s22  ;;  %v1803_v37 = vsel %vm1797_vm8, %v1792_v29, %v1794_v31  ;;  %v1804_v43 = vsel %vm1797_vm8, %v1794_v31, %v1796_v32  ;;  %vm3672_vm8 = vcmask 506884  }
  0xf1   : > { %3818 = vmatmul.mubr.msk.bf16.vlgmr.msra.gmra.mxu1 %vm270_vm2, %v3814_v4  ;;  %3370 = vrot.lane.b32.xlu1 %v4023_v11, %s3962_s22  ;;  %v1815_v11 = vsel %vm274_vm1, %v1800_v36, 0  ;;  %v1827_v46 = vsel %vm274_vm1, %v1804_v43, 0 }
  0xf2   : > { %1745 = vmatpush1.bf16.msra.mxu1 %v1602_v5  ;;  %1762 = vmatprep.mubr.bf16.mxu1 %v3948_v0 }
  0xf3   : > { %3826 = vmatprep.subr.msk.bf16.mxu1 %vm274_vm1, %v1801_v34  ;;  %v2007_v9 = vpop.permute.xlu0 %2006  ;;  %v2009_v35 = vpop.permute.xlu1 %2008 }
  0xf4   : > { %v2023_v47 = vsel %vm2022_vm9, %v2007_v9, %v2009_v35 }
  0xf5   : > { %3820 = vmatmul.mubr.msk.bf16.vlgmr.msra.gmra.mxu0 %vm270_vm2, %v3814_v4  ;;  %v2034_v51 = vsel %vm274_vm1, %v2023_v47, 0 }
  0xf6   : > { %1847 = vmatpush1.bf16.msra.mxu0 %v1809_v8  ;;  %1864 = vmatprep.mubr.bf16.mxu0 %v3948_v0 }
  0xf7   : > { %3828 = vmatprep.subr.msk.bf16.mxu0 %vm274_vm1, %v1803_v37  ;;  %v2011_v12 = vpop.permute.xlu0 %2010  ;;  %v2013_v38 = vpop.permute.xlu1 %2012  ;;  %v3850_v37 = vld [vmem:[%s4705_s1 + $0x28] sm:$0xf] }
  0xf8   : > { %v2024_v44 = vsel %vm2022_vm9, %v2009_v35, %v2011_v12  ;;  %v2025_v52 = vsel %vm2022_vm9, %v2011_v12, %v2013_v38 }
  0xf9   : > { %3822 = vmatmul.mubr.msk.bf16.vlgmr.msra.gmra.mxu1 %vm270_vm2, %v3814_v4  ;;  %v2040_v55 = vsel %vm274_vm1, %v2025_v52, 0 }
  0xfa   : > { %1888 = vmatpush1.bf16.msra.mxu1 %v1815_v11  ;;  %1905 = vmatprep.mubr.bf16.mxu1 %v3948_v0 }
  0xfb   : > { %3830 = vmatprep.subr.msk.bf16.mxu1 %vm274_vm1, %v1796_v32  ;;  %v2015_v42 = vpop.permute.xlu0 %2014 }
  0xfc   : > { %v2017_v45 = vpop.permute.xlu1 %2016  ;;  %v2026_v48 = vsel %vm2022_vm9, %v2013_v38, %v2015_v42 }
  0xfd   : > { %3825 = vmatmul.mubr.msk.bf16.vlgmr.msra.gmra.mxu0 %vm270_vm2, %v3823_v40  ;;  %v2027_v57 = vsel %vm2022_vm9, %v2015_v42, %v2017_v45 }
  0xfe   : > { %1929 = vmatpush1.bf16.msra.mxu0 %v1821_v41  ;;  %1946 = vmatprep.mubr.bf16.mxu0 %v3948_v0  ;;  %v2046_v60 = vsel %vm274_vm1, %v2027_v57, 0 }
  0xff   : > { %3833 = vmatprep.subr.msk.bf16.mxu0 %vm274_vm1, %v2024_v44 }
 0x101   : > { %3827 = vmatmul.mubr.msk.bf16.vlgmr.msra.gmra.mxu1 %vm270_vm2, %v3823_v40  ;;  %v2019_v49 = vpop.permute.xlu0 %2018  ;;  %v2021_v50 = vpop.permute.xlu1 %2020 }
 0x102   : > { %1970 = vmatpush1.bf16.msra.mxu1 %v1827_v46  ;;  %1987 = vmatprep.mubr.bf16.mxu1 %v3948_v0  ;;  %v2028_v53 = vsel %vm2022_vm9, %v2017_v45, %v2019_v49  ;;  %v2029_v62 = vsel %vm2022_vm9, %v2019_v49, %v2021_v50  ;;  %v3579_v49 = vld [vmem:[%s4706_s2] sm:$0xff] }
 0x103   : > { %3835 = vmatprep.subr.msk.bf16.mxu1 %vm274_vm1, %v2026_v48  ;;  %v2052_v2 = vsel %vm274_vm1, %v2029_v62, 0  ;;  %3582 = vperm.xlu0 %3931, %v3579_v49  }
 0x105   : > { %3829 = vmatmul.mubr.msk.bf16.vlgmr.msra.gmra.mxu0 %vm270_vm2, %v3823_v40 }
 0x106   : > { %2072 = vmatpush1.bf16.msra.mxu0 %v2034_v51  ;;  %2089 = vmatprep.mubr.bf16.mxu0 %v3948_v0  ;;  %v2232_v54 = vpop.permute.xlu0 %2231 }
 0x107   : > { %3837 = vmatprep.subr.msk.bf16.mxu0 %vm274_vm1, %v2028_v53  ;;  %v2234_v56 = vpop.permute.xlu1 %2233 }
 0x108   : > { %v2248_v10 = vsel %vm2247_vm10, %v2232_v54, %v2234_v56 }
 0x109   : > { %3831 = vmatmul.mubr.msk.bf16.vlgmr.msra.gmra.mxu1 %vm270_vm2, %v3823_v40  ;;  %v2259_v15 = vsel %vm274_vm1, %v2248_v10, 0 }
 0x10a   : > { %2113 = vmatpush1.bf16.msra.mxu1 %v2040_v55  ;;  %2130 = vmatprep.mubr.bf16.mxu1 %v3948_v0  ;;  %v2236_v59 = vpop.permute.xlu0 %2235 }
 0x10b   : > { %3839 = vmatprep.subr.msk.bf16.mxu1 %vm274_vm1, %v2021_v50  ;;  %v2238_v61 = vpop.permute.xlu1 %2237  ;;  %v2249_v63 = vsel %vm2247_vm10, %v2234_v56, %v2236_v59  ;;  %v3859_v56 = vld [vmem:[%s4705_s1 + $0x2c] sm:$0xf] }
 0x10c   : > { %v2250_v17 = vsel %vm2247_vm10, %v2236_v59, %v2238_v61 }
 0x10d   : > { %3834 = vmatmul.mubr.msk.bf16.vlgmr.msra.gmra.mxu0 %vm270_vm2, %v3832_v58  ;;  %v2265_v20 = vsel %vm274_vm1, %v2250_v17, 0 }
 0x10e   : > { %2154 = vmatpush1.bf16.msra.mxu0 %v2046_v60  ;;  %2171 = vmatprep.mubr.bf16.mxu0 %v3948_v0  ;;  %v2240_v1 = vpop.permute.xlu0 %2239 }
 0x10f   : > { %3842 = vmatprep.subr.msk.bf16.mxu0 %vm274_vm1, %v2249_v63  ;;  %v2242_v7 = vpop.permute.xlu1 %2241  ;;  %v2251_v13 = vsel %vm2247_vm10, %v2238_v61, %v2240_v1 }
 0x110   : > { %v2252_v22 = vsel %vm2247_vm10, %v2240_v1, %v2242_v7 }
 0x111   : > { %3836 = vmatmul.mubr.msk.bf16.vlgmr.msra.gmra.mxu1 %vm270_vm2, %v3832_v58  ;;  %v2271_v25 = vsel %vm274_vm1, %v2252_v22, 0 }
 0x112   : > { %2195 = vmatpush1.bf16.msra.mxu1 %v2052_v2  ;;  %2212 = vmatprep.mubr.bf16.mxu1 %v3948_v0  ;;  %v2244_v14 = vpop.permute.xlu0 %2243 }
 0x113   : > { %3844 = vmatprep.subr.msk.bf16.mxu1 %vm274_vm1, %v2251_v13  ;;  %v2246_v16 = vpop.permute.xlu1 %2245  ;;  %v2253_v18 = vsel %vm2247_vm10, %v2242_v7, %v2244_v14 }
 0x114   : > { %v2254_v27 = vsel %vm2247_vm10, %v2244_v14, %v2246_v16  ;;  %vm3673_vm10 = vmor %vm3672_vm8, %vm274_vm1 }
 0x115   : > { %3838 = vmatmul.mubr.msk.bf16.vlgmr.msra.gmra.mxu0 %vm270_vm2, %v3832_v58  ;;  %v2277_v28 = vsel %vm274_vm1, %v2254_v27, 0 }
 0x116   : > { %2297 = vmatpush1.bf16.msra.mxu0 %v2259_v15  ;;  %2314 = vmatprep.mubr.bf16.mxu0 %v3948_v0  ;;  %v2457_v19 = vpop.permute.xlu0 %2456 }
 0x117   : > { %3846 = vmatprep.subr.msk.bf16.mxu0 %vm274_vm1, %v2253_v18  ;;  %v2459_v21 = vpop.permute.xlu1 %2458 }
 0x118   : > { %v2473_v3 = vsel %vm2472_vm11, %v2457_v19, %v2459_v21 }
 0x119   : > { %3840 = vmatmul.mubr.msk.bf16.vlgmr.msra.gmra.mxu1 %vm270_vm2, %v3832_v58  ;;  %v2484_v31 = vsel %vm274_vm1, %v2473_v3, 0 }
 0x11a   : > { %2338 = vmatpush1.bf16.msra.mxu1 %v2265_v20  ;;  %2355 = vmatprep.mubr.bf16.mxu1 %v3948_v0  ;;  %v2461_v24 = vpop.permute.xlu0 %2460 }
 0x11b   : > { %3848 = vmatprep.subr.msk.bf16.mxu1 %vm274_vm1, %v2246_v16  ;;  %v2463_v26 = vpop.permute.xlu1 %2462  ;;  %v2474_v4 = vsel %vm2472_vm11, %v2459_v21, %v2461_v24  ;;  %v3868_v21 = vld [vmem:[%s4705_s1 + $0x30] sm:$0xf] }
 0x11c   : > { %v2475_v33 = vsel %vm2472_vm11, %v2461_v24, %v2463_v26 }
 0x11d   : > { %3843 = vmatmul.mubr.msk.bf16.vlgmr.msra.gmra.mxu0 %vm270_vm2, %v3841_v23  ;;  %v2490_v9 = vsel %vm274_vm1, %v2475_v33, 0 }
 0x11e   : > { %2379 = vmatpush1.bf16.msra.mxu0 %v2271_v25  ;;  %2396 = vmatprep.mubr.bf16.mxu0 %v3948_v0  ;;  %v2465_v6 = vpop.permute.xlu0 %2464 }
 0x11f   : > { %3851 = vmatprep.subr.msk.bf16.mxu0 %vm274_vm1, %v2474_v4  ;;  %v2467_v29 = vpop.permute.xlu1 %2466  ;;  %v2476_v30 = vsel %vm2472_vm11, %v2463_v26, %v2465_v6 }
 0x120   : > { %v2477_v36 = vsel %vm2472_vm11, %v2465_v6, %v2467_v29 }
 0x121   : > { %3845 = vmatmul.mubr.msk.bf16.vlgmr.msra.gmra.mxu1 %vm270_vm2, %v3841_v23  ;;  %v2496_v12 = vsel %vm274_vm1, %v2477_v36, 0 }
 0x122   : > { %2420 = vmatpush1.bf16.msra.mxu1 %v2277_v28  ;;  %2437 = vmatprep.mubr.bf16.mxu1 %v3948_v0  ;;  %v2469_v5 = vpop.permute.xlu0 %2468 }
 0x123   : > { %3853 = vmatprep.subr.msk.bf16.mxu1 %vm274_vm1, %v2476_v30  ;;  %v2471_v32 = vpop.permute.xlu1 %2470  ;;  %v2478_v34 = vsel %vm2472_vm11, %v2467_v29, %v2469_v5 }
 0x124   : > { %v2479_v39 = vsel %vm2472_vm11, %v2469_v5, %v2471_v32 }
 0x125   : > { %3847 = vmatmul.mubr.msk.bf16.vlgmr.msra.gmra.mxu0 %vm270_vm2, %v3841_v23  ;;  %v2502_v42 = vsel %vm274_vm1, %v2479_v39, 0 }
 0x126   : > { %2522 = vmatpush1.bf16.msra.mxu0 %v2484_v31  ;;  %2539 = vmatprep.mubr.bf16.mxu0 %v3948_v0  ;;  %v2682_v8 = vpop.permute.xlu0 %2681 }
 0x127   : > { %3855 = vmatprep.subr.msk.bf16.mxu0 %vm274_vm1, %v2478_v34  ;;  %v2684_v35 = vpop.permute.xlu1 %2683 }
 0x128   : > { %v2698_v44 = vsel %vm2697_vm12, %v2682_v8, %v2684_v35 }
 0x129   : > { %3849 = vmatmul.mubr.msk.bf16.vlgmr.msra.gmra.mxu1 %vm270_vm2, %v3841_v23  ;;  %v2709_v47 = vsel %vm274_vm1, %v2698_v44, 0 }
 0x12a   : > { %2563 = vmatpush1.bf16.msra.mxu1 %v2490_v9  ;;  %2580 = vmatprep.mubr.bf16.mxu1 %v3948_v0  ;;  %v2686_v11 = vpop.permute.xlu0 %2685 }
 0x12b   : > { %3857 = vmatprep.subr.msk.bf16.mxu1 %vm274_vm1, %v2471_v32  ;;  %v2688_v38 = vpop.permute.xlu1 %2687  ;;  %v2699_v40 = vsel %vm2697_vm12, %v2684_v35, %v2686_v11 }
 0x12c   : > { %v2700_v50 = vsel %vm2697_vm12, %v2686_v11, %v2688_v38 }
 0x12d   : > { %3852 = vmatmul.mubr.msk.bf16.vlgmr.msra.gmra.mxu0 %vm270_vm2, %v3850_v37  ;;  %v2715_v53 = vsel %vm274_vm1, %v2700_v50, 0 }
 0x12e   : > { %2604 = vmatpush1.bf16.msra.mxu0 %v2496_v12  ;;  %2621 = vmatprep.mubr.bf16.mxu0 %v3948_v0  ;;  %v2690_v41 = vpop.permute.xlu0 %2689 }
 0x12f   : > { %3860 = vmatprep.subr.msk.bf16.mxu0 %vm274_vm1, %v2699_v40  ;;  %v2692_v43 = vpop.permute.xlu1 %2691  ;;  %v2701_v45 = vsel %vm2697_vm12, %v2688_v38, %v2690_v41 }
 0x130   : > { %v2702_v55 = vsel %vm2697_vm12, %v2690_v41, %v2692_v43 }
 0x131   : > { %3854 = vmatmul.mubr.msk.bf16.vlgmr.msra.gmra.mxu1 %vm270_vm2, %v3850_v37  ;;  %v2721_v58 = vsel %vm274_vm1, %v2702_v55, 0 }
 0x132   : > { %2645 = vmatpush1.bf16.msra.mxu1 %v2502_v42  ;;  %2662 = vmatprep.mubr.bf16.mxu1 %v3948_v0  ;;  %v2694_v46 = vpop.permute.xlu0 %2693 }
 0x133   : > { %3862 = vmatprep.subr.msk.bf16.mxu1 %vm274_vm1, %v2701_v45  ;;  %v2696_v48 = vpop.permute.xlu1 %2695  ;;  %v2703_v51 = vsel %vm2697_vm12, %v2692_v43, %v2694_v46  ;;  %v3877_v45 = vld [vmem:[%s4705_s1 + $0x34] sm:$0xf] }
 0x134   : > { %v2704_v60 = vsel %vm2697_vm12, %v2694_v46, %v2696_v48 }
 0x135   : > { %3856 = vmatmul.mubr.msk.bf16.vlgmr.msra.gmra.mxu0 %vm270_vm2, %v3850_v37  ;;  %v2727_v63 = vsel %vm274_vm1, %v2704_v60, 0 }
 0x136   : > { %2747 = vmatpush1.bf16.msra.mxu0 %v2709_v47  ;;  %2764 = vmatprep.mubr.bf16.mxu0 %v3948_v0  ;;  %v2907_v52 = vpop.permute.xlu0 %2906 }
 0x137   : > { %3864 = vmatprep.subr.msk.bf16.mxu0 %vm274_vm1, %v2703_v51  ;;  %v2909_v54 = vpop.permute.xlu1 %2908 }
 0x138   : > { %v2923_v2 = vsel %vm2922_vm13, %v2907_v52, %v2909_v54 }
 0x139   : > { %3858 = vmatmul.mubr.msk.bf16.vlgmr.msra.gmra.mxu1 %vm270_vm2, %v3850_v37  ;;  %v2934_v13 = vsel %vm274_vm1, %v2923_v2, 0 }
 0x13a   : > { %2788 = vmatpush1.bf16.msra.mxu1 %v2715_v53  ;;  %2805 = vmatprep.mubr.bf16.mxu1 %v3948_v0  ;;  %v2911_v57 = vpop.permute.xlu0 %2910 }
 0x13b   : > { %3866 = vmatprep.subr.msk.bf16.mxu1 %vm274_vm1, %v2696_v48  ;;  %v2913_v59 = vpop.permute.xlu1 %2912  ;;  %v2924_v61 = vsel %vm2922_vm13, %v2909_v54, %v2911_v57 }
 0x13c   : > { %v2925_v15 = vsel %vm2922_vm13, %v2911_v57, %v2913_v59 }
 0x13d   : > { %3861 = vmatmul.mubr.msk.bf16.vlgmr.msra.gmra.mxu0 %vm270_vm2, %v3859_v56  ;;  %v2940_v18 = vsel %vm274_vm1, %v2925_v15, 0 }
 0x13e   : > { %2829 = vmatpush1.bf16.msra.mxu0 %v2721_v58  ;;  %2846 = vmatprep.mubr.bf16.mxu0 %v3948_v0  ;;  %v2915_v62 = vpop.permute.xlu0 %2914 }
 0x13f   : > { %3869 = vmatprep.subr.msk.bf16.mxu0 %vm274_vm1, %v2924_v61  ;;  %v2917_v1 = vpop.permute.xlu1 %2916  ;;  %v2926_v7 = vsel %vm2922_vm13, %v2913_v59, %v2915_v62 }
 0x140   : > { %v2927_v20 = vsel %vm2922_vm13, %v2915_v62, %v2917_v1 }
 0x141   : > { %3863 = vmatmul.mubr.msk.bf16.vlgmr.msra.gmra.mxu1 %vm270_vm2, %v3859_v56  ;;  %v2946_v23 = vsel %vm274_vm1, %v2927_v20, 0 }
 0x142   : > { %2870 = vmatpush1.bf16.msra.mxu1 %v2727_v63  ;;  %2887 = vmatprep.mubr.bf16.mxu1 %v3948_v0  ;;  %v2919_v10 = vpop.permute.xlu0 %2918 }
 0x143   : > { %3871 = vmatprep.subr.msk.bf16.mxu1 %vm274_vm1, %v2926_v7  ;;  %v2921_v14 = vpop.permute.xlu1 %2920  ;;  %v2928_v16 = vsel %vm2922_vm13, %v2917_v1, %v2919_v10 }
 0x144   : > { %v2929_v25 = vsel %vm2922_vm13, %v2919_v10, %v2921_v14 }
 0x145   : > { %3865 = vmatmul.mubr.msk.bf16.vlgmr.msra.gmra.mxu0 %vm270_vm2, %v3859_v56  ;;  %v2952_v6 = vsel %vm274_vm1, %v2929_v25, 0 }
 0x146   : > { %2972 = vmatpush1.bf16.msra.mxu0 %v2934_v13  ;;  %2989 = vmatprep.mubr.bf16.mxu0 %v3948_v0  ;;  %v3132_v17 = vpop.permute.xlu0 %3131 }
 0x147   : > { %3873 = vmatprep.subr.msk.bf16.mxu0 %vm274_vm1, %v2928_v16  ;;  %v3134_v19 = vpop.permute.xlu1 %3133 }
 0x148   : > { %v3148_v3 = vsel %vm3147_vm14, %v3132_v17, %v3134_v19 }
 0x149   : > { %3867 = vmatmul.mubr.msk.bf16.vlgmr.msra.gmra.mxu1 %vm270_vm2, %v3859_v56  ;;  %v3159_v33 = vsel %vm274_vm1, %v3148_v3, 0 }
 0x14a   : > { %3013 = vmatpush1.bf16.msra.mxu1 %v2940_v18  ;;  %3030 = vmatprep.mubr.bf16.mxu1 %v3948_v0  ;;  %v3136_v22 = vpop.permute.xlu0 %3135 }
 0x14b   : > { %3875 = vmatprep.subr.msk.bf16.mxu1 %vm274_vm1, %v2921_v14  ;;  %v3138_v24 = vpop.permute.xlu1 %3137  ;;  %v3149_v26 = vsel %vm3147_vm14, %v3134_v19, %v3136_v22 }
 0x14c   : > { %v3150_v9 = vsel %vm3147_vm14, %v3136_v22, %v3138_v24 }
 0x14d   : > { %v333_v27 = vpop.f32.mrf.mxu0  ;;  %3870 = vmatmul.mubr.msk.bf16.vlgmr.msra.gmra.mxu0 %vm270_vm2, %v3868_v21  ;;  %v3165_v38 = vsel %vm274_vm1, %v3150_v9, 0 }
 0x14e   : > { %3054 = vmatpush1.bf16.msra.mxu0 %v2946_v23  ;;  %3071 = vmatprep.mubr.bf16.mxu0 %v3948_v0  ;;  %v3140_v4 = vpop.permute.xlu0 %3139 }
 0x14f   : > { %v335_v28 = vpop.f32.mrf.mxu0  ;;  %3878 = vmatprep.subr.msk.bf16.mxu0 %vm274_vm1, %v3149_v26  ;;  %v3142_v29 = vpop.permute.xlu1 %3141  ;;  %v3151_v30 = vsel %vm3147_vm14, %v3138_v24, %v3140_v4 }
 0x150   : > { %v3152_v41 = vsel %vm3147_vm14, %v3140_v4, %v3142_v29 }
 0x151   : > { %v337_v5 = vpop.f32.mrf.mxu0  ;;  %v374_v31 = vpop.f32.mrf.mxu1  ;;  %3872 = vmatmul.mubr.msk.bf16.vlgmr.msra.gmra.mxu1 %vm270_vm2, %v3868_v21  ;;  %v3171_v47 = vsel %vm274_vm1, %v3152_v41, 0 }
 0x152   : > { %3095 = vmatpush1.bf16.msra.mxu1 %v2952_v6  ;;  %3112 = vmatprep.mubr.bf16.mxu1 %v3948_v0  ;;  %v3144_v32 = vpop.permute.xlu0 %3143 }
 0x153   : > { %v338_v34 = vpop.f32.mrf.mxu0  ;;  %v376_v8 = vpop.f32.mrf.mxu1  ;;  %3880 = vmatprep.subr.msk.bf16.mxu1 %vm274_vm1, %v3151_v30  ;;  %v3153_v35 = vsel %vm3147_vm14, %v3142_v29, %v3144_v32  ;;  %v3886_v29 = vld [vmem:[%s4705_s1 + $0x38] sm:$0xf] }
 0x154   : > { %v3146_v36 = vpop.permute.xlu1 %3145 }
 0x155   : > { %v378_v37 = vpop.f32.mrf.mxu1  ;;  %v415_v11 = vpop.f32.mrf.mxu0  ;;  %3874 = vmatmul.mubr.msk.bf16.vlgmr.msra.gmra.mxu0 %vm270_vm2, %v3868_v21  ;;  %v3154_v50 = vsel %vm3147_vm14, %v3144_v32, %v3146_v36 }
 0x156   : > { %3197 = vmatpush1.bf16.msra.mxu0 %v3159_v33  ;;  %3214 = vmatprep.mubr.bf16.mxu0 %v3948_v0  ;;  %v3357_v12 = vpop.permute.xlu0 %3356  ;;  %v3177_v57 = vsel %vm274_vm1, %v3154_v50, 0 }
 0x157   : > { %v379_v39 = vpop.f32.mrf.mxu1  ;;  %v417_v40 = vpop.f32.mrf.mxu0  ;;  %3882 = vmatprep.subr.msk.bf16.mxu0 %vm274_vm1, %v3153_v35 }
 0x158   : > { %v3359_v42 = vpop.permute.xlu1 %3358 }
 0x159   : > { %v419_v43 = vpop.f32.mrf.mxu0  ;;  %v456_v44 = vpop.f32.mrf.mxu1  ;;  %3876 = vmatmul.mubr.msk.bf16.vlgmr.msra.gmra.mxu1 %vm270_vm2, %v3868_v21  ;;  %v3373_v60 = vsel %vm3372_vm15, %v3357_v12, %v3359_v42 }
 0x15a   : > { %3238 = vmatpush1.bf16.msra.mxu1 %v3165_v38  ;;  %3255 = vmatprep.mubr.bf16.mxu1 %v3948_v0  ;;  %v3361_v46 = vpop.permute.xlu0 %3360  ;;  %v3384_v13 = vsel %vm274_vm1, %v3373_v60, 0 }
 0x15b   : > { %v420_v48 = vpop.f32.mrf.mxu0  ;;  %v458_v49 = vpop.f32.mrf.mxu1  ;;  %3884 = vmatprep.subr.msk.bf16.mxu1 %vm274_vm1, %v3146_v36  ;;  %v3374_v51 = vsel %vm3372_vm15, %v3359_v42, %v3361_v46 }
 0x15c   : > { %v3363_v52 = vpop.permute.xlu1 %3362 }
 0x15d   : > { %v460_v53 = vpop.f32.mrf.mxu1  ;;  %v524_v54 = vpop.f32.mrf.mxu0  ;;  %3879 = vmatmul.mubr.msk.bf16.vlgmr.msra.gmra.mxu0 %vm270_vm2, %v3877_v45  ;;  %v3375_v16 = vsel %vm3372_vm15, %v3361_v46, %v3363_v52 }
 0x15e   : > { %v525_v55 = vadd.f32 %v524_v54, %v333_v27  ;;  %3279 = vmatpush1.bf16.msra.mxu0 %v3171_v47  ;;  %3296 = vmatprep.mubr.bf16.mxu0 %v3948_v0  ;;  %v3365_v56 = vpop.permute.xlu0 %3364  ;;  %v3390_v22 = vsel %vm274_vm1, %v3375_v16, 0 }
 0x15f   : > { %v461_v58 = vpop.f32.mrf.mxu1  ;;  %v526_v59 = vpop.f32.mrf.mxu0  ;;  %3887 = vmatprep.subr.msk.bf16.mxu0 %vm274_vm1, %v3374_v51  ;;  %v3376_v62 = vsel %vm3372_vm15, %v3363_v52, %v3365_v56 }
 0x160   : > { %v527_v61 = vadd.f32 %v526_v59, %v335_v28  ;;  %v3367_v63 = vpop.permute.xlu1 %3366 }
 0x161   : > { %v528_v1 = vpop.f32.mrf.mxu0  ;;  %v565_v2 = vpop.f32.mrf.mxu1  ;;  %3881 = vmatmul.mubr.msk.bf16.vlgmr.msra.gmra.mxu1 %vm270_vm2, %v3877_v45  ;;  %v3377_v25 = vsel %vm3372_vm15, %v3365_v56, %v3367_v63 }
 0x162   : > { %v566_v7 = vadd.f32 %v565_v2, %v374_v31  ;;  %3320 = vmatpush1.bf16.msra.mxu1 %v3177_v57  ;;  %3337 = vmatprep.mubr.bf16.mxu1 %v3948_v0  ;;  %v3369_v10 = vpop.permute.xlu0 %3368  ;;  %v3396_v3 = vsel %vm274_vm1, %v3377_v25, 0 }
 0x163   : > { %v529_v14 = vpop.f32.mrf.mxu0  ;;  %v567_v15 = vpop.f32.mrf.mxu1  ;;  %3889 = vmatprep.subr.msk.bf16.mxu1 %vm274_vm1, %v3376_v62  ;;  %v3378_v18 = vsel %vm3372_vm15, %v3367_v63, %v3369_v10 }
 0x164   : > { %v568_v17 = vadd.f32 %v567_v15, %v376_v8  ;;  %v3371_v27 = vpop.permute.xlu1 %3370 }
 0x165   : > { %v569_v19 = vpop.f32.mrf.mxu1  ;;  %v606_v20 = vpop.f32.mrf.mxu0  ;;  %3883 = vmatmul.mubr.msk.bf16.vlgmr.msra.gmra.mxu0 %vm270_vm2, %v3877_v45  ;;  %v3379_v32 = vsel %vm3372_vm15, %v3369_v10, %v3371_v27 }
 0x166   : > { %v607_v21 = vadd.f32 %v606_v20, %v415_v11  ;;  %3422 = vmatpush1.bf16.msra.mxu0 %v3384_v13  ;;  %3439 = vmatprep.mubr.bf16.mxu0 %v3948_v0  ;;  %v3402_v9 = vsel %vm274_vm1, %v3379_v32, 0 }
 0x167   : > { %v570_v23 = vpop.f32.mrf.mxu1  ;;  %v608_v24 = vpop.f32.mrf.mxu0  ;;  %3891 = vmatprep.subr.msk.bf16.mxu0 %vm274_vm1, %v3378_v18 }
 0x168   : > { %v609_v26 = vadd.f32 %v608_v24, %v417_v40 }
 0x169   : > { %v610_v4 = vpop.f32.mrf.mxu0  ;;  %v647_v6 = vpop.f32.mrf.mxu1  ;;  %3885 = vmatmul.mubr.msk.bf16.vlgmr.msra.gmra.mxu1 %vm270_vm2, %v3877_v45 }
 0x16a   : > { %v648_v28 = vadd.f32 %v647_v6, %v456_v44  ;;  %3463 = vmatpush1.bf16.msra.mxu1 %v3390_v22  ;;  %3480 = vmatprep.mubr.bf16.mxu1 %v3948_v0 }
 0x16b   : > { %v611_v30 = vpop.f32.mrf.mxu0  ;;  %v649_v5 = vpop.f32.mrf.mxu1  ;;  %3893 = vmatprep.subr.msk.bf16.mxu1 %vm274_vm1, %v3371_v27 }
 0x16c   : > { %v650_v31 = vadd.f32 %v649_v5, %v458_v49 }
 0x16d   : > { %v651_v33 = vpop.f32.mrf.mxu1  ;;  %v741_v34 = vpop.f32.mrf.mxu0  ;;  %3888 = vmatmul.mubr.msk.bf16.vlgmr.msra.gmra.mxu0 %vm270_vm2, %v3886_v29 }
 0x16e   : > { %v871_v8 = vadd.f32 %v741_v34, %v525_v55  ;;  %3504 = vmatpush1.bf16.msra.mxu0 %v3396_v3  ;;  %3521 = vmatprep.mubr.bf16.mxu0 %v3948_v0 }
 0x16f   : > { %v652_v35 = vpop.f32.mrf.mxu1  ;;  %v743_v36 = vpop.f32.mrf.mxu0 }
 0x170   : > { %v872_v37 = vadd.f32 %v743_v36, %v527_v61 }
 0x171   : > { %v745_v11 = vpop.f32.mrf.mxu0  ;;  %v782_v12 = vpop.f32.mrf.mxu1  ;;  %3890 = vmatmul.mubr.msk.bf16.vlgmr.msra.gmra.mxu1 %vm270_vm2, %v3886_v29 }
 0x172   : > { %v873_v38 = vadd.f32 %v782_v12, %v566_v7  ;;  %3545 = vmatpush1.bf16.msra.mxu1 %v3402_v9  ;;  %3562 = vmatprep.mubr.bf16.mxu1 %v3948_v0 }
 0x173   : > { %v746_v39 = vpop.f32.mrf.mxu0  ;;  %v784_v40 = vpop.f32.mrf.mxu1 }
 0x174   : > { %v874_v41 = vadd.f32 %v784_v40, %v568_v17 }
 0x175   : > { %v786_v42 = vpop.f32.mrf.mxu1  ;;  %v823_v43 = vpop.f32.mrf.mxu0  ;;  %3892 = vmatmul.mubr.msk.bf16.vlgmr.msra.gmra.mxu0 %vm270_vm2, %v3886_v29 }
 0x176   : > { %v875_v44 = vadd.f32 %v823_v43, %v607_v21 }
 0x177   : > { %v787_v45 = vpop.f32.mrf.mxu1  ;;  %v825_v46 = vpop.f32.mrf.mxu0 }
 0x178   : > { %v876_v47 = vadd.f32 %v825_v46, %v609_v26 }
 0x179   : > { %v827_v48 = vpop.f32.mrf.mxu0  ;;  %v864_v49 = vpop.f32.mrf.mxu1  ;;  %3894 = vmatmul.mubr.msk.bf16.vlgmr.msra.gmra.mxu1 %vm270_vm2, %v3886_v29 }
 0x17a   : > { %v877_v50 = vadd.f32 %v864_v49, %v648_v28 }
 0x17b   : > { %v828_v51 = vpop.f32.mrf.mxu0  ;;  %v866_v52 = vpop.f32.mrf.mxu1 }
 0x17c   : > { %v878_v53 = vadd.f32 %v866_v52, %v650_v31 }
 0x17d   : > { %v868_v0 = vpop.f32.mrf.mxu1  ;;  %v966_v54 = vpop.f32.mrf.mxu0 }
 0x17e   : > { %v1096_v55 = vadd.f32 %v966_v54, %v871_v8 }
 0x17f   : > { %v869_v56 = vpop.f32.mrf.mxu1  ;;  %v968_v57 = vpop.f32.mrf.mxu0 }
 0x180   : > { %v1097_v58 = vadd.f32 %v968_v57, %v872_v37 }
 0x181   : > { %v970_v59 = vpop.f32.mrf.mxu0  ;;  %v1007_v60 = vpop.f32.mrf.mxu1 }
 0x182   : > { %v1098_v61 = vadd.f32 %v1007_v60, %v873_v38 }
 0x183   : > { %v971_v62 = vpop.f32.mrf.mxu0  ;;  %v1009_v63 = vpop.f32.mrf.mxu1 }
 0x184   : > { %v1099_v1 = vadd.f32 %v1009_v63, %v874_v41 }
 0x185   : > { %v1011_v2 = vpop.f32.mrf.mxu1  ;;  %v1048_v7 = vpop.f32.mrf.mxu0 }
 0x186   : > { %v1100_v10 = vadd.f32 %v1048_v7, %v875_v44 }
 0x187   : > { %v1012_v13 = vpop.f32.mrf.mxu1  ;;  %v1050_v14 = vpop.f32.mrf.mxu0 }
 0x188   : > { %v1101_v15 = vadd.f32 %v1050_v14, %v876_v47 }
 0x189   : > { %v1052_v16 = vpop.f32.mrf.mxu0  ;;  %v1089_v17 = vpop.f32.mrf.mxu1 }
 0x18a   : > { %v1102_v18 = vadd.f32 %v1089_v17, %v877_v50 }
 0x18b   : > { %v1053_v19 = vpop.f32.mrf.mxu0  ;;  %v1091_v20 = vpop.f32.mrf.mxu1 }
 0x18c   : > { %v1103_v21 = vadd.f32 %v1091_v20, %v878_v53 }
 0x18d   : > { %v1093_v22 = vpop.f32.mrf.mxu1  ;;  %v1191_v23 = vpop.f32.mrf.mxu0 }
 0x18e   : > { %v1321_v24 = vadd.f32 %v1191_v23, %v1096_v55 }
 0x18f   : > { %v1094_v25 = vpop.f32.mrf.mxu1  ;;  %v1193_v26 = vpop.f32.mrf.mxu0 }
 0x190   : > { %v1322_v27 = vadd.f32 %v1193_v26, %v1097_v58 }
 0x191   : > { %v1195_v4 = vpop.f32.mrf.mxu0  ;;  %v1232_v6 = vpop.f32.mrf.mxu1 }
 0x192   : > { %v1323_v28 = vadd.f32 %v1232_v6, %v1098_v61 }
 0x193   : > { %v1196_v29 = vpop.f32.mrf.mxu0  ;;  %v1234_v3 = vpop.f32.mrf.mxu1 }
 0x194   : > { %v1324_v30 = vadd.f32 %v1234_v3, %v1099_v1 }
 0x195   : > { %v1236_v5 = vpop.f32.mrf.mxu1  ;;  %v1273_v31 = vpop.f32.mrf.mxu0 }
 0x196   : > { %v1325_v32 = vadd.f32 %v1273_v31, %v1100_v10 }
 0x197   : > { %v1237_v33 = vpop.f32.mrf.mxu1  ;;  %v1275_v34 = vpop.f32.mrf.mxu0 }
 0x198   : > { %v1326_v8 = vadd.f32 %v1275_v34, %v1101_v15 }
 0x199   : > { %v1277_v9 = vpop.f32.mrf.mxu0  ;;  %v1314_v35 = vpop.f32.mrf.mxu1 }
 0x19a   : > { %v1327_v36 = vadd.f32 %v1314_v35, %v1102_v18 }
 0x19b   : > { %v1278_v37 = vpop.f32.mrf.mxu0  ;;  %v1316_v11 = vpop.f32.mrf.mxu1 }
 0x19c   : > { %v1328_v12 = vadd.f32 %v1316_v11, %v1103_v21 }
 0x19d   : > { %v1318_v38 = vpop.f32.mrf.mxu1  ;;  %v1416_v39 = vpop.f32.mrf.mxu0 }
 0x19e   : > { %v1546_v40 = vadd.f32 %v1416_v39, %v1321_v24 }
 0x19f   : > { %v1319_v41 = vpop.f32.mrf.mxu1  ;;  %v1418_v42 = vpop.f32.mrf.mxu0 }
 0x1a0   : > { %v1547_v43 = vadd.f32 %v1418_v42, %v1322_v27 }
 0x1a1   : > { %v1420_v44 = vpop.f32.mrf.mxu0  ;;  %v1457_v45 = vpop.f32.mrf.mxu1 }
 0x1a2   : > { %v1548_v46 = vadd.f32 %v1457_v45, %v1323_v28 }
 0x1a3   : > { %v1421_v47 = vpop.f32.mrf.mxu0  ;;  %v1459_v48 = vpop.f32.mrf.mxu1 }
 0x1a4   : > { %v1549_v49 = vadd.f32 %v1459_v48, %v1324_v30 }
 0x1a5   : > { %v1461_v50 = vpop.f32.mrf.mxu1  ;;  %v1498_v51 = vpop.f32.mrf.mxu0 }
 0x1a6   : > { %v1550_v52 = vadd.f32 %v1498_v51, %v1325_v32 }
 0x1a7   : > { %v1462_v53 = vpop.f32.mrf.mxu1  ;;  %v1500_v0 = vpop.f32.mrf.mxu0 }
 0x1a8   : > { %v1551_v54 = vadd.f32 %v1500_v0, %v1326_v8 }
 0x1a9   : > { %v1502_v55 = vpop.f32.mrf.mxu0  ;;  %v1539_v56 = vpop.f32.mrf.mxu1 }
 0x1aa   : > { %v1552_v57 = vadd.f32 %v1539_v56, %v1327_v36 }
 0x1ab   : > { %v1503_v58 = vpop.f32.mrf.mxu0  ;;  %v1541_v59 = vpop.f32.mrf.mxu1 }
 0x1ac   : > { %v1553_v60 = vadd.f32 %v1541_v59, %v1328_v12 }
 0x1ad   : > { %v1543_v61 = vpop.f32.mrf.mxu1  ;;  %v1641_v62 = vpop.f32.mrf.mxu0 }
 0x1ae   : > { %v1771_v63 = vadd.f32 %v1641_v62, %v1546_v40 }
 0x1af   : > { %v1544_v1 = vpop.f32.mrf.mxu1  ;;  %v1643_v2 = vpop.f32.mrf.mxu0 }
 0x1b0   : > { %v1772_v7 = vadd.f32 %v1643_v2, %v1547_v43 }
 0x1b1   : > { %v1645_v10 = vpop.f32.mrf.mxu0  ;;  %v1682_v13 = vpop.f32.mrf.mxu1 }
 0x1b2   : > { %v1773_v14 = vadd.f32 %v1682_v13, %v1548_v46 }
 0x1b3   : > { %v1646_v15 = vpop.f32.mrf.mxu0  ;;  %v1684_v16 = vpop.f32.mrf.mxu1 }
 0x1b4   : > { %v1774_v17 = vadd.f32 %v1684_v16, %v1549_v49 }
 0x1b5   : > { %v1686_v18 = vpop.f32.mrf.mxu1  ;;  %v1723_v19 = vpop.f32.mrf.mxu0 }
 0x1b6   : > { %v1775_v20 = vadd.f32 %v1723_v19, %v1550_v52 }
 0x1b7   : > { %v1687_v21 = vpop.f32.mrf.mxu1  ;;  %v1725_v22 = vpop.f32.mrf.mxu0 }
 0x1b8   : > { %v1776_v23 = vadd.f32 %v1725_v22, %v1551_v54 }
 0x1b9   : > { %v1727_v24 = vpop.f32.mrf.mxu0  ;;  %v1764_v25 = vpop.f32.mrf.mxu1 }
 0x1ba   : > { %v1777_v26 = vadd.f32 %v1764_v25, %v1552_v57 }
 0x1bb   : > { %v1728_v27 = vpop.f32.mrf.mxu0  ;;  %v1766_v4 = vpop.f32.mrf.mxu1 }
 0x1bc   : > { %v1778_v6 = vadd.f32 %v1766_v4, %v1553_v60 }
 0x1bd   : > { %v1768_v28 = vpop.f32.mrf.mxu1  ;;  %v1866_v29 = vpop.f32.mrf.mxu0 }
 0x1be   : > { %v1996_v3 = vadd.f32 %v1866_v29, %v1771_v63 }
 0x1bf   : > { %v1769_v30 = vpop.f32.mrf.mxu1  ;;  %v1868_v5 = vpop.f32.mrf.mxu0 }
 0x1c0   : > { %v1997_v31 = vadd.f32 %v1868_v5, %v1772_v7 }
 0x1c1   : > { %v1870_v32 = vpop.f32.mrf.mxu0  ;;  %v1907_v33 = vpop.f32.mrf.mxu1 }
 0x1c2   : > { %v1998_v34 = vadd.f32 %v1907_v33, %v1773_v14 }
 0x1c3   : > { %v1871_v8 = vpop.f32.mrf.mxu0  ;;  %v1909_v9 = vpop.f32.mrf.mxu1 }
 0x1c4   : > { %v1999_v35 = vadd.f32 %v1909_v9, %v1774_v17 }
 0x1c5   : > { %v1911_v36 = vpop.f32.mrf.mxu1  ;;  %v1948_v37 = vpop.f32.mrf.mxu0 }
 0x1c6   : > { %v2000_v11 = vadd.f32 %v1948_v37, %v1775_v20 }
 0x1c7   : > { %v1912_v12 = vpop.f32.mrf.mxu1  ;;  %v1950_v38 = vpop.f32.mrf.mxu0 }
 0x1c8   : > { %v2001_v39 = vadd.f32 %v1950_v38, %v1776_v23 }
 0x1c9   : > { %v1952_v40 = vpop.f32.mrf.mxu0  ;;  %v1989_v41 = vpop.f32.mrf.mxu1 }
 0x1ca   : > { %v2002_v42 = vadd.f32 %v1989_v41, %v1777_v26 }
 0x1cb   : > { %v1953_v43 = vpop.f32.mrf.mxu0  ;;  %v1991_v44 = vpop.f32.mrf.mxu1 }
 0x1cc   : > { %v2003_v45 = vadd.f32 %v1991_v44, %v1778_v6 }
 0x1cd   : > { %v1993_v46 = vpop.f32.mrf.mxu1  ;;  %v2091_v47 = vpop.f32.mrf.mxu0 }
 0x1ce   : > { %v2221_v48 = vadd.f32 %v2091_v47, %v1996_v3 }
 0x1cf   : > { %v1994_v49 = vpop.f32.mrf.mxu1  ;;  %v2093_v50 = vpop.f32.mrf.mxu0 }
 0x1d0   : > { %v2222_v51 = vadd.f32 %v2093_v50, %v1997_v31 }
 0x1d1   : > { %v2095_v52 = vpop.f32.mrf.mxu0  ;;  %v2132_v53 = vpop.f32.mrf.mxu1 }
 0x1d2   : > { %v2223_v0 = vadd.f32 %v2132_v53, %v1998_v34 }
 0x1d3   : > { %v2096_v54 = vpop.f32.mrf.mxu0  ;;  %v2134_v55 = vpop.f32.mrf.mxu1 }
 0x1d4   : > { %v2224_v56 = vadd.f32 %v2134_v55, %v1999_v35 }
 0x1d5   : > { %v2136_v57 = vpop.f32.mrf.mxu1  ;;  %v2173_v58 = vpop.f32.mrf.mxu0 }
 0x1d6   : > { %v2225_v59 = vadd.f32 %v2173_v58, %v2000_v11 }
 0x1d7   : > { %v2137_v60 = vpop.f32.mrf.mxu1  ;;  %v2175_v61 = vpop.f32.mrf.mxu0 }
 0x1d8   : > { %v2226_v62 = vadd.f32 %v2175_v61, %v2001_v39 }
 0x1d9   : > { %v2177_v63 = vpop.f32.mrf.mxu0  ;;  %v2214_v1 = vpop.f32.mrf.mxu1 }
 0x1da   : > { %v2227_v2 = vadd.f32 %v2214_v1, %v2002_v42 }
 0x1db   : > { %v2178_v7 = vpop.f32.mrf.mxu0  ;;  %v2216_v10 = vpop.f32.mrf.mxu1 }
 0x1dc   : > { %v2228_v13 = vadd.f32 %v2216_v10, %v2003_v45 }
 0x1dd   : > { %v2218_v14 = vpop.f32.mrf.mxu1  ;;  %v2316_v15 = vpop.f32.mrf.mxu0 }
 0x1de   : > { %v4581_v16 = vadd.f32 %v2316_v15, %v2221_v48 }
 0x1df   : > { %v2219_v17 = vpop.f32.mrf.mxu1  ;;  %v2318_v18 = vpop.f32.mrf.mxu0 }
 0x1e0   : > { %v4583_v19 = vadd.f32 %v2318_v18, %v2222_v51 }
 0x1e1   : > { %v2320_v20 = vpop.f32.mrf.mxu0  ;;  %v2357_v21 = vpop.f32.mrf.mxu1 }
 0x1e2   : > { %v4585_v22 = vadd.f32 %v2357_v21, %v2223_v0 }
 0x1e3   : > { %v2321_v23 = vpop.f32.mrf.mxu0  ;;  %v2359_v24 = vpop.f32.mrf.mxu1 }
 0x1e4   : > { %v4587_v25 = vadd.f32 %v2359_v24, %v2224_v56 }
 0x1e5   : > { %v2361_v26 = vpop.f32.mrf.mxu1  ;;  %v2398_v27 = vpop.f32.mrf.mxu0 }
 0x1e6   : > { %v4589_v4 = vadd.f32 %v2398_v27, %v2225_v59 }
 0x1e7   : > { %v2362_v6 = vpop.f32.mrf.mxu1  ;;  %v2400_v28 = vpop.f32.mrf.mxu0 }
 0x1e8   : > { %v4591_v29 = vadd.f32 %v2400_v28, %v2226_v62 }
 0x1e9   : > { %v2402_v3 = vpop.f32.mrf.mxu0  ;;  %v2439_v30 = vpop.f32.mrf.mxu1 }
 0x1ea   : > { %v4593_v5 = vadd.f32 %v2439_v30, %v2227_v2 }
 0x1eb   : > { %v2403_v31 = vpop.f32.mrf.mxu0  ;;  %v2441_v32 = vpop.f32.mrf.mxu1 }
 0x1ec   : > { %v4595_v33 = vadd.f32 %v2441_v32, %v2228_v13 }
 0x1ed   : > { %v2443_v34 = vpop.f32.mrf.mxu1  ;;  %v2541_v8 = vpop.f32.mrf.mxu0 }
 0x1ef   : > { %v2444_v9 = vpop.f32.mrf.mxu1  ;;  %v2543_v35 = vpop.f32.mrf.mxu0 }
 0x1f1   : > { %v2545_v36 = vpop.f32.mrf.mxu0  ;;  %v2582_v37 = vpop.f32.mrf.mxu1 }
 0x1f2   : > { %v2671_v36 = vadd.f32 %v2541_v8, %v4581_v16 }
 0x1f3   : > { %v2546_v11 = vpop.f32.mrf.mxu0  ;;  %v4597_v12 = vpop.f32.mrf.mxu1 }
 0x1f5   : > { %v2586_v38 = vpop.f32.mrf.mxu1  ;;  %v4599_v39 = vpop.f32.mrf.mxu0 }
 0x1f7   : > { %v2587_v40 = vpop.f32.mrf.mxu1  ;;  %v4601_v41 = vpop.f32.mrf.mxu0 }
 0x1f8   : > { %v2672_v40 = vadd.f32 %v2543_v35, %v4583_v19  ;;  %v4649_v19 = vld [vmem:[%s4634_s21 + $0x10] sm:$0xff]  ;;  %v2674_v35 = vadd.f32 %v4597_v12, %v4587_v25 }
 0x1f9   : > { %v2627_v42 = vpop.f32.mrf.mxu0  ;;  %v4603_v43 = vpop.f32.mrf.mxu1  ;;  %v3601_v25 = vunpack.c.l.bf16 %v4649_v19  ;;  %v3602_v12 = vunpack.c.h.bf16 %v4649_v19 }
 0x1fb   : > { %v2628_v44 = vpop.f32.mrf.mxu0  ;;  %v4605_v45 = vpop.f32.mrf.mxu1 }
 0x1fd   : > { %v2668_v46 = vpop.f32.mrf.mxu1  ;;  %v2766_v47 = vpop.f32.mrf.mxu0 }
 0x1fe   : > { %v2896_v42 = vadd.f32 %v2766_v47, %v2671_v36 }
 0x1ff   : > { %v2669_v48 = vpop.f32.mrf.mxu1  ;;  %v2768_v49 = vpop.f32.mrf.mxu0 }
 0x200   : > { %v2673_v48 = vadd.f32 %v2582_v37, %v4585_v22  ;;  %v2897_v16 = vadd.f32 %v2768_v49, %v2672_v40 }
 0x201   : > { %v2770_v50 = vpop.f32.mrf.mxu0  ;;  %v2807_v51 = vpop.f32.mrf.mxu1 }
 0x202   : > { %v3593_v50 = vld [vmem:[%s4634_s21] sm:$0xff] }
 0x203   : > { %v2771_v52 = vpop.f32.mrf.mxu0  ;;  %v4607_v53 = vpop.f32.mrf.mxu1  ;;  %v3597_v37 = vunpack.c.l.bf16 %v3593_v50  ;;  %v3598_v49 = vunpack.c.h.bf16 %v3593_v50 }
 0x204   : > { %v4642_v52 = vld [vmem:[%s4634_s21 + $0x8] sm:$0xff] }
 0x205   : > { %v2811_v0 = vpop.f32.mrf.mxu1  ;;  %v4609_v54 = vpop.f32.mrf.mxu0 }
 0x207   : > { %v2812_v55 = vpop.f32.mrf.mxu1  ;;  %v4611_v56 = vpop.f32.mrf.mxu0 }
 0x209   : > { %v2852_v57 = vpop.f32.mrf.mxu0  ;;  %v4613_v58 = vpop.f32.mrf.mxu1 }
 0x20a   : > { %v2898_v57 = vadd.f32 %v2807_v51, %v2673_v48  ;;  %v3600_v51 = vunpack.c.h.bf16 %v4642_v52 }
 0x20b   : > { %v2853_v59 = vpop.f32.mrf.mxu0  ;;  %v4615_v60 = vpop.f32.mrf.mxu1 }
 0x20d   : > { %v2893_v61 = vpop.f32.mrf.mxu1  ;;  %v2991_v62 = vpop.f32.mrf.mxu0 }
 0x20e   : > { %v3121_v8 = vadd.f32 %v2991_v62, %v2896_v42  ;;  %v3599_v62 = vunpack.c.l.bf16 %v4642_v52 }
 0x20f   : > { %v2894_v63 = vpop.f32.mrf.mxu1  ;;  %v2993_v1 = vpop.f32.mrf.mxu0 }
 0x210   : > { %v3122_v59 = vadd.f32 %v2993_v1, %v2897_v16  ;;  %v4646_v63 = vpop.permute.xlu0 %3582  ;;  %v2675_v1 = vadd.f32 %v4599_v39, %v4589_v4  ;;  %v2678_v4 = vadd.f32 %v4605_v45, %v4595_v33 }
 0x211   : > { %v2995_v2 = vpop.f32.mrf.mxu0  ;;  %v3032_v7 = vpop.f32.mrf.mxu1 }
 0x212   : > { %v3123_v2 = vadd.f32 %v3032_v7, %v2898_v57  ;;  %v2900_v39 = vadd.f32 %v4609_v54, %v2675_v1 }
 0x213   : > { %v2996_v10 = vpop.f32.mrf.mxu0  ;;  %v3034_v13 = vpop.f32.mrf.mxu1 }
 0x215   : > { %v3036_v14 = vpop.f32.mrf.mxu1  ;;  %v4617_v15 = vpop.f32.mrf.mxu0 }
 0x217   : > { %v3037_v17 = vpop.f32.mrf.mxu1  ;;  %v4619_v18 = vpop.f32.mrf.mxu0 }
 0x218   : > { %v2899_v17 = vadd.f32 %v4607_v53, %v2674_v35 }
 0x219   : > { %v3077_v20 = vpop.f32.mrf.mxu0  ;;  %v4621_v21 = vpop.f32.mrf.mxu1 }
 0x21a   : > { %v3124_v53 = vadd.f32 %v3034_v13, %v2899_v17 }
 0x21b   : > { %v3078_v23 = vpop.f32.mrf.mxu0  ;;  %v4623_v24 = vpop.f32.mrf.mxu1 }
 0x21d   : > { %v3118_v26 = vpop.f32.mrf.mxu1  ;;  %v3216_v27 = vpop.f32.mrf.mxu0 }
 0x21e   : > { %v3346_v61 = vadd.f32 %v3216_v27, %v3121_v8  ;;  %v2676_v26 = vadd.f32 %v4601_v41, %v4591_v29 }
 0x21f   : > { %v3119_v6 = vpop.f32.mrf.mxu1  ;;  %v3218_v28 = vpop.f32.mrf.mxu0 }
 0x220   : > { %v3347_v10 = vadd.f32 %v3218_v28, %v3122_v59  ;;  %v2677_v28 = vadd.f32 %v4603_v43, %v4593_v5  ;;  %v3125_v5 = vadd.f32 %v4617_v15, %v2900_v39 }
 0x221   : > { %v3220_v3 = vpop.f32.mrf.mxu0  ;;  %v3257_v30 = vpop.f32.mrf.mxu1 }
 0x222   : > { %v3348_v27 = vadd.f32 %v3257_v30, %v3123_v2  ;;  %v2902_v36 = vadd.f32 %v4613_v58, %v2677_v28 }
 0x223   : > { %v3221_v31 = vpop.f32.mrf.mxu0  ;;  %v3259_v32 = vpop.f32.mrf.mxu1 }
 0x224   : > { %v3349_v43 = vadd.f32 %v3259_v32, %v3124_v53 }
 0x225   : > { %v3261_v34 = vpop.f32.mrf.mxu1  ;;  %v4625_v9 = vpop.f32.mrf.mxu0 }
 0x226   : > { %v2901_v34 = vadd.f32 %v4611_v56, %v2676_v26  ;;  %v3596_v56 = vld [vmem:[%s4634_s21 + $0x18] sm:$0xff]  ;;  %v3350_v48 = vadd.f32 %v4625_v9, %v3125_v5 }
 0x227   : > { %v3262_v11 = vpop.f32.mrf.mxu1  ;;  %v4628_v38 = vpop.f32.mrf.mxu0  ;;  %v3604_v26 = vunpack.c.h.bf16 %v3596_v56 }
 0x228   : > { %v2903_v11 = vadd.f32 %v4615_v60, %v2678_v4  ;;  %v3126_v54 = vadd.f32 %v4619_v18, %v2901_v34 }
 0x229   : > { %v3302_v44 = vpop.f32.mrf.mxu0  ;;  %v4637_v46 = vpop.f32.mrf.mxu1 }
 0x22a   : > { %v3127_v44 = vadd.f32 %v4621_v21, %v2902_v36  ;;  %v3351_v15 = vadd.f32 %v4628_v38, %v3126_v54  ;;  %v3128_v18 = vadd.f32 %v4623_v24, %v2903_v11  ;;  %v3603_v21 = vunpack.c.l.bf16 %v3596_v56 }
 0x22b   : > { %v3303_v0 = vpop.f32.mrf.mxu0  ;;  %v4644_v55 = vpop.f32.mrf.mxu1 }
 0x22c   : > { %v3352_v9 = vadd.f32 %v4637_v46, %v3127_v44 }
 0x22d   : > { %v3343_v47 = vpop.f32.mrf.mxu1  ;;  %v3441_v22 = vpop.f32.mrf.mxu0 }
 0x22e   : > { %v3571_v14 = vadd.f32 %v3441_v22, %v3346_v61 }
 0x22f   : > { %v3344_v20 = vpop.f32.mrf.mxu1  ;;  %v3443_v23 = vpop.f32.mrf.mxu0 }
 0x230   : > { %v3572_v7 = vadd.f32 %v3443_v23, %v3347_v10  ;;  %v3585_v6 = vadd.f32 %v4646_v63, %v3571_v14 }
 0x231   : > { %v3445_v3 = vpop.f32.mrf.mxu0  ;;  %v3482_v31 = vpop.f32.mrf.mxu1 }
 0x232   : > { %v3586_v29 = vadd.f32 %v4646_v63, %v3572_v7  ;;  %v3605_v41 = vadd.f32 %v3597_v37, %v3585_v6  ;;  %v3573_v30 = vadd.f32 %v3482_v31, %v3348_v27 }
 0x233   : > { %v3446_v33 = vpop.f32.mrf.mxu0  ;;  %v3484_v45 = vpop.f32.mrf.mxu1 }
 0x234   : > { %v3606_v13 = vadd.f32 %v3598_v49, %v3586_v29  ;;  %v3621_v40 = vmul.f32 0.01, %v3605_v41  ;;  %v3587_v42 = vadd.f32 %v4646_v63, %v3573_v30  ;;  %vm3613_vm0 = vcmp.ge.f32.partialorder %v3605_v41, 0.0 }
 0x235   : > { %v3574_v58 = vadd.f32 %v3484_v45, %v3349_v43  ;;  %v3486_v60 = vpop.f32.mrf.mxu1  ;;  %v3523_v16 = vpop.f32.mrf.mxu0 }
 0x236   : > { %vm3614_vm2 = vcmp.ge.f32.partialorder %v3606_v13, 0.0  ;;  %v3622_v32 = vmul.f32 0.01, %v3606_v13  ;;  %v3607_v8 = vadd.f32 %v3599_v62, %v3587_v42  ;;  %v3575_v52 = vadd.f32 %v3523_v16, %v3350_v48 }
 0x237   : > { %v3588_v50 = vadd.f32 %v4646_v63, %v3574_v58  ;;  %v3487_v0 = vpop.f32.mrf.mxu1  ;;  %v3525_v57 = vpop.f32.mrf.mxu0  ;;  %v3629_v38 = vsel %vm3613_vm0, %v3605_v41, %v3621_v40  ;;  %v3353_v62 = vadd.f32 %v4644_v55, %v3128_v18 }
 0x238   : > { %v3630_v59 = vsel %vm3614_vm2, %v3606_v13, %v3622_v32  ;;  %v3576_v61 = vadd.f32 %v3525_v57, %v3351_v15  ;;  %v3623_v24 = vmul.f32 0.01, %v3607_v8  ;;  %v3589_v22 = vadd.f32 %v4646_v63, %v3575_v52 }
 0x239   : > { %v3904_v35 = vpack.c.bf16 %v3630_v59, %v3629_v38  ;;  %v3608_v47 = vadd.f32 %v3600_v51, %v3588_v50  ;;  %v3527_v37 = vpop.f32.mrf.mxu0  ;;  %v3564_v49 = vpop.f32.mrf.mxu1  ;;  %vm3615_vm3 = vcmp.ge.f32.partialorder %v3607_v8, 0.0 }
 0x23a   : > { %v3590_v46 = vadd.f32 %v4646_v63, %v3576_v61  ;;  %v3577_v2 = vadd.f32 %v3564_v49, %v3352_v9  ;;  %v3609_v14 = vadd.f32 %v3601_v25, %v3589_v22  ;;  %v3631_v27 = vsel %vm3615_vm3, %v3607_v8, %v3623_v24 }
 0x23b   : > { %3669 = vst [vmem:[%s4686_s24] sm:$0xff] %v3904_v35  ;;  %vm3616_vm4 = vcmp.ge.f32.partialorder %v3608_v47, 0.0  ;;  %v3624_v10 = vmul.f32 0.01, %v3608_v47  ;;  %v3528_v1 = vpop.f32.mrf.mxu0  ;;  %v3566_v17 = vpop.f32.mrf.mxu1 }
 0x23c   : > { %v3610_v51 = vadd.f32 %v3602_v12, %v3590_v46  ;;  %v3591_v20 = vadd.f32 %v4646_v63, %v3577_v2  ;;  %v3578_v23 = vadd.f32 %v3566_v17, %v3353_v62  ;;  %vm3617_vm5 = vcmp.ge.f32.partialorder %v3609_v14, 0.0 }
 0x23d   : > { %v3632_v55 = vsel %vm3616_vm4, %v3608_v47, %v3624_v10  ;;  %v3625_v7 = vmul.f32 0.01, %v3609_v14  ;;  %v3568_v6 = vpop.f32.mrf.mxu1 }
 0x23e   : > { %v3905_v28 = vpack.c.bf16 %v3632_v55, %v3631_v27  ;;  %vm3618_vm6 = vcmp.ge.f32.partialorder %v3610_v51, 0.0  ;;  %v3626_v4 = vmul.f32 0.01, %v3610_v51  ;;  %v3611_v25 = vadd.f32 %v3603_v21, %v3591_v20 }
 0x23f   : > { %v3592_v39 = vadd.f32 %v4646_v63, %v3578_v23  ;;  %v3569_v53 = vpop.f32.mrf.mxu1  ;;  %v3633_v19 = vsel %vm3617_vm5, %v3609_v14, %v3625_v7 }
 0x240   : > { %3670 = vst [vmem:[%s4686_s24 + $0x8] sm:$0xff] %v3905_v28  ;;  %v3634_v12 = vsel %vm3618_vm6, %v3610_v51, %v3626_v4  ;;  %v3627_v31 = vmul.f32 0.01, %v3611_v25  ;;  %vm3619_vm7 = vcmp.ge.f32.partialorder %v3611_v25, 0.0 }
 0x241   : > { %v3906_v3 = vpack.c.bf16 %v3634_v12, %v3633_v19  ;;  %v3612_v34 = vadd.f32 %v3604_v26, %v3592_v39 }
 0x242   : > { %v3635_v41 = vsel %vm3619_vm7, %v3611_v25, %v3627_v31 }
 0x243   : > { %3671 = vst [vmem:[%s4686_s24 + $0x10] sm:$0xff] %v3906_v3  ;;  %vm3620_vm9 = vcmp.ge.f32.partialorder %v3612_v34, 0.0  ;;  %v3628_v29 = vmul.f32 0.01, %v3612_v34 }
 0x245   : > { %v3636_v30 = vsel %vm3620_vm9, %v3612_v34, %v3628_v29 }
 0x246   : > { %v3907_v36 = vpack.c.bf16 %v3636_v30, %v3635_v41 }
 0x248   : > { %3674 = vst.msk [vmem:[%s4686_s24 + $0x18] sm:$0xff] %vm3673_vm10, %v3907_v36 }
 0x249 PF: > { %s14_s15 = sadd.s32 1, %s3946_s15  }
 0x24a   : > { %p11_p4 = scmp.ge.s32.totalorder %s14_s15, 4  }
 0x24c   :  { %13 = sbr.rel (!%p11_p4) target bundleno = 1 (0x1), region = 83 }

// kernel: run.14
= control target key start
LH: loop header
LB: loop body
LE: loop exit
PB: predicated region body
PF: predicated region fallthrough
CT: control target
= control target key end

     0   :  { %s685_s15 = smov 0   ;;  %s730_s0 = inlined_call_operand.vmem [shape: bf16[2,48,160], index: 0, kind: input, shape index: {}]   ;;  %s731_s1 = inlined_call_operand.vmem [shape: bf16[3,16,48], index: 1, kind: input, shape index: {}]   ;;  %s732_s2 = inlined_call_operand.vmem [shape: f32[16,1], index: 2, kind: input, shape index: {}]   ;;  %s733_s3 = inlined_call_operand.vmem [shape: bf16[2,8,158], index: 3, kind: output, shape index: {0}]   ;;  %s734_s4 = inlined_call_operand.vmem [shape: bf16[2,8,158], index: 4, kind: output, shape index: {1}]  }
   0x1 LB: > { %s589_s16 = sadd.s32 4294967295, %s655_s15   ;;  %p593_p0 = scmp.ge.s32.totalorder %s655_s15, 1  ;;  %s655_s15 = sphi %s685_s15, %s15_s15  }
   0x2   : > { %p165_p1 = scmp.lt.s32.totalorder %s655_s15, 3 }
   0x4   : > { %p166_p2 = pnand %p593_p0, %p165_p1 }
   0x5   : > { %p196_p3 = scmp.lt.s32.totalorder (!%p166_p2), %s589_s16, 1  ;;  %s657_s21 = smov (!%p166_p2), 127  }
   0x6   : > { %169 = sbr.rel (%p166_p2) target bundleno = 365 (0x16d), region = 32  ;;  %s659_s24 = smov (!%p166_p2), 126  }
   0xb   : > { %s736_s16 = smov (!%p196_p3, %s589_s16), 1  ;;  %v658_v4 = vmov 0   ;;  %v647_v7 = vld [vmem:[%s731_s1] sm:$0xff]   ;;  %vm274_vm0 = vcmask 392192   ;;  %v459_v9 = vld [vmem:[%s732_s2 + $0x8] sm:$0xff]  ;;  %vm264_vm1 = vcmask 1039360  }
   0xc   : > { %s623_s17 = smul.u32 48, %s736_s16  ;;  %310 = vmatprep.mubr.bf16.mxu0 %v658_v4  ;;  %367 = vmatprep.mubr.bf16.mxu1 %v658_v4  ;;  %v458_v8 = vld [vmem:[%s732_s2] sm:$0xff]  ;;  %vm398_vm2 = vcmask 1031168   ;;  %v646_v21 = vld [vmem:[%s731_s1 + $0x8] sm:$0xff]   ;;  %v648_v29 = vld [vmem:[%s731_s1 + $0x10] sm:$0xff]   ;;  %vm488_vm3 = vcmask 1043456  }
   0xd   : > { %635 = vset.pattern.permute.xlu0 %v658_v4  ;;  %636 = vset.pattern.permute.xlu1 %v658_v4  ;;  %s619_s7 = sshll.u32 %s736_s16, 3  ;;  %vm489_vm4 = vcmask 244740  }
   0xe   : > { %s200_s20 = scalar_lea.vmem %s730_s0, %s623_s17  ;;  %s205_s10 = scalar_lea.vmem %s733_s3, %s619_s7  ;;  %vm490_vm7 = vmor %vm489_vm4, %vm488_vm3 }
   0xf   : > { %v637_v0 = vld [vmem:[%s200_s20 + $0x20] ss:$8 sps:$4 sm:$0xff]   ;;  %v639_v1 = vld [vmem:[%s200_s20 + $0x10] ss:$8 sps:$4 sm:$0xff]   ;;  %v641_v2 = vld [vmem:[%s200_s20 + $0x24] ss:$8 sps:$4 sm:$0xff]   ;;  %s210_s13 = scalar_lea.vmem %s734_s4, %s619_s7 }
  0x10   : > { %260 = vrot.lane.b32.xlu0 %v637_v0, %s657_s21  ;;  %256 = vrot.lane.b32.xlu1 %v639_v1, %s657_s21  ;;  %v642_v3 = vld [vmem:[%s200_s20 + $0x14] ss:$8 sps:$4 sm:$0xff]   ;;  %v645_v5 = vld [vmem:[%s200_s20] ss:$8 sps:$4 sm:$0xff]  }
  0x11   : > { %345 = vmatprep.subr.bf16.mxu1 %v641_v2  ;;  %v643_v6 = vld [vmem:[%s200_s20 + $0x4] ss:$8 sps:$4 sm:$0xff]  }
  0x12   : > { %346 = vmatpush1.bf16.msra.mxu1 %v637_v0 }
  0x13   : > { %347 = vmatprep.subr.bf16.mxu1 %v642_v3 }
  0x14   : > { %262 = vrot.lane.b32.xlu0 %v641_v2, %s657_s21  ;;  %258 = vrot.lane.b32.xlu1 %v642_v3, %s657_s21 }
  0x16   : > { %348 = vmatpush1.bf16.msra.mxu1 %v639_v1 }
  0x17   : > { %349 = vmatprep.subr.bf16.mxu1 %v643_v6 }
  0x18   : > { %252 = vrot.lane.b32.xlu0 %v645_v5, %s657_s21  ;;  %254 = vrot.lane.b32.xlu1 %v643_v6, %s657_s21 }
  0x1a   : > { %350 = vmatpush1.bf16.msra.mxu1 %v645_v5 }
  0x1c   : > { %394 = vrot.lane.b32.xlu0 %v637_v0, %s659_s24  ;;  %396 = vrot.lane.b32.xlu1 %v641_v2, %s659_s24 }
  0x1d   : > { %610 = vmatmul.mubr.msk.bf16.vlgmr.msra.gmra.mxu1 %vm274_vm0, %v647_v7 }
  0x20   : > { %390 = vrot.lane.b32.xlu0 %v639_v1, %s659_s24  ;;  %392 = vrot.lane.b32.xlu1 %v642_v3, %s659_s24 }
  0x24   : > { %386 = vrot.lane.b32.xlu0 %v645_v5, %s659_s24  ;;  %388 = vrot.lane.b32.xlu1 %v643_v6, %s659_s24 }
  0x28   : > { %462 = vperm.xlu0 %635, %v458_v8   ;;  %467 = vperm.xlu1 %636, %v459_v9  }
  0x82   : > { %v261_v10 = vpop.permute.xlu0 %260  ;;  %v257_v11 = vpop.permute.xlu1 %256 }
  0x86   : > { %v263_v12 = vpop.permute.xlu0 %262  ;;  %v259_v13 = vpop.permute.xlu1 %258 }
  0x87   : > { %288 = vmatprep.subr.bf16.mxu0 %v263_v12  ;;  %v267_v14 = vsel %vm264_vm1, %v261_v10, %v263_v12  ;;  %v266_v16 = vsel %vm264_vm1, %v257_v11, %v259_v13 }
  0x88   : > { %289 = vmatpush1.bf16.msra.mxu0 %v267_v14 }
  0x89   : > { %290 = vmatprep.subr.bf16.mxu0 %v259_v13 }
  0x8a   : > { %v253_v15 = vpop.permute.xlu0 %252  ;;  %v255_v17 = vpop.permute.xlu1 %254 }
  0x8b   : > { %v265_v18 = vsel %vm264_vm1, %v253_v15, %v255_v17 }
  0x8c   : > { %291 = vmatpush1.bf16.msra.mxu0 %v266_v16 }
  0x8d   : > { %292 = vmatprep.subr.bf16.mxu0 %v255_v17 }
  0x8e   : > { %v395_v19 = vpop.permute.xlu0 %394  ;;  %v397_v20 = vpop.permute.xlu1 %396 }
  0x8f   : > { %v401_v22 = vsel %vm398_vm2, %v395_v19, %v397_v20 }
  0x90   : > { %293 = vmatpush1.bf16.msra.mxu0 %v265_v18 }
  0x91   : > { %421 = vmatprep.subr.bf16.mxu0 %v397_v20 }
  0x92   : > { %v391_v23 = vpop.permute.xlu0 %390  ;;  %v393_v24 = vpop.permute.xlu1 %392 }
  0x93   : > { %608 = vmatmul.mubr.msk.bf16.vlgmr.msra.gmra.mxu0 %vm274_vm0, %v646_v21  ;;  %v400_v25 = vsel %vm398_vm2, %v391_v23, %v393_v24 }
  0x94   : > { %422 = vmatpush1.bf16.msra.mxu0 %v401_v22  ;;  %443 = vmatprep.mubr.bf16.mxu0 %v658_v4 }
  0x95   : > { %423 = vmatprep.subr.bf16.mxu0 %v393_v24 }
  0x96   : > { %v387_v26 = vpop.permute.xlu0 %386  ;;  %v389_v27 = vpop.permute.xlu1 %388 }
  0x97   : > { %v399_v28 = vsel %vm398_vm2, %v387_v26, %v389_v27 }
  0x98   : > { %424 = vmatpush1.bf16.msra.mxu0 %v400_v25 }
  0x99   : > { %425 = vmatprep.subr.bf16.mxu0 %v389_v27 }
  0x9c   : > { %426 = vmatpush1.bf16.msra.mxu0 %v399_v28 }
  0x9f   : > { %614 = vmatmul.mubr.msk.bf16.vlgmr.msra.gmra.mxu0 %vm274_vm0, %v648_v29 }
  0xa3   : > { %v463_v39 = vpop.permute.xlu0 %462  ;;  %v468_v54 = vpop.permute.xlu1 %467 }
  0xdd   : > { %v369_v32 = vpop.f32.mrf.mxu1 }
  0xdf   : > { %v371_v34 = vpop.f32.mrf.mxu1 }
  0xe1   : > { %v373_v37 = vpop.f32.mrf.mxu1 }
  0xe3   : > { %v375_v43 = vpop.f32.mrf.mxu1 }
 0x153   : > { %v312_v30 = vpop.f32.mrf.mxu0 }
 0x154   : > { %v370_v36 = vadd.f32 %v369_v32, %v312_v30 }
 0x155   : > { %v314_v31 = vpop.f32.mrf.mxu0 }
 0x156   : > { %v372_v40 = vadd.f32 %v371_v34, %v314_v31 }
 0x157   : > { %v316_v33 = vpop.f32.mrf.mxu0 }
 0x158   : > { %v374_v46 = vadd.f32 %v373_v37, %v316_v33 }
 0x159   : > { %v318_v35 = vpop.f32.mrf.mxu0 }
 0x15a   : > { %v376_v50 = vadd.f32 %v375_v43, %v318_v35 }
 0x15f   : > { %v445_v38 = vpop.f32.mrf.mxu0 }
 0x160   : > { %v454_v41 = vadd.f32 %v445_v38, %v370_v36 }
 0x161   : > { %v447_v42 = vpop.f32.mrf.mxu0 }
 0x162   : > { %v455_v44 = vadd.f32 %v447_v42, %v372_v40  ;;  %v470_v45 = vadd.f32 %v463_v39, %v454_v41 }
 0x163   : > { %v449_v47 = vpop.f32.mrf.mxu0 }
 0x164   : > { %v471_v48 = vadd.f32 %v463_v39, %v455_v44  ;;  %v476_v49 = vmul.f32 0.01, %v470_v45  ;;  %vm474_vm5 = vcmp.ge.f32.partialorder %v470_v45, 0.0  ;;  %v456_v51 = vadd.f32 %v449_v47, %v374_v46 }
 0x165   : > { %v451_v52 = vpop.f32.mrf.mxu0 }
 0x166   : > { %vm475_vm6 = vcmp.ge.f32.partialorder %v471_v48, 0.0  ;;  %v477_v53 = vmul.f32 0.01, %v471_v48  ;;  %v457_v55 = vadd.f32 %v451_v52, %v376_v50  ;;  %v478_v56 = vsel %vm474_vm5, %v470_v45, %v476_v49 }
 0x167   : > { %v472_v59 = vadd.f32 %v468_v54, %v456_v51 }
 0x168   : > { %v479_v57 = vsel %vm475_vm6, %v471_v48, %v477_v53  ;;  %v473_v60 = vadd.f32 %v468_v54, %v457_v55 }
 0x169   : > { %v621_v58 = vpack.c.bf16 %v479_v57, %v478_v56 }
 0x16a   : > { %v622_v61 = vpack.c.bf16 %v473_v60, %v472_v59 }
 0x16b   : > { %491 = vst.msk [vmem:[%s205_s10] sm:$0xff] %vm490_vm7, %v621_v58 }
 0x16c   : > { %500 = vst.msk [vmem:[%s210_s13] sm:$0xff] %vm490_vm7, %v622_v61 }
 0x16d PF: > { %s15_s15 = sadd.s32 1, %s655_s15  }
 0x16e   : > { %p12_p4 = scmp.ge.s32.totalorder %s15_s15, 4  }
 0x170   :  { %14 = sbr.rel (!%p12_p4) target bundleno = 1 (0x1), region = 76 }

// kernel: run.15
= control target key start
LH: loop header
LB: loop body
LE: loop exit
PB: predicated region body
PF: predicated region fallthrough
CT: control target
= control target key end

     0   :  { %s1351_s15 = smov 0   ;;  %s1486_s0 = inlined_call_operand.vmem [shape: bf16[2,8,172], index: 0, kind: input, shape index: {}]   ;;  %s1487_s1 = inlined_call_operand.vmem [shape: bf16[15,8,8], index: 1, kind: input, shape index: {}]   ;;  %s1488_s2 = inlined_call_operand.vmem [shape: f32[8,1], index: 2, kind: input, shape index: {}]   ;;  %s1489_s3 = inlined_call_operand.vmem [shape: bf16[2,8,158], index: 3, kind: input, shape index: {}]   ;;  %s1490_s4 = inlined_call_operand.vmem [shape: bf16[2,8,158], index: 4, kind: output, shape index: {}]  }
   0x1 LB: > { %s1213_s16 = sadd.s32 4294967295, %s1309_s15   ;;  %p1217_p0 = scmp.ge.s32.totalorder %s1309_s15, 1  ;;  %s1309_s15 = sphi %s1351_s15, %s14_s15  }
   0x2   : > { %p172_p1 = scmp.lt.s32.totalorder %s1309_s15, 3 }
   0x4   : > { %p173_p2 = pnand %p1217_p0, %p172_p1 }
   0x5   : > { %p203_p3 = scmp.lt.s32.totalorder (!%p173_p2), %s1213_s16, 1  ;;  %s1312_s21 = smov (!%p173_p2), 126  }
   0x6   : > { %176 = sbr.rel (%p173_p2) target bundleno = 404 (0x194), region = 36  ;;  %s1313_s22 = smov (!%p173_p2), 127  }
   0x7   : > { %s1314_s25 = smov (!%p173_p2), 125   ;;  %s1315_s26 = smov (!%p173_p2), 124  }
   0x8   : > { %s1316_s27 = smov (!%p173_p2), 123   ;;  %s1317_s28 = smov (!%p173_p2), 122  }
   0x9   : > { %s1318_s29 = smov (!%p173_p2), 121   ;;  %s1319_s30 = smov (!%p173_p2), 120  }
   0xa   : > { %s1320_s5 = smov (!%p173_p2), 119   ;;  %s1321_s6 = smov (!%p173_p2), 118  }
   0xb   : > { %s1492_s16 = smov (!%p203_p3, %s1213_s16), 1  ;;  %v1311_v0 = vmov 0   ;;  %vm238_vm0 = vcmask 1043456   ;;  %vm234_vm1 = vcmask 64512   ;;  %v219_v5 = vld [vmem:[%s1487_s1] sm:$0xf] }
   0xc   : > { %277 = vmatprep.mubr.bf16.mxu0 %v1311_v0  ;;  %327 = vmatprep.mubr.bf16.mxu1 %v1311_v0  ;;  %s1361_s17 = sshll.u32 %s1492_s16, 3  ;;  %s1322_s7 = smov 117   ;;  %v1116_v6 = vld [vmem:[%s1488_s2] sm:$0xff]  ;;  %vm342_vm2 = vcmask 1031168   ;;  %vm232_vm3 = vcmask 1039360   ;;  %vm402_vm4 = vcmask 1022976  }
   0xd   : > { %1300 = vset.pattern.permute.xlu0 %v1311_v0  ;;  %s207_s20 = scalar_lea.vmem %s1486_s0, %s1361_s17  ;;  %s1323_s8 = smov 116   ;;  %v1224_v14 = vld [vmem:[%s1487_s1 + $0x4] sm:$0xf]  ;;  %vm462_vm5 = vcmask 1014784   ;;  %v1234_v20 = vld [vmem:[%s1487_s1 + $0xc] sm:$0xf] }
   0xe   : > { %v220_v1 = vld [vmem:[%s207_s20] sm:$0xff]  ;;  %s1324_s9 = smov 115   ;;  %s1325_s10 = smov 114   ;;  %vm522_vm6 = vcmask 1006592   ;;  %v1231_v24 = vld [vmem:[%s1487_s1 + $0x8] sm:$0xf] }
   0xf   : > { %v1225_v2 = vcombine.low %v220_v1, %v220_v1  ;;  %v1226_v3 = vcombine.high %v220_v1, %v220_v1  ;;  %vm582_vm7 = vcmask 998400   ;;  %v1240_v30 = vld [vmem:[%s1487_s1 + $0x14] sm:$0xf]  ;;  %vm642_vm8 = vcmask 990208   ;;  %v1237_v34 = vld [vmem:[%s1487_s1 + $0x10] sm:$0xf]  ;;  %s217_s24 = scalar_lea.vmem %s1490_s4, %s1361_s17 }
  0x10   : > { %vm702_vm9 = vcmask 982016   ;;  %v1246_v40 = vld [vmem:[%s1487_s1 + $0x1c] sm:$0xf]  ;;  %vm762_vm10 = vcmask 973824   ;;  %v1243_v44 = vld [vmem:[%s1487_s1 + $0x18] sm:$0xf] }
  0x11   : > { %338 = vrot.lane.b32.xlu1 %v1225_v2, %s1312_s21  ;;  %228 = vrot.lane.b32.xlu0 %v1225_v2, %s1313_s22  ;;  %v290_v4 = vsel %vm238_vm0, %v1225_v2, 0  ;;  %vm822_vm11 = vcmask 965632   ;;  %v1252_v50 = vld [vmem:[%s1487_s1 + $0x24] sm:$0xf]  ;;  %vm882_vm12 = vcmask 957440   ;;  %vm942_vm13 = vcmask 949248  }
  0x12   : > { %1229 = vmatprep.subr.msk.bf16.mxu1 %vm238_vm0, %v1226_v3  ;;  %v1249_v54 = vld [vmem:[%s1487_s1 + $0x20] sm:$0xf]  ;;  %v1258_v60 = vld [vmem:[%s1487_s1 + $0x2c] sm:$0xf]  ;;  %vm1002_vm14 = vcmask 941056   ;;  %vm1062_vm15 = vcmask 932864  }
  0x13   : > { %310 = vmatpush1.bf16.msra.mxu1 %v290_v4  ;;  %v1255_v1 = vld [vmem:[%s1487_s1 + $0x28] sm:$0xf] }
  0x15   : > { %340 = vrot.lane.b32.xlu1 %v1226_v3, %s1312_s21  ;;  %230 = vrot.lane.b32.xlu0 %v1226_v3, %s1313_s22  ;;  %s212_s21 = scalar_lea.vmem %s1489_s3, %s1361_s17 }
  0x16   : > { %1230 = vmatmul.mubr.msk.bf16.vlgmr.msra.gmra.mxu1 %vm234_vm1, %v219_v5 }
  0x17   : > { %445 = vmatprep.mubr.bf16.mxu1 %v1311_v0 }
  0x19   : > { %400 = vrot.lane.b32.xlu1 %v1226_v3, %s1314_s25  ;;  %398 = vrot.lane.b32.xlu0 %v1225_v2, %s1314_s25 }
  0x1d   : > { %460 = vrot.lane.b32.xlu1 %v1226_v3, %s1315_s26  ;;  %458 = vrot.lane.b32.xlu0 %v1225_v2, %s1315_s26 }
  0x21   : > { %520 = vrot.lane.b32.xlu1 %v1226_v3, %s1316_s27  ;;  %518 = vrot.lane.b32.xlu0 %v1225_v2, %s1316_s27 }
  0x25   : > { %580 = vrot.lane.b32.xlu1 %v1226_v3, %s1317_s28  ;;  %578 = vrot.lane.b32.xlu0 %v1225_v2, %s1317_s28 }
  0x29   : > { %640 = vrot.lane.b32.xlu1 %v1226_v3, %s1318_s29  ;;  %638 = vrot.lane.b32.xlu0 %v1225_v2, %s1318_s29 }
  0x2d   : > { %700 = vrot.lane.b32.xlu1 %v1226_v3, %s1319_s30  ;;  %698 = vrot.lane.b32.xlu0 %v1225_v2, %s1319_s30 }
  0x31   : > { %760 = vrot.lane.b32.xlu1 %v1226_v3, %s1320_s5  ;;  %758 = vrot.lane.b32.xlu0 %v1225_v2, %s1320_s5 }
  0x35   : > { %820 = vrot.lane.b32.xlu1 %v1226_v3, %s1321_s6  ;;  %818 = vrot.lane.b32.xlu0 %v1225_v2, %s1321_s6 }
  0x39   : > { %880 = vrot.lane.b32.xlu1 %v1226_v3, %s1322_s7  ;;  %878 = vrot.lane.b32.xlu0 %v1225_v2, %s1322_s7 }
  0x3d   : > { %940 = vrot.lane.b32.xlu1 %v1226_v3, %s1323_s8  ;;  %938 = vrot.lane.b32.xlu0 %v1225_v2, %s1323_s8 }
  0x41   : > { %1000 = vrot.lane.b32.xlu1 %v1226_v3, %s1324_s9  ;;  %998 = vrot.lane.b32.xlu0 %v1225_v2, %s1324_s9 }
  0x45   : > { %1060 = vrot.lane.b32.xlu1 %v1226_v3, %s1325_s10  ;;  %1058 = vrot.lane.b32.xlu0 %v1225_v2, %s1325_s10 }
  0x49   : > { %1119 = vperm.xlu0 %1300, %v1116_v6  }
  0x83   : > { %v339_v7 = vpop.permute.xlu1 %338  ;;  %v229_v8 = vpop.permute.xlu0 %228 }
  0x87   : > { %v341_v9 = vpop.permute.xlu1 %340  ;;  %v231_v10 = vpop.permute.xlu0 %230 }
  0x88   : > { %v343_v11 = vsel %vm342_vm2, %v339_v7, %v341_v9  ;;  %1227 = vmatprep.subr.msk.bf16.mxu0 %vm238_vm0, %v231_v10  ;;  %v233_v12 = vsel %vm232_vm3, %v229_v8, %v231_v10  ;;  %v1264_v7 = vld [vmem:[%s1487_s1 + $0x34] sm:$0xf] }
  0x89   : > { %v240_v13 = vsel %vm238_vm0, %v233_v12, 0  ;;  %v348_v15 = vsel %vm238_vm0, %v343_v11, 0  ;;  %v1261_v11 = vld [vmem:[%s1487_s1 + $0x30] sm:$0xf] }
  0x8a   : > { %260 = vmatpush1.bf16.msra.mxu0 %v240_v13  ;;  %v1267_v13 = vld [vmem:[%s1487_s1 + $0x38] sm:$0xf] }
  0x8b   : > { %1232 = vmatprep.subr.msk.bf16.mxu0 %vm238_vm0, %v341_v9  ;;  %v401_v16 = vpop.permute.xlu1 %400  ;;  %v399_v17 = vpop.permute.xlu0 %398 }
  0x8c   : > { %v403_v18 = vsel %vm402_vm4, %v399_v17, %v401_v16  ;;  %1235 = vmatprep.subr.msk.bf16.mxu1 %vm238_vm0, %v401_v16 }
  0x8d   : > { %1228 = vmatmul.mubr.msk.bf16.vlgmr.msra.gmra.mxu0 %vm234_vm1, %v1224_v14  ;;  %v408_v19 = vsel %vm238_vm0, %v403_v18, 0 }
  0x8e   : > { %368 = vmatpush1.bf16.msra.mxu0 %v348_v15  ;;  %428 = vmatpush1.bf16.msra.mxu1 %v408_v19 }
  0x8f   : > { %v461_v21 = vpop.permute.xlu1 %460  ;;  %v459_v22 = vpop.permute.xlu0 %458  ;;  %385 = vmatprep.mubr.bf16.mxu0 %v1311_v0 }
  0x90   : > { %v463_v23 = vsel %vm462_vm5, %v459_v22, %v461_v21  ;;  %1238 = vmatprep.subr.msk.bf16.mxu0 %vm238_vm0, %v461_v21 }
  0x91   : > { %1236 = vmatmul.mubr.msk.bf16.vlgmr.msra.gmra.mxu1 %vm234_vm1, %v1234_v20  ;;  %v468_v25 = vsel %vm238_vm0, %v463_v23, 0 }
  0x92   : > { %565 = vmatprep.mubr.bf16.mxu1 %v1311_v0 }
  0x93   : > { %v521_v26 = vpop.permute.xlu1 %520  ;;  %v519_v27 = vpop.permute.xlu0 %518 }
  0x94   : > { %v523_v28 = vsel %vm522_vm6, %v519_v27, %v521_v26  ;;  %1241 = vmatprep.subr.msk.bf16.mxu1 %vm238_vm0, %v521_v26 }
  0x95   : > { %1233 = vmatmul.mubr.msk.bf16.vlgmr.msra.gmra.mxu0 %vm234_vm1, %v1231_v24  ;;  %v528_v29 = vsel %vm238_vm0, %v523_v28, 0 }
  0x96   : > { %488 = vmatpush1.bf16.msra.mxu0 %v468_v25  ;;  %548 = vmatpush1.bf16.msra.mxu1 %v528_v29 }
  0x97   : > { %v581_v31 = vpop.permute.xlu1 %580  ;;  %v579_v32 = vpop.permute.xlu0 %578  ;;  %505 = vmatprep.mubr.bf16.mxu0 %v1311_v0 }
  0x98   : > { %v583_v33 = vsel %vm582_vm7, %v579_v32, %v581_v31  ;;  %1244 = vmatprep.subr.msk.bf16.mxu0 %vm238_vm0, %v581_v31 }
  0x99   : > { %1242 = vmatmul.mubr.msk.bf16.vlgmr.msra.gmra.mxu1 %vm234_vm1, %v1240_v30  ;;  %v588_v35 = vsel %vm238_vm0, %v583_v33, 0 }
  0x9a   : > { %685 = vmatprep.mubr.bf16.mxu1 %v1311_v0 }
  0x9b   : > { %v641_v36 = vpop.permute.xlu1 %640  ;;  %v639_v37 = vpop.permute.xlu0 %638 }
  0x9c   : > { %v643_v38 = vsel %vm642_vm8, %v639_v37, %v641_v36  ;;  %1247 = vmatprep.subr.msk.bf16.mxu1 %vm238_vm0, %v641_v36 }
  0x9d   : > { %1239 = vmatmul.mubr.msk.bf16.vlgmr.msra.gmra.mxu0 %vm234_vm1, %v1237_v34  ;;  %v648_v39 = vsel %vm238_vm0, %v643_v38, 0 }
  0x9e   : > { %608 = vmatpush1.bf16.msra.mxu0 %v588_v35  ;;  %668 = vmatpush1.bf16.msra.mxu1 %v648_v39 }
  0x9f   : > { %v701_v41 = vpop.permute.xlu1 %700  ;;  %v699_v42 = vpop.permute.xlu0 %698  ;;  %625 = vmatprep.mubr.bf16.mxu0 %v1311_v0 }
  0xa0   : > { %v703_v43 = vsel %vm702_vm9, %v699_v42, %v701_v41  ;;  %1250 = vmatprep.subr.msk.bf16.mxu0 %vm238_vm0, %v701_v41 }
  0xa1   : > { %1248 = vmatmul.mubr.msk.bf16.vlgmr.msra.gmra.mxu1 %vm234_vm1, %v1246_v40  ;;  %v708_v45 = vsel %vm238_vm0, %v703_v43, 0 }
  0xa2   : > { %805 = vmatprep.mubr.bf16.mxu1 %v1311_v0 }
  0xa3   : > { %v761_v46 = vpop.permute.xlu1 %760  ;;  %v759_v47 = vpop.permute.xlu0 %758 }
  0xa4   : > { %v763_v48 = vsel %vm762_vm10, %v759_v47, %v761_v46  ;;  %1253 = vmatprep.subr.msk.bf16.mxu1 %vm238_vm0, %v761_v46 }
  0xa5   : > { %1245 = vmatmul.mubr.msk.bf16.vlgmr.msra.gmra.mxu0 %vm234_vm1, %v1243_v44  ;;  %v768_v49 = vsel %vm238_vm0, %v763_v48, 0 }
  0xa6   : > { %728 = vmatpush1.bf16.msra.mxu0 %v708_v45  ;;  %788 = vmatpush1.bf16.msra.mxu1 %v768_v49 }
  0xa7   : > { %v821_v51 = vpop.permute.xlu1 %820  ;;  %v819_v52 = vpop.permute.xlu0 %818  ;;  %745 = vmatprep.mubr.bf16.mxu0 %v1311_v0 }
  0xa8   : > { %v823_v53 = vsel %vm822_vm11, %v819_v52, %v821_v51  ;;  %1256 = vmatprep.subr.msk.bf16.mxu0 %vm238_vm0, %v821_v51 }
  0xa9   : > { %1254 = vmatmul.mubr.msk.bf16.vlgmr.msra.gmra.mxu1 %vm234_vm1, %v1252_v50  ;;  %v828_v55 = vsel %vm238_vm0, %v823_v53, 0 }
  0xaa   : > { %925 = vmatprep.mubr.bf16.mxu1 %v1311_v0 }
  0xab   : > { %v881_v56 = vpop.permute.xlu1 %880  ;;  %v879_v57 = vpop.permute.xlu0 %878 }
  0xac   : > { %v883_v58 = vsel %vm882_vm12, %v879_v57, %v881_v56  ;;  %1259 = vmatprep.subr.msk.bf16.mxu1 %vm238_vm0, %v881_v56 }
  0xad   : > { %1251 = vmatmul.mubr.msk.bf16.vlgmr.msra.gmra.mxu0 %vm234_vm1, %v1249_v54  ;;  %v888_v59 = vsel %vm238_vm0, %v883_v58, 0 }
  0xae   : > { %848 = vmatpush1.bf16.msra.mxu0 %v828_v55  ;;  %908 = vmatpush1.bf16.msra.mxu1 %v888_v59 }
  0xaf   : > { %v941_v61 = vpop.permute.xlu1 %940  ;;  %v939_v62 = vpop.permute.xlu0 %938  ;;  %865 = vmatprep.mubr.bf16.mxu0 %v1311_v0 }
  0xb0   : > { %v943_v63 = vsel %vm942_vm13, %v939_v62, %v941_v61  ;;  %1262 = vmatprep.subr.msk.bf16.mxu0 %vm238_vm0, %v941_v61 }
  0xb1   : > { %1260 = vmatmul.mubr.msk.bf16.vlgmr.msra.gmra.mxu1 %vm234_vm1, %v1258_v60  ;;  %v948_v2 = vsel %vm238_vm0, %v943_v63, 0 }
  0xb2   : > { %1045 = vmatprep.mubr.bf16.mxu1 %v1311_v0 }
  0xb3   : > { %v1001_v3 = vpop.permute.xlu1 %1000  ;;  %v999_v4 = vpop.permute.xlu0 %998 }
  0xb4   : > { %v1003_v5 = vsel %vm1002_vm14, %v999_v4, %v1001_v3  ;;  %1265 = vmatprep.subr.msk.bf16.mxu1 %vm238_vm0, %v1001_v3 }
  0xb5   : > { %1257 = vmatmul.mubr.msk.bf16.vlgmr.msra.gmra.mxu0 %vm234_vm1, %v1255_v1  ;;  %v1008_v6 = vsel %vm238_vm0, %v1003_v5, 0 }
  0xb6   : > { %968 = vmatpush1.bf16.msra.mxu0 %v948_v2  ;;  %1028 = vmatpush1.bf16.msra.mxu1 %v1008_v6 }
  0xb7   : > { %v1061_v8 = vpop.permute.xlu1 %1060  ;;  %v1059_v9 = vpop.permute.xlu0 %1058  ;;  %985 = vmatprep.mubr.bf16.mxu0 %v1311_v0 }
  0xb8   : > { %v1063_v10 = vsel %vm1062_vm15, %v1059_v9, %v1061_v8  ;;  %1268 = vmatprep.subr.msk.bf16.mxu0 %vm238_vm0, %v1061_v8 }
  0xb9   : > { %1266 = vmatmul.mubr.msk.bf16.vlgmr.msra.gmra.mxu1 %vm234_vm1, %v1264_v7  ;;  %v1068_v12 = vsel %vm238_vm0, %v1063_v10, 0 }
  0xbd   : > { %1263 = vmatmul.mubr.msk.bf16.vlgmr.msra.gmra.mxu0 %vm234_vm1, %v1261_v11 }
  0xbe   : > { %1088 = vmatpush1.bf16.msra.mxu0 %v1068_v12  ;;  %1105 = vmatprep.mubr.bf16.mxu0 %v1311_v0 }
  0xc5   : > { %1269 = vmatmul.mubr.msk.bf16.vlgmr.msra.gmra.mxu0 %vm234_vm1, %v1267_v13  ;;  %vm1143_vm1 = vcmask 244740  }
  0xc6   : > { %vm1144_vm4 = vmor %vm1143_vm1, %vm238_vm0 }
  0xd6   : > { %v329_v14 = vpop.f32.mrf.mxu1 }
  0xd8   : > { %v331_v15 = vpop.f32.mrf.mxu1 }
  0xda   : > { %v333_v16 = vpop.f32.mrf.mxu1 }
  0xdc   : > { %v334_v17 = vpop.f32.mrf.mxu1 }
 0x14d   : > { %v279_v18 = vpop.f32.mrf.mxu0 }
 0x14e   : > { %v330_v35 = vadd.f32 %v329_v14, %v279_v18 }
 0x14f   : > { %v281_v19 = vpop.f32.mrf.mxu0 }
 0x150   : > { %v332_v38 = vadd.f32 %v331_v15, %v281_v19 }
 0x151   : > { %v283_v20 = vpop.f32.mrf.mxu0  ;;  %v447_v21 = vpop.f32.mrf.mxu1 }
 0x153   : > { %v284_v22 = vpop.f32.mrf.mxu0  ;;  %v449_v23 = vpop.f32.mrf.mxu1 }
 0x155   : > { %v387_v24 = vpop.f32.mrf.mxu0  ;;  %v451_v25 = vpop.f32.mrf.mxu1 }
 0x156   : > { %v394_v39 = vadd.f32 %v387_v24, %v330_v35 }
 0x157   : > { %v389_v26 = vpop.f32.mrf.mxu0  ;;  %v452_v0 = vpop.f32.mrf.mxu1 }
 0x158   : > { %v395_v42 = vadd.f32 %v389_v26, %v332_v38  ;;  %v454_v45 = vadd.f32 %v447_v21, %v394_v39 }
 0x159   : > { %v391_v27 = vpop.f32.mrf.mxu0  ;;  %v567_v28 = vpop.f32.mrf.mxu1 }
 0x15a   : > { %v455_v48 = vadd.f32 %v449_v23, %v395_v42 }
 0x15b   : > { %v392_v29 = vpop.f32.mrf.mxu0  ;;  %v569_v30 = vpop.f32.mrf.mxu1 }
 0x15c   : > { %v1124_v29 = vld [vmem:[%s212_s21] sm:$0xff] }
 0x15d   : > { %v507_v31 = vpop.f32.mrf.mxu0  ;;  %v571_v32 = vpop.f32.mrf.mxu1  ;;  %v1125_v35 = vunpack.c.l.bf16 %v1124_v29  ;;  %v1126_v38 = vunpack.c.h.bf16 %v1124_v29 }
 0x15e   : > { %v514_v49 = vadd.f32 %v507_v31, %v454_v45  ;;  %v1120_v32 = vpop.permute.xlu0 %1119 }
 0x15f   : > { %v509_v33 = vpop.f32.mrf.mxu0  ;;  %v572_v34 = vpop.f32.mrf.mxu1 }
 0x160   : > { %v515_v52 = vadd.f32 %v509_v33, %v455_v48  ;;  %v574_v55 = vadd.f32 %v567_v28, %v514_v49 }
 0x161   : > { %v511_v36 = vpop.f32.mrf.mxu0  ;;  %v687_v37 = vpop.f32.mrf.mxu1 }
 0x162   : > { %v575_v58 = vadd.f32 %v569_v30, %v515_v52 }
 0x163   : > { %v512_v40 = vpop.f32.mrf.mxu0  ;;  %v689_v41 = vpop.f32.mrf.mxu1 }
 0x165   : > { %v627_v43 = vpop.f32.mrf.mxu0  ;;  %v691_v44 = vpop.f32.mrf.mxu1 }
 0x166   : > { %v634_v59 = vadd.f32 %v627_v43, %v574_v55 }
 0x167   : > { %v629_v46 = vpop.f32.mrf.mxu0  ;;  %v692_v47 = vpop.f32.mrf.mxu1 }
 0x168   : > { %v635_v62 = vadd.f32 %v629_v46, %v575_v58  ;;  %v694_v2 = vadd.f32 %v687_v37, %v634_v59 }
 0x169   : > { %v631_v50 = vpop.f32.mrf.mxu0  ;;  %v807_v51 = vpop.f32.mrf.mxu1 }
 0x16a   : > { %v695_v5 = vadd.f32 %v689_v41, %v635_v62 }
 0x16b   : > { %v632_v53 = vpop.f32.mrf.mxu0  ;;  %v809_v54 = vpop.f32.mrf.mxu1 }
 0x16d   : > { %v747_v56 = vpop.f32.mrf.mxu0  ;;  %v811_v57 = vpop.f32.mrf.mxu1 }
 0x16e   : > { %v754_v6 = vadd.f32 %v747_v56, %v694_v2 }
 0x16f   : > { %v749_v60 = vpop.f32.mrf.mxu0  ;;  %v812_v61 = vpop.f32.mrf.mxu1 }
 0x170   : > { %v755_v9 = vadd.f32 %v749_v60, %v695_v5  ;;  %v814_v12 = vadd.f32 %v807_v51, %v754_v6 }
 0x171   : > { %v751_v63 = vpop.f32.mrf.mxu0  ;;  %v927_v1 = vpop.f32.mrf.mxu1 }
 0x172   : > { %v815_v15 = vadd.f32 %v809_v54, %v755_v9 }
 0x173   : > { %v752_v3 = vpop.f32.mrf.mxu0  ;;  %v929_v4 = vpop.f32.mrf.mxu1 }
 0x175   : > { %v867_v7 = vpop.f32.mrf.mxu0  ;;  %v931_v8 = vpop.f32.mrf.mxu1 }
 0x176   : > { %v874_v16 = vadd.f32 %v867_v7, %v814_v12 }
 0x177   : > { %v869_v10 = vpop.f32.mrf.mxu0  ;;  %v932_v11 = vpop.f32.mrf.mxu1 }
 0x178   : > { %v875_v19 = vadd.f32 %v869_v10, %v815_v15  ;;  %v934_v22 = vadd.f32 %v927_v1, %v874_v16 }
 0x179   : > { %v871_v13 = vpop.f32.mrf.mxu0  ;;  %v1047_v14 = vpop.f32.mrf.mxu1 }
 0x17a   : > { %v935_v25 = vadd.f32 %v929_v4, %v875_v19 }
 0x17b   : > { %v872_v17 = vpop.f32.mrf.mxu0  ;;  %v1049_v18 = vpop.f32.mrf.mxu1 }
 0x17d   : > { %v987_v20 = vpop.f32.mrf.mxu0  ;;  %v1051_v21 = vpop.f32.mrf.mxu1 }
 0x17e   : > { %v994_v26 = vadd.f32 %v987_v20, %v934_v22 }
 0x17f   : > { %v989_v23 = vpop.f32.mrf.mxu0  ;;  %v1052_v24 = vpop.f32.mrf.mxu1 }
 0x180   : > { %v995_v27 = vadd.f32 %v989_v23, %v935_v25  ;;  %v1054_v30 = vadd.f32 %v1047_v14, %v994_v26 }
 0x181   : > { %v991_v0 = vpop.f32.mrf.mxu0 }
 0x182   : > { %v1055_v33 = vadd.f32 %v1049_v18, %v995_v27 }
 0x183   : > { %v992_v28 = vpop.f32.mrf.mxu0 }
 0x185   : > { %v1107_v31 = vpop.f32.mrf.mxu0 }
 0x186   : > { %v1114_v34 = vadd.f32 %v1107_v31, %v1054_v30 }
 0x187   : > { %v1109_v36 = vpop.f32.mrf.mxu0 }
 0x188   : > { %v1115_v37 = vadd.f32 %v1109_v36, %v1055_v33  ;;  %v1122_v39 = vadd.f32 %v1120_v32, %v1114_v34 }
 0x189   : > { %v1111_v40 = vpop.f32.mrf.mxu0 }
 0x18a   : > { %v1123_v41 = vadd.f32 %v1120_v32, %v1115_v37  ;;  %v1127_v42 = vadd.f32 %v1125_v35, %v1122_v39 }
 0x18b   : > { %v1112_v43 = vpop.f32.mrf.mxu0 }
 0x18c   : > { %v1128_v44 = vadd.f32 %v1126_v38, %v1123_v41  ;;  %v1131_v45 = vmul.f32 0.01, %v1127_v42  ;;  %vm1129_vm2 = vcmp.ge.f32.partialorder %v1127_v42, 0.0 }
 0x18e   : > { %vm1130_vm3 = vcmp.ge.f32.partialorder %v1128_v44, 0.0  ;;  %v1132_v46 = vmul.f32 0.01, %v1128_v44  ;;  %v1133_v47 = vsel %vm1129_vm2, %v1127_v42, %v1131_v45 }
 0x190   : > { %v1134_v48 = vsel %vm1130_vm3, %v1128_v44, %v1132_v46 }
 0x191   : > { %v1276_v49 = vpack.c.bf16 %v1134_v48, %v1133_v47 }
 0x193   : > { %1145 = vst.msk [vmem:[%s217_s24] sm:$0xff] %vm1144_vm4, %v1276_v49 }
 0x194 PF: > { %s14_s15 = sadd.s32 1, %s1309_s15  }
 0x195   : > { %p11_p4 = scmp.ge.s32.totalorder %s14_s15, 4  }
 0x197   :  { %13 = sbr.rel (!%p11_p4) target bundleno = 1 (0x1), region = 83 }

// kernel: run.16
= control target key start
LH: loop header
LB: loop body
LE: loop exit
PB: predicated region body
PF: predicated region fallthrough
CT: control target
= control target key end

     0   :  { %s1279_s12 = smov 0   ;;  %s1413_s0 = inlined_call_operand.vmem [shape: bf16[2,8,172], index: 0, kind: input, shape index: {}]   ;;  %s1414_s1 = inlined_call_operand.vmem [shape: bf16[15,8,8], index: 1, kind: input, shape index: {}]   ;;  %s1415_s2 = inlined_call_operand.vmem [shape: f32[8,1], index: 2, kind: input, shape index: {}]   ;;  %s1416_s3 = inlined_call_operand.vmem [shape: bf16[2,8,158], index: 3, kind: output, shape index: {}]  }
   0x1 LB: > { %s1149_s13 = sadd.s32 4294967295, %s1242_s12   ;;  %p1153_p0 = scmp.ge.s32.totalorder %s1242_s12, 1  ;;  %s1242_s12 = sphi %s1279_s12, %s13_s12  }
   0x2   : > { %p137_p1 = scmp.lt.s32.totalorder %s1242_s12, 3 }
   0x4   : > { %p138_p2 = pnand %p1153_p0, %p137_p1 }
   0x5   : > { %p161_p3 = scmp.lt.s32.totalorder (!%p138_p2), %s1149_s13, 1  ;;  %s1245_s18 = smov (!%p138_p2), 126  }
   0x6   : > { %141 = sbr.rel (%p138_p2) target bundleno = 402 (0x192), region = 32  ;;  %s1246_s19 = smov (!%p138_p2), 127  }
   0x7   : > { %s1247_s22 = smov (!%p138_p2), 125   ;;  %s1248_s23 = smov (!%p138_p2), 124  }
   0x8   : > { %s1249_s24 = smov (!%p138_p2), 123   ;;  %s1250_s25 = smov (!%p138_p2), 122  }
   0x9   : > { %s1251_s26 = smov (!%p138_p2), 121   ;;  %s1252_s27 = smov (!%p138_p2), 120  }
   0xa   : > { %s1253_s28 = smov (!%p138_p2), 119   ;;  %s1254_s29 = smov (!%p138_p2), 118  }
   0xb   : > { %s1418_s13 = smov (!%p161_p3, %s1149_s13), 1  ;;  %v1244_v0 = vmov 0   ;;  %vm191_vm0 = vcmask 1043456   ;;  %vm187_vm1 = vcmask 64512   ;;  %v172_v5 = vld [vmem:[%s1414_s1] sm:$0xf] }
   0xc   : > { %230 = vmatprep.mubr.bf16.mxu0 %v1244_v0  ;;  %280 = vmatprep.mubr.bf16.mxu1 %v1244_v0  ;;  %s1207_s14 = sshll.u32 %s1418_s13, 3  ;;  %s1255_s30 = smov 117   ;;  %v1069_v6 = vld [vmem:[%s1415_s2] sm:$0xff]  ;;  %vm295_vm2 = vcmask 1031168   ;;  %vm185_vm3 = vcmask 1039360   ;;  %vm355_vm4 = vcmask 1022976  }
   0xd   : > { %1233 = vset.pattern.permute.xlu0 %v1244_v0  ;;  %s165_s17 = scalar_lea.vmem %s1413_s0, %s1207_s14  ;;  %s1256_s4 = smov 116   ;;  %v1158_v14 = vld [vmem:[%s1414_s1 + $0x4] sm:$0xf]  ;;  %vm415_vm5 = vcmask 1014784   ;;  %v1168_v20 = vld [vmem:[%s1414_s1 + $0xc] sm:$0xf] }
   0xe   : > { %v173_v1 = vld [vmem:[%s165_s17] sm:$0xff]  ;;  %s1257_s5 = smov 115   ;;  %s1258_s6 = smov 114   ;;  %vm475_vm6 = vcmask 1006592   ;;  %v1165_v24 = vld [vmem:[%s1414_s1 + $0x8] sm:$0xf] }
   0xf   : > { %v1159_v2 = vcombine.low %v173_v1, %v173_v1  ;;  %v1160_v3 = vcombine.high %v173_v1, %v173_v1  ;;  %vm535_vm7 = vcmask 998400   ;;  %v1174_v30 = vld [vmem:[%s1414_s1 + $0x14] sm:$0xf]  ;;  %vm595_vm8 = vcmask 990208   ;;  %v1171_v34 = vld [vmem:[%s1414_s1 + $0x10] sm:$0xf] }
  0x10   : > { %vm655_vm9 = vcmask 982016   ;;  %v1180_v40 = vld [vmem:[%s1414_s1 + $0x1c] sm:$0xf]  ;;  %vm715_vm10 = vcmask 973824   ;;  %v1177_v44 = vld [vmem:[%s1414_s1 + $0x18] sm:$0xf] }
  0x11   : > { %291 = vrot.lane.b32.xlu1 %v1159_v2, %s1245_s18  ;;  %181 = vrot.lane.b32.xlu0 %v1159_v2, %s1246_s19  ;;  %v243_v4 = vsel %vm191_vm0, %v1159_v2, 0  ;;  %vm775_vm11 = vcmask 965632   ;;  %v1186_v50 = vld [vmem:[%s1414_s1 + $0x24] sm:$0xf]  ;;  %vm835_vm12 = vcmask 957440   ;;  %vm895_vm13 = vcmask 949248  }
  0x12   : > { %1163 = vmatprep.subr.msk.bf16.mxu1 %vm191_vm0, %v1160_v3  ;;  %v1183_v54 = vld [vmem:[%s1414_s1 + $0x20] sm:$0xf]  ;;  %v1192_v60 = vld [vmem:[%s1414_s1 + $0x2c] sm:$0xf]  ;;  %vm955_vm14 = vcmask 941056   ;;  %vm1015_vm15 = vcmask 932864  }
  0x13   : > { %263 = vmatpush1.bf16.msra.mxu1 %v243_v4  ;;  %v1189_v1 = vld [vmem:[%s1414_s1 + $0x28] sm:$0xf] }
  0x15   : > { %293 = vrot.lane.b32.xlu1 %v1160_v3, %s1245_s18  ;;  %183 = vrot.lane.b32.xlu0 %v1160_v3, %s1246_s19  ;;  %s170_s18 = scalar_lea.vmem %s1416_s3, %s1207_s14 }
  0x16   : > { %1164 = vmatmul.mubr.msk.bf16.vlgmr.msra.gmra.mxu1 %vm187_vm1, %v172_v5 }
  0x17   : > { %398 = vmatprep.mubr.bf16.mxu1 %v1244_v0 }
  0x19   : > { %353 = vrot.lane.b32.xlu1 %v1160_v3, %s1247_s22  ;;  %351 = vrot.lane.b32.xlu0 %v1159_v2, %s1247_s22 }
  0x1d   : > { %413 = vrot.lane.b32.xlu1 %v1160_v3, %s1248_s23  ;;  %411 = vrot.lane.b32.xlu0 %v1159_v2, %s1248_s23 }
  0x21   : > { %473 = vrot.lane.b32.xlu1 %v1160_v3, %s1249_s24  ;;  %471 = vrot.lane.b32.xlu0 %v1159_v2, %s1249_s24 }
  0x25   : > { %533 = vrot.lane.b32.xlu1 %v1160_v3, %s1250_s25  ;;  %531 = vrot.lane.b32.xlu0 %v1159_v2, %s1250_s25 }
  0x29   : > { %593 = vrot.lane.b32.xlu1 %v1160_v3, %s1251_s26  ;;  %591 = vrot.lane.b32.xlu0 %v1159_v2, %s1251_s26 }
  0x2d   : > { %653 = vrot.lane.b32.xlu1 %v1160_v3, %s1252_s27  ;;  %651 = vrot.lane.b32.xlu0 %v1159_v2, %s1252_s27 }
  0x31   : > { %713 = vrot.lane.b32.xlu1 %v1160_v3, %s1253_s28  ;;  %711 = vrot.lane.b32.xlu0 %v1159_v2, %s1253_s28 }
  0x35   : > { %773 = vrot.lane.b32.xlu1 %v1160_v3, %s1254_s29  ;;  %771 = vrot.lane.b32.xlu0 %v1159_v2, %s1254_s29 }
  0x39   : > { %833 = vrot.lane.b32.xlu1 %v1160_v3, %s1255_s30  ;;  %831 = vrot.lane.b32.xlu0 %v1159_v2, %s1255_s30 }
  0x3d   : > { %893 = vrot.lane.b32.xlu1 %v1160_v3, %s1256_s4  ;;  %891 = vrot.lane.b32.xlu0 %v1159_v2, %s1256_s4 }
  0x41   : > { %953 = vrot.lane.b32.xlu1 %v1160_v3, %s1257_s5  ;;  %951 = vrot.lane.b32.xlu0 %v1159_v2, %s1257_s5 }
  0x45   : > { %1013 = vrot.lane.b32.xlu1 %v1160_v3, %s1258_s6  ;;  %1011 = vrot.lane.b32.xlu0 %v1159_v2, %s1258_s6 }
  0x49   : > { %1072 = vperm.xlu0 %1233, %v1069_v6  }
  0x83   : > { %v292_v7 = vpop.permute.xlu1 %291  ;;  %v182_v8 = vpop.permute.xlu0 %181 }
  0x87   : > { %v294_v9 = vpop.permute.xlu1 %293  ;;  %v184_v10 = vpop.permute.xlu0 %183 }
  0x88   : > { %v296_v11 = vsel %vm295_vm2, %v292_v7, %v294_v9  ;;  %1161 = vmatprep.subr.msk.bf16.mxu0 %vm191_vm0, %v184_v10  ;;  %v186_v12 = vsel %vm185_vm3, %v182_v8, %v184_v10  ;;  %v1198_v7 = vld [vmem:[%s1414_s1 + $0x34] sm:$0xf] }
  0x89   : > { %v193_v13 = vsel %vm191_vm0, %v186_v12, 0  ;;  %v301_v15 = vsel %vm191_vm0, %v296_v11, 0  ;;  %v1195_v11 = vld [vmem:[%s1414_s1 + $0x30] sm:$0xf] }
  0x8a   : > { %213 = vmatpush1.bf16.msra.mxu0 %v193_v13  ;;  %v1201_v13 = vld [vmem:[%s1414_s1 + $0x38] sm:$0xf] }
  0x8b   : > { %1166 = vmatprep.subr.msk.bf16.mxu0 %vm191_vm0, %v294_v9  ;;  %v354_v16 = vpop.permute.xlu1 %353  ;;  %v352_v17 = vpop.permute.xlu0 %351 }
  0x8c   : > { %v356_v18 = vsel %vm355_vm4, %v352_v17, %v354_v16  ;;  %1169 = vmatprep.subr.msk.bf16.mxu1 %vm191_vm0, %v354_v16 }
  0x8d   : > { %1162 = vmatmul.mubr.msk.bf16.vlgmr.msra.gmra.mxu0 %vm187_vm1, %v1158_v14  ;;  %v361_v19 = vsel %vm191_vm0, %v356_v18, 0 }
  0x8e   : > { %321 = vmatpush1.bf16.msra.mxu0 %v301_v15  ;;  %381 = vmatpush1.bf16.msra.mxu1 %v361_v19 }
  0x8f   : > { %v414_v21 = vpop.permute.xlu1 %413  ;;  %v412_v22 = vpop.permute.xlu0 %411  ;;  %338 = vmatprep.mubr.bf16.mxu0 %v1244_v0 }
  0x90   : > { %v416_v23 = vsel %vm415_vm5, %v412_v22, %v414_v21  ;;  %1172 = vmatprep.subr.msk.bf16.mxu0 %vm191_vm0, %v414_v21 }
  0x91   : > { %1170 = vmatmul.mubr.msk.bf16.vlgmr.msra.gmra.mxu1 %vm187_vm1, %v1168_v20  ;;  %v421_v25 = vsel %vm191_vm0, %v416_v23, 0 }
  0x92   : > { %518 = vmatprep.mubr.bf16.mxu1 %v1244_v0 }
  0x93   : > { %v474_v26 = vpop.permute.xlu1 %473  ;;  %v472_v27 = vpop.permute.xlu0 %471 }
  0x94   : > { %v476_v28 = vsel %vm475_vm6, %v472_v27, %v474_v26  ;;  %1175 = vmatprep.subr.msk.bf16.mxu1 %vm191_vm0, %v474_v26 }
  0x95   : > { %1167 = vmatmul.mubr.msk.bf16.vlgmr.msra.gmra.mxu0 %vm187_vm1, %v1165_v24  ;;  %v481_v29 = vsel %vm191_vm0, %v476_v28, 0 }
  0x96   : > { %441 = vmatpush1.bf16.msra.mxu0 %v421_v25  ;;  %501 = vmatpush1.bf16.msra.mxu1 %v481_v29 }
  0x97   : > { %v534_v31 = vpop.permute.xlu1 %533  ;;  %v532_v32 = vpop.permute.xlu0 %531  ;;  %458 = vmatprep.mubr.bf16.mxu0 %v1244_v0 }
  0x98   : > { %v536_v33 = vsel %vm535_vm7, %v532_v32, %v534_v31  ;;  %1178 = vmatprep.subr.msk.bf16.mxu0 %vm191_vm0, %v534_v31 }
  0x99   : > { %1176 = vmatmul.mubr.msk.bf16.vlgmr.msra.gmra.mxu1 %vm187_vm1, %v1174_v30  ;;  %v541_v35 = vsel %vm191_vm0, %v536_v33, 0 }
  0x9a   : > { %638 = vmatprep.mubr.bf16.mxu1 %v1244_v0 }
  0x9b   : > { %v594_v36 = vpop.permute.xlu1 %593  ;;  %v592_v37 = vpop.permute.xlu0 %591 }
  0x9c   : > { %v596_v38 = vsel %vm595_vm8, %v592_v37, %v594_v36  ;;  %1181 = vmatprep.subr.msk.bf16.mxu1 %vm191_vm0, %v594_v36 }
  0x9d   : > { %1173 = vmatmul.mubr.msk.bf16.vlgmr.msra.gmra.mxu0 %vm187_vm1, %v1171_v34  ;;  %v601_v39 = vsel %vm191_vm0, %v596_v38, 0 }
  0x9e   : > { %561 = vmatpush1.bf16.msra.mxu0 %v541_v35  ;;  %621 = vmatpush1.bf16.msra.mxu1 %v601_v39 }
  0x9f   : > { %v654_v41 = vpop.permute.xlu1 %653  ;;  %v652_v42 = vpop.permute.xlu0 %651  ;;  %578 = vmatprep.mubr.bf16.mxu0 %v1244_v0 }
  0xa0   : > { %v656_v43 = vsel %vm655_vm9, %v652_v42, %v654_v41  ;;  %1184 = vmatprep.subr.msk.bf16.mxu0 %vm191_vm0, %v654_v41 }
  0xa1   : > { %1182 = vmatmul.mubr.msk.bf16.vlgmr.msra.gmra.mxu1 %vm187_vm1, %v1180_v40  ;;  %v661_v45 = vsel %vm191_vm0, %v656_v43, 0 }
  0xa2   : > { %758 = vmatprep.mubr.bf16.mxu1 %v1244_v0 }
  0xa3   : > { %v714_v46 = vpop.permute.xlu1 %713  ;;  %v712_v47 = vpop.permute.xlu0 %711 }
  0xa4   : > { %v716_v48 = vsel %vm715_vm10, %v712_v47, %v714_v46  ;;  %1187 = vmatprep.subr.msk.bf16.mxu1 %vm191_vm0, %v714_v46 }
  0xa5   : > { %1179 = vmatmul.mubr.msk.bf16.vlgmr.msra.gmra.mxu0 %vm187_vm1, %v1177_v44  ;;  %v721_v49 = vsel %vm191_vm0, %v716_v48, 0 }
  0xa6   : > { %681 = vmatpush1.bf16.msra.mxu0 %v661_v45  ;;  %741 = vmatpush1.bf16.msra.mxu1 %v721_v49 }
  0xa7   : > { %v774_v51 = vpop.permute.xlu1 %773  ;;  %v772_v52 = vpop.permute.xlu0 %771  ;;  %698 = vmatprep.mubr.bf16.mxu0 %v1244_v0 }
  0xa8   : > { %v776_v53 = vsel %vm775_vm11, %v772_v52, %v774_v51  ;;  %1190 = vmatprep.subr.msk.bf16.mxu0 %vm191_vm0, %v774_v51 }
  0xa9   : > { %1188 = vmatmul.mubr.msk.bf16.vlgmr.msra.gmra.mxu1 %vm187_vm1, %v1186_v50  ;;  %v781_v55 = vsel %vm191_vm0, %v776_v53, 0 }
  0xaa   : > { %878 = vmatprep.mubr.bf16.mxu1 %v1244_v0 }
  0xab   : > { %v834_v56 = vpop.permute.xlu1 %833  ;;  %v832_v57 = vpop.permute.xlu0 %831 }
  0xac   : > { %v836_v58 = vsel %vm835_vm12, %v832_v57, %v834_v56  ;;  %1193 = vmatprep.subr.msk.bf16.mxu1 %vm191_vm0, %v834_v56 }
  0xad   : > { %1185 = vmatmul.mubr.msk.bf16.vlgmr.msra.gmra.mxu0 %vm187_vm1, %v1183_v54  ;;  %v841_v59 = vsel %vm191_vm0, %v836_v58, 0 }
  0xae   : > { %801 = vmatpush1.bf16.msra.mxu0 %v781_v55  ;;  %861 = vmatpush1.bf16.msra.mxu1 %v841_v59 }
  0xaf   : > { %v894_v61 = vpop.permute.xlu1 %893  ;;  %v892_v62 = vpop.permute.xlu0 %891  ;;  %818 = vmatprep.mubr.bf16.mxu0 %v1244_v0 }
  0xb0   : > { %v896_v63 = vsel %vm895_vm13, %v892_v62, %v894_v61  ;;  %1196 = vmatprep.subr.msk.bf16.mxu0 %vm191_vm0, %v894_v61 }
  0xb1   : > { %1194 = vmatmul.mubr.msk.bf16.vlgmr.msra.gmra.mxu1 %vm187_vm1, %v1192_v60  ;;  %v901_v2 = vsel %vm191_vm0, %v896_v63, 0 }
  0xb2   : > { %998 = vmatprep.mubr.bf16.mxu1 %v1244_v0 }
  0xb3   : > { %v954_v3 = vpop.permute.xlu1 %953  ;;  %v952_v4 = vpop.permute.xlu0 %951 }
  0xb4   : > { %v956_v5 = vsel %vm955_vm14, %v952_v4, %v954_v3  ;;  %1199 = vmatprep.subr.msk.bf16.mxu1 %vm191_vm0, %v954_v3 }
  0xb5   : > { %1191 = vmatmul.mubr.msk.bf16.vlgmr.msra.gmra.mxu0 %vm187_vm1, %v1189_v1  ;;  %v961_v6 = vsel %vm191_vm0, %v956_v5, 0 }
  0xb6   : > { %921 = vmatpush1.bf16.msra.mxu0 %v901_v2  ;;  %981 = vmatpush1.bf16.msra.mxu1 %v961_v6 }
  0xb7   : > { %v1014_v8 = vpop.permute.xlu1 %1013  ;;  %v1012_v9 = vpop.permute.xlu0 %1011  ;;  %938 = vmatprep.mubr.bf16.mxu0 %v1244_v0 }
  0xb8   : > { %v1016_v10 = vsel %vm1015_vm15, %v1012_v9, %v1014_v8  ;;  %1202 = vmatprep.subr.msk.bf16.mxu0 %vm191_vm0, %v1014_v8 }
  0xb9   : > { %1200 = vmatmul.mubr.msk.bf16.vlgmr.msra.gmra.mxu1 %vm187_vm1, %v1198_v7  ;;  %v1021_v12 = vsel %vm191_vm0, %v1016_v10, 0 }
  0xbd   : > { %1197 = vmatmul.mubr.msk.bf16.vlgmr.msra.gmra.mxu0 %vm187_vm1, %v1195_v11 }
  0xbe   : > { %1041 = vmatpush1.bf16.msra.mxu0 %v1021_v12  ;;  %1058 = vmatprep.mubr.bf16.mxu0 %v1244_v0 }
  0xc5   : > { %1203 = vmatmul.mubr.msk.bf16.vlgmr.msra.gmra.mxu0 %vm187_vm1, %v1201_v13  ;;  %vm1091_vm1 = vcmask 244740  }
  0xc6   : > { %vm1092_vm4 = vmor %vm1091_vm1, %vm191_vm0 }
  0xd6   : > { %v282_v14 = vpop.f32.mrf.mxu1 }
  0xd8   : > { %v284_v15 = vpop.f32.mrf.mxu1 }
  0xda   : > { %v286_v16 = vpop.f32.mrf.mxu1 }
  0xdc   : > { %v287_v17 = vpop.f32.mrf.mxu1 }
 0x14d   : > { %v232_v18 = vpop.f32.mrf.mxu0 }
 0x14e   : > { %v283_v35 = vadd.f32 %v282_v14, %v232_v18 }
 0x14f   : > { %v234_v19 = vpop.f32.mrf.mxu0 }
 0x150   : > { %v285_v38 = vadd.f32 %v284_v15, %v234_v19 }
 0x151   : > { %v236_v20 = vpop.f32.mrf.mxu0  ;;  %v400_v21 = vpop.f32.mrf.mxu1 }
 0x153   : > { %v237_v22 = vpop.f32.mrf.mxu0  ;;  %v402_v23 = vpop.f32.mrf.mxu1 }
 0x155   : > { %v340_v24 = vpop.f32.mrf.mxu0  ;;  %v404_v25 = vpop.f32.mrf.mxu1 }
 0x156   : > { %v347_v39 = vadd.f32 %v340_v24, %v283_v35 }
 0x157   : > { %v342_v26 = vpop.f32.mrf.mxu0  ;;  %v405_v0 = vpop.f32.mrf.mxu1 }
 0x158   : > { %v348_v42 = vadd.f32 %v342_v26, %v285_v38  ;;  %v407_v45 = vadd.f32 %v400_v21, %v347_v39 }
 0x159   : > { %v344_v27 = vpop.f32.mrf.mxu0  ;;  %v520_v28 = vpop.f32.mrf.mxu1 }
 0x15a   : > { %v408_v48 = vadd.f32 %v402_v23, %v348_v42 }
 0x15b   : > { %v345_v29 = vpop.f32.mrf.mxu0  ;;  %v522_v30 = vpop.f32.mrf.mxu1 }
 0x15d   : > { %v460_v31 = vpop.f32.mrf.mxu0  ;;  %v524_v32 = vpop.f32.mrf.mxu1 }
 0x15e   : > { %v467_v49 = vadd.f32 %v460_v31, %v407_v45  ;;  %v1073_v31 = vpop.permute.xlu0 %1072 }
 0x15f   : > { %v462_v33 = vpop.f32.mrf.mxu0  ;;  %v525_v34 = vpop.f32.mrf.mxu1 }
 0x160   : > { %v468_v52 = vadd.f32 %v462_v33, %v408_v48  ;;  %v527_v55 = vadd.f32 %v520_v28, %v467_v49 }
 0x161   : > { %v464_v36 = vpop.f32.mrf.mxu0  ;;  %v640_v37 = vpop.f32.mrf.mxu1 }
 0x162   : > { %v528_v58 = vadd.f32 %v522_v30, %v468_v52 }
 0x163   : > { %v465_v40 = vpop.f32.mrf.mxu0  ;;  %v642_v41 = vpop.f32.mrf.mxu1 }
 0x165   : > { %v580_v43 = vpop.f32.mrf.mxu0  ;;  %v644_v44 = vpop.f32.mrf.mxu1 }
 0x166   : > { %v587_v59 = vadd.f32 %v580_v43, %v527_v55 }
 0x167   : > { %v582_v46 = vpop.f32.mrf.mxu0  ;;  %v645_v47 = vpop.f32.mrf.mxu1 }
 0x168   : > { %v588_v62 = vadd.f32 %v582_v46, %v528_v58  ;;  %v647_v2 = vadd.f32 %v640_v37, %v587_v59 }
 0x169   : > { %v584_v50 = vpop.f32.mrf.mxu0  ;;  %v760_v51 = vpop.f32.mrf.mxu1 }
 0x16a   : > { %v648_v5 = vadd.f32 %v642_v41, %v588_v62 }
 0x16b   : > { %v585_v53 = vpop.f32.mrf.mxu0  ;;  %v762_v54 = vpop.f32.mrf.mxu1 }
 0x16d   : > { %v700_v56 = vpop.f32.mrf.mxu0  ;;  %v764_v57 = vpop.f32.mrf.mxu1 }
 0x16e   : > { %v707_v6 = vadd.f32 %v700_v56, %v647_v2 }
 0x16f   : > { %v702_v60 = vpop.f32.mrf.mxu0  ;;  %v765_v61 = vpop.f32.mrf.mxu1 }
 0x170   : > { %v708_v9 = vadd.f32 %v702_v60, %v648_v5  ;;  %v767_v12 = vadd.f32 %v760_v51, %v707_v6 }
 0x171   : > { %v704_v63 = vpop.f32.mrf.mxu0  ;;  %v880_v1 = vpop.f32.mrf.mxu1 }
 0x172   : > { %v768_v15 = vadd.f32 %v762_v54, %v708_v9 }
 0x173   : > { %v705_v3 = vpop.f32.mrf.mxu0  ;;  %v882_v4 = vpop.f32.mrf.mxu1 }
 0x175   : > { %v820_v7 = vpop.f32.mrf.mxu0  ;;  %v884_v8 = vpop.f32.mrf.mxu1 }
 0x176   : > { %v827_v16 = vadd.f32 %v820_v7, %v767_v12 }
 0x177   : > { %v822_v10 = vpop.f32.mrf.mxu0  ;;  %v885_v11 = vpop.f32.mrf.mxu1 }
 0x178   : > { %v828_v19 = vadd.f32 %v822_v10, %v768_v15  ;;  %v887_v22 = vadd.f32 %v880_v1, %v827_v16 }
 0x179   : > { %v824_v13 = vpop.f32.mrf.mxu0  ;;  %v1000_v14 = vpop.f32.mrf.mxu1 }
 0x17a   : > { %v888_v25 = vadd.f32 %v882_v4, %v828_v19 }
 0x17b   : > { %v825_v17 = vpop.f32.mrf.mxu0  ;;  %v1002_v18 = vpop.f32.mrf.mxu1 }
 0x17d   : > { %v940_v20 = vpop.f32.mrf.mxu0  ;;  %v1004_v21 = vpop.f32.mrf.mxu1 }
 0x17e   : > { %v947_v26 = vadd.f32 %v940_v20, %v887_v22 }
 0x17f   : > { %v942_v23 = vpop.f32.mrf.mxu0  ;;  %v1005_v24 = vpop.f32.mrf.mxu1 }
 0x180   : > { %v948_v27 = vadd.f32 %v942_v23, %v888_v25  ;;  %v1007_v29 = vadd.f32 %v1000_v14, %v947_v26 }
 0x181   : > { %v944_v0 = vpop.f32.mrf.mxu0 }
 0x182   : > { %v1008_v32 = vadd.f32 %v1002_v18, %v948_v27 }
 0x183   : > { %v945_v28 = vpop.f32.mrf.mxu0 }
 0x185   : > { %v1060_v30 = vpop.f32.mrf.mxu0 }
 0x186   : > { %v1067_v33 = vadd.f32 %v1060_v30, %v1007_v29 }
 0x187   : > { %v1062_v34 = vpop.f32.mrf.mxu0 }
 0x188   : > { %v1068_v35 = vadd.f32 %v1062_v34, %v1008_v32  ;;  %v1075_v36 = vadd.f32 %v1073_v31, %v1067_v33 }
 0x189   : > { %v1064_v37 = vpop.f32.mrf.mxu0 }
 0x18a   : > { %v1076_v38 = vadd.f32 %v1073_v31, %v1068_v35  ;;  %v1079_v39 = vmul.f32 0.01, %v1075_v36  ;;  %vm1077_vm2 = vcmp.ge.f32.partialorder %v1075_v36, 0.0 }
 0x18b   : > { %v1065_v40 = vpop.f32.mrf.mxu0 }
 0x18c   : > { %vm1078_vm3 = vcmp.ge.f32.partialorder %v1076_v38, 0.0  ;;  %v1080_v41 = vmul.f32 0.01, %v1076_v38  ;;  %v1081_v42 = vsel %vm1077_vm2, %v1075_v36, %v1079_v39 }
 0x18e   : > { %v1082_v43 = vsel %vm1078_vm3, %v1076_v38, %v1080_v41 }
 0x18f   : > { %v1209_v44 = vpack.c.bf16 %v1082_v43, %v1081_v42 }
 0x191   : > { %1093 = vst.msk [vmem:[%s170_s18] sm:$0xff] %vm1092_vm4, %v1209_v44 }
 0x192 PF: > { %s13_s12 = sadd.s32 1, %s1242_s12  }
 0x193   : > { %p10_p4 = scmp.ge.s32.totalorder %s13_s12, 4  }
 0x195   :  { %12 = sbr.rel (!%p10_p4) target bundleno = 1 (0x1), region = 76 }

// kernel: run.18
= control target key start
LH: loop header
LB: loop body
LE: loop exit
PB: predicated region body
PF: predicated region fallthrough
CT: control target
= control target key end

     0   :  { %s760_s15 = smov 0   ;;  %s824_s0 = inlined_call_operand.vmem [shape: bf16[2,48,26], index: 0, kind: input, shape index: {}]   ;;  %s825_s1 = inlined_call_operand.vmem [shape: bf16[3,32,48], index: 1, kind: input, shape index: {}]   ;;  %s826_s2 = inlined_call_operand.vmem [shape: f32[32,1], index: 2, kind: input, shape index: {}]   ;;  %s827_s3 = inlined_call_operand.vmem [shape: bf16[2,16,24], index: 3, kind: output, shape index: {0}]   ;;  %s828_s4 = inlined_call_operand.vmem [shape: bf16[2,16,24], index: 4, kind: output, shape index: {1}]  }
   0x1 LB: > { %s611_s16 = sadd.s32 4294967295, %s730_s15   ;;  %p615_p0 = scmp.ge.s32.totalorder %s730_s15, 1  ;;  %s730_s15 = sphi %s760_s15, %s15_s15  }
   0x2   : > { %p165_p1 = scmp.lt.s32.totalorder %s730_s15, 3 }
   0x4   : > { %p166_p2 = pnand %p615_p0, %p165_p1 }
   0x5   : > { %p196_p3 = scmp.lt.s32.totalorder (!%p166_p2), %s611_s16, 1  ;;  %s732_s25 = smov (!%p166_p2), 127  }
   0x6   : > { %169 = sbr.rel (%p166_p2) target bundleno = 364 (0x16c), region = 32  ;;  %s733_s26 = smov (!%p166_p2), 126  }
   0xb   : > { %s830_s16 = smov (!%p196_p3, %s611_s16), 1  ;;  %v718_v0 = vld [vmem:[%s825_s1 + $0x10] sm:$0xff]   ;;  %vm261_vm0 = vcmask 392192   ;;  %v719_v1 = vld [vmem:[%s825_s1] sm:$0xff]   ;;  %v721_v5 = vld [vmem:[%s825_s1 + $0x8] sm:$0xff]   ;;  %v734_v8 = vmov 0  }
   0xc   : > { %s701_s17 = smul.u32 24, %s830_s16  ;;  %677 = vmatprep.mubr.msk.bf16.mxu0 %vm261_vm0, %v718_v0  ;;  %687 = vmatprep.mubr.msk.bf16.mxu1 %vm261_vm0, %v719_v1  ;;  %v469_v6 = vld [vmem:[%s826_s2 + $0x8] sm:$0xff]  ;;  %v468_v7 = vld [vmem:[%s826_s2] sm:$0xff]  ;;  %v470_v9 = vld [vmem:[%s826_s2 + $0x10] sm:$0xff]  ;;  %s650_s19 = sshll.u32 %s830_s16, 3  ;;  %vm510_vm1 = vcmask 191488  }
   0xd   : > { %714 = vset.pattern.permute.xlu1 %v734_v8  ;;  %713 = vset.pattern.permute.xlu0 %v734_v8  ;;  %v471_v10 = vld [vmem:[%s826_s2 + $0x18] sm:$0xff]  ;;  %v722_v16 = vld [vmem:[%s825_s1 + $0x20] sm:$0xff]   ;;  %v723_v19 = vld [vmem:[%s825_s1 + $0x28] sm:$0xff]   ;;  %s210_s22 = scalar_lea.vmem %s828_s4, %s650_s19 }
   0xe   : > { %s200_s24 = scalar_lea.vmem %s824_s0, %s701_s17  ;;  %v720_v15 = vld [vmem:[%s825_s1 + $0x18] sm:$0xff]  }
   0xf   : > { %v715_v2 = vld [vmem:[%s200_s24 + $0x10] sm:$0xff]   ;;  %v716_v3 = vld [vmem:[%s200_s24 + $0x8] sm:$0xff]   ;;  %v717_v4 = vld [vmem:[%s200_s24] sm:$0xff]   ;;  %s205_s24 = scalar_lea.vmem %s827_s3, %s650_s19 }
  0x10   : > { %256 = vrot.lane.b32.xlu0 %v715_v2, %s732_s25  ;;  %681 = vmatprep.subr.bf16.mxu1 %v715_v2 }
  0x11   : > { %682 = vmatpush3.bf16.msra.mxu1 %v715_v2  ;;  %252 = vrot.lane.b32.xlu1 %v717_v4, %s732_s25 }
  0x12   : > { %683 = vmatprep.subr.bf16.mxu1 %v716_v3 }
  0x14   : > { %254 = vrot.lane.b32.xlu0 %v716_v3, %s732_s25 }
  0x15   : > { %684 = vmatpush3.bf16.msra.mxu1 %v716_v3  ;;  %404 = vrot.lane.b32.xlu1 %v715_v2, %s733_s26 }
  0x16   : > { %685 = vmatprep.subr.bf16.mxu1 %v717_v4 }
  0x18   : > { %402 = vrot.lane.b32.xlu0 %v716_v3, %s733_s26 }
  0x19   : > { %686 = vmatpush3.bf16.msra.mxu1 %v717_v4  ;;  %400 = vrot.lane.b32.xlu1 %v717_v4, %s733_s26 }
  0x1c   : > { %688 = vmatmul.mubr.msk.bf16.vlgmr.msra.gmra.mxu1 %vm261_vm0, %v721_v5  ;;  %474 = vperm.xlu0 %713, %v468_v7  }
  0x1d   : > { %479 = vperm.xlu1 %714, %v469_v6  }
  0x20   : > { %489 = vperm.xlu0 %713, %v471_v10  }
  0x21   : > { %484 = vperm.xlu1 %714, %v470_v9  }
  0x82   : > { %v257_v11 = vpop.permute.xlu0 %256 }
  0x83   : > { %671 = vmatprep.subr.bf16.mxu0 %v257_v11  ;;  %v253_v12 = vpop.permute.xlu1 %252 }
  0x84   : > { %672 = vmatpush3.bf16.msra.mxu0 %v257_v11 }
  0x86   : > { %v255_v13 = vpop.permute.xlu0 %254 }
  0x87   : > { %673 = vmatprep.subr.bf16.mxu0 %v255_v13  ;;  %v405_v14 = vpop.permute.xlu1 %404 }
  0x88   : > { %674 = vmatpush3.bf16.msra.mxu0 %v255_v13 }
  0x89   : > { %675 = vmatprep.subr.bf16.mxu0 %v253_v12 }
  0x8a   : > { %v403_v17 = vpop.permute.xlu0 %402 }
  0x8b   : > { %v401_v18 = vpop.permute.xlu1 %400 }
  0x8c   : > { %676 = vmatpush3.bf16.msra.mxu0 %v253_v12 }
  0x8d   : > { %691 = vmatprep.subr.bf16.mxu0 %v405_v14 }
  0x8f   : > { %678 = vmatmul.mubr.msk.bf16.vlgmr.msra.gmra.mxu0 %vm261_vm0, %v720_v15 }
  0x90   : > { %692 = vmatpush3.bf16.msra.mxu0 %v405_v14  ;;  %697 = vmatprep.mubr.msk.bf16.mxu0 %vm261_vm0, %v722_v16 }
  0x91   : > { %693 = vmatprep.subr.bf16.mxu0 %v403_v17 }
  0x94   : > { %694 = vmatpush3.bf16.msra.mxu0 %v403_v17 }
  0x95   : > { %695 = vmatprep.subr.bf16.mxu0 %v401_v18 }
  0x97   : > { %v475_v26 = vpop.permute.xlu0 %474 }
  0x98   : > { %696 = vmatpush3.bf16.msra.mxu0 %v401_v18  ;;  %v480_v23 = vpop.permute.xlu1 %479 }
  0x9b   : > { %698 = vmatmul.mubr.msk.bf16.vlgmr.msra.gmra.mxu0 %vm261_vm0, %v723_v19  ;;  %v490_v40 = vpop.permute.xlu0 %489 }
  0x9c   : > { %v485_v31 = vpop.permute.xlu1 %484 }
  0xdc   : > { %v689_v21 = vpop.f32.mrf.mxu1 }
  0xde   : > { %v370_v24 = vpop.f32.mrf.mxu1 }
  0xe0   : > { %v690_v27 = vpop.f32.mrf.mxu1 }
  0xe2   : > { %v373_v34 = vpop.f32.mrf.mxu1 }
 0x14f   : > { %v679_v20 = vpop.f32.mrf.mxu0 }
 0x150   : > { %v379_v29 = vadd.f32 %v689_v21, %v679_v20 }
 0x151   : > { %v302_v22 = vpop.f32.mrf.mxu0 }
 0x152   : > { %v371_v32 = vadd.f32 %v370_v24, %v302_v22 }
 0x153   : > { %v680_v25 = vpop.f32.mrf.mxu0 }
 0x154   : > { %v382_v36 = vadd.f32 %v690_v27, %v680_v25 }
 0x155   : > { %v305_v28 = vpop.f32.mrf.mxu0 }
 0x156   : > { %v374_v41 = vadd.f32 %v373_v34, %v305_v28 }
 0x15b   : > { %v699_v30 = vpop.f32.mrf.mxu0 }
 0x15c   : > { %v466_v33 = vadd.f32 %v699_v30, %v379_v29 }
 0x15d   : > { %v449_v35 = vpop.f32.mrf.mxu0 }
 0x15e   : > { %v464_v37 = vadd.f32 %v449_v35, %v371_v32  ;;  %v494_v38 = vadd.f32 %v485_v31, %v466_v33 }
 0x15f   : > { %v700_v39 = vpop.f32.mrf.mxu0 }
 0x160   : > { %v492_v42 = vadd.f32 %v475_v26, %v464_v37  ;;  %v654_v43 = vpack.c.bf16 %v494_v38, %v494_v38  ;;  %v467_v44 = vadd.f32 %v700_v39, %v382_v36 }
 0x161   : > { %v452_v45 = vpop.f32.mrf.mxu0 }
 0x162   : > { %vm496_vm2 = vcmp.ge.f32.partialorder %v492_v42, 0.0  ;;  %v498_v46 = vmul.f32 0.01, %v492_v42  ;;  %521 = vst.msk [vmem:[%s210_s22] sm:$0xf] %vm510_vm1, %v654_v43  ;;  %v495_v47 = vadd.f32 %v490_v40, %v467_v44  ;;  %v465_v48 = vadd.f32 %v452_v45, %v374_v41 }
 0x164   : > { %v500_v49 = vsel %vm496_vm2, %v492_v42, %v498_v46  ;;  %v655_v50 = vpack.c.bf16 %v495_v47, %v495_v47  ;;  %v493_v51 = vadd.f32 %v480_v23, %v465_v48 }
 0x165   : > { %v652_v52 = vpack.c.bf16 %v500_v49, %v500_v49 }
 0x166   : > { %522 = vst.msk [vmem:[%s210_s22 + $0x4] sm:$0xf] %vm510_vm1, %v655_v50  ;;  %vm497_vm3 = vcmp.ge.f32.partialorder %v493_v51, 0.0  ;;  %v499_v53 = vmul.f32 0.01, %v493_v51 }
 0x167   : > { %511 = vst.msk [vmem:[%s205_s24] sm:$0xf] %vm510_vm1, %v652_v52 }
 0x168   : > { %v501_v54 = vsel %vm497_vm3, %v493_v51, %v499_v53 }
 0x169   : > { %v653_v55 = vpack.c.bf16 %v501_v54, %v501_v54 }
 0x16b   : > { %512 = vst.msk [vmem:[%s205_s24 + $0x4] sm:$0xf] %vm510_vm1, %v653_v55 }
 0x16c PF: > { %s15_s15 = sadd.s32 1, %s730_s15  }
 0x16d   : > { %p12_p4 = scmp.ge.s32.totalorder %s15_s15, 4  }
 0x16f   :  { %14 = sbr.rel (!%p12_p4) target bundleno = 1 (0x1), region = 76 }

// kernel: run.19
= control target key start
LH: loop header
LB: loop body
LE: loop exit
PB: predicated region body
PF: predicated region fallthrough
CT: control target
= control target key end

     0   :  { %s1475_s15 = smov 0   ;;  %s1611_s0 = inlined_call_operand.vmem [shape: bf16[2,16,38], index: 0, kind: input, shape index: {}]   ;;  %s1612_s1 = inlined_call_operand.vmem [shape: bf16[15,16,16], index: 1, kind: input, shape index: {}]   ;;  %s1613_s2 = inlined_call_operand.vmem [shape: f32[16,1], index: 2, kind: input, shape index: {}]   ;;  %s1614_s3 = inlined_call_operand.vmem [shape: bf16[2,16,24], index: 3, kind: input, shape index: {}]   ;;  %s1615_s4 = inlined_call_operand.vmem [shape: bf16[2,16,24], index: 4, kind: output, shape index: {}]  }
   0x1 LB: > { %s1179_s16 = sadd.s32 4294967295, %s1431_s15   ;;  %p1183_p0 = scmp.ge.s32.totalorder %s1431_s15, 1  ;;  %s1431_s15 = sphi %s1475_s15, %s14_s15  }
   0x2   : > { %p172_p1 = scmp.lt.s32.totalorder %s1431_s15, 3 }
   0x4   : > { %p173_p2 = pnand %p1183_p0, %p172_p1 }
   0x5   : > { %p203_p3 = scmp.lt.s32.totalorder (!%p173_p2), %s1179_s16, 1  ;;  %s1435_s21 = smov (!%p173_p2), 127  }
   0x6   : > { %176 = sbr.rel (%p173_p2) target bundleno = 398 (0x18e), region = 36  ;;  %s1436_s22 = smov (!%p173_p2), 125  }
   0x7   : > { %s1437_s25 = smov (!%p173_p2), 126   ;;  %s1438_s26 = smov (!%p173_p2), 124  }
   0x8   : > { %s1439_s27 = smov (!%p173_p2), 123   ;;  %s1440_s28 = smov (!%p173_p2), 122  }
   0x9   : > { %s1441_s29 = smov (!%p173_p2), 121   ;;  %s1442_s30 = smov (!%p173_p2), 120  }
   0xa   : > { %s1443_s5 = smov (!%p173_p2), 119   ;;  %s1444_s6 = smov (!%p173_p2), 118  }
   0xb   : > { %v1433_v0 = vmov 0.0   ;;  %s1617_s16 = smov (!%p203_p3, %s1179_s16), 1  ;;  %vm1434_vm0 = vmmov 0   ;;  %vm239_vm1 = vcmask 130048   ;;  %v1411_v2 = vld [vmem:[%s1612_s1] sm:$0xff]   ;;  %s1445_s7 = smov 117  }
   0xc   : > { %1292 = vmatprep.subr.bf16.mxu0 %v1433_v0  ;;  %1298 = vmatprep.subr.bf16.mxu1 %v1433_v0  ;;  %s1489_s17 = sshll.u32 %s1617_s16, 3  ;;  %s1446_s8 = smov 116   ;;  %v1075_v3 = vld [vmem:[%s1613_s2] sm:$0xff]  ;;  %v1076_v4 = vld [vmem:[%s1613_s2 + $0x8] sm:$0xff]  ;;  %v1449_v5 = vmov 0   ;;  %v1413_v9 = vld [vmem:[%s1612_s1 + $0x18] sm:$0xff]  }
   0xd   : > { %1294 = vmatprep.mubr.msk.bf16.mxu0 %vm1434_vm0, %v1433_v0  ;;  %1300 = vmatprep.mubr.msk.bf16.mxu1 %vm1434_vm0, %v1433_v0  ;;  %s207_s20 = scalar_lea.vmem %s1611_s0, %s1489_s17  ;;  %s1447_s9 = smov 115   ;;  %v1410_v7 = vld [vmem:[%s1612_s1 + $0x8] sm:$0xff]   ;;  %v1412_v11 = vld [vmem:[%s1612_s1 + $0x10] sm:$0xff]   ;;  %v1414_v16 = vld [vmem:[%s1612_s1 + $0x20] sm:$0xff]   ;;  %vm1109_vm3 = vcmask 191488  }
   0xe   : > { %v1409_v1 = vld [vmem:[%s207_s20] sm:$0xff]   ;;  %s1448_s10 = smov 114   ;;  %1407 = vset.pattern.permute.xlu0 %v1449_v5  ;;  %1408 = vset.pattern.permute.xlu1 %v1449_v5  ;;  %v1415_v13 = vld [vmem:[%s1612_s1 + $0x28] sm:$0xff]   ;;  %v1417_v17 = vld [vmem:[%s1612_s1 + $0x38] sm:$0xff]   ;;  %s212_s23 = scalar_lea.vmem %s1614_s3, %s1489_s17 }
   0xf   : > { %236 = vrot.lane.b32.xlu0 %v1409_v1, %s1435_s21  ;;  %399 = vrot.lane.b32.xlu1 %v1409_v1, %s1436_s22  ;;  %v1416_v20 = vld [vmem:[%s1612_s1 + $0x30] sm:$0xff]   ;;  %v1419_v21 = vld [vmem:[%s1612_s1 + $0x48] sm:$0xff]  }
  0x10   : > { %1299 = vmatpush3.bf16.msra.mxu1 %v1409_v1  ;;  %v1418_v24 = vld [vmem:[%s1612_s1 + $0x40] sm:$0xff]   ;;  %v1421_v25 = vld [vmem:[%s1612_s1 + $0x58] sm:$0xff]   ;;  %v1420_v28 = vld [vmem:[%s1612_s1 + $0x50] sm:$0xff]  }
  0x11   : > { %1310 = vmatprep.subr.bf16.mxu1 %v1433_v0  ;;  %v1423_v29 = vld [vmem:[%s1612_s1 + $0x68] sm:$0xff]   ;;  %v1422_v31 = vld [vmem:[%s1612_s1 + $0x60] sm:$0xff]   ;;  %v1424_v33 = vld [vmem:[%s1612_s1 + $0x70] sm:$0xff]  }
  0x13   : > { %342 = vrot.lane.b32.xlu0 %v1409_v1, %s1437_s25  ;;  %456 = vrot.lane.b32.xlu1 %v1409_v1, %s1438_s26  ;;  %s217_s26 = scalar_lea.vmem %s1615_s4, %s1489_s17 }
  0x14   : > { %1301 = vmatmul.mubr.msk.bf16.vlgmr.msra.gmra.mxu1 %vm239_vm1, %v1411_v2 }
  0x15   : > { %1312 = vmatprep.mubr.msk.bf16.mxu1 %vm1434_vm0, %v1433_v0 }
  0x17   : > { %513 = vrot.lane.b32.xlu0 %v1409_v1, %s1439_s27  ;;  %570 = vrot.lane.b32.xlu1 %v1409_v1, %s1440_s28 }
  0x1b   : > { %627 = vrot.lane.b32.xlu0 %v1409_v1, %s1441_s29  ;;  %684 = vrot.lane.b32.xlu1 %v1409_v1, %s1442_s30 }
  0x1f   : > { %741 = vrot.lane.b32.xlu0 %v1409_v1, %s1443_s5  ;;  %798 = vrot.lane.b32.xlu1 %v1409_v1, %s1444_s6 }
  0x23   : > { %855 = vrot.lane.b32.xlu0 %v1409_v1, %s1445_s7  ;;  %912 = vrot.lane.b32.xlu1 %v1409_v1, %s1446_s8 }
  0x27   : > { %969 = vrot.lane.b32.xlu0 %v1409_v1, %s1447_s9  ;;  %1026 = vrot.lane.b32.xlu1 %v1409_v1, %s1448_s10 }
  0x2b   : > { %1079 = vperm.xlu0 %1407, %v1075_v3   ;;  %1084 = vperm.xlu1 %1408, %v1076_v4  }
  0x81   : > { %v237_v6 = vpop.permute.xlu0 %236  ;;  %v400_v8 = vpop.permute.xlu1 %399 }
  0x82   : > { %1293 = vmatpush3.bf16.msra.mxu0 %v237_v6  ;;  %1311 = vmatpush3.bf16.msra.mxu1 %v400_v8 }
  0x83   : > { %1304 = vmatprep.subr.bf16.mxu0 %v1433_v0  ;;  %1322 = vmatprep.subr.bf16.mxu1 %v1433_v0 }
  0x85   : > { %1295 = vmatmul.mubr.msk.bf16.vlgmr.msra.gmra.mxu0 %vm239_vm1, %v1410_v7  ;;  %v343_v10 = vpop.permute.xlu0 %342  ;;  %1313 = vmatmul.mubr.msk.bf16.vlgmr.msra.gmra.mxu1 %vm239_vm1, %v1413_v9  ;;  %v457_v14 = vpop.permute.xlu1 %456 }
  0x86   : > { %1305 = vmatpush3.bf16.msra.mxu0 %v343_v10  ;;  %1306 = vmatprep.mubr.msk.bf16.mxu0 %vm1434_vm0, %v1433_v0 }
  0x87   : > { %1316 = vmatprep.subr.bf16.mxu0 %v1433_v0  ;;  %1324 = vmatprep.mubr.msk.bf16.mxu1 %vm1434_vm0, %v1433_v0 }
  0x89   : > { %v514_v12 = vpop.permute.xlu0 %513  ;;  %v571_v18 = vpop.permute.xlu1 %570 }
  0x8a   : > { %1323 = vmatpush3.bf16.msra.mxu1 %v514_v12 }
  0x8b   : > { %1334 = vmatprep.subr.bf16.mxu1 %v1433_v0 }
  0x8d   : > { %1307 = vmatmul.mubr.msk.bf16.vlgmr.msra.gmra.mxu0 %vm239_vm1, %v1412_v11  ;;  %1325 = vmatmul.mubr.msk.bf16.vlgmr.msra.gmra.mxu1 %vm239_vm1, %v1415_v13  ;;  %v628_v15 = vpop.permute.xlu0 %627  ;;  %v685_v22 = vpop.permute.xlu1 %684 }
  0x8e   : > { %1317 = vmatpush3.bf16.msra.mxu0 %v457_v14  ;;  %1318 = vmatprep.mubr.msk.bf16.mxu0 %vm1434_vm0, %v1433_v0 }
  0x8f   : > { %1328 = vmatprep.subr.bf16.mxu0 %v1433_v0  ;;  %1335 = vmatpush3.bf16.msra.mxu1 %v628_v15 }
  0x90   : > { %1336 = vmatprep.mubr.msk.bf16.mxu1 %vm1434_vm0, %v1433_v0  ;;  %1346 = vmatprep.subr.bf16.mxu1 %v1433_v0 }
  0x91   : > { %v742_v19 = vpop.permute.xlu0 %741  ;;  %v799_v26 = vpop.permute.xlu1 %798 }
  0x95   : > { %1319 = vmatmul.mubr.msk.bf16.vlgmr.msra.gmra.mxu0 %vm239_vm1, %v1414_v16  ;;  %1337 = vmatmul.mubr.msk.bf16.vlgmr.msra.gmra.mxu1 %vm239_vm1, %v1417_v17  ;;  %v856_v23 = vpop.permute.xlu0 %855  ;;  %v913_v30 = vpop.permute.xlu1 %912 }
  0x96   : > { %1329 = vmatpush3.bf16.msra.mxu0 %v571_v18  ;;  %1330 = vmatprep.mubr.msk.bf16.mxu0 %vm1434_vm0, %v1433_v0 }
  0x97   : > { %1340 = vmatprep.subr.bf16.mxu0 %v1433_v0  ;;  %1347 = vmatpush3.bf16.msra.mxu1 %v742_v19 }
  0x98   : > { %1348 = vmatprep.mubr.msk.bf16.mxu1 %vm1434_vm0, %v1433_v0  ;;  %1358 = vmatprep.subr.bf16.mxu1 %v1433_v0 }
  0x99   : > { %v970_v27 = vpop.permute.xlu0 %969  ;;  %v1027_v32 = vpop.permute.xlu1 %1026 }
  0x9d   : > { %1331 = vmatmul.mubr.msk.bf16.vlgmr.msra.gmra.mxu0 %vm239_vm1, %v1416_v20  ;;  %1349 = vmatmul.mubr.msk.bf16.vlgmr.msra.gmra.mxu1 %vm239_vm1, %v1419_v21 }
  0x9e   : > { %1341 = vmatpush3.bf16.msra.mxu0 %v685_v22  ;;  %1342 = vmatprep.mubr.msk.bf16.mxu0 %vm1434_vm0, %v1433_v0 }
  0x9f   : > { %1352 = vmatprep.subr.bf16.mxu0 %v1433_v0  ;;  %1359 = vmatpush3.bf16.msra.mxu1 %v856_v23 }
  0xa0   : > { %1360 = vmatprep.mubr.msk.bf16.mxu1 %vm1434_vm0, %v1433_v0  ;;  %1370 = vmatprep.subr.bf16.mxu1 %v1433_v0 }
  0xa5   : > { %1343 = vmatmul.mubr.msk.bf16.vlgmr.msra.gmra.mxu0 %vm239_vm1, %v1418_v24  ;;  %1361 = vmatmul.mubr.msk.bf16.vlgmr.msra.gmra.mxu1 %vm239_vm1, %v1421_v25 }
  0xa6   : > { %1353 = vmatpush3.bf16.msra.mxu0 %v799_v26  ;;  %1354 = vmatprep.mubr.msk.bf16.mxu0 %vm1434_vm0, %v1433_v0 }
  0xa7   : > { %1364 = vmatprep.subr.bf16.mxu0 %v1433_v0  ;;  %1371 = vmatpush3.bf16.msra.mxu1 %v970_v27 }
  0xa8   : > { %1372 = vmatprep.mubr.msk.bf16.mxu1 %vm1434_vm0, %v1433_v0 }
  0xad   : > { %1355 = vmatmul.mubr.msk.bf16.vlgmr.msra.gmra.mxu0 %vm239_vm1, %v1420_v28  ;;  %1373 = vmatmul.mubr.msk.bf16.vlgmr.msra.gmra.mxu1 %vm239_vm1, %v1423_v29 }
  0xae   : > { %1365 = vmatpush3.bf16.msra.mxu0 %v913_v30  ;;  %1366 = vmatprep.mubr.msk.bf16.mxu0 %vm1434_vm0, %v1433_v0 }
  0xaf   : > { %1376 = vmatprep.subr.bf16.mxu0 %v1433_v0 }
  0xb5   : > { %1367 = vmatmul.mubr.msk.bf16.vlgmr.msra.gmra.mxu0 %vm239_vm1, %v1422_v31 }
  0xb6   : > { %1377 = vmatpush3.bf16.msra.mxu0 %v1027_v32  ;;  %1378 = vmatprep.mubr.msk.bf16.mxu0 %vm1434_vm0, %v1433_v0 }
  0xbd   : > { %1379 = vmatmul.mubr.msk.bf16.vlgmr.msra.gmra.mxu0 %vm239_vm1, %v1424_v33 }
  0xd4   : > { %v327_v34 = vpop.f32.mrf.mxu1 }
  0xd6   : > { %v1302_v35 = vpop.f32.mrf.mxu1 }
  0xd8   : > { %v330_v36 = vpop.f32.mrf.mxu1 }
  0xda   : > { %v1303_v37 = vpop.f32.mrf.mxu1 }
 0x145   : > { %v277_v38 = vpop.f32.mrf.mxu0  ;;  %v439_v39 = vpop.f32.mrf.mxu1 }
 0x146   : > { %v328_v58 = vadd.f32 %v327_v34, %v277_v38 }
 0x147   : > { %v1296_v40 = vpop.f32.mrf.mxu0  ;;  %v1314_v41 = vpop.f32.mrf.mxu1 }
 0x149   : > { %v280_v42 = vpop.f32.mrf.mxu0  ;;  %v442_v43 = vpop.f32.mrf.mxu1 }
 0x14a   : > { %v331_v0 = vadd.f32 %v330_v36, %v280_v42 }
 0x14b   : > { %v1297_v44 = vpop.f32.mrf.mxu0  ;;  %v1315_v45 = vpop.f32.mrf.mxu1 }
 0x14d   : > { %v382_v46 = vpop.f32.mrf.mxu0  ;;  %v553_v47 = vpop.f32.mrf.mxu1 }
 0x14e   : > { %v389_v61 = vadd.f32 %v382_v46, %v328_v58 }
 0x14f   : > { %v1308_v48 = vpop.f32.mrf.mxu0  ;;  %v1326_v49 = vpop.f32.mrf.mxu1 }
 0x150   : > { %v446_v3 = vadd.f32 %v439_v39, %v389_v61  ;;  %v1259_v49 = vld [vmem:[%s212_s23] sm:$0xff]  }
 0x151   : > { %v385_v50 = vpop.f32.mrf.mxu0  ;;  %v556_v51 = vpop.f32.mrf.mxu1 }
 0x152   : > { %v390_v4 = vadd.f32 %v385_v50, %v331_v0 }
 0x153   : > { %v1309_v52 = vpop.f32.mrf.mxu0  ;;  %v1327_v53 = vpop.f32.mrf.mxu1 }
 0x154   : > { %v447_v10 = vadd.f32 %v442_v43, %v390_v4  ;;  %v1080_v53 = vpop.permute.xlu0 %1079 }
 0x155   : > { %v496_v54 = vpop.f32.mrf.mxu0  ;;  %v667_v55 = vpop.f32.mrf.mxu1 }
 0x156   : > { %v503_v7 = vadd.f32 %v496_v54, %v446_v3 }
 0x157   : > { %v1320_v56 = vpop.f32.mrf.mxu0  ;;  %v1338_v57 = vpop.f32.mrf.mxu1 }
 0x158   : > { %v560_v13 = vadd.f32 %v553_v47, %v503_v7 }
 0x159   : > { %v499_v59 = vpop.f32.mrf.mxu0  ;;  %v670_v60 = vpop.f32.mrf.mxu1 }
 0x15a   : > { %v504_v14 = vadd.f32 %v499_v59, %v447_v10 }
 0x15b   : > { %v1321_v62 = vpop.f32.mrf.mxu0  ;;  %v1339_v63 = vpop.f32.mrf.mxu1 }
 0x15c   : > { %v561_v20 = vadd.f32 %v556_v51, %v504_v14  ;;  %v1261_v63 = vunpack.c.h.bf16 %v1259_v49 }
 0x15d   : > { %v610_v1 = vpop.f32.mrf.mxu0  ;;  %v781_v2 = vpop.f32.mrf.mxu1 }
 0x15e   : > { %v617_v17 = vadd.f32 %v610_v1, %v560_v13 }
 0x15f   : > { %v1332_v5 = vpop.f32.mrf.mxu0  ;;  %v1350_v6 = vpop.f32.mrf.mxu1 }
 0x160   : > { %v674_v23 = vadd.f32 %v667_v55, %v617_v17  ;;  %v1260_v55 = vunpack.c.l.bf16 %v1259_v49 }
 0x161   : > { %v613_v8 = vpop.f32.mrf.mxu0  ;;  %v784_v9 = vpop.f32.mrf.mxu1 }
 0x162   : > { %v618_v24 = vadd.f32 %v613_v8, %v561_v20 }
 0x163   : > { %v1333_v11 = vpop.f32.mrf.mxu0  ;;  %v1351_v12 = vpop.f32.mrf.mxu1 }
 0x164   : > { %v675_v30 = vadd.f32 %v670_v60, %v618_v24  ;;  %v1085_v60 = vpop.permute.xlu1 %1084 }
 0x165   : > { %v724_v15 = vpop.f32.mrf.mxu0  ;;  %v895_v16 = vpop.f32.mrf.mxu1 }
 0x166   : > { %v731_v27 = vadd.f32 %v724_v15, %v674_v23 }
 0x167   : > { %v1344_v18 = vpop.f32.mrf.mxu0  ;;  %v1362_v19 = vpop.f32.mrf.mxu1 }
 0x168   : > { %v788_v33 = vadd.f32 %v781_v2, %v731_v27 }
 0x169   : > { %v727_v21 = vpop.f32.mrf.mxu0  ;;  %v898_v22 = vpop.f32.mrf.mxu1 }
 0x16a   : > { %v732_v34 = vadd.f32 %v727_v21, %v675_v30 }
 0x16b   : > { %v1345_v25 = vpop.f32.mrf.mxu0  ;;  %v1363_v26 = vpop.f32.mrf.mxu1 }
 0x16c   : > { %v789_v40 = vadd.f32 %v784_v9, %v732_v34 }
 0x16d   : > { %v838_v28 = vpop.f32.mrf.mxu0  ;;  %v1009_v29 = vpop.f32.mrf.mxu1 }
 0x16e   : > { %v845_v37 = vadd.f32 %v838_v28, %v788_v33 }
 0x16f   : > { %v1356_v31 = vpop.f32.mrf.mxu0  ;;  %v1374_v32 = vpop.f32.mrf.mxu1 }
 0x170   : > { %v902_v42 = vadd.f32 %v895_v16, %v845_v37 }
 0x171   : > { %v841_v35 = vpop.f32.mrf.mxu0  ;;  %v1012_v36 = vpop.f32.mrf.mxu1 }
 0x172   : > { %v846_v43 = vadd.f32 %v841_v35, %v789_v40 }
 0x173   : > { %v1357_v38 = vpop.f32.mrf.mxu0  ;;  %v1375_v39 = vpop.f32.mrf.mxu1 }
 0x174   : > { %v903_v47 = vadd.f32 %v898_v22, %v846_v43 }
 0x175   : > { %v952_v41 = vpop.f32.mrf.mxu0 }
 0x176   : > { %v959_v45 = vadd.f32 %v952_v41, %v902_v42 }
 0x177   : > { %v1368_v44 = vpop.f32.mrf.mxu0 }
 0x178   : > { %v1016_v50 = vadd.f32 %v1009_v29, %v959_v45 }
 0x179   : > { %v955_v46 = vpop.f32.mrf.mxu0 }
 0x17a   : > { %v960_v51 = vadd.f32 %v955_v46, %v903_v47 }
 0x17b   : > { %v1369_v48 = vpop.f32.mrf.mxu0 }
 0x17c   : > { %v1017_v57 = vadd.f32 %v1012_v36, %v960_v51 }
 0x17d   : > { %v1066_v52 = vpop.f32.mrf.mxu0 }
 0x17e   : > { %v1073_v54 = vadd.f32 %v1066_v52, %v1016_v50 }
 0x17f   : > { %v1380_v56 = vpop.f32.mrf.mxu0 }
 0x180   : > { %v1087_v58 = vadd.f32 %v1080_v53, %v1073_v54 }
 0x181   : > { %v1069_v59 = vpop.f32.mrf.mxu0 }
 0x182   : > { %v1093_v61 = vadd.f32 %v1260_v55, %v1087_v58  ;;  %v1074_v62 = vadd.f32 %v1069_v59, %v1017_v57 }
 0x183   : > { %v1381_v0 = vpop.f32.mrf.mxu0 }
 0x184   : > { %vm1095_vm2 = vcmp.ge.f32.partialorder %v1093_v61, 0.0  ;;  %v1097_v1 = vmul.f32 0.01, %v1093_v61  ;;  %v1088_v2 = vadd.f32 %v1085_v60, %v1074_v62 }
 0x186   : > { %v1099_v3 = vsel %vm1095_vm2, %v1093_v61, %v1097_v1  ;;  %v1094_v4 = vadd.f32 %v1261_v63, %v1088_v2 }
 0x187   : > { %v1256_v5 = vpack.c.bf16 %v1099_v3, %v1099_v3 }
 0x188   : > { %vm1096_vm4 = vcmp.ge.f32.partialorder %v1094_v4, 0.0  ;;  %v1098_v6 = vmul.f32 0.01, %v1094_v4 }
 0x189   : > { %1110 = vst.msk [vmem:[%s217_s26] sm:$0xf] %vm1109_vm3, %v1256_v5 }
 0x18a   : > { %v1100_v7 = vsel %vm1096_vm4, %v1094_v4, %v1098_v6 }
 0x18b   : > { %v1257_v8 = vpack.c.bf16 %v1100_v7, %v1100_v7 }
 0x18d   : > { %1111 = vst.msk [vmem:[%s217_s26 + $0x4] sm:$0xf] %vm1109_vm3, %v1257_v8 }
 0x18e PF: > { %s14_s15 = sadd.s32 1, %s1431_s15  }
 0x18f   : > { %p11_p4 = scmp.ge.s32.totalorder %s14_s15, 4  }
 0x191   :  { %13 = sbr.rel (!%p11_p4) target bundleno = 1 (0x1), region = 83 }

// kernel: run.20
= control target key start
LH: loop header
LB: loop body
LE: loop exit
PB: predicated region body
PF: predicated region fallthrough
CT: control target
= control target key end

     0   :  { %s1398_s12 = smov 0   ;;  %s1533_s0 = inlined_call_operand.vmem [shape: bf16[2,16,38], index: 0, kind: input, shape index: {}]   ;;  %s1534_s1 = inlined_call_operand.vmem [shape: bf16[15,16,16], index: 1, kind: input, shape index: {}]   ;;  %s1535_s2 = inlined_call_operand.vmem [shape: f32[16,1], index: 2, kind: input, shape index: {}]   ;;  %s1536_s3 = inlined_call_operand.vmem [shape: bf16[2,16,24], index: 3, kind: output, shape index: {}]  }
   0x1 LB: > { %s1114_s13 = sadd.s32 4294967295, %s1359_s12   ;;  %p1118_p0 = scmp.ge.s32.totalorder %s1359_s12, 1  ;;  %s1359_s12 = sphi %s1398_s12, %s13_s12  }
   0x2   : > { %p137_p1 = scmp.lt.s32.totalorder %s1359_s12, 3 }
   0x4   : > { %p138_p2 = pnand %p1118_p0, %p137_p1 }
   0x5   : > { %p161_p3 = scmp.lt.s32.totalorder (!%p138_p2), %s1114_s13, 1  ;;  %s1363_s18 = smov (!%p138_p2), 127  }
   0x6   : > { %141 = sbr.rel (%p138_p2) target bundleno = 396 (0x18c), region = 32  ;;  %s1364_s19 = smov (!%p138_p2), 125  }
   0x7   : > { %s1365_s22 = smov (!%p138_p2), 126   ;;  %s1366_s23 = smov (!%p138_p2), 124  }
   0x8   : > { %s1367_s24 = smov (!%p138_p2), 123   ;;  %s1368_s25 = smov (!%p138_p2), 122  }
   0x9   : > { %s1369_s26 = smov (!%p138_p2), 121   ;;  %s1370_s27 = smov (!%p138_p2), 120  }
   0xa   : > { %s1371_s28 = smov (!%p138_p2), 119   ;;  %s1372_s29 = smov (!%p138_p2), 118  }
   0xb   : > { %v1361_v0 = vmov 0.0   ;;  %s1538_s13 = smov (!%p161_p3, %s1114_s13), 1  ;;  %vm1362_vm0 = vmmov 0   ;;  %vm192_vm1 = vcmask 130048   ;;  %v1339_v2 = vld [vmem:[%s1534_s1] sm:$0xff]   ;;  %s1373_s30 = smov 117  }
   0xc   : > { %1220 = vmatprep.subr.bf16.mxu0 %v1361_v0  ;;  %1226 = vmatprep.subr.bf16.mxu1 %v1361_v0  ;;  %s1186_s14 = sshll.u32 %s1538_s13, 3  ;;  %s1374_s4 = smov 116   ;;  %v1028_v3 = vld [vmem:[%s1535_s2] sm:$0xff]  ;;  %v1029_v4 = vld [vmem:[%s1535_s2 + $0x8] sm:$0xff]  ;;  %v1377_v5 = vmov 0   ;;  %v1341_v9 = vld [vmem:[%s1534_s1 + $0x18] sm:$0xff]  }
   0xd   : > { %1222 = vmatprep.mubr.msk.bf16.mxu0 %vm1362_vm0, %v1361_v0  ;;  %1228 = vmatprep.mubr.msk.bf16.mxu1 %vm1362_vm0, %v1361_v0  ;;  %s165_s17 = scalar_lea.vmem %s1533_s0, %s1186_s14  ;;  %s1375_s5 = smov 115   ;;  %v1338_v7 = vld [vmem:[%s1534_s1 + $0x8] sm:$0xff]   ;;  %v1340_v11 = vld [vmem:[%s1534_s1 + $0x10] sm:$0xff]   ;;  %v1342_v16 = vld [vmem:[%s1534_s1 + $0x20] sm:$0xff]   ;;  %vm1056_vm3 = vcmask 191488  }
   0xe   : > { %v1337_v1 = vld [vmem:[%s165_s17] sm:$0xff]   ;;  %s1376_s6 = smov 114   ;;  %1335 = vset.pattern.permute.xlu0 %v1377_v5  ;;  %1336 = vset.pattern.permute.xlu1 %v1377_v5  ;;  %v1343_v13 = vld [vmem:[%s1534_s1 + $0x28] sm:$0xff]   ;;  %v1345_v17 = vld [vmem:[%s1534_s1 + $0x38] sm:$0xff]   ;;  %s170_s20 = scalar_lea.vmem %s1536_s3, %s1186_s14 }
   0xf   : > { %189 = vrot.lane.b32.xlu0 %v1337_v1, %s1363_s18  ;;  %352 = vrot.lane.b32.xlu1 %v1337_v1, %s1364_s19  ;;  %v1344_v20 = vld [vmem:[%s1534_s1 + $0x30] sm:$0xff]   ;;  %v1347_v21 = vld [vmem:[%s1534_s1 + $0x48] sm:$0xff]  }
  0x10   : > { %1227 = vmatpush3.bf16.msra.mxu1 %v1337_v1  ;;  %v1346_v24 = vld [vmem:[%s1534_s1 + $0x40] sm:$0xff]   ;;  %v1349_v25 = vld [vmem:[%s1534_s1 + $0x58] sm:$0xff]   ;;  %v1348_v28 = vld [vmem:[%s1534_s1 + $0x50] sm:$0xff]  }
  0x11   : > { %1238 = vmatprep.subr.bf16.mxu1 %v1361_v0  ;;  %v1351_v29 = vld [vmem:[%s1534_s1 + $0x68] sm:$0xff]   ;;  %v1350_v31 = vld [vmem:[%s1534_s1 + $0x60] sm:$0xff]   ;;  %v1352_v33 = vld [vmem:[%s1534_s1 + $0x70] sm:$0xff]  }
  0x13   : > { %295 = vrot.lane.b32.xlu0 %v1337_v1, %s1365_s22  ;;  %409 = vrot.lane.b32.xlu1 %v1337_v1, %s1366_s23 }
  0x14   : > { %1229 = vmatmul.mubr.msk.bf16.vlgmr.msra.gmra.mxu1 %vm192_vm1, %v1339_v2 }
  0x15   : > { %1240 = vmatprep.mubr.msk.bf16.mxu1 %vm1362_vm0, %v1361_v0 }
  0x17   : > { %466 = vrot.lane.b32.xlu0 %v1337_v1, %s1367_s24  ;;  %523 = vrot.lane.b32.xlu1 %v1337_v1, %s1368_s25 }
  0x1b   : > { %580 = vrot.lane.b32.xlu0 %v1337_v1, %s1369_s26  ;;  %637 = vrot.lane.b32.xlu1 %v1337_v1, %s1370_s27 }
  0x1f   : > { %694 = vrot.lane.b32.xlu0 %v1337_v1, %s1371_s28  ;;  %751 = vrot.lane.b32.xlu1 %v1337_v1, %s1372_s29 }
  0x23   : > { %808 = vrot.lane.b32.xlu0 %v1337_v1, %s1373_s30  ;;  %865 = vrot.lane.b32.xlu1 %v1337_v1, %s1374_s4 }
  0x27   : > { %922 = vrot.lane.b32.xlu0 %v1337_v1, %s1375_s5  ;;  %979 = vrot.lane.b32.xlu1 %v1337_v1, %s1376_s6 }
  0x2b   : > { %1032 = vperm.xlu0 %1335, %v1028_v3   ;;  %1037 = vperm.xlu1 %1336, %v1029_v4  }
  0x81   : > { %v190_v6 = vpop.permute.xlu0 %189  ;;  %v353_v8 = vpop.permute.xlu1 %352 }
  0x82   : > { %1221 = vmatpush3.bf16.msra.mxu0 %v190_v6  ;;  %1239 = vmatpush3.bf16.msra.mxu1 %v353_v8 }
  0x83   : > { %1232 = vmatprep.subr.bf16.mxu0 %v1361_v0  ;;  %1250 = vmatprep.subr.bf16.mxu1 %v1361_v0 }
  0x85   : > { %1223 = vmatmul.mubr.msk.bf16.vlgmr.msra.gmra.mxu0 %vm192_vm1, %v1338_v7  ;;  %v296_v10 = vpop.permute.xlu0 %295  ;;  %1241 = vmatmul.mubr.msk.bf16.vlgmr.msra.gmra.mxu1 %vm192_vm1, %v1341_v9  ;;  %v410_v14 = vpop.permute.xlu1 %409 }
  0x86   : > { %1233 = vmatpush3.bf16.msra.mxu0 %v296_v10  ;;  %1234 = vmatprep.mubr.msk.bf16.mxu0 %vm1362_vm0, %v1361_v0 }
  0x87   : > { %1244 = vmatprep.subr.bf16.mxu0 %v1361_v0  ;;  %1252 = vmatprep.mubr.msk.bf16.mxu1 %vm1362_vm0, %v1361_v0 }
  0x89   : > { %v467_v12 = vpop.permute.xlu0 %466  ;;  %v524_v18 = vpop.permute.xlu1 %523 }
  0x8a   : > { %1251 = vmatpush3.bf16.msra.mxu1 %v467_v12 }
  0x8b   : > { %1262 = vmatprep.subr.bf16.mxu1 %v1361_v0 }
  0x8d   : > { %1235 = vmatmul.mubr.msk.bf16.vlgmr.msra.gmra.mxu0 %vm192_vm1, %v1340_v11  ;;  %1253 = vmatmul.mubr.msk.bf16.vlgmr.msra.gmra.mxu1 %vm192_vm1, %v1343_v13  ;;  %v581_v15 = vpop.permute.xlu0 %580  ;;  %v638_v22 = vpop.permute.xlu1 %637 }
  0x8e   : > { %1245 = vmatpush3.bf16.msra.mxu0 %v410_v14  ;;  %1246 = vmatprep.mubr.msk.bf16.mxu0 %vm1362_vm0, %v1361_v0 }
  0x8f   : > { %1256 = vmatprep.subr.bf16.mxu0 %v1361_v0  ;;  %1263 = vmatpush3.bf16.msra.mxu1 %v581_v15 }
  0x90   : > { %1264 = vmatprep.mubr.msk.bf16.mxu1 %vm1362_vm0, %v1361_v0  ;;  %1274 = vmatprep.subr.bf16.mxu1 %v1361_v0 }
  0x91   : > { %v695_v19 = vpop.permute.xlu0 %694  ;;  %v752_v26 = vpop.permute.xlu1 %751 }
  0x95   : > { %1247 = vmatmul.mubr.msk.bf16.vlgmr.msra.gmra.mxu0 %vm192_vm1, %v1342_v16  ;;  %1265 = vmatmul.mubr.msk.bf16.vlgmr.msra.gmra.mxu1 %vm192_vm1, %v1345_v17  ;;  %v809_v23 = vpop.permute.xlu0 %808  ;;  %v866_v30 = vpop.permute.xlu1 %865 }
  0x96   : > { %1257 = vmatpush3.bf16.msra.mxu0 %v524_v18  ;;  %1258 = vmatprep.mubr.msk.bf16.mxu0 %vm1362_vm0, %v1361_v0 }
  0x97   : > { %1268 = vmatprep.subr.bf16.mxu0 %v1361_v0  ;;  %1275 = vmatpush3.bf16.msra.mxu1 %v695_v19 }
  0x98   : > { %1276 = vmatprep.mubr.msk.bf16.mxu1 %vm1362_vm0, %v1361_v0  ;;  %1286 = vmatprep.subr.bf16.mxu1 %v1361_v0 }
  0x99   : > { %v923_v27 = vpop.permute.xlu0 %922  ;;  %v980_v32 = vpop.permute.xlu1 %979 }
  0x9d   : > { %1259 = vmatmul.mubr.msk.bf16.vlgmr.msra.gmra.mxu0 %vm192_vm1, %v1344_v20  ;;  %1277 = vmatmul.mubr.msk.bf16.vlgmr.msra.gmra.mxu1 %vm192_vm1, %v1347_v21 }
  0x9e   : > { %1269 = vmatpush3.bf16.msra.mxu0 %v638_v22  ;;  %1270 = vmatprep.mubr.msk.bf16.mxu0 %vm1362_vm0, %v1361_v0 }
  0x9f   : > { %1280 = vmatprep.subr.bf16.mxu0 %v1361_v0  ;;  %1287 = vmatpush3.bf16.msra.mxu1 %v809_v23 }
  0xa0   : > { %1288 = vmatprep.mubr.msk.bf16.mxu1 %vm1362_vm0, %v1361_v0  ;;  %1298 = vmatprep.subr.bf16.mxu1 %v1361_v0 }
  0xa5   : > { %1271 = vmatmul.mubr.msk.bf16.vlgmr.msra.gmra.mxu0 %vm192_vm1, %v1346_v24  ;;  %1289 = vmatmul.mubr.msk.bf16.vlgmr.msra.gmra.mxu1 %vm192_vm1, %v1349_v25 }
  0xa6   : > { %1281 = vmatpush3.bf16.msra.mxu0 %v752_v26  ;;  %1282 = vmatprep.mubr.msk.bf16.mxu0 %vm1362_vm0, %v1361_v0 }
  0xa7   : > { %1292 = vmatprep.subr.bf16.mxu0 %v1361_v0  ;;  %1299 = vmatpush3.bf16.msra.mxu1 %v923_v27 }
  0xa8   : > { %1300 = vmatprep.mubr.msk.bf16.mxu1 %vm1362_vm0, %v1361_v0 }
  0xad   : > { %1283 = vmatmul.mubr.msk.bf16.vlgmr.msra.gmra.mxu0 %vm192_vm1, %v1348_v28  ;;  %1301 = vmatmul.mubr.msk.bf16.vlgmr.msra.gmra.mxu1 %vm192_vm1, %v1351_v29 }
  0xae   : > { %1293 = vmatpush3.bf16.msra.mxu0 %v866_v30  ;;  %1294 = vmatprep.mubr.msk.bf16.mxu0 %vm1362_vm0, %v1361_v0 }
  0xaf   : > { %1304 = vmatprep.subr.bf16.mxu0 %v1361_v0 }
  0xb5   : > { %1295 = vmatmul.mubr.msk.bf16.vlgmr.msra.gmra.mxu0 %vm192_vm1, %v1350_v31 }
  0xb6   : > { %1305 = vmatpush3.bf16.msra.mxu0 %v980_v32  ;;  %1306 = vmatprep.mubr.msk.bf16.mxu0 %vm1362_vm0, %v1361_v0 }
  0xbd   : > { %1307 = vmatmul.mubr.msk.bf16.vlgmr.msra.gmra.mxu0 %vm192_vm1, %v1352_v33 }
  0xd4   : > { %v280_v34 = vpop.f32.mrf.mxu1 }
  0xd6   : > { %v1230_v35 = vpop.f32.mrf.mxu1 }
  0xd8   : > { %v283_v36 = vpop.f32.mrf.mxu1 }
  0xda   : > { %v1231_v37 = vpop.f32.mrf.mxu1 }
 0x145   : > { %v230_v38 = vpop.f32.mrf.mxu0  ;;  %v392_v39 = vpop.f32.mrf.mxu1 }
 0x146   : > { %v281_v58 = vadd.f32 %v280_v34, %v230_v38 }
 0x147   : > { %v1224_v40 = vpop.f32.mrf.mxu0  ;;  %v1242_v41 = vpop.f32.mrf.mxu1 }
 0x149   : > { %v233_v42 = vpop.f32.mrf.mxu0  ;;  %v395_v43 = vpop.f32.mrf.mxu1 }
 0x14a   : > { %v284_v0 = vadd.f32 %v283_v36, %v233_v42 }
 0x14b   : > { %v1225_v44 = vpop.f32.mrf.mxu0  ;;  %v1243_v45 = vpop.f32.mrf.mxu1 }
 0x14d   : > { %v335_v46 = vpop.f32.mrf.mxu0  ;;  %v506_v47 = vpop.f32.mrf.mxu1 }
 0x14e   : > { %v342_v61 = vadd.f32 %v335_v46, %v281_v58  ;;  %v1038_v58 = vpop.permute.xlu1 %1037 }
 0x14f   : > { %v1236_v48 = vpop.f32.mrf.mxu0  ;;  %v1254_v49 = vpop.f32.mrf.mxu1 }
 0x150   : > { %v399_v3 = vadd.f32 %v392_v39, %v342_v61 }
 0x151   : > { %v338_v50 = vpop.f32.mrf.mxu0  ;;  %v509_v51 = vpop.f32.mrf.mxu1 }
 0x152   : > { %v343_v4 = vadd.f32 %v338_v50, %v284_v0 }
 0x153   : > { %v1237_v52 = vpop.f32.mrf.mxu0  ;;  %v1255_v53 = vpop.f32.mrf.mxu1 }
 0x154   : > { %v400_v10 = vadd.f32 %v395_v43, %v343_v4  ;;  %v1033_v52 = vpop.permute.xlu0 %1032 }
 0x155   : > { %v449_v54 = vpop.f32.mrf.mxu0  ;;  %v620_v55 = vpop.f32.mrf.mxu1 }
 0x156   : > { %v456_v7 = vadd.f32 %v449_v54, %v399_v3 }
 0x157   : > { %v1248_v56 = vpop.f32.mrf.mxu0  ;;  %v1266_v57 = vpop.f32.mrf.mxu1 }
 0x158   : > { %v513_v13 = vadd.f32 %v506_v47, %v456_v7 }
 0x159   : > { %v452_v59 = vpop.f32.mrf.mxu0  ;;  %v623_v60 = vpop.f32.mrf.mxu1 }
 0x15a   : > { %v457_v14 = vadd.f32 %v452_v59, %v400_v10 }
 0x15b   : > { %v1249_v62 = vpop.f32.mrf.mxu0  ;;  %v1267_v63 = vpop.f32.mrf.mxu1 }
 0x15c   : > { %v514_v20 = vadd.f32 %v509_v51, %v457_v14 }
 0x15d   : > { %v563_v1 = vpop.f32.mrf.mxu0  ;;  %v734_v2 = vpop.f32.mrf.mxu1 }
 0x15e   : > { %v570_v17 = vadd.f32 %v563_v1, %v513_v13 }
 0x15f   : > { %v1260_v5 = vpop.f32.mrf.mxu0  ;;  %v1278_v6 = vpop.f32.mrf.mxu1 }
 0x160   : > { %v627_v23 = vadd.f32 %v620_v55, %v570_v17 }
 0x161   : > { %v566_v8 = vpop.f32.mrf.mxu0  ;;  %v737_v9 = vpop.f32.mrf.mxu1 }
 0x162   : > { %v571_v24 = vadd.f32 %v566_v8, %v514_v20 }
 0x163   : > { %v1261_v11 = vpop.f32.mrf.mxu0  ;;  %v1279_v12 = vpop.f32.mrf.mxu1 }
 0x164   : > { %v628_v30 = vadd.f32 %v623_v60, %v571_v24 }
 0x165   : > { %v677_v15 = vpop.f32.mrf.mxu0  ;;  %v848_v16 = vpop.f32.mrf.mxu1 }
 0x166   : > { %v684_v27 = vadd.f32 %v677_v15, %v627_v23 }
 0x167   : > { %v1272_v18 = vpop.f32.mrf.mxu0  ;;  %v1290_v19 = vpop.f32.mrf.mxu1 }
 0x168   : > { %v741_v33 = vadd.f32 %v734_v2, %v684_v27 }
 0x169   : > { %v680_v21 = vpop.f32.mrf.mxu0  ;;  %v851_v22 = vpop.f32.mrf.mxu1 }
 0x16a   : > { %v685_v34 = vadd.f32 %v680_v21, %v628_v30 }
 0x16b   : > { %v1273_v25 = vpop.f32.mrf.mxu0  ;;  %v1291_v26 = vpop.f32.mrf.mxu1 }
 0x16c   : > { %v742_v40 = vadd.f32 %v737_v9, %v685_v34 }
 0x16d   : > { %v791_v28 = vpop.f32.mrf.mxu0  ;;  %v962_v29 = vpop.f32.mrf.mxu1 }
 0x16e   : > { %v798_v37 = vadd.f32 %v791_v28, %v741_v33 }
 0x16f   : > { %v1284_v31 = vpop.f32.mrf.mxu0  ;;  %v1302_v32 = vpop.f32.mrf.mxu1 }
 0x170   : > { %v855_v42 = vadd.f32 %v848_v16, %v798_v37 }
 0x171   : > { %v794_v35 = vpop.f32.mrf.mxu0  ;;  %v965_v36 = vpop.f32.mrf.mxu1 }
 0x172   : > { %v799_v43 = vadd.f32 %v794_v35, %v742_v40 }
 0x173   : > { %v1285_v38 = vpop.f32.mrf.mxu0  ;;  %v1303_v39 = vpop.f32.mrf.mxu1 }
 0x174   : > { %v856_v47 = vadd.f32 %v851_v22, %v799_v43 }
 0x175   : > { %v905_v41 = vpop.f32.mrf.mxu0 }
 0x176   : > { %v912_v45 = vadd.f32 %v905_v41, %v855_v42 }
 0x177   : > { %v1296_v44 = vpop.f32.mrf.mxu0 }
 0x178   : > { %v969_v49 = vadd.f32 %v962_v29, %v912_v45 }
 0x179   : > { %v908_v46 = vpop.f32.mrf.mxu0 }
 0x17a   : > { %v913_v50 = vadd.f32 %v908_v46, %v856_v47 }
 0x17b   : > { %v1297_v48 = vpop.f32.mrf.mxu0 }
 0x17c   : > { %v970_v55 = vadd.f32 %v965_v36, %v913_v50 }
 0x17d   : > { %v1019_v51 = vpop.f32.mrf.mxu0 }
 0x17e   : > { %v1026_v53 = vadd.f32 %v1019_v51, %v969_v49 }
 0x17f   : > { %v1308_v54 = vpop.f32.mrf.mxu0 }
 0x180   : > { %v1040_v56 = vadd.f32 %v1033_v52, %v1026_v53 }
 0x181   : > { %v1022_v57 = vpop.f32.mrf.mxu0 }
 0x182   : > { %vm1042_vm2 = vcmp.ge.f32.partialorder %v1040_v56, 0.0  ;;  %v1044_v59 = vmul.f32 0.01, %v1040_v56  ;;  %v1027_v60 = vadd.f32 %v1022_v57, %v970_v55 }
 0x183   : > { %v1309_v61 = vpop.f32.mrf.mxu0 }
 0x184   : > { %v1046_v62 = vsel %vm1042_vm2, %v1040_v56, %v1044_v59  ;;  %v1041_v63 = vadd.f32 %v1038_v58, %v1027_v60 }
 0x185   : > { %v1188_v0 = vpack.c.bf16 %v1046_v62, %v1046_v62 }
 0x186   : > { %vm1043_vm4 = vcmp.ge.f32.partialorder %v1041_v63, 0.0  ;;  %v1045_v1 = vmul.f32 0.01, %v1041_v63 }
 0x187   : > { %1057 = vst.msk [vmem:[%s170_s20] sm:$0xf] %vm1056_vm3, %v1188_v0 }
 0x188   : > { %v1047_v2 = vsel %vm1043_vm4, %v1041_v63, %v1045_v1 }
 0x189   : > { %v1189_v3 = vpack.c.bf16 %v1047_v2, %v1047_v2 }
 0x18b   : > { %1058 = vst.msk [vmem:[%s170_s20 + $0x4] sm:$0xf] %vm1056_vm3, %v1189_v3 }
 0x18c PF: > { %s13_s12 = sadd.s32 1, %s1359_s12  }
 0x18d   : > { %p10_p4 = scmp.ge.s32.totalorder %s13_s12, 4  }
 0x18f   :  { %12 = sbr.rel (!%p10_p4) target bundleno = 1 (0x1), region = 76 }

// kernel: run.22
= control target key start
LH: loop header
LB: loop body
LE: loop exit
PB: predicated region body
PF: predicated region fallthrough
CT: control target
= control target key end

     0   :  { %s1316_s15 = smov 0   ;;  %s1477_s0 = inlined_call_operand.vmem [shape: bf16[2,48,8], index: 0, kind: input, shape index: {}]   ;;  %s1478_s1 = inlined_call_operand.vmem [shape: bf16[5,64,48], index: 1, kind: input, shape index: {}]   ;;  %s1479_s2 = inlined_call_operand.vmem [shape: f32[64,1], index: 2, kind: input, shape index: {}]   ;;  %s1480_s3 = inlined_call_operand.vmem [shape: bf16[2,32,4], index: 3, kind: output, shape index: {0}]   ;;  %s1481_s4 = inlined_call_operand.vmem [shape: bf16[2,32,4], index: 4, kind: output, shape index: {1}]  }
   0x1 LB: > { %s1023_s16 = sadd.s32 4294967295, %s1284_s15   ;;  %p1027_p0 = scmp.ge.s32.totalorder %s1284_s15, 1  ;;  %s1284_s15 = sphi %s1316_s15, %s15_s15  }
   0x2   : > { %p165_p1 = scmp.lt.s32.totalorder %s1284_s15, 3 }
   0x4   : > { %p166_p2 = pnand %p1027_p0, %p165_p1 }
   0x5   : > { %p196_p3 = scmp.lt.s32.totalorder (!%p166_p2), %s1023_s16, 1  ;;  %s1286_s25 = smov (!%p166_p2), 127  }
   0x6   : > { %169 = sbr.rel (%p166_p2) target bundleno = 384 (0x180), region = 32  ;;  %s1287_s26 = smov (!%p166_p2), 126  }
   0x7   : > { %s1288_s27 = smov (!%p166_p2), 125   ;;  %s1289_s10 = smov (!%p166_p2), 124  }
   0xb   : > { %vm279_vm0 = vcmask 392192   ;;  %v1258_v0 = vld [vmem:[%s1478_s1] sm:$0xff]   ;;  %s1483_s16 = smov (!%p196_p3, %s1023_s16), 1  ;;  %v1259_v5 = vld [vmem:[%s1478_s1 + $0x8] sm:$0xff]   ;;  %v1262_v6 = vld [vmem:[%s1478_s1 + $0x10] sm:$0xff]   ;;  %v1290_v11 = vmov 0  }
   0xc   : > { %1183 = vmatprep.mubr.msk.bf16.mxu1 %vm279_vm0, %v1258_v0  ;;  %s1239_s19 = smul.u32 24, %s1483_s16  ;;  %v1260_v1 = vld [vmem:[%s1478_s1 + $0x20] sm:$0xff]   ;;  %v1263_v7 = vld [vmem:[%s1478_s1 + $0x18] sm:$0xff]   ;;  %v827_v9 = vld [vmem:[%s1479_s2 + $0x8] sm:$0xff]  ;;  %1254 = vset.pattern.permute.xlu1 %v1290_v11  ;;  %s1118_s7 = sshll.u32 %s1483_s16, 4  ;;  %vm910_vm1 = vcmask 27648  }
   0xd   : > { %1169 = vmatprep.mubr.msk.bf16.mxu0 %vm279_vm0, %v1260_v1  ;;  %v1266_v8 = vld [vmem:[%s1478_s1 + $0x60] sm:$0xff]   ;;  %1253 = vset.pattern.permute.xlu0 %v1290_v11  ;;  %v828_v12 = vld [vmem:[%s1479_s2 + $0x10] sm:$0xff]  ;;  %v829_v13 = vld [vmem:[%s1479_s2 + $0x18] sm:$0xff]  ;;  %s205_s13 = scalar_lea.vmem %s1480_s3, %s1118_s7 }
   0xe   : > { %s200_s24 = scalar_lea.vmem %s1477_s0, %s1239_s19  ;;  %v826_v10 = vld [vmem:[%s1479_s2] sm:$0xff]  ;;  %v831_v15 = vld [vmem:[%s1479_s2 + $0x28] sm:$0xff]  ;;  %v832_v16 = vld [vmem:[%s1479_s2 + $0x30] sm:$0xff] }
   0xf   : > { %v1255_v2 = vld [vmem:[%s200_s24 + $0x10] sm:$0xff]   ;;  %v1256_v3 = vld [vmem:[%s200_s24 + $0x8] sm:$0xff]   ;;  %v1257_v4 = vld [vmem:[%s200_s24] sm:$0xff]  }
  0x10   : > { %274 = vrot.lane.b32.xlu0 %v1255_v2, %s1286_s25  ;;  %1177 = vmatprep.subr.bf16.mxu1 %v1255_v2  ;;  %v830_v14 = vld [vmem:[%s1479_s2 + $0x20] sm:$0xff]  ;;  %v833_v17 = vld [vmem:[%s1479_s2 + $0x38] sm:$0xff]  ;;  %v1261_v23 = vld [vmem:[%s1478_s1 + $0x28] sm:$0xff]  }
  0x11   : > { %1178 = vmatpush3.bf16.msra.mxu1 %v1255_v2  ;;  %270 = vrot.lane.b32.xlu1 %v1257_v4, %s1286_s25  ;;  %v1264_v25 = vld [vmem:[%s1478_s1 + $0x30] sm:$0xff]   ;;  %v1265_v29 = vld [vmem:[%s1478_s1 + $0x38] sm:$0xff]   ;;  %v1267_v30 = vld [vmem:[%s1478_s1 + $0x68] sm:$0xff]  }
  0x12   : > { %1179 = vmatprep.subr.bf16.mxu1 %v1256_v3  ;;  %v1268_v32 = vld [vmem:[%s1478_s1 + $0x40] sm:$0xff]   ;;  %v1270_v33 = vld [vmem:[%s1478_s1 + $0x70] sm:$0xff]   ;;  %v1269_v35 = vld [vmem:[%s1478_s1 + $0x48] sm:$0xff]  }
  0x13   : > { %v1271_v36 = vld [vmem:[%s1478_s1 + $0x78] sm:$0xff]   ;;  %v1272_v38 = vld [vmem:[%s1478_s1 + $0x50] sm:$0xff]   ;;  %v1276_v42 = vld [vmem:[%s1478_s1 + $0x80] sm:$0xff]  }
  0x14   : > { %272 = vrot.lane.b32.xlu0 %v1256_v3, %s1286_s25  ;;  %v1274_v39 = vld [vmem:[%s1478_s1 + $0x90] sm:$0xff]   ;;  %v1273_v40 = vld [vmem:[%s1478_s1 + $0x58] sm:$0xff]   ;;  %v1277_v43 = vld [vmem:[%s1478_s1 + $0x88] sm:$0xff]  }
  0x15   : > { %1180 = vmatpush3.bf16.msra.mxu1 %v1256_v3  ;;  %490 = vrot.lane.b32.xlu1 %v1255_v2, %s1287_s26  ;;  %v1275_v41 = vld [vmem:[%s1478_s1 + $0x98] sm:$0xff]  }
  0x16   : > { %1181 = vmatprep.subr.bf16.mxu1 %v1257_v4 }
  0x18   : > { %613 = vrot.lane.b32.xlu0 %v1255_v2, %s1288_s27 }
  0x19   : > { %1182 = vmatpush3.bf16.msra.mxu1 %v1257_v4  ;;  %488 = vrot.lane.b32.xlu1 %v1256_v3, %s1287_s26 }
  0x1c   : > { %611 = vrot.lane.b32.xlu0 %v1256_v3, %s1288_s27  ;;  %1184 = vmatmul.mubr.msk.bf16.vlgmr.msra.gmra.mxu1 %vm279_vm0, %v1259_v5 }
  0x1d   : > { %1187 = vmatprep.mubr.msk.bf16.mxu1 %vm279_vm0, %v1262_v6  ;;  %486 = vrot.lane.b32.xlu1 %v1257_v4, %s1287_s26 }
  0x20   : > { %609 = vrot.lane.b32.xlu0 %v1257_v4, %s1288_s27 }
  0x21   : > { %736 = vrot.lane.b32.xlu1 %v1255_v2, %s1289_s10 }
  0x24   : > { %734 = vrot.lane.b32.xlu0 %v1256_v3, %s1289_s10  ;;  %1188 = vmatmul.mubr.msk.bf16.gmra.mxu1 %vm279_vm0, %v1263_v7 }
  0x25   : > { %1211 = vmatprep.mubr.msk.bf16.mxu1 %vm279_vm0, %v1266_v8  ;;  %732 = vrot.lane.b32.xlu1 %v1257_v4, %s1289_s10  ;;  %s1450_s10 = scalar_lea.vmem %s1481_s4, %s1118_s7 }
  0x28   : > { %836 = vperm.xlu0 %1253, %v826_v10  }
  0x29   : > { %841 = vperm.xlu1 %1254, %v827_v9  }
  0x2c   : > { %851 = vperm.xlu0 %1253, %v829_v13  }
  0x2d   : > { %846 = vperm.xlu1 %1254, %v828_v12  }
  0x30   : > { %861 = vperm.xlu0 %1253, %v831_v15  }
  0x31   : > { %856 = vperm.xlu1 %1254, %v830_v14  }
  0x34   : > { %871 = vperm.xlu0 %1253, %v833_v17  }
  0x35   : > { %866 = vperm.xlu1 %1254, %v832_v16  }
  0x82   : > { %v275_v18 = vpop.permute.xlu0 %274 }
  0x83   : > { %1163 = vmatprep.subr.bf16.mxu0 %v275_v18  ;;  %v271_v19 = vpop.permute.xlu1 %270 }
  0x84   : > { %1164 = vmatpush3.bf16.msra.mxu0 %v275_v18 }
  0x86   : > { %v273_v20 = vpop.permute.xlu0 %272 }
  0x87   : > { %1165 = vmatprep.subr.bf16.mxu0 %v273_v20  ;;  %v491_v21 = vpop.permute.xlu1 %490 }
  0x88   : > { %1166 = vmatpush3.bf16.msra.mxu0 %v273_v20 }
  0x89   : > { %1167 = vmatprep.subr.bf16.mxu0 %v271_v19 }
  0x8a   : > { %v614_v22 = vpop.permute.xlu0 %613 }
  0x8b   : > { %1205 = vmatprep.subr.bf16.mxu1 %v614_v22  ;;  %v489_v24 = vpop.permute.xlu1 %488 }
  0x8c   : > { %1168 = vmatpush3.bf16.msra.mxu0 %v271_v19  ;;  %1206 = vmatpush3.bf16.msra.mxu1 %v614_v22 }
  0x8d   : > { %1191 = vmatprep.subr.bf16.mxu0 %v491_v21 }
  0x8e   : > { %v612_v26 = vpop.permute.xlu0 %611 }
  0x8f   : > { %1170 = vmatmul.mubr.msk.bf16.vlgmr.msra.gmra.mxu0 %vm279_vm0, %v1261_v23  ;;  %1207 = vmatprep.subr.bf16.mxu1 %v612_v26  ;;  %v487_v27 = vpop.permute.xlu1 %486 }
  0x90   : > { %1192 = vmatpush3.bf16.msra.mxu0 %v491_v21  ;;  %1208 = vmatpush3.bf16.msra.mxu1 %v612_v26 }
  0x91   : > { %1193 = vmatprep.subr.bf16.mxu0 %v489_v24  ;;  %1173 = vmatprep.mubr.msk.bf16.mxu0 %vm279_vm0, %v1264_v25 }
  0x92   : > { %v610_v28 = vpop.permute.xlu0 %609 }
  0x93   : > { %1209 = vmatprep.subr.bf16.mxu1 %v610_v28  ;;  %v737_v31 = vpop.permute.xlu1 %736 }
  0x94   : > { %1194 = vmatpush3.bf16.msra.mxu0 %v489_v24  ;;  %1210 = vmatpush3.bf16.msra.mxu1 %v610_v28 }
  0x95   : > { %1195 = vmatprep.subr.bf16.mxu0 %v487_v27  ;;  %1233 = vmatprep.subr.bf16.mxu1 %v737_v31 }
  0x96   : > { %v735_v34 = vpop.permute.xlu0 %734 }
  0x97   : > { %1174 = vmatmul.mubr.msk.bf16.gmra.mxu0 %vm279_vm0, %v1265_v29  ;;  %1212 = vmatmul.mubr.msk.bf16.vlgmr.msra.gmra.mxu1 %vm279_vm0, %v1267_v30  ;;  %v733_v37 = vpop.permute.xlu1 %732 }
  0x98   : > { %1196 = vmatpush3.bf16.msra.mxu0 %v487_v27  ;;  %1197 = vmatprep.mubr.msk.bf16.mxu0 %vm279_vm0, %v1268_v32 }
  0x99   : > { %1219 = vmatprep.subr.bf16.mxu0 %v737_v31  ;;  %1236 = vmatpush3.bf16.msra.mxu1 %v737_v31 }
  0x9a   : > { %1215 = vmatprep.mubr.msk.bf16.mxu1 %vm279_vm0, %v1270_v33  ;;  %1234 = vmatprep.subr.bf16.mxu1 %v735_v34 }
  0x9d   : > { %1237 = vmatpush3.bf16.msra.mxu1 %v735_v34 }
  0x9e   : > { %1235 = vmatprep.subr.bf16.mxu1 %v733_v37 }
  0x9f   : > { %1198 = vmatmul.mubr.msk.bf16.vlgmr.msra.gmra.mxu0 %vm279_vm0, %v1269_v35  ;;  %1216 = vmatmul.mubr.msk.bf16.gmra.mxu1 %vm279_vm0, %v1271_v36 }
  0xa0   : > { %1220 = vmatpush3.bf16.msra.mxu0 %v737_v31  ;;  %1201 = vmatprep.mubr.msk.bf16.mxu0 %vm279_vm0, %v1272_v38 }
  0xa1   : > { %1221 = vmatprep.subr.bf16.mxu0 %v735_v34  ;;  %1238 = vmatpush3.bf16.msra.mxu1 %v733_v37 }
  0xa2   : > { %1229 = vmatprep.mubr.msk.bf16.mxu1 %vm279_vm0, %v1274_v39 }
  0xa3   : > { %v1440_v1 = vpop.permute.xlu0 %836 }
  0xa4   : > { %1222 = vmatpush3.bf16.msra.mxu0 %v735_v34  ;;  %v1434_v58 = vpop.permute.xlu1 %841 }
  0xa5   : > { %1223 = vmatprep.subr.bf16.mxu0 %v733_v37 }
  0xa7   : > { %1202 = vmatmul.mubr.msk.bf16.gmra.mxu0 %vm279_vm0, %v1273_v40  ;;  %1230 = vmatmul.mubr.msk.bf16.vlgmr.msra.gmra.mxu1 %vm279_vm0, %v1275_v41  ;;  %v1442_v9 = vpop.permute.xlu0 %851 }
  0xa8   : > { %1224 = vmatpush3.bf16.msra.mxu0 %v733_v37  ;;  %1225 = vmatprep.mubr.msk.bf16.mxu0 %vm279_vm0, %v1276_v42  ;;  %v847_v2 = vpop.permute.xlu1 %846 }
  0xab   : > { %v862_v25 = vpop.permute.xlu0 %861 }
  0xac   : > { %v857_v10 = vpop.permute.xlu1 %856 }
  0xaf   : > { %1226 = vmatmul.mubr.msk.bf16.vlgmr.msra.gmra.mxu0 %vm279_vm0, %v1277_v43 }
  0xb0   : > { %v867_v29 = vpop.permute.xlu1 %866 }
  0xdc   : > { %v1185_v44 = vpop.f32.mrf.mxu1 }
  0xde   : > { %v426_v45 = vpop.f32.mrf.mxu1 }
  0xe0   : > { %v1186_v46 = vpop.f32.mrf.mxu1 }
  0xe2   : > { %v429_v47 = vpop.f32.mrf.mxu1 }
  0xe4   : > { %v1189_v48 = vpop.f32.mrf.mxu1 }
  0xe6   : > { %v442_v49 = vpop.f32.mrf.mxu1 }
  0xe8   : > { %v1190_v51 = vpop.f32.mrf.mxu1 }
  0xea   : > { %v445_v54 = vpop.f32.mrf.mxu1 }
 0x14f   : > { %v1171_v50 = vpop.f32.mrf.mxu0 }
 0x150   : > { %v435_v14 = vadd.f32 %v1185_v44, %v1171_v50 }
 0x151   : > { %v326_v52 = vpop.f32.mrf.mxu0 }
 0x152   : > { %v427_v19 = vadd.f32 %v426_v45, %v326_v52  ;;  %v872_v52 = vpop.permute.xlu0 %871 }
 0x153   : > { %v1172_v53 = vpop.f32.mrf.mxu0 }
 0x154   : > { %v438_v35 = vadd.f32 %v1186_v46, %v1172_v53 }
 0x155   : > { %v329_v55 = vpop.f32.mrf.mxu0 }
 0x156   : > { %v430_v36 = vadd.f32 %v429_v47, %v329_v55 }
 0x157   : > { %v1175_v56 = vpop.f32.mrf.mxu0  ;;  %v1213_v57 = vpop.f32.mrf.mxu1 }
 0x158   : > { %v451_v13 = vadd.f32 %v1189_v48, %v1175_v56 }
 0x159   : > { %v342_v59 = vpop.f32.mrf.mxu0  ;;  %v664_v60 = vpop.f32.mrf.mxu1 }
 0x15a   : > { %v443_v17 = vadd.f32 %v442_v49, %v342_v59 }
 0x15b   : > { %v1176_v61 = vpop.f32.mrf.mxu0  ;;  %v1436_v62 = vpop.f32.mrf.mxu1 }
 0x15c   : > { %v454_v23 = vadd.f32 %v1190_v51, %v1176_v61 }
 0x15d   : > { %v345_v63 = vpop.f32.mrf.mxu0  ;;  %v1438_v0 = vpop.f32.mrf.mxu1 }
 0x15e   : > { %v446_v30 = vadd.f32 %v445_v54, %v345_v63 }
 0x15f   : > { %v1199_v3 = vpop.f32.mrf.mxu0  ;;  %v1217_v4 = vpop.f32.mrf.mxu1 }
 0x160   : > { %v574_v20 = vadd.f32 %v1199_v3, %v435_v14 }
 0x161   : > { %v541_v5 = vpop.f32.mrf.mxu0  ;;  %v680_v6 = vpop.f32.mrf.mxu1 }
 0x162   : > { %v572_v27 = vadd.f32 %v541_v5, %v427_v19  ;;  %v697_v38 = vadd.f32 %v1213_v57, %v574_v20 }
 0x163   : > { %v1200_v7 = vpop.f32.mrf.mxu0  ;;  %v1218_v8 = vpop.f32.mrf.mxu1 }
 0x164   : > { %v575_v43 = vadd.f32 %v1200_v7, %v438_v35  ;;  %v695_v48 = vadd.f32 %v664_v60, %v572_v27 }
 0x165   : > { %v544_v11 = vpop.f32.mrf.mxu0  ;;  %v683_v12 = vpop.f32.mrf.mxu1 }
 0x166   : > { %v573_v44 = vadd.f32 %v544_v11, %v430_v36  ;;  %v698_v60 = vadd.f32 %v1436_v62, %v575_v43 }
 0x167   : > { %v1203_v15 = vpop.f32.mrf.mxu0  ;;  %v1231_v16 = vpop.f32.mrf.mxu1 }
 0x168   : > { %v578_v18 = vadd.f32 %v1203_v15, %v451_v13  ;;  %v696_v3 = vadd.f32 %v1438_v0, %v573_v44 }
 0x169   : > { %v557_v21 = vpop.f32.mrf.mxu0  ;;  %v803_v22 = vpop.f32.mrf.mxu1 }
 0x16a   : > { %v576_v24 = vadd.f32 %v557_v21, %v443_v17  ;;  %v701_v26 = vadd.f32 %v1217_v4, %v578_v18 }
 0x16b   : > { %v1204_v28 = vpop.f32.mrf.mxu0  ;;  %v1232_v34 = vpop.f32.mrf.mxu1 }
 0x16c   : > { %v579_v31 = vadd.f32 %v1204_v28, %v454_v23  ;;  %v824_v32 = vadd.f32 %v1231_v16, %v701_v26  ;;  %v699_v33 = vadd.f32 %v680_v6, %v576_v24 }
 0x16d   : > { %v560_v37 = vpop.f32.mrf.mxu0  ;;  %v806_v51 = vpop.f32.mrf.mxu1 }
 0x16e   : > { %v577_v39 = vadd.f32 %v560_v37, %v446_v30  ;;  %v880_v40 = vadd.f32 %v867_v29, %v824_v32  ;;  %v822_v41 = vadd.f32 %v803_v22, %v699_v33  ;;  %v702_v42 = vadd.f32 %v1218_v8, %v579_v31 }
 0x16f   : > { %v1227_v45 = vpop.f32.mrf.mxu0 }
 0x170   : > { %v1126_v46 = vpack.c.bf16 %v880_v40, %v880_v40  ;;  %v878_v47 = vadd.f32 %v857_v10, %v822_v41  ;;  %v820_v49 = vadd.f32 %v1227_v45, %v697_v38  ;;  %v825_v50 = vadd.f32 %v1232_v34, %v702_v42 }
 0x171   : > { %v787_v53 = vpop.f32.mrf.mxu0  ;;  %v700_v54 = vadd.f32 %v683_v12, %v577_v39 }
 0x172   : > { %933 = vst.msk [vmem:[%s1450_s10 + $0x8] sm:$0xf] %vm910_vm1, %v1126_v46  ;;  %v1124_v55 = vpack.c.bf16 %v878_v47, %v878_v47  ;;  %v876_v56 = vadd.f32 %v847_v2, %v820_v49  ;;  %v881_v57 = vadd.f32 %v872_v52, %v825_v50  ;;  %v818_v59 = vadd.f32 %v787_v53, %v695_v48 }
 0x173   : > { %v823_v61 = vadd.f32 %v806_v51, %v700_v54  ;;  %v1228_v63 = vpop.f32.mrf.mxu0 }
 0x174   : > { %931 = vst.msk [vmem:[%s1450_s10] sm:$0xf] %vm910_vm1, %v1124_v55  ;;  %vm884_vm2 = vcmp.ge.f32.partialorder %v876_v56, 0.0  ;;  %v888_v4 = vmul.f32 0.01, %v876_v56  ;;  %v1127_v5 = vpack.c.bf16 %v881_v57, %v881_v57  ;;  %v874_v6 = vadd.f32 %v1440_v1, %v818_v59 }
 0x175   : > { %v879_v7 = vadd.f32 %v862_v25, %v823_v61  ;;  %v821_v8 = vadd.f32 %v1228_v63, %v698_v60  ;;  %v790_v2 = vpop.f32.mrf.mxu0 }
 0x176   : > { %v892_v62 = vsel %vm884_vm2, %v876_v56, %v888_v4  ;;  %934 = vst.msk [vmem:[%s1450_s10 + $0xc] sm:$0xf] %vm910_vm1, %v1127_v5  ;;  %vm882_vm3 = vcmp.ge.f32.partialorder %v874_v6, 0.0  ;;  %v886_v0 = vmul.f32 0.01, %v874_v6  ;;  %v819_v10 = vadd.f32 %v790_v2, %v696_v3 }
 0x177   : > { %v1122_v11 = vpack.c.bf16 %v892_v62, %v892_v62  ;;  %v1125_v12 = vpack.c.bf16 %v879_v7, %v879_v7  ;;  %v877_v13 = vadd.f32 %v1442_v9, %v821_v8 }
 0x178   : > { %v890_v1 = vsel %vm882_vm3, %v874_v6, %v886_v0  ;;  %v875_v14 = vadd.f32 %v1434_v58, %v819_v10 }
 0x179   : > { %913 = vst.msk [vmem:[%s205_s13 + $0x8] sm:$0xf] %vm910_vm1, %v1122_v11  ;;  %v1120_v15 = vpack.c.bf16 %v890_v1, %v890_v1  ;;  %932 = vst.msk [vmem:[%s1450_s10 + $0x4] sm:$0xf] %vm910_vm1, %v1125_v12  ;;  %vm885_vm4 = vcmp.ge.f32.partialorder %v877_v13, 0.0 }
 0x17a   : > { %v889_v16 = vmul.f32 0.01, %v877_v13  ;;  %vm883_vm5 = vcmp.ge.f32.partialorder %v875_v14, 0.0  ;;  %v887_v17 = vmul.f32 0.01, %v875_v14 }
 0x17b   : > { %911 = vst.msk [vmem:[%s205_s13] sm:$0xf] %vm910_vm1, %v1120_v15 }
 0x17c   : > { %v893_v18 = vsel %vm885_vm4, %v877_v13, %v889_v16  ;;  %v891_v20 = vsel %vm883_vm5, %v875_v14, %v887_v17 }
 0x17d   : > { %v1123_v19 = vpack.c.bf16 %v893_v18, %v893_v18  ;;  %v1121_v21 = vpack.c.bf16 %v891_v20, %v891_v20 }
 0x17f   : > { %914 = vst.msk [vmem:[%s205_s13 + $0xc] sm:$0xf] %vm910_vm1, %v1123_v19  ;;  %912 = vst.msk [vmem:[%s205_s13 + $0x4] sm:$0xf] %vm910_vm1, %v1121_v21 }
 0x180 PF: > { %s15_s15 = sadd.s32 1, %s1284_s15  }
 0x181   : > { %p12_p4 = scmp.ge.s32.totalorder %s15_s15, 4  }
 0x183   :  { %14 = sbr.rel (!%p12_p4) target bundleno = 1 (0x1), region = 78 }

// kernel: run.23
= control target key start
LH: loop header
LB: loop body
LE: loop exit
PB: predicated region body
PF: predicated region fallthrough
CT: control target
= control target key end

     0   :  { %s1997_s15 = smov 0   ;;  %s2158_s0 = inlined_call_operand.vmem [shape: bf16[2,32,18], index: 0, kind: input, shape index: {}]   ;;  %s2159_s1 = inlined_call_operand.vmem [shape: bf16[15,32,32], index: 1, kind: input, shape index: {}]   ;;  %s2160_s2 = inlined_call_operand.vmem [shape: f32[32,1], index: 2, kind: input, shape index: {}]   ;;  %s2161_s3 = inlined_call_operand.vmem [shape: bf16[2,32,4], index: 3, kind: input, shape index: {}]   ;;  %s2162_s4 = inlined_call_operand.vmem [shape: bf16[2,32,4], index: 4, kind: output, shape index: {}]  }
   0x1 LB: > { %s1561_s16 = sadd.s32 4294967295, %s1955_s15   ;;  %p1565_p0 = scmp.ge.s32.totalorder %s1955_s15, 1  ;;  %s1955_s15 = sphi %s1997_s15, %s14_s15  }
   0x2   : > { %p172_p1 = scmp.lt.s32.totalorder %s1955_s15, 3 }
   0x4   : > { %p173_p2 = pnand %p1565_p0, %p172_p1 }
   0x5   : > { %p203_p3 = scmp.lt.s32.totalorder (!%p173_p2), %s1561_s16, 1  ;;  %s1957_s25 = smov (!%p173_p2), 127  }
   0x6   : > { %176 = sbr.rel (%p173_p2) target bundleno = 406 (0x196), region = 36  ;;  %s1958_s26 = smov (!%p173_p2), 126  }
   0x7   : > { %s1959_s5 = smov (!%p173_p2), 125   ;;  %s1960_s6 = smov (!%p173_p2), 124  }
   0x8   : > { %s1961_s7 = smov (!%p173_p2), 123   ;;  %s1962_s8 = smov (!%p173_p2), 122  }
   0x9   : > { %s1963_s9 = smov (!%p173_p2), 121   ;;  %s1964_s10 = smov (!%p173_p2), 120  }
   0xa   : > { %s1965_s11 = smov (!%p173_p2), 119   ;;  %s1966_s12 = smov (!%p173_p2), 118  }
   0xb   : > { %v1919_v0 = vld [vmem:[%s2159_s1 + $0x10] sm:$0xff]   ;;  %vm258_vm0 = vcmask 261120   ;;  %s2164_s16 = smov (!%p203_p3, %s1561_s16), 1  ;;  %v1920_v1 = vld [vmem:[%s2159_s1] sm:$0xff]   ;;  %v1922_v4 = vld [vmem:[%s2159_s1 + $0x8] sm:$0xff]   ;;  %s1967_s13 = smov 117  }
   0xc   : > { %1776 = vmatprep.mubr.msk.bf16.mxu0 %vm258_vm0, %v1919_v0  ;;  %s2012_s21 = sshll.u32 %s2164_s16, 4  ;;  %1784 = vmatprep.mubr.msk.bf16.mxu1 %vm258_vm0, %v1920_v1  ;;  %v1925_v5 = vld [vmem:[%s2159_s1 + $0x30] sm:$0xff]   ;;  %s1968_s14 = smov 116   ;;  %v1971_v6 = vmov 0   ;;  %v1422_v7 = vld [vmem:[%s2160_s2 + $0x8] sm:$0xff]  ;;  %v1421_v8 = vld [vmem:[%s2160_s2] sm:$0xff] }
   0xd   : > { %s207_s24 = scalar_lea.vmem %s2158_s0, %s2012_s21  ;;  %s1969_s16 = smov 115   ;;  %1916 = vset.pattern.permute.xlu1 %v1971_v6  ;;  %1915 = vset.pattern.permute.xlu0 %v1971_v6  ;;  %v1423_v9 = vld [vmem:[%s2160_s2 + $0x10] sm:$0xff]  ;;  %v1424_v10 = vld [vmem:[%s2160_s2 + $0x18] sm:$0xff]  ;;  %v1923_v16 = vld [vmem:[%s2159_s1 + $0x20] sm:$0xff]   ;;  %vm1489_vm2 = vcmask 27648  }
   0xe   : > { %v1917_v2 = vld [vmem:[%s207_s24 + $0x8] sm:$0xff]   ;;  %v1918_v3 = vld [vmem:[%s207_s24] sm:$0xff]   ;;  %s1970_s17 = smov 114   ;;  %v1921_v15 = vld [vmem:[%s2159_s1 + $0x18] sm:$0xff]  }
   0xf   : > { %254 = vrot.lane.b32.xlu0 %v1917_v2, %s1957_s25  ;;  %398 = vrot.lane.b32.xlu1 %v1917_v2, %s1958_s26  ;;  %v1924_v21 = vld [vmem:[%s2159_s1 + $0x28] sm:$0xff]   ;;  %v1926_v22 = vld [vmem:[%s2159_s1 + $0x38] sm:$0xff]  }
  0x10   : > { %1780 = vmatprep.subr.bf16.mxu1 %v1917_v2  ;;  %v1927_v25 = vld [vmem:[%s2159_s1 + $0x40] sm:$0xff]   ;;  %v1929_v26 = vld [vmem:[%s2159_s1 + $0x50] sm:$0xff]   ;;  %v1928_v29 = vld [vmem:[%s2159_s1 + $0x48] sm:$0xff]  }
  0x11   : > { %1781 = vmatpush3.bf16.msra.mxu1 %v1917_v2  ;;  %v1930_v30 = vld [vmem:[%s2159_s1 + $0x58] sm:$0xff]   ;;  %v1931_v33 = vld [vmem:[%s2159_s1 + $0x60] sm:$0xff]   ;;  %v1933_v34 = vld [vmem:[%s2159_s1 + $0x70] sm:$0xff]  }
  0x12   : > { %1782 = vmatprep.subr.bf16.mxu1 %v1918_v3  ;;  %v1932_v37 = vld [vmem:[%s2159_s1 + $0x68] sm:$0xff]   ;;  %v1934_v38 = vld [vmem:[%s2159_s1 + $0x78] sm:$0xff]   ;;  %v1935_v41 = vld [vmem:[%s2159_s1 + $0x80] sm:$0xff]  }
  0x13   : > { %252 = vrot.lane.b32.xlu0 %v1918_v3, %s1957_s25  ;;  %396 = vrot.lane.b32.xlu1 %v1918_v3, %s1958_s26  ;;  %v1937_v42 = vld [vmem:[%s2159_s1 + $0x90] sm:$0xff]   ;;  %v1936_v45 = vld [vmem:[%s2159_s1 + $0x88] sm:$0xff]  }
  0x14   : > { %v1938_v46 = vld [vmem:[%s2159_s1 + $0x98] sm:$0xff]   ;;  %v1939_v49 = vld [vmem:[%s2159_s1 + $0xa0] sm:$0xff]   ;;  %v1941_v50 = vld [vmem:[%s2159_s1 + $0xb0] sm:$0xff]  }
  0x15   : > { %1783 = vmatpush3.bf16.msra.mxu1 %v1918_v3  ;;  %v1940_v53 = vld [vmem:[%s2159_s1 + $0xa8] sm:$0xff]   ;;  %v1942_v54 = vld [vmem:[%s2159_s1 + $0xb8] sm:$0xff]   ;;  %v1943_v56 = vld [vmem:[%s2159_s1 + $0xc0] sm:$0xff]  }
  0x16   : > { %v1945_v57 = vld [vmem:[%s2159_s1 + $0xd0] sm:$0xff]   ;;  %v1944_v60 = vld [vmem:[%s2159_s1 + $0xc8] sm:$0xff]   ;;  %v1946_v61 = vld [vmem:[%s2159_s1 + $0xd8] sm:$0xff]  }
  0x17   : > { %478 = vrot.lane.b32.xlu0 %v1917_v2, %s1959_s5  ;;  %558 = vrot.lane.b32.xlu1 %v1917_v2, %s1960_s6  ;;  %v1947_v62 = vld [vmem:[%s2159_s1 + $0xe0] sm:$0xff]   ;;  %v1948_v0 = vld [vmem:[%s2159_s1 + $0xe8] sm:$0xff]  }
  0x18   : > { %1785 = vmatmul.mubr.msk.bf16.vlgmr.msra.gmra.mxu1 %vm258_vm0, %v1922_v4 }
  0x19   : > { %1800 = vmatprep.mubr.msk.bf16.mxu1 %vm258_vm0, %v1925_v5 }
  0x1b   : > { %476 = vrot.lane.b32.xlu0 %v1918_v3, %s1959_s5  ;;  %556 = vrot.lane.b32.xlu1 %v1918_v3, %s1960_s6 }
  0x1f   : > { %638 = vrot.lane.b32.xlu0 %v1917_v2, %s1961_s7  ;;  %718 = vrot.lane.b32.xlu1 %v1917_v2, %s1962_s8 }
  0x23   : > { %636 = vrot.lane.b32.xlu0 %v1918_v3, %s1961_s7  ;;  %716 = vrot.lane.b32.xlu1 %v1918_v3, %s1962_s8  ;;  %s212_s7 = scalar_lea.vmem %s2161_s3, %s2012_s21 }
  0x27   : > { %798 = vrot.lane.b32.xlu0 %v1917_v2, %s1963_s9  ;;  %878 = vrot.lane.b32.xlu1 %v1917_v2, %s1964_s10 }
  0x2b   : > { %796 = vrot.lane.b32.xlu0 %v1918_v3, %s1963_s9  ;;  %876 = vrot.lane.b32.xlu1 %v1918_v3, %s1964_s10  ;;  %s217_s10 = scalar_lea.vmem %s2162_s4, %s2012_s21 }
  0x2f   : > { %958 = vrot.lane.b32.xlu0 %v1917_v2, %s1965_s11  ;;  %1038 = vrot.lane.b32.xlu1 %v1917_v2, %s1966_s12 }
  0x33   : > { %956 = vrot.lane.b32.xlu0 %v1918_v3, %s1965_s11  ;;  %1036 = vrot.lane.b32.xlu1 %v1918_v3, %s1966_s12 }
  0x37   : > { %1118 = vrot.lane.b32.xlu0 %v1917_v2, %s1967_s13  ;;  %1198 = vrot.lane.b32.xlu1 %v1917_v2, %s1968_s14 }
  0x3b   : > { %1116 = vrot.lane.b32.xlu0 %v1918_v3, %s1967_s13  ;;  %1196 = vrot.lane.b32.xlu1 %v1918_v3, %s1968_s14 }
  0x3f   : > { %1278 = vrot.lane.b32.xlu0 %v1917_v2, %s1969_s16  ;;  %1358 = vrot.lane.b32.xlu1 %v1917_v2, %s1970_s17 }
  0x43   : > { %1276 = vrot.lane.b32.xlu0 %v1918_v3, %s1969_s16  ;;  %1356 = vrot.lane.b32.xlu1 %v1918_v3, %s1970_s17 }
  0x47   : > { %1432 = vperm.xlu1 %1916, %v1422_v7   ;;  %1427 = vperm.xlu0 %1915, %v1421_v8  }
  0x4b   : > { %1437 = vperm.xlu1 %1916, %v1423_v9   ;;  %1442 = vperm.xlu0 %1915, %v1424_v10  }
  0x81   : > { %v255_v11 = vpop.permute.xlu0 %254  ;;  %v399_v12 = vpop.permute.xlu1 %398 }
  0x82   : > { %1772 = vmatprep.subr.bf16.mxu0 %v255_v11 }
  0x83   : > { %1773 = vmatpush3.bf16.msra.mxu0 %v255_v11 }
  0x85   : > { %v253_v13 = vpop.permute.xlu0 %252  ;;  %v397_v14 = vpop.permute.xlu1 %396 }
  0x86   : > { %1774 = vmatprep.subr.bf16.mxu0 %v253_v13 }
  0x87   : > { %1775 = vmatpush3.bf16.msra.mxu0 %v253_v13 }
  0x88   : > { %1788 = vmatprep.subr.bf16.mxu0 %v399_v12 }
  0x89   : > { %v479_v17 = vpop.permute.xlu0 %478  ;;  %v559_v18 = vpop.permute.xlu1 %558 }
  0x8a   : > { %1777 = vmatmul.mubr.msk.bf16.vlgmr.msra.gmra.mxu0 %vm258_vm0, %v1921_v15  ;;  %1796 = vmatprep.subr.bf16.mxu1 %v479_v17 }
  0x8b   : > { %1789 = vmatpush3.bf16.msra.mxu0 %v399_v12  ;;  %1797 = vmatpush3.bf16.msra.mxu1 %v479_v17 }
  0x8c   : > { %1790 = vmatprep.subr.bf16.mxu0 %v397_v14  ;;  %1792 = vmatprep.mubr.msk.bf16.mxu0 %vm258_vm0, %v1923_v16 }
  0x8d   : > { %v477_v19 = vpop.permute.xlu0 %476  ;;  %v557_v20 = vpop.permute.xlu1 %556 }
  0x8e   : > { %1798 = vmatprep.subr.bf16.mxu1 %v477_v19 }
  0x8f   : > { %1791 = vmatpush3.bf16.msra.mxu0 %v397_v14  ;;  %1799 = vmatpush3.bf16.msra.mxu1 %v477_v19 }
  0x90   : > { %1804 = vmatprep.subr.bf16.mxu0 %v559_v18 }
  0x91   : > { %v639_v23 = vpop.permute.xlu0 %638  ;;  %v719_v24 = vpop.permute.xlu1 %718 }
  0x92   : > { %1793 = vmatmul.mubr.msk.bf16.vlgmr.msra.gmra.mxu0 %vm258_vm0, %v1924_v21  ;;  %1801 = vmatmul.mubr.msk.bf16.vlgmr.msra.gmra.mxu1 %vm258_vm0, %v1926_v22 }
  0x93   : > { %1805 = vmatpush3.bf16.msra.mxu0 %v559_v18  ;;  %1812 = vmatprep.subr.bf16.mxu1 %v639_v23 }
  0x94   : > { %1813 = vmatpush3.bf16.msra.mxu1 %v639_v23  ;;  %1806 = vmatprep.subr.bf16.mxu0 %v557_v20 }
  0x95   : > { %v637_v27 = vpop.permute.xlu0 %636  ;;  %1808 = vmatprep.mubr.msk.bf16.mxu0 %vm258_vm0, %v1927_v25  ;;  %1816 = vmatprep.mubr.msk.bf16.mxu1 %vm258_vm0, %v1929_v26  ;;  %v717_v28 = vpop.permute.xlu1 %716 }
  0x96   : > { %1814 = vmatprep.subr.bf16.mxu1 %v637_v27 }
  0x97   : > { %1807 = vmatpush3.bf16.msra.mxu0 %v557_v20 }
  0x98   : > { %1815 = vmatpush3.bf16.msra.mxu1 %v637_v27  ;;  %1820 = vmatprep.subr.bf16.mxu0 %v719_v24 }
  0x99   : > { %v799_v31 = vpop.permute.xlu0 %798  ;;  %v879_v32 = vpop.permute.xlu1 %878 }
  0x9a   : > { %1809 = vmatmul.mubr.msk.bf16.vlgmr.msra.gmra.mxu0 %vm258_vm0, %v1928_v29  ;;  %1828 = vmatprep.subr.bf16.mxu1 %v799_v31 }
  0x9b   : > { %1817 = vmatmul.mubr.msk.bf16.vlgmr.msra.gmra.mxu1 %vm258_vm0, %v1930_v30  ;;  %1821 = vmatpush3.bf16.msra.mxu0 %v719_v24 }
  0x9c   : > { %1829 = vmatpush3.bf16.msra.mxu1 %v799_v31  ;;  %1822 = vmatprep.subr.bf16.mxu0 %v717_v28 }
  0x9d   : > { %v797_v35 = vpop.permute.xlu0 %796  ;;  %1824 = vmatprep.mubr.msk.bf16.mxu0 %vm258_vm0, %v1931_v33  ;;  %1832 = vmatprep.mubr.msk.bf16.mxu1 %vm258_vm0, %v1933_v34  ;;  %v877_v36 = vpop.permute.xlu1 %876 }
  0x9e   : > { %1830 = vmatprep.subr.bf16.mxu1 %v797_v35 }
  0x9f   : > { %1823 = vmatpush3.bf16.msra.mxu0 %v717_v28 }
  0xa0   : > { %1831 = vmatpush3.bf16.msra.mxu1 %v797_v35  ;;  %1836 = vmatprep.subr.bf16.mxu0 %v879_v32 }
  0xa1   : > { %v959_v39 = vpop.permute.xlu0 %958  ;;  %v1039_v40 = vpop.permute.xlu1 %1038 }
  0xa2   : > { %1825 = vmatmul.mubr.msk.bf16.vlgmr.msra.gmra.mxu0 %vm258_vm0, %v1932_v37  ;;  %1844 = vmatprep.subr.bf16.mxu1 %v959_v39 }
  0xa3   : > { %1833 = vmatmul.mubr.msk.bf16.vlgmr.msra.gmra.mxu1 %vm258_vm0, %v1934_v38  ;;  %1837 = vmatpush3.bf16.msra.mxu0 %v879_v32 }
  0xa4   : > { %1845 = vmatpush3.bf16.msra.mxu1 %v959_v39  ;;  %1838 = vmatprep.subr.bf16.mxu0 %v877_v36 }
  0xa5   : > { %v957_v43 = vpop.permute.xlu0 %956  ;;  %1840 = vmatprep.mubr.msk.bf16.mxu0 %vm258_vm0, %v1935_v41  ;;  %1848 = vmatprep.mubr.msk.bf16.mxu1 %vm258_vm0, %v1937_v42  ;;  %v1037_v44 = vpop.permute.xlu1 %1036 }
  0xa6   : > { %1846 = vmatprep.subr.bf16.mxu1 %v957_v43 }
  0xa7   : > { %1839 = vmatpush3.bf16.msra.mxu0 %v877_v36 }
  0xa8   : > { %1847 = vmatpush3.bf16.msra.mxu1 %v957_v43  ;;  %1852 = vmatprep.subr.bf16.mxu0 %v1039_v40 }
  0xa9   : > { %v1119_v47 = vpop.permute.xlu0 %1118  ;;  %v1199_v48 = vpop.permute.xlu1 %1198 }
  0xaa   : > { %1841 = vmatmul.mubr.msk.bf16.vlgmr.msra.gmra.mxu0 %vm258_vm0, %v1936_v45  ;;  %1860 = vmatprep.subr.bf16.mxu1 %v1119_v47 }
  0xab   : > { %1849 = vmatmul.mubr.msk.bf16.vlgmr.msra.gmra.mxu1 %vm258_vm0, %v1938_v46  ;;  %1853 = vmatpush3.bf16.msra.mxu0 %v1039_v40 }
  0xac   : > { %1861 = vmatpush3.bf16.msra.mxu1 %v1119_v47  ;;  %1854 = vmatprep.subr.bf16.mxu0 %v1037_v44 }
  0xad   : > { %v1117_v51 = vpop.permute.xlu0 %1116  ;;  %1856 = vmatprep.mubr.msk.bf16.mxu0 %vm258_vm0, %v1939_v49  ;;  %1864 = vmatprep.mubr.msk.bf16.mxu1 %vm258_vm0, %v1941_v50  ;;  %v1197_v52 = vpop.permute.xlu1 %1196 }
  0xae   : > { %1862 = vmatprep.subr.bf16.mxu1 %v1117_v51 }
  0xaf   : > { %1855 = vmatpush3.bf16.msra.mxu0 %v1037_v44 }
  0xb0   : > { %1863 = vmatpush3.bf16.msra.mxu1 %v1117_v51  ;;  %1868 = vmatprep.subr.bf16.mxu0 %v1199_v48 }
  0xb1   : > { %v1279_v55 = vpop.permute.xlu0 %1278  ;;  %v1359_v58 = vpop.permute.xlu1 %1358 }
  0xb2   : > { %1857 = vmatmul.mubr.msk.bf16.vlgmr.msra.gmra.mxu0 %vm258_vm0, %v1940_v53  ;;  %1876 = vmatprep.subr.bf16.mxu1 %v1279_v55 }
  0xb3   : > { %1865 = vmatmul.mubr.msk.bf16.vlgmr.msra.gmra.mxu1 %vm258_vm0, %v1942_v54  ;;  %1869 = vmatpush3.bf16.msra.mxu0 %v1199_v48 }
  0xb4   : > { %1877 = vmatpush3.bf16.msra.mxu1 %v1279_v55  ;;  %1870 = vmatprep.subr.bf16.mxu0 %v1197_v52 }
  0xb5   : > { %v1277_v59 = vpop.permute.xlu0 %1276  ;;  %1872 = vmatprep.mubr.msk.bf16.mxu0 %vm258_vm0, %v1943_v56  ;;  %1880 = vmatprep.mubr.msk.bf16.mxu1 %vm258_vm0, %v1945_v57  ;;  %v1357_v63 = vpop.permute.xlu1 %1356 }
  0xb6   : > { %1878 = vmatprep.subr.bf16.mxu1 %v1277_v59 }
  0xb7   : > { %1871 = vmatpush3.bf16.msra.mxu0 %v1197_v52 }
  0xb8   : > { %1879 = vmatpush3.bf16.msra.mxu1 %v1277_v59  ;;  %1884 = vmatprep.subr.bf16.mxu0 %v1359_v58 }
  0xba   : > { %1873 = vmatmul.mubr.msk.bf16.vlgmr.msra.gmra.mxu0 %vm258_vm0, %v1944_v60 }
  0xbb   : > { %1881 = vmatmul.mubr.msk.bf16.vlgmr.msra.gmra.mxu1 %vm258_vm0, %v1946_v61  ;;  %1885 = vmatpush3.bf16.msra.mxu0 %v1359_v58 }
  0xbc   : > { %1886 = vmatprep.subr.bf16.mxu0 %v1357_v63  ;;  %1888 = vmatprep.mubr.msk.bf16.mxu0 %vm258_vm0, %v1947_v62 }
  0xbf   : > { %1887 = vmatpush3.bf16.msra.mxu0 %v1357_v63 }
  0xc2   : > { %1889 = vmatmul.mubr.msk.bf16.vlgmr.msra.gmra.mxu0 %vm258_vm0, %v1948_v0 }
  0xd8   : > { %v1786_v1 = vpop.f32.mrf.mxu1 }
  0xda   : > { %v366_v2 = vpop.f32.mrf.mxu1 }
  0xdc   : > { %v1787_v4 = vpop.f32.mrf.mxu1 }
  0xde   : > { %v369_v7 = vpop.f32.mrf.mxu1 }
 0x14a   : > { %v1778_v3 = vpop.f32.mrf.mxu0 }
 0x14b   : > { %v375_v20 = vadd.f32 %v1786_v1, %v1778_v3 }
 0x14c   : > { %v299_v5 = vpop.f32.mrf.mxu0 }
 0x14d   : > { %v367_v23 = vadd.f32 %v366_v2, %v299_v5 }
 0x14e   : > { %v1779_v6 = vpop.f32.mrf.mxu0 }
 0x14f   : > { %v378_v27 = vadd.f32 %v1787_v4, %v1779_v6 }
 0x150   : > { %v302_v8 = vpop.f32.mrf.mxu0 }
 0x151   : > { %v370_v34 = vadd.f32 %v369_v7, %v302_v8 }
 0x152   : > { %v1794_v9 = vpop.f32.mrf.mxu0  ;;  %v1802_v10 = vpop.f32.mrf.mxu1 }
 0x153   : > { %v459_v24 = vadd.f32 %v1794_v9, %v375_v20 }
 0x154   : > { %v442_v11 = vpop.f32.mrf.mxu0  ;;  %v522_v12 = vpop.f32.mrf.mxu1 }
 0x155   : > { %v457_v28 = vadd.f32 %v442_v11, %v367_v23  ;;  %v539_v31 = vadd.f32 %v1802_v10, %v459_v24 }
 0x156   : > { %v1795_v13 = vpop.f32.mrf.mxu0  ;;  %v1803_v14 = vpop.f32.mrf.mxu1 }
 0x157   : > { %v460_v32 = vadd.f32 %v1795_v13, %v378_v27  ;;  %v537_v36 = vadd.f32 %v522_v12, %v457_v28  ;;  %v1433_v28 = vpop.permute.xlu1 %1432 }
 0x158   : > { %v445_v15 = vpop.f32.mrf.mxu0  ;;  %v525_v16 = vpop.f32.mrf.mxu1 }
 0x159   : > { %v458_v39 = vadd.f32 %v445_v15, %v370_v34  ;;  %v540_v41 = vadd.f32 %v1803_v14, %v460_v32 }
 0x15a   : > { %v1810_v17 = vpop.f32.mrf.mxu0 }
 0x15b   : > { %v1818_v18 = vpop.f32.mrf.mxu1  ;;  %v619_v37 = vadd.f32 %v1810_v17, %v539_v31  ;;  %v538_v48 = vadd.f32 %v525_v16, %v458_v39 }
 0x15c   : > { %v602_v19 = vpop.f32.mrf.mxu0 }
 0x15d   : > { %v682_v21 = vpop.f32.mrf.mxu1  ;;  %v617_v42 = vadd.f32 %v602_v19, %v537_v36  ;;  %v699_v45 = vadd.f32 %v1818_v18, %v619_v37  ;;  %v1711_v37 = vld [vmem:[%s212_s7 + $0x8] sm:$0xff]  }
 0x15e   : > { %v1811_v22 = vpop.f32.mrf.mxu0 }
 0x15f   : > { %v1819_v25 = vpop.f32.mrf.mxu1  ;;  %v620_v46 = vadd.f32 %v1811_v22, %v540_v41  ;;  %v697_v50 = vadd.f32 %v682_v21, %v617_v42 }
 0x160   : > { %v605_v26 = vpop.f32.mrf.mxu0 }
 0x161   : > { %v685_v29 = vpop.f32.mrf.mxu1  ;;  %v618_v53 = vadd.f32 %v605_v26, %v538_v48  ;;  %v700_v55 = vadd.f32 %v1819_v25, %v620_v46  ;;  %v1709_v48 = vunpack.c.l.bf16 %v1711_v37 }
 0x162   : > { %v1826_v30 = vpop.f32.mrf.mxu0 }
 0x163   : > { %v1834_v33 = vpop.f32.mrf.mxu1  ;;  %v779_v51 = vadd.f32 %v1826_v30, %v699_v45  ;;  %v698_v62 = vadd.f32 %v685_v29, %v618_v53 }
 0x164   : > { %v762_v35 = vpop.f32.mrf.mxu0 }
 0x165   : > { %v842_v38 = vpop.f32.mrf.mxu1  ;;  %v777_v56 = vadd.f32 %v762_v35, %v697_v50  ;;  %v859_v59 = vadd.f32 %v1834_v33, %v779_v51 }
 0x166   : > { %v1827_v40 = vpop.f32.mrf.mxu0 }
 0x167   : > { %v1835_v43 = vpop.f32.mrf.mxu1  ;;  %v780_v60 = vadd.f32 %v1827_v40, %v700_v55  ;;  %v857_v0 = vadd.f32 %v842_v38, %v777_v56  ;;  %v1428_v40 = vpop.permute.xlu0 %1427 }
 0x168   : > { %v765_v44 = vpop.f32.mrf.mxu0 }
 0x169   : > { %v845_v47 = vpop.f32.mrf.mxu1  ;;  %v778_v3 = vadd.f32 %v765_v44, %v698_v62  ;;  %v860_v5 = vadd.f32 %v1835_v43, %v780_v60  ;;  %v1438_v43 = vpop.permute.xlu1 %1437  ;;  %v1704_v44 = vld [vmem:[%s212_s7] sm:$0xff]   ;;  %v1710_v60 = vunpack.c.h.bf16 %v1711_v37 }
 0x16a   : > { %v1842_v49 = vpop.f32.mrf.mxu0 }
 0x16b   : > { %v1850_v52 = vpop.f32.mrf.mxu1  ;;  %v939_v1 = vadd.f32 %v1842_v49, %v859_v59  ;;  %v858_v12 = vadd.f32 %v845_v47, %v778_v3  ;;  %v1443_v62 = vpop.permute.xlu0 %1442 }
 0x16c   : > { %v922_v54 = vpop.f32.mrf.mxu0 }
 0x16d   : > { %v1002_v57 = vpop.f32.mrf.mxu1  ;;  %v937_v6 = vadd.f32 %v922_v54, %v857_v0  ;;  %v1019_v9 = vadd.f32 %v1850_v52, %v939_v1  ;;  %v1705_v54 = vunpack.c.l.bf16 %v1704_v44 }
 0x16e   : > { %v1843_v58 = vpop.f32.mrf.mxu0 }
 0x16f   : > { %v1851_v61 = vpop.f32.mrf.mxu1  ;;  %v940_v10 = vadd.f32 %v1843_v58, %v860_v5  ;;  %v1017_v14 = vadd.f32 %v1002_v57, %v937_v6 }
 0x170   : > { %v925_v63 = vpop.f32.mrf.mxu0 }
 0x171   : > { %v1005_v2 = vpop.f32.mrf.mxu1  ;;  %v938_v17 = vadd.f32 %v925_v63, %v858_v12  ;;  %v1020_v19 = vadd.f32 %v1851_v61, %v940_v10 }
 0x172   : > { %v1858_v4 = vpop.f32.mrf.mxu0 }
 0x173   : > { %v1866_v7 = vpop.f32.mrf.mxu1  ;;  %v1099_v15 = vadd.f32 %v1858_v4, %v1019_v9  ;;  %v1018_v26 = vadd.f32 %v1005_v2, %v938_v17  ;;  %v1706_v4 = vunpack.c.h.bf16 %v1704_v44 }
 0x174   : > { %v1082_v8 = vpop.f32.mrf.mxu0 }
 0x175   : > { %v1162_v11 = vpop.f32.mrf.mxu1  ;;  %v1097_v20 = vadd.f32 %v1082_v8, %v1017_v14  ;;  %v1179_v23 = vadd.f32 %v1866_v7, %v1099_v15 }
 0x176   : > { %v1859_v13 = vpop.f32.mrf.mxu0 }
 0x177   : > { %v1867_v16 = vpop.f32.mrf.mxu1  ;;  %v1100_v24 = vadd.f32 %v1859_v13, %v1020_v19  ;;  %v1177_v29 = vadd.f32 %v1162_v11, %v1097_v20 }
 0x178   : > { %v1085_v18 = vpop.f32.mrf.mxu0 }
 0x179   : > { %v1165_v21 = vpop.f32.mrf.mxu1  ;;  %v1098_v31 = vadd.f32 %v1085_v18, %v1018_v26  ;;  %v1180_v33 = vadd.f32 %v1867_v16, %v1100_v24 }
 0x17a   : > { %v1874_v22 = vpop.f32.mrf.mxu0 }
 0x17b   : > { %v1882_v25 = vpop.f32.mrf.mxu1  ;;  %v1259_v30 = vadd.f32 %v1874_v22, %v1179_v23  ;;  %v1178_v41 = vadd.f32 %v1165_v21, %v1098_v31 }
 0x17c   : > { %v1242_v27 = vpop.f32.mrf.mxu0 }
 0x17d   : > { %v1257_v34 = vadd.f32 %v1242_v27, %v1177_v29  ;;  %v1322_v35 = vpop.f32.mrf.mxu1  ;;  %v1339_v38 = vadd.f32 %v1882_v25, %v1259_v30 }
 0x17e   : > { %v1875_v32 = vpop.f32.mrf.mxu0 }
 0x17f   : > { %v1260_v39 = vadd.f32 %v1875_v32, %v1180_v33  ;;  %v1337_v45 = vadd.f32 %v1322_v35, %v1257_v34  ;;  %v1883_v46 = vpop.f32.mrf.mxu1 }
 0x180   : > { %v1245_v36 = vpop.f32.mrf.mxu0 }
 0x181   : > { %v1258_v49 = vadd.f32 %v1245_v36, %v1178_v41  ;;  %v1340_v51 = vadd.f32 %v1883_v46, %v1260_v39  ;;  %v1325_v56 = vpop.f32.mrf.mxu1 }
 0x182   : > { %v1890_v42 = vpop.f32.mrf.mxu0 }
 0x183   : > { %v1419_v47 = vadd.f32 %v1890_v42, %v1339_v38  ;;  %v1338_v61 = vadd.f32 %v1325_v56, %v1258_v49 }
 0x184   : > { %v1402_v50 = vpop.f32.mrf.mxu0 }
 0x185   : > { %v1447_v52 = vadd.f32 %v1438_v43, %v1419_v47  ;;  %v1417_v53 = vadd.f32 %v1402_v50, %v1337_v45 }
 0x186   : > { %v1891_v55 = vpop.f32.mrf.mxu0 }
 0x187   : > { %v1459_v57 = vadd.f32 %v1709_v48, %v1447_v52  ;;  %v1445_v58 = vadd.f32 %v1428_v40, %v1417_v53  ;;  %v1420_v59 = vadd.f32 %v1891_v55, %v1340_v51 }
 0x188   : > { %v1405_v63 = vpop.f32.mrf.mxu0 }
 0x189   : > { %vm1463_vm1 = vcmp.ge.f32.partialorder %v1459_v57, 0.0  ;;  %v1467_v0 = vmul.f32 0.01, %v1459_v57  ;;  %v1457_v1 = vadd.f32 %v1705_v54, %v1445_v58  ;;  %v1448_v2 = vadd.f32 %v1443_v62, %v1420_v59 }
 0x18a   : > { %v1418_v3 = vadd.f32 %v1405_v63, %v1338_v61 }
 0x18b   : > { %v1471_v5 = vsel %vm1463_vm1, %v1459_v57, %v1467_v0  ;;  %vm1461_vm3 = vcmp.ge.f32.partialorder %v1457_v1, 0.0  ;;  %v1465_v6 = vmul.f32 0.01, %v1457_v1  ;;  %v1460_v7 = vadd.f32 %v1710_v60, %v1448_v2 }
 0x18c   : > { %v1701_v8 = vpack.c.bf16 %v1471_v5, %v1471_v5  ;;  %v1446_v9 = vadd.f32 %v1433_v28, %v1418_v3 }
 0x18d   : > { %v1469_v10 = vsel %vm1461_vm3, %v1457_v1, %v1465_v6  ;;  %vm1464_vm4 = vcmp.ge.f32.partialorder %v1460_v7, 0.0  ;;  %v1468_v11 = vmul.f32 0.01, %v1460_v7 }
 0x18e   : > { %1492 = vst.msk [vmem:[%s217_s10 + $0x8] sm:$0xf] %vm1489_vm2, %v1701_v8  ;;  %v1699_v12 = vpack.c.bf16 %v1469_v10, %v1469_v10  ;;  %v1458_v13 = vadd.f32 %v1706_v4, %v1446_v9 }
 0x18f   : > { %v1472_v14 = vsel %vm1464_vm4, %v1460_v7, %v1468_v11 }
 0x190   : > { %1490 = vst.msk [vmem:[%s217_s10] sm:$0xf] %vm1489_vm2, %v1699_v12  ;;  %v1702_v15 = vpack.c.bf16 %v1472_v14, %v1472_v14  ;;  %vm1462_vm5 = vcmp.ge.f32.partialorder %v1458_v13, 0.0  ;;  %v1466_v16 = vmul.f32 0.01, %v1458_v13 }
 0x192   : > { %1493 = vst.msk [vmem:[%s217_s10 + $0xc] sm:$0xf] %vm1489_vm2, %v1702_v15  ;;  %v1470_v17 = vsel %vm1462_vm5, %v1458_v13, %v1466_v16 }
 0x193   : > { %v1700_v18 = vpack.c.bf16 %v1470_v17, %v1470_v17 }
 0x195   : > { %1491 = vst.msk [vmem:[%s217_s10 + $0x4] sm:$0xf] %vm1489_vm2, %v1700_v18 }
 0x196 PF: > { %s14_s15 = sadd.s32 1, %s1955_s15  }
 0x197   : > { %p11_p4 = scmp.ge.s32.totalorder %s14_s15, 4  }
 0x199   :  { %13 = sbr.rel (!%p11_p4) target bundleno = 1 (0x1), region = 83 }

</bundles_post_ra>
